<compile_context>
chip_gen: v5e
topology: v5e:2x2
jax: 0.10.0
libtpu: 0.0.40
codegen_flags: <defaults>
</compile_context>

<pallas_src>
import functools

import jax
import jax.numpy as jnp
from jax import lax
from jax.experimental import pallas as pl
from jax.experimental.pallas import tpu as pltpu

KSIZE = 7
PAD = 3


def _round_up(x, m):
    return (x + m - 1) // m * m


def _band_matrices(w, W, Wp):
    """(2*KSIZE, Wp, Wp) f32 banded matrices carrying the horizontal taps.

    bands[m*KSIZE + dy][j, x] = w[0, m, dy, j - x + PAD]
        if 0 <= j - x + PAD < KSIZE and j < W (horizontal zero padding),
        else 0,
    so (row_rolled_map @ bands[k])[y, x] accumulates the dx taps of row dy
    with exact zero-padding at the left/right edges.
    """
    w = w.astype(jnp.float32)
    j = jnp.arange(Wp)[:, None]
    xx = jnp.arange(Wp)[None, :]
    d = j - xx + PAD                                     # (Wp, Wp)
    valid = (d >= 0) & (d < KSIZE) & (j < W)
    dc = jnp.clip(d, 0, KSIZE - 1)
    taps = w[0]                                          # (2, KSIZE, KSIZE)
    bands = jnp.where(valid[None, None], taps[:, :, dc], 0.0)   # (2,7,Wp,Wp)
    return bands.reshape(2 * KSIZE, Wp, Wp)


def spatial_attention_kernel(bands_ref, x_ref, o_ref, pad_ref, att_ref, *, H, W):
    # bands_ref : VMEM (2*KSIZE, Wp, Wp) f32   banded horizontal-tap matrices
    # x_ref     : VMEM (1, C, H*W)             one image, flattened spatial
    # o_ref     : VMEM (1, C, H*W)
    # pad_ref   : VMEM (2, Hp, Wp) f32         zero-padded avg/max maps (conv)
    # att_ref   : VMEM (1, HWr) f32            flat attention-map bridge
    _, C, HW = x_ref.shape
    Hp = pad_ref.shape[1]
    Wp = pad_ref.shape[2]

    # ---- Phase 1: channel mean / max over C, lane-dense, chunked ------------
    CH = 8 if C >= 8 else C
    n_full = C // CH
    rem = C - n_full * CH

    def reduce_chunk(i, carry):
        s, m = carry
        c0 = pl.multiple_of(i * CH, CH)
        blk = x_ref[0, pl.ds(c0, CH), :]                       # (CH, HW)
        return s + blk.astype(jnp.float32), jnp.maximum(m, blk)

    s0 = jnp.zeros((CH, HW), jnp.float32)
    m0 = jnp.full((CH, HW), -jnp.inf, dtype=x_ref.dtype)       # max in input dtype
    s, m = lax.fori_loop(0, n_full, reduce_chunk, (s0, m0),
                         unroll=min(4, n_full))
    ssum = jnp.sum(s, axis=0, keepdims=True)                           # (1, HW) f32
    smax = jnp.max(m, axis=0, keepdims=True).astype(jnp.float32)       # (1, HW) f32
    if rem:
        blk = x_ref[0, pl.ds(n_full * CH, rem), :]
        ssum = ssum + jnp.sum(blk.astype(jnp.float32), axis=0, keepdims=True)
        smax = jnp.maximum(
            smax, jnp.max(blk, axis=0, keepdims=True).astype(jnp.float32))
    avg = ssum * (1.0 / C)

    # ---- Phase 2: stage zero-padded (Hp, Wp) maps for the conv --------------
    # Full zero each step (megacore-safe, NaN-safe), then write the H data
    # rows (flat -> 2D relayout via W-wide row stores into the scratch).
    pad_ref[...] = jnp.zeros_like(pad_ref)
    for y in range(H):
        pad_ref[0, y:y + 1, :W] = avg[:, y * W:(y + 1) * W]
        pad_ref[1, y:y + 1, :W] = smax[:, y * W:(y + 1) * W]

    # ---- Phase 3: 7x7 conv = 12 sublane rolls + 14 banded MXU matmuls -------
    acc = jnp.zeros((Hp, Wp), jnp.float32)
    for mi in range(2):
        mp = pad_ref[mi]                                       # (Hp, Wp) f32
        for dy in range(KSIZE):
            sr = (PAD - dy) % Hp
            r = mp if sr == 0 else pltpu.roll(mp, sr, 0)
            acc = acc + jnp.dot(r, bands_ref[mi * KSIZE + dy],
                                preferred_element_type=jnp.float32,
                                precision=lax.Precision.HIGHEST)
    att2d = jax.nn.sigmoid(acc)                                # (Hp, Wp) f32

    # ---- Phase 3b: relayout att (H, W) -> flat (1, H*W) once per image ------
    for y in range(H):
        att_ref[0:1, y * W:(y + 1) * W] = att2d[y:y + 1, :W]

    # ---- Phase 4: out = att * x, lane-dense, chunked over C -----------------
    att = att_ref[0:1, :HW].astype(o_ref.dtype)                # (1, HW)
    att_b = jnp.broadcast_to(att, (CH, HW))                    # hoisted broadcast

    def mul_chunk(i, carry):
        c0 = pl.multiple_of(i * CH, CH)
        o_ref[0, pl.ds(c0, CH), :] = x_ref[0, pl.ds(c0, CH), :] * att_b
        return carry

    lax.fori_loop(0, n_full, mul_chunk, 0, unroll=min(4, n_full))
    if rem:
        c0 = n_full * CH
        o_ref[0, pl.ds(c0, rem), :] = x_ref[0, pl.ds(c0, rem), :] * att_b[:rem]


def spatial_attention(x, w):
    """x: (N, C, H, W) float; w: (1, 2, 7, 7) conv weight (OIHW, no bias)."""
    N, C, H, W = x.shape
    HW = H * W
    Hp = _round_up(H + PAD, 8)       # >= H+3 zero rows for the vertical taps
    Wp = _round_up(W, 128)           # lane-padded conv width
    HWr = _round_up(HW, 128)

    x_flat = x.reshape(N, C, HW)                 # free: NCHW is contiguous
    bands = _band_matrices(w, W, Wp)             # (14, Wp, Wp) f32

    block_bytes = C * HW * x.dtype.itemsize
    vmem_est = (4 * block_bytes                  # in + out blocks, 2x buffered
                + 2 * bands.nbytes               # resident banded weights
                + (2 * Hp * Wp + HWr) * 4)       # scratch
    vmem_limit = int(min(max(vmem_est + (8 << 20), 32 << 20), 112 << 20))
    # TODO(synk): on v7x (64 MiB VMEM/TC) shapes needing > ~48 MiB should get a
    #   spatial grid axis (halo'd conv) instead of a larger limit.

    grid_spec = pltpu.PrefetchScalarGridSpec(
        num_scalar_prefetch=0,
        grid=(N,),
        in_specs=[
            pl.BlockSpec((2 * KSIZE, Wp, Wp), lambda b: (0, 0, 0)),   # bands
            pl.BlockSpec((1, C, HW), lambda b: (b, 0, 0)),            # x
        ],
        out_specs=pl.BlockSpec((1, C, HW), lambda b: (b, 0, 0)),
        scratch_shapes=[
            pltpu.VMEM((2, Hp, Wp), jnp.float32),   # zero-padded avg/max maps
            pltpu.VMEM((1, HWr), jnp.float32),      # flat attention-map bridge
        ],
    )

    out_flat = pl.pallas_call(
        functools.partial(spatial_attention_kernel, H=H, W=W),
        out_shape=jax.ShapeDtypeStruct((N, C, HW), x.dtype),
        grid_spec=grid_spec,
        compiler_params=pltpu.CompilerParams(
            dimension_semantics=("parallel",),
            vmem_limit_bytes=vmem_limit,
        ),
    )(bands, x_flat)
    return out_flat.reshape(N, C, H, W)


def spatial_attention_reference(x, w):
    avg = jnp.mean(x, axis=1, keepdims=True)
    mx = jnp.max(x, axis=1, keepdims=True)
    cat = jnp.concatenate([avg, mx], axis=1)
    conv = lax.conv_general_dilated(
        cat, w.astype(jnp.float32),
        window_strides=(1, 1),
        padding=((PAD, PAD), (PAD, PAD)),
        dimension_numbers=("NCHW", "OIHW", "NCHW"),
        precision=lax.Precision.HIGHEST,
    )
    return jax.nn.sigmoid(conv) * x


if __name__ == "__main__":
    key = jax.random.PRNGKey(0)
    kx, kw = jax.random.split(key)

    N, C, H, W = 2, 4, 16, 16
    x = jax.random.normal(kx, (N, C, H, W), dtype=jnp.float32)

    # Deterministic conv weight (kaiming-uniform-like, fan_in = 2*7*7).
    fan_in = 2 * KSIZE * KSIZE
    bound = 1.0 / float(fan_in) ** 0.5
    w = jax.random.uniform(kw, (1, 2, KSIZE, KSIZE), dtype=jnp.float32,
                           minval=-bound, maxval=bound)

    out = spatial_attention(x, w)
    out = jax.block_until_ready(out)

    ref = spatial_attention_reference(x, w)
    assert out.shape == (N, C, H, W)
    err = float(jnp.max(jnp.abs(out - ref)))
    assert jnp.allclose(out, ref, atol=5e-4, rtol=5e-4), f"max abs err = {err}"

    print("KERNEL_OK")
</pallas_src>

<mosaic_0001>
module attributes {stable_mosaic.version = 11 : i64} {
  func.func @spatial_attention_kernel(%arg0: i32, %arg1: memref<14x128x128xf32, #tpu.memory_space<vmem>>, %arg2: memref<1x4x256xf32, #tpu.memory_space<vmem>>, %arg3: memref<1x4x256xf32, #tpu.memory_space<vmem>>, %arg4: memref<2x24x128xf32, #tpu.memory_space<vmem>>, %arg5: memref<1x256xf32, #tpu.memory_space<vmem>>) attributes {dimension_semantics = [#tpu.dimension_semantics<parallel>], iteration_bounds = array<i64: 2>, scalar_prefetch = 0 : i64, scratch_operands = 2 : i64, tpu.core_type = #tpu.core_type<tc>, window_params = [{pipeline_mode = #tpu.pipeline_mode<synchronous>, transform_indices = @transform_0, window_bounds = array<i64: 14, 128, 128>}, {transform_indices = @transform_1, window_bounds = array<i64: 1, 4, 256>}, {transform_indices = @transform_2, window_bounds = array<i64: 1, 4, 256>}]} {
    %cst = arith.constant 0.000000e+00 : f32
    %0 = vector.broadcast %cst : f32 to vector<4x256xf32>
    %cst_0 = arith.constant 0xFF800000 : f32
    %1 = vector.broadcast %cst_0 : f32 to vector<4x256xf32>
    %c0_i32 = arith.constant 0 : i32
    %c4_i32 = arith.constant 4 : i32
    %2 = arith.muli %c0_i32, %c4_i32 : i32
    %3 = tpu.assume_multiple %2, 4 : i32
    %c0 = arith.constant 0 : index
    %4 = arith.index_cast %3 : i32 to index
    %c0_1 = arith.constant 0 : index
    %5 = vector.load %arg2[%c0, %4, %c0_1] : memref<1x4x256xf32, #tpu.memory_space<vmem>>, vector<1x4x256xf32>
    %6 = vector.shape_cast %5 : vector<1x4x256xf32> to vector<4x256xf32>
    %7 = arith.addf %0, %6 : vector<4x256xf32>
    %8 = arith.maximumf %1, %6 : vector<4x256xf32>
    %c1_i32 = arith.constant 1 : i32
    %cst_2 = arith.constant dense<0.000000e+00> : vector<256xf32>
    %9 = vector.multi_reduction <add>, %7, %cst_2 [0] : vector<4x256xf32> to vector<256xf32>
    %10 = vector.shape_cast %9 : vector<256xf32> to vector<1x256xf32>
    %cst_3 = arith.constant dense<0xFF800000> : vector<256xf32>
    %11 = vector.multi_reduction <maximumf>, %8, %cst_3 [0] : vector<4x256xf32> to vector<256xf32>
    %12 = vector.shape_cast %11 : vector<256xf32> to vector<1x256xf32>
    %cst_4 = arith.constant 2.500000e-01 : f32
    %13 = vector.broadcast %cst_4 : f32 to vector<1x256xf32>
    %14 = arith.mulf %10, %13 : vector<1x256xf32>
    %cst_5 = arith.constant 0.000000e+00 : f32
    %15 = vector.broadcast %cst_5 : f32 to vector<2x24x128xf32>
    %c0_6 = arith.constant 0 : index
    %c0_7 = arith.constant 0 : index
    %c0_8 = arith.constant 0 : index
    %16 = vector.load %arg4[%c0_6, %c0_7, %c0_8] : memref<2x24x128xf32, #tpu.memory_space<vmem>>, vector<2x24x128xf32>
    tpu.vector_store %arg4[%c0_6, %c0_7, %c0_8], %15 {strides = array<i32>} : memref<2x24x128xf32, #tpu.memory_space<vmem>>, vector<2x24x128xf32>,
    %17 = vector.extract_strided_slice %14 {offsets = [0, 0], sizes = [1, 16], strides = [1, 1]} : vector<1x256xf32> to vector<1x16xf32>
    %c0_9 = arith.constant 0 : index
    %c0_10 = arith.constant 0 : index
    %c0_11 = arith.constant 0 : index
    %18 = vector.load %arg4[%c0_9, %c0_10, %c0_11] : memref<2x24x128xf32, #tpu.memory_space<vmem>>, vector<1x1x16xf32>
    %19 = vector.shape_cast %18 : vector<1x1x16xf32> to vector<1x16xf32>
    %20 = vector.shape_cast %17 : vector<1x16xf32> to vector<1x1x16xf32>
    tpu.vector_store %arg4[%c0_9, %c0_10, %c0_11], %20 {strides = array<i32>} : memref<2x24x128xf32, #tpu.memory_space<vmem>>, vector<1x1x16xf32>,
    %21 = vector.extract_strided_slice %12 {offsets = [0, 0], sizes = [1, 16], strides = [1, 1]} : vector<1x256xf32> to vector<1x16xf32>
    %c1 = arith.constant 1 : index
    %c0_12 = arith.constant 0 : index
    %c0_13 = arith.constant 0 : index
    %22 = vector.load %arg4[%c1, %c0_12, %c0_13] : memref<2x24x128xf32, #tpu.memory_space<vmem>>, vector<1x1x16xf32>
    %23 = vector.shape_cast %22 : vector<1x1x16xf32> to vector<1x16xf32>
    %24 = vector.shape_cast %21 : vector<1x16xf32> to vector<1x1x16xf32>
    tpu.vector_store %arg4[%c1, %c0_12, %c0_13], %24 {strides = array<i32>} : memref<2x24x128xf32, #tpu.memory_space<vmem>>, vector<1x1x16xf32>,
    %25 = vector.extract_strided_slice %14 {offsets = [0, 16], sizes = [1, 16], strides = [1, 1]} : vector<1x256xf32> to vector<1x16xf32>
    %c0_14 = arith.constant 0 : index
    %c1_15 = arith.constant 1 : index
    %c0_16 = arith.constant 0 : index
    %26 = vector.load %arg4[%c0_14, %c1_15, %c0_16] : memref<2x24x128xf32, #tpu.memory_space<vmem>>, vector<1x1x16xf32>
    %27 = vector.shape_cast %26 : vector<1x1x16xf32> to vector<1x16xf32>
    %28 = vector.shape_cast %25 : vector<1x16xf32> to vector<1x1x16xf32>
    tpu.vector_store %arg4[%c0_14, %c1_15, %c0_16], %28 {strides = array<i32>} : memref<2x24x128xf32, #tpu.memory_space<vmem>>, vector<1x1x16xf32>,
    %29 = vector.extract_strided_slice %12 {offsets = [0, 16], sizes = [1, 16], strides = [1, 1]} : vector<1x256xf32> to vector<1x16xf32>
    %c1_17 = arith.constant 1 : index
    %c1_18 = arith.constant 1 : index
    %c0_19 = arith.constant 0 : index
    %30 = vector.load %arg4[%c1_17, %c1_18, %c0_19] : memref<2x24x128xf32, #tpu.memory_space<vmem>>, vector<1x1x16xf32>
    %31 = vector.shape_cast %30 : vector<1x1x16xf32> to vector<1x16xf32>
    %32 = vector.shape_cast %29 : vector<1x16xf32> to vector<1x1x16xf32>
    tpu.vector_store %arg4[%c1_17, %c1_18, %c0_19], %32 {strides = array<i32>} : memref<2x24x128xf32, #tpu.memory_space<vmem>>, vector<1x1x16xf32>,
    %33 = vector.extract_strided_slice %14 {offsets = [0, 32], sizes = [1, 16], strides = [1, 1]} : vector<1x256xf32> to vector<1x16xf32>
    %c0_20 = arith.constant 0 : index
    %c2 = arith.constant 2 : index
    %c0_21 = arith.constant 0 : index
    %34 = vector.load %arg4[%c0_20, %c2, %c0_21] : memref<2x24x128xf32, #tpu.memory_space<vmem>>, vector<1x1x16xf32>
    %35 = vector.shape_cast %34 : vector<1x1x16xf32> to vector<1x16xf32>
    %36 = vector.shape_cast %33 : vector<1x16xf32> to vector<1x1x16xf32>
    tpu.vector_store %arg4[%c0_20, %c2, %c0_21], %36 {strides = array<i32>} : memref<2x24x128xf32, #tpu.memory_space<vmem>>, vector<1x1x16xf32>,
    %37 = vector.extract_strided_slice %12 {offsets = [0, 32], sizes = [1, 16], strides = [1, 1]} : vector<1x256xf32> to vector<1x16xf32>
    %c1_22 = arith.constant 1 : index
    %c2_23 = arith.constant 2 : index
    %c0_24 = arith.constant 0 : index
    %38 = vector.load %arg4[%c1_22, %c2_23, %c0_24] : memref<2x24x128xf32, #tpu.memory_space<vmem>>, vector<1x1x16xf32>
    %39 = vector.shape_cast %38 : vector<1x1x16xf32> to vector<1x16xf32>
    %40 = vector.shape_cast %37 : vector<1x16xf32> to vector<1x1x16xf32>
    tpu.vector_store %arg4[%c1_22, %c2_23, %c0_24], %40 {strides = array<i32>} : memref<2x24x128xf32, #tpu.memory_space<vmem>>, vector<1x1x16xf32>,
    %41 = vector.extract_strided_slice %14 {offsets = [0, 48], sizes = [1, 16], strides = [1, 1]} : vector<1x256xf32> to vector<1x16xf32>
    %c0_25 = arith.constant 0 : index
    %c3 = arith.constant 3 : index
    %c0_26 = arith.constant 0 : index
    %42 = vector.load %arg4[%c0_25, %c3, %c0_26] : memref<2x24x128xf32, #tpu.memory_space<vmem>>, vector<1x1x16xf32>
    %43 = vector.shape_cast %42 : vector<1x1x16xf32> to vector<1x16xf32>
    %44 = vector.shape_cast %41 : vector<1x16xf32> to vector<1x1x16xf32>
    tpu.vector_store %arg4[%c0_25, %c3, %c0_26], %44 {strides = array<i32>} : memref<2x24x128xf32, #tpu.memory_space<vmem>>, vector<1x1x16xf32>,
    %45 = vector.extract_strided_slice %12 {offsets = [0, 48], sizes = [1, 16], strides = [1, 1]} : vector<1x256xf32> to vector<1x16xf32>
    %c1_27 = arith.constant 1 : index
    %c3_28 = arith.constant 3 : index
    %c0_29 = arith.constant 0 : index
    %46 = vector.load %arg4[%c1_27, %c3_28, %c0_29] : memref<2x24x128xf32, #tpu.memory_space<vmem>>, vector<1x1x16xf32>
    %47 = vector.shape_cast %46 : vector<1x1x16xf32> to vector<1x16xf32>
    %48 = vector.shape_cast %45 : vector<1x16xf32> to vector<1x1x16xf32>
    tpu.vector_store %arg4[%c1_27, %c3_28, %c0_29], %48 {strides = array<i32>} : memref<2x24x128xf32, #tpu.memory_space<vmem>>, vector<1x1x16xf32>,
    %49 = vector.extract_strided_slice %14 {offsets = [0, 64], sizes = [1, 16], strides = [1, 1]} : vector<1x256xf32> to vector<1x16xf32>
    %c0_30 = arith.constant 0 : index
    %c4 = arith.constant 4 : index
    %c0_31 = arith.constant 0 : index
    %50 = vector.load %arg4[%c0_30, %c4, %c0_31] : memref<2x24x128xf32, #tpu.memory_space<vmem>>, vector<1x1x16xf32>
    %51 = vector.shape_cast %50 : vector<1x1x16xf32> to vector<1x16xf32>
    %52 = vector.shape_cast %49 : vector<1x16xf32> to vector<1x1x16xf32>
    tpu.vector_store %arg4[%c0_30, %c4, %c0_31], %52 {strides = array<i32>} : memref<2x24x128xf32, #tpu.memory_space<vmem>>, vector<1x1x16xf32>,
    %53 = vector.extract_strided_slice %12 {offsets = [0, 64], sizes = [1, 16], strides = [1, 1]} : vector<1x256xf32> to vector<1x16xf32>
    %c1_32 = arith.constant 1 : index
    %c4_33 = arith.constant 4 : index
    %c0_34 = arith.constant 0 : index
    %54 = vector.load %arg4[%c1_32, %c4_33, %c0_34] : memref<2x24x128xf32, #tpu.memory_space<vmem>>, vector<1x1x16xf32>
    %55 = vector.shape_cast %54 : vector<1x1x16xf32> to vector<1x16xf32>
    %56 = vector.shape_cast %53 : vector<1x16xf32> to vector<1x1x16xf32>
    tpu.vector_store %arg4[%c1_32, %c4_33, %c0_34], %56 {strides = array<i32>} : memref<2x24x128xf32, #tpu.memory_space<vmem>>, vector<1x1x16xf32>,
    %57 = vector.extract_strided_slice %14 {offsets = [0, 80], sizes = [1, 16], strides = [1, 1]} : vector<1x256xf32> to vector<1x16xf32>
    %c0_35 = arith.constant 0 : index
    %c5 = arith.constant 5 : index
    %c0_36 = arith.constant 0 : index
    %58 = vector.load %arg4[%c0_35, %c5, %c0_36] : memref<2x24x128xf32, #tpu.memory_space<vmem>>, vector<1x1x16xf32>
    %59 = vector.shape_cast %58 : vector<1x1x16xf32> to vector<1x16xf32>
    %60 = vector.shape_cast %57 : vector<1x16xf32> to vector<1x1x16xf32>
    tpu.vector_store %arg4[%c0_35, %c5, %c0_36], %60 {strides = array<i32>} : memref<2x24x128xf32, #tpu.memory_space<vmem>>, vector<1x1x16xf32>,
    %61 = vector.extract_strided_slice %12 {offsets = [0, 80], sizes = [1, 16], strides = [1, 1]} : vector<1x256xf32> to vector<1x16xf32>
    %c1_37 = arith.constant 1 : index
    %c5_38 = arith.constant 5 : index
    %c0_39 = arith.constant 0 : index
    %62 = vector.load %arg4[%c1_37, %c5_38, %c0_39] : memref<2x24x128xf32, #tpu.memory_space<vmem>>, vector<1x1x16xf32>
    %63 = vector.shape_cast %62 : vector<1x1x16xf32> to vector<1x16xf32>
    %64 = vector.shape_cast %61 : vector<1x16xf32> to vector<1x1x16xf32>
    tpu.vector_store %arg4[%c1_37, %c5_38, %c0_39], %64 {strides = array<i32>} : memref<2x24x128xf32, #tpu.memory_space<vmem>>, vector<1x1x16xf32>,
    %65 = vector.extract_strided_slice %14 {offsets = [0, 96], sizes = [1, 16], strides = [1, 1]} : vector<1x256xf32> to vector<1x16xf32>
    %c0_40 = arith.constant 0 : index
    %c6 = arith.constant 6 : index
    %c0_41 = arith.constant 0 : index
    %66 = vector.load %arg4[%c0_40, %c6, %c0_41] : memref<2x24x128xf32, #tpu.memory_space<vmem>>, vector<1x1x16xf32>
    %67 = vector.shape_cast %66 : vector<1x1x16xf32> to vector<1x16xf32>
    %68 = vector.shape_cast %65 : vector<1x16xf32> to vector<1x1x16xf32>
    tpu.vector_store %arg4[%c0_40, %c6, %c0_41], %68 {strides = array<i32>} : memref<2x24x128xf32, #tpu.memory_space<vmem>>, vector<1x1x16xf32>,
    %69 = vector.extract_strided_slice %12 {offsets = [0, 96], sizes = [1, 16], strides = [1, 1]} : vector<1x256xf32> to vector<1x16xf32>
    %c1_42 = arith.constant 1 : index
    %c6_43 = arith.constant 6 : index
    %c0_44 = arith.constant 0 : index
    %70 = vector.load %arg4[%c1_42, %c6_43, %c0_44] : memref<2x24x128xf32, #tpu.memory_space<vmem>>, vector<1x1x16xf32>
    %71 = vector.shape_cast %70 : vector<1x1x16xf32> to vector<1x16xf32>
    %72 = vector.shape_cast %69 : vector<1x16xf32> to vector<1x1x16xf32>
    tpu.vector_store %arg4[%c1_42, %c6_43, %c0_44], %72 {strides = array<i32>} : memref<2x24x128xf32, #tpu.memory_space<vmem>>, vector<1x1x16xf32>,
    %73 = vector.extract_strided_slice %14 {offsets = [0, 112], sizes = [1, 16], strides = [1, 1]} : vector<1x256xf32> to vector<1x16xf32>
    %c0_45 = arith.constant 0 : index
    %c7 = arith.constant 7 : index
    %c0_46 = arith.constant 0 : index
    %74 = vector.load %arg4[%c0_45, %c7, %c0_46] : memref<2x24x128xf32, #tpu.memory_space<vmem>>, vector<1x1x16xf32>
    %75 = vector.shape_cast %74 : vector<1x1x16xf32> to vector<1x16xf32>
    %76 = vector.shape_cast %73 : vector<1x16xf32> to vector<1x1x16xf32>
    tpu.vector_store %arg4[%c0_45, %c7, %c0_46], %76 {strides = array<i32>} : memref<2x24x128xf32, #tpu.memory_space<vmem>>, vector<1x1x16xf32>,
    %77 = vector.extract_strided_slice %12 {offsets = [0, 112], sizes = [1, 16], strides = [1, 1]} : vector<1x256xf32> to vector<1x16xf32>
    %c1_47 = arith.constant 1 : index
    %c7_48 = arith.constant 7 : index
    %c0_49 = arith.constant 0 : index
    %78 = vector.load %arg4[%c1_47, %c7_48, %c0_49] : memref<2x24x128xf32, #tpu.memory_space<vmem>>, vector<1x1x16xf32>
    %79 = vector.shape_cast %78 : vector<1x1x16xf32> to vector<1x16xf32>
    %80 = vector.shape_cast %77 : vector<1x16xf32> to vector<1x1x16xf32>
    tpu.vector_store %arg4[%c1_47, %c7_48, %c0_49], %80 {strides = array<i32>} : memref<2x24x128xf32, #tpu.memory_space<vmem>>, vector<1x1x16xf32>,
    %81 = vector.extract_strided_slice %14 {offsets = [0, 128], sizes = [1, 16], strides = [1, 1]} : vector<1x256xf32> to vector<1x16xf32>
    %c0_50 = arith.constant 0 : index
    %c8 = arith.constant 8 : index
    %c0_51 = arith.constant 0 : index
    %82 = vector.load %arg4[%c0_50, %c8, %c0_51] : memref<2x24x128xf32, #tpu.memory_space<vmem>>, vector<1x1x16xf32>
    %83 = vector.shape_cast %82 : vector<1x1x16xf32> to vector<1x16xf32>
    %84 = vector.shape_cast %81 : vector<1x16xf32> to vector<1x1x16xf32>
    tpu.vector_store %arg4[%c0_50, %c8, %c0_51], %84 {strides = array<i32>} : memref<2x24x128xf32, #tpu.memory_space<vmem>>, vector<1x1x16xf32>,
    %85 = vector.extract_strided_slice %12 {offsets = [0, 128], sizes = [1, 16], strides = [1, 1]} : vector<1x256xf32> to vector<1x16xf32>
    %c1_52 = arith.constant 1 : index
    %c8_53 = arith.constant 8 : index
    %c0_54 = arith.constant 0 : index
    %86 = vector.load %arg4[%c1_52, %c8_53, %c0_54] : memref<2x24x128xf32, #tpu.memory_space<vmem>>, vector<1x1x16xf32>
    %87 = vector.shape_cast %86 : vector<1x1x16xf32> to vector<1x16xf32>
    %88 = vector.shape_cast %85 : vector<1x16xf32> to vector<1x1x16xf32>
    tpu.vector_store %arg4[%c1_52, %c8_53, %c0_54], %88 {strides = array<i32>} : memref<2x24x128xf32, #tpu.memory_space<vmem>>, vector<1x1x16xf32>,
    %89 = vector.extract_strided_slice %14 {offsets = [0, 144], sizes = [1, 16], strides = [1, 1]} : vector<1x256xf32> to vector<1x16xf32>
    %c0_55 = arith.constant 0 : index
    %c9 = arith.constant 9 : index
    %c0_56 = arith.constant 0 : index
    %90 = vector.load %arg4[%c0_55, %c9, %c0_56] : memref<2x24x128xf32, #tpu.memory_space<vmem>>, vector<1x1x16xf32>
    %91 = vector.shape_cast %90 : vector<1x1x16xf32> to vector<1x16xf32>
    %92 = vector.shape_cast %89 : vector<1x16xf32> to vector<1x1x16xf32>
    tpu.vector_store %arg4[%c0_55, %c9, %c0_56], %92 {strides = array<i32>} : memref<2x24x128xf32, #tpu.memory_space<vmem>>, vector<1x1x16xf32>,
    %93 = vector.extract_strided_slice %12 {offsets = [0, 144], sizes = [1, 16], strides = [1, 1]} : vector<1x256xf32> to vector<1x16xf32>
    %c1_57 = arith.constant 1 : index
    %c9_58 = arith.constant 9 : index
    %c0_59 = arith.constant 0 : index
    %94 = vector.load %arg4[%c1_57, %c9_58, %c0_59] : memref<2x24x128xf32, #tpu.memory_space<vmem>>, vector<1x1x16xf32>
    %95 = vector.shape_cast %94 : vector<1x1x16xf32> to vector<1x16xf32>
    %96 = vector.shape_cast %93 : vector<1x16xf32> to vector<1x1x16xf32>
    tpu.vector_store %arg4[%c1_57, %c9_58, %c0_59], %96 {strides = array<i32>} : memref<2x24x128xf32, #tpu.memory_space<vmem>>, vector<1x1x16xf32>,
    %97 = vector.extract_strided_slice %14 {offsets = [0, 160], sizes = [1, 16], strides = [1, 1]} : vector<1x256xf32> to vector<1x16xf32>
    %c0_60 = arith.constant 0 : index
    %c10 = arith.constant 10 : index
    %c0_61 = arith.constant 0 : index
    %98 = vector.load %arg4[%c0_60, %c10, %c0_61] : memref<2x24x128xf32, #tpu.memory_space<vmem>>, vector<1x1x16xf32>
    %99 = vector.shape_cast %98 : vector<1x1x16xf32> to vector<1x16xf32>
    %100 = vector.shape_cast %97 : vector<1x16xf32> to vector<1x1x16xf32>
    tpu.vector_store %arg4[%c0_60, %c10, %c0_61], %100 {strides = array<i32>} : memref<2x24x128xf32, #tpu.memory_space<vmem>>, vector<1x1x16xf32>,
    %101 = vector.extract_strided_slice %12 {offsets = [0, 160], sizes = [1, 16], strides = [1, 1]} : vector<1x256xf32> to vector<1x16xf32>
    %c1_62 = arith.constant 1 : index
    %c10_63 = arith.constant 10 : index
    %c0_64 = arith.constant 0 : index
    %102 = vector.load %arg4[%c1_62, %c10_63, %c0_64] : memref<2x24x128xf32, #tpu.memory_space<vmem>>, vector<1x1x16xf32>
    %103 = vector.shape_cast %102 : vector<1x1x16xf32> to vector<1x16xf32>
    %104 = vector.shape_cast %101 : vector<1x16xf32> to vector<1x1x16xf32>
    tpu.vector_store %arg4[%c1_62, %c10_63, %c0_64], %104 {strides = array<i32>} : memref<2x24x128xf32, #tpu.memory_space<vmem>>, vector<1x1x16xf32>,
    %105 = vector.extract_strided_slice %14 {offsets = [0, 176], sizes = [1, 16], strides = [1, 1]} : vector<1x256xf32> to vector<1x16xf32>
    %c0_65 = arith.constant 0 : index
    %c11 = arith.constant 11 : index
    %c0_66 = arith.constant 0 : index
    %106 = vector.load %arg4[%c0_65, %c11, %c0_66] : memref<2x24x128xf32, #tpu.memory_space<vmem>>, vector<1x1x16xf32>
    %107 = vector.shape_cast %106 : vector<1x1x16xf32> to vector<1x16xf32>
    %108 = vector.shape_cast %105 : vector<1x16xf32> to vector<1x1x16xf32>
    tpu.vector_store %arg4[%c0_65, %c11, %c0_66], %108 {strides = array<i32>} : memref<2x24x128xf32, #tpu.memory_space<vmem>>, vector<1x1x16xf32>,
    %109 = vector.extract_strided_slice %12 {offsets = [0, 176], sizes = [1, 16], strides = [1, 1]} : vector<1x256xf32> to vector<1x16xf32>
    %c1_67 = arith.constant 1 : index
    %c11_68 = arith.constant 11 : index
    %c0_69 = arith.constant 0 : index
    %110 = vector.load %arg4[%c1_67, %c11_68, %c0_69] : memref<2x24x128xf32, #tpu.memory_space<vmem>>, vector<1x1x16xf32>
    %111 = vector.shape_cast %110 : vector<1x1x16xf32> to vector<1x16xf32>
    %112 = vector.shape_cast %109 : vector<1x16xf32> to vector<1x1x16xf32>
    tpu.vector_store %arg4[%c1_67, %c11_68, %c0_69], %112 {strides = array<i32>} : memref<2x24x128xf32, #tpu.memory_space<vmem>>, vector<1x1x16xf32>,
    %113 = vector.extract_strided_slice %14 {offsets = [0, 192], sizes = [1, 16], strides = [1, 1]} : vector<1x256xf32> to vector<1x16xf32>
    %c0_70 = arith.constant 0 : index
    %c12 = arith.constant 12 : index
    %c0_71 = arith.constant 0 : index
    %114 = vector.load %arg4[%c0_70, %c12, %c0_71] : memref<2x24x128xf32, #tpu.memory_space<vmem>>, vector<1x1x16xf32>
    %115 = vector.shape_cast %114 : vector<1x1x16xf32> to vector<1x16xf32>
    %116 = vector.shape_cast %113 : vector<1x16xf32> to vector<1x1x16xf32>
    tpu.vector_store %arg4[%c0_70, %c12, %c0_71], %116 {strides = array<i32>} : memref<2x24x128xf32, #tpu.memory_space<vmem>>, vector<1x1x16xf32>,
    %117 = vector.extract_strided_slice %12 {offsets = [0, 192], sizes = [1, 16], strides = [1, 1]} : vector<1x256xf32> to vector<1x16xf32>
    %c1_72 = arith.constant 1 : index
    %c12_73 = arith.constant 12 : index
    %c0_74 = arith.constant 0 : index
    %118 = vector.load %arg4[%c1_72, %c12_73, %c0_74] : memref<2x24x128xf32, #tpu.memory_space<vmem>>, vector<1x1x16xf32>
    %119 = vector.shape_cast %118 : vector<1x1x16xf32> to vector<1x16xf32>
    %120 = vector.shape_cast %117 : vector<1x16xf32> to vector<1x1x16xf32>
    tpu.vector_store %arg4[%c1_72, %c12_73, %c0_74], %120 {strides = array<i32>} : memref<2x24x128xf32, #tpu.memory_space<vmem>>, vector<1x1x16xf32>,
    %121 = vector.extract_strided_slice %14 {offsets = [0, 208], sizes = [1, 16], strides = [1, 1]} : vector<1x256xf32> to vector<1x16xf32>
    %c0_75 = arith.constant 0 : index
    %c13 = arith.constant 13 : index
    %c0_76 = arith.constant 0 : index
    %122 = vector.load %arg4[%c0_75, %c13, %c0_76] : memref<2x24x128xf32, #tpu.memory_space<vmem>>, vector<1x1x16xf32>
    %123 = vector.shape_cast %122 : vector<1x1x16xf32> to vector<1x16xf32>
    %124 = vector.shape_cast %121 : vector<1x16xf32> to vector<1x1x16xf32>
    tpu.vector_store %arg4[%c0_75, %c13, %c0_76], %124 {strides = array<i32>} : memref<2x24x128xf32, #tpu.memory_space<vmem>>, vector<1x1x16xf32>,
    %125 = vector.extract_strided_slice %12 {offsets = [0, 208], sizes = [1, 16], strides = [1, 1]} : vector<1x256xf32> to vector<1x16xf32>
    %c1_77 = arith.constant 1 : index
    %c13_78 = arith.constant 13 : index
    %c0_79 = arith.constant 0 : index
    %126 = vector.load %arg4[%c1_77, %c13_78, %c0_79] : memref<2x24x128xf32, #tpu.memory_space<vmem>>, vector<1x1x16xf32>
    %127 = vector.shape_cast %126 : vector<1x1x16xf32> to vector<1x16xf32>
    %128 = vector.shape_cast %125 : vector<1x16xf32> to vector<1x1x16xf32>
    tpu.vector_store %arg4[%c1_77, %c13_78, %c0_79], %128 {strides = array<i32>} : memref<2x24x128xf32, #tpu.memory_space<vmem>>, vector<1x1x16xf32>,
    %129 = vector.extract_strided_slice %14 {offsets = [0, 224], sizes = [1, 16], strides = [1, 1]} : vector<1x256xf32> to vector<1x16xf32>
    %c0_80 = arith.constant 0 : index
    %c14 = arith.constant 14 : index
    %c0_81 = arith.constant 0 : index
    %130 = vector.load %arg4[%c0_80, %c14, %c0_81] : memref<2x24x128xf32, #tpu.memory_space<vmem>>, vector<1x1x16xf32>
    %131 = vector.shape_cast %130 : vector<1x1x16xf32> to vector<1x16xf32>
    %132 = vector.shape_cast %129 : vector<1x16xf32> to vector<1x1x16xf32>
    tpu.vector_store %arg4[%c0_80, %c14, %c0_81], %132 {strides = array<i32>} : memref<2x24x128xf32, #tpu.memory_space<vmem>>, vector<1x1x16xf32>,
    %133 = vector.extract_strided_slice %12 {offsets = [0, 224], sizes = [1, 16], strides = [1, 1]} : vector<1x256xf32> to vector<1x16xf32>
    %c1_82 = arith.constant 1 : index
    %c14_83 = arith.constant 14 : index
    %c0_84 = arith.constant 0 : index
    %134 = vector.load %arg4[%c1_82, %c14_83, %c0_84] : memref<2x24x128xf32, #tpu.memory_space<vmem>>, vector<1x1x16xf32>
    %135 = vector.shape_cast %134 : vector<1x1x16xf32> to vector<1x16xf32>
    %136 = vector.shape_cast %133 : vector<1x16xf32> to vector<1x1x16xf32>
    tpu.vector_store %arg4[%c1_82, %c14_83, %c0_84], %136 {strides = array<i32>} : memref<2x24x128xf32, #tpu.memory_space<vmem>>, vector<1x1x16xf32>,
    %137 = vector.extract_strided_slice %14 {offsets = [0, 240], sizes = [1, 16], strides = [1, 1]} : vector<1x256xf32> to vector<1x16xf32>
    %c0_85 = arith.constant 0 : index
    %c15 = arith.constant 15 : index
    %c0_86 = arith.constant 0 : index
    %138 = vector.load %arg4[%c0_85, %c15, %c0_86] : memref<2x24x128xf32, #tpu.memory_space<vmem>>, vector<1x1x16xf32>
    %139 = vector.shape_cast %138 : vector<1x1x16xf32> to vector<1x16xf32>
    %140 = vector.shape_cast %137 : vector<1x16xf32> to vector<1x1x16xf32>
    tpu.vector_store %arg4[%c0_85, %c15, %c0_86], %140 {strides = array<i32>} : memref<2x24x128xf32, #tpu.memory_space<vmem>>, vector<1x1x16xf32>,
    %141 = vector.extract_strided_slice %12 {offsets = [0, 240], sizes = [1, 16], strides = [1, 1]} : vector<1x256xf32> to vector<1x16xf32>
    %c1_87 = arith.constant 1 : index
    %c15_88 = arith.constant 15 : index
    %c0_89 = arith.constant 0 : index
    %142 = vector.load %arg4[%c1_87, %c15_88, %c0_89] : memref<2x24x128xf32, #tpu.memory_space<vmem>>, vector<1x1x16xf32>
    %143 = vector.shape_cast %142 : vector<1x1x16xf32> to vector<1x16xf32>
    %144 = vector.shape_cast %141 : vector<1x16xf32> to vector<1x1x16xf32>
    tpu.vector_store %arg4[%c1_87, %c15_88, %c0_89], %144 {strides = array<i32>} : memref<2x24x128xf32, #tpu.memory_space<vmem>>, vector<1x1x16xf32>,
    %cst_90 = arith.constant 0.000000e+00 : f32
    %145 = vector.broadcast %cst_90 : f32 to vector<24x128xf32>
    %c0_91 = arith.constant 0 : index
    %c0_92 = arith.constant 0 : index
    %c0_93 = arith.constant 0 : index
    %146 = vector.load %arg4[%c0_91, %c0_92, %c0_93] : memref<2x24x128xf32, #tpu.memory_space<vmem>>, vector<1x24x128xf32>
    %147 = vector.shape_cast %146 : vector<1x24x128xf32> to vector<24x128xf32>
    %c3_i32 = arith.constant 3 : i32
    %148 = tpu.dynamic_rotate %147 by %c3_i32 dim 0 : vector<24x128xf32>, i32 -> vector<24x128xf32>
    %c0_94 = arith.constant 0 : index
    %c0_95 = arith.constant 0 : index
    %c0_96 = arith.constant 0 : index
    %149 = vector.load %arg1[%c0_94, %c0_95, %c0_96] : memref<14x128x128xf32, #tpu.memory_space<vmem>>, vector<1x128x128xf32>
    %150 = vector.shape_cast %149 : vector<1x128x128xf32> to vector<128x128xf32>
    %cst_97 = arith.constant dense<0.000000e+00> : vector<24x128xf32>
    %151 = tpu.matmul %148, %150, %cst_97 {dimension_numbers = #tpu.dot_dimension_numbers<[1], [0], [0], [1], [0, 0, 1, 1], [], []>, precision = #tpu.contract_precision<fp32>} : vector<24x128xf32>, vector<128x128xf32>, vector<24x128xf32> -> vector<24x128xf32>
    %152 = arith.addf %145, %151 : vector<24x128xf32>
    %c2_i32 = arith.constant 2 : i32
    %153 = tpu.dynamic_rotate %147 by %c2_i32 dim 0 : vector<24x128xf32>, i32 -> vector<24x128xf32>
    %c1_98 = arith.constant 1 : index
    %c0_99 = arith.constant 0 : index
    %c0_100 = arith.constant 0 : index
    %154 = vector.load %arg1[%c1_98, %c0_99, %c0_100] : memref<14x128x128xf32, #tpu.memory_space<vmem>>, vector<1x128x128xf32>
    %155 = vector.shape_cast %154 : vector<1x128x128xf32> to vector<128x128xf32>
    %cst_101 = arith.constant dense<0.000000e+00> : vector<24x128xf32>
    %156 = tpu.matmul %153, %155, %cst_101 {dimension_numbers = #tpu.dot_dimension_numbers<[1], [0], [0], [1], [0, 0, 1, 1], [], []>, precision = #tpu.contract_precision<fp32>} : vector<24x128xf32>, vector<128x128xf32>, vector<24x128xf32> -> vector<24x128xf32>
    %157 = arith.addf %152, %156 : vector<24x128xf32>
    %c1_i32_102 = arith.constant 1 : i32
    %158 = tpu.dynamic_rotate %147 by %c1_i32_102 dim 0 : vector<24x128xf32>, i32 -> vector<24x128xf32>
    %c2_103 = arith.constant 2 : index
    %c0_104 = arith.constant 0 : index
    %c0_105 = arith.constant 0 : index
    %159 = vector.load %arg1[%c2_103, %c0_104, %c0_105] : memref<14x128x128xf32, #tpu.memory_space<vmem>>, vector<1x128x128xf32>
    %160 = vector.shape_cast %159 : vector<1x128x128xf32> to vector<128x128xf32>
    %cst_106 = arith.constant dense<0.000000e+00> : vector<24x128xf32>
    %161 = tpu.matmul %158, %160, %cst_106 {dimension_numbers = #tpu.dot_dimension_numbers<[1], [0], [0], [1], [0, 0, 1, 1], [], []>, precision = #tpu.contract_precision<fp32>} : vector<24x128xf32>, vector<128x128xf32>, vector<24x128xf32> -> vector<24x128xf32>
    %162 = arith.addf %157, %161 : vector<24x128xf32>
    %c3_107 = arith.constant 3 : index
    %c0_108 = arith.constant 0 : index
    %c0_109 = arith.constant 0 : index
    %163 = vector.load %arg1[%c3_107, %c0_108, %c0_109] : memref<14x128x128xf32, #tpu.memory_space<vmem>>, vector<1x128x128xf32>
    %164 = vector.shape_cast %163 : vector<1x128x128xf32> to vector<128x128xf32>
    %cst_110 = arith.constant dense<0.000000e+00> : vector<24x128xf32>
    %165 = tpu.matmul %147, %164, %cst_110 {dimension_numbers = #tpu.dot_dimension_numbers<[1], [0], [0], [1], [0, 0, 1, 1], [], []>, precision = #tpu.contract_precision<fp32>} : vector<24x128xf32>, vector<128x128xf32>, vector<24x128xf32> -> vector<24x128xf32>
    %166 = arith.addf %162, %165 : vector<24x128xf32>
    %c23_i32 = arith.constant 23 : i32
    %167 = tpu.dynamic_rotate %147 by %c23_i32 dim 0 : vector<24x128xf32>, i32 -> vector<24x128xf32>
    %c4_111 = arith.constant 4 : index
    %c0_112 = arith.constant 0 : index
    %c0_113 = arith.constant 0 : index
    %168 = vector.load %arg1[%c4_111, %c0_112, %c0_113] : memref<14x128x128xf32, #tpu.memory_space<vmem>>, vector<1x128x128xf32>
    %169 = vector.shape_cast %168 : vector<1x128x128xf32> to vector<128x128xf32>
    %cst_114 = arith.constant dense<0.000000e+00> : vector<24x128xf32>
    %170 = tpu.matmul %167, %169, %cst_114 {dimension_numbers = #tpu.dot_dimension_numbers<[1], [0], [0], [1], [0, 0, 1, 1], [], []>, precision = #tpu.contract_precision<fp32>} : vector<24x128xf32>, vector<128x128xf32>, vector<24x128xf32> -> vector<24x128xf32>
    %171 = arith.addf %166, %170 : vector<24x128xf32>
    %c22_i32 = arith.constant 22 : i32
    %172 = tpu.dynamic_rotate %147 by %c22_i32 dim 0 : vector<24x128xf32>, i32 -> vector<24x128xf32>
    %c5_115 = arith.constant 5 : index
    %c0_116 = arith.constant 0 : index
    %c0_117 = arith.constant 0 : index
    %173 = vector.load %arg1[%c5_115, %c0_116, %c0_117] : memref<14x128x128xf32, #tpu.memory_space<vmem>>, vector<1x128x128xf32>
    %174 = vector.shape_cast %173 : vector<1x128x128xf32> to vector<128x128xf32>
    %cst_118 = arith.constant dense<0.000000e+00> : vector<24x128xf32>
    %175 = tpu.matmul %172, %174, %cst_118 {dimension_numbers = #tpu.dot_dimension_numbers<[1], [0], [0], [1], [0, 0, 1, 1], [], []>, precision = #tpu.contract_precision<fp32>} : vector<24x128xf32>, vector<128x128xf32>, vector<24x128xf32> -> vector<24x128xf32>
    %176 = arith.addf %171, %175 : vector<24x128xf32>
    %c21_i32 = arith.constant 21 : i32
    %177 = tpu.dynamic_rotate %147 by %c21_i32 dim 0 : vector<24x128xf32>, i32 -> vector<24x128xf32>
    %c6_119 = arith.constant 6 : index
    %c0_120 = arith.constant 0 : index
    %c0_121 = arith.constant 0 : index
    %178 = vector.load %arg1[%c6_119, %c0_120, %c0_121] : memref<14x128x128xf32, #tpu.memory_space<vmem>>, vector<1x128x128xf32>
    %179 = vector.shape_cast %178 : vector<1x128x128xf32> to vector<128x128xf32>
    %cst_122 = arith.constant dense<0.000000e+00> : vector<24x128xf32>
    %180 = tpu.matmul %177, %179, %cst_122 {dimension_numbers = #tpu.dot_dimension_numbers<[1], [0], [0], [1], [0, 0, 1, 1], [], []>, precision = #tpu.contract_precision<fp32>} : vector<24x128xf32>, vector<128x128xf32>, vector<24x128xf32> -> vector<24x128xf32>
    %181 = arith.addf %176, %180 : vector<24x128xf32>
    %c1_123 = arith.constant 1 : index
    %c0_124 = arith.constant 0 : index
    %c0_125 = arith.constant 0 : index
    %182 = vector.load %arg4[%c1_123, %c0_124, %c0_125] : memref<2x24x128xf32, #tpu.memory_space<vmem>>, vector<1x24x128xf32>
    %183 = vector.shape_cast %182 : vector<1x24x128xf32> to vector<24x128xf32>
    %c3_i32_126 = arith.constant 3 : i32
    %184 = tpu.dynamic_rotate %183 by %c3_i32_126 dim 0 : vector<24x128xf32>, i32 -> vector<24x128xf32>
    %c7_127 = arith.constant 7 : index
    %c0_128 = arith.constant 0 : index
    %c0_129 = arith.constant 0 : index
    %185 = vector.load %arg1[%c7_127, %c0_128, %c0_129] : memref<14x128x128xf32, #tpu.memory_space<vmem>>, vector<1x128x128xf32>
    %186 = vector.shape_cast %185 : vector<1x128x128xf32> to vector<128x128xf32>
    %cst_130 = arith.constant dense<0.000000e+00> : vector<24x128xf32>
    %187 = tpu.matmul %184, %186, %cst_130 {dimension_numbers = #tpu.dot_dimension_numbers<[1], [0], [0], [1], [0, 0, 1, 1], [], []>, precision = #tpu.contract_precision<fp32>} : vector<24x128xf32>, vector<128x128xf32>, vector<24x128xf32> -> vector<24x128xf32>
    %188 = arith.addf %181, %187 : vector<24x128xf32>
    %c2_i32_131 = arith.constant 2 : i32
    %189 = tpu.dynamic_rotate %183 by %c2_i32_131 dim 0 : vector<24x128xf32>, i32 -> vector<24x128xf32>
    %c8_132 = arith.constant 8 : index
    %c0_133 = arith.constant 0 : index
    %c0_134 = arith.constant 0 : index
    %190 = vector.load %arg1[%c8_132, %c0_133, %c0_134] : memref<14x128x128xf32, #tpu.memory_space<vmem>>, vector<1x128x128xf32>
    %191 = vector.shape_cast %190 : vector<1x128x128xf32> to vector<128x128xf32>
    %cst_135 = arith.constant dense<0.000000e+00> : vector<24x128xf32>
    %192 = tpu.matmul %189, %191, %cst_135 {dimension_numbers = #tpu.dot_dimension_numbers<[1], [0], [0], [1], [0, 0, 1, 1], [], []>, precision = #tpu.contract_precision<fp32>} : vector<24x128xf32>, vector<128x128xf32>, vector<24x128xf32> -> vector<24x128xf32>
    %193 = arith.addf %188, %192 : vector<24x128xf32>
    %c1_i32_136 = arith.constant 1 : i32
    %194 = tpu.dynamic_rotate %183 by %c1_i32_136 dim 0 : vector<24x128xf32>, i32 -> vector<24x128xf32>
    %c9_137 = arith.constant 9 : index
    %c0_138 = arith.constant 0 : index
    %c0_139 = arith.constant 0 : index
    %195 = vector.load %arg1[%c9_137, %c0_138, %c0_139] : memref<14x128x128xf32, #tpu.memory_space<vmem>>, vector<1x128x128xf32>
    %196 = vector.shape_cast %195 : vector<1x128x128xf32> to vector<128x128xf32>
    %cst_140 = arith.constant dense<0.000000e+00> : vector<24x128xf32>
    %197 = tpu.matmul %194, %196, %cst_140 {dimension_numbers = #tpu.dot_dimension_numbers<[1], [0], [0], [1], [0, 0, 1, 1], [], []>, precision = #tpu.contract_precision<fp32>} : vector<24x128xf32>, vector<128x128xf32>, vector<24x128xf32> -> vector<24x128xf32>
    %198 = arith.addf %193, %197 : vector<24x128xf32>
    %c10_141 = arith.constant 10 : index
    %c0_142 = arith.constant 0 : index
    %c0_143 = arith.constant 0 : index
    %199 = vector.load %arg1[%c10_141, %c0_142, %c0_143] : memref<14x128x128xf32, #tpu.memory_space<vmem>>, vector<1x128x128xf32>
    %200 = vector.shape_cast %199 : vector<1x128x128xf32> to vector<128x128xf32>
    %cst_144 = arith.constant dense<0.000000e+00> : vector<24x128xf32>
    %201 = tpu.matmul %183, %200, %cst_144 {dimension_numbers = #tpu.dot_dimension_numbers<[1], [0], [0], [1], [0, 0, 1, 1], [], []>, precision = #tpu.contract_precision<fp32>} : vector<24x128xf32>, vector<128x128xf32>, vector<24x128xf32> -> vector<24x128xf32>
    %202 = arith.addf %198, %201 : vector<24x128xf32>
    %c23_i32_145 = arith.constant 23 : i32
    %203 = tpu.dynamic_rotate %183 by %c23_i32_145 dim 0 : vector<24x128xf32>, i32 -> vector<24x128xf32>
    %c11_146 = arith.constant 11 : index
    %c0_147 = arith.constant 0 : index
    %c0_148 = arith.constant 0 : index
    %204 = vector.load %arg1[%c11_146, %c0_147, %c0_148] : memref<14x128x128xf32, #tpu.memory_space<vmem>>, vector<1x128x128xf32>
    %205 = vector.shape_cast %204 : vector<1x128x128xf32> to vector<128x128xf32>
    %cst_149 = arith.constant dense<0.000000e+00> : vector<24x128xf32>
    %206 = tpu.matmul %203, %205, %cst_149 {dimension_numbers = #tpu.dot_dimension_numbers<[1], [0], [0], [1], [0, 0, 1, 1], [], []>, precision = #tpu.contract_precision<fp32>} : vector<24x128xf32>, vector<128x128xf32>, vector<24x128xf32> -> vector<24x128xf32>
    %207 = arith.addf %202, %206 : vector<24x128xf32>
    %c22_i32_150 = arith.constant 22 : i32
    %208 = tpu.dynamic_rotate %183 by %c22_i32_150 dim 0 : vector<24x128xf32>, i32 -> vector<24x128xf32>
    %c12_151 = arith.constant 12 : index
    %c0_152 = arith.constant 0 : index
    %c0_153 = arith.constant 0 : index
    %209 = vector.load %arg1[%c12_151, %c0_152, %c0_153] : memref<14x128x128xf32, #tpu.memory_space<vmem>>, vector<1x128x128xf32>
    %210 = vector.shape_cast %209 : vector<1x128x128xf32> to vector<128x128xf32>
    %cst_154 = arith.constant dense<0.000000e+00> : vector<24x128xf32>
    %211 = tpu.matmul %208, %210, %cst_154 {dimension_numbers = #tpu.dot_dimension_numbers<[1], [0], [0], [1], [0, 0, 1, 1], [], []>, precision = #tpu.contract_precision<fp32>} : vector<24x128xf32>, vector<128x128xf32>, vector<24x128xf32> -> vector<24x128xf32>
    %212 = arith.addf %207, %211 : vector<24x128xf32>
    %c21_i32_155 = arith.constant 21 : i32
    %213 = tpu.dynamic_rotate %183 by %c21_i32_155 dim 0 : vector<24x128xf32>, i32 -> vector<24x128xf32>
    %c13_156 = arith.constant 13 : index
    %c0_157 = arith.constant 0 : index
    %c0_158 = arith.constant 0 : index
    %214 = vector.load %arg1[%c13_156, %c0_157, %c0_158] : memref<14x128x128xf32, #tpu.memory_space<vmem>>, vector<1x128x128xf32>
    %215 = vector.shape_cast %214 : vector<1x128x128xf32> to vector<128x128xf32>
    %cst_159 = arith.constant dense<0.000000e+00> : vector<24x128xf32>
    %216 = tpu.matmul %213, %215, %cst_159 {dimension_numbers = #tpu.dot_dimension_numbers<[1], [0], [0], [1], [0, 0, 1, 1], [], []>, precision = #tpu.contract_precision<fp32>} : vector<24x128xf32>, vector<128x128xf32>, vector<24x128xf32> -> vector<24x128xf32>
    %217 = arith.addf %212, %216 : vector<24x128xf32>
    %218 = arith.negf %217 : vector<24x128xf32>
    %219 = math.exp %218 : vector<24x128xf32>
    %cst_160 = arith.constant 1.000000e+00 : f32
    %220 = vector.broadcast %cst_160 : f32 to vector<24x128xf32>
    %221 = arith.addf %220, %219 : vector<24x128xf32>
    %222 = arith.divf %220, %221 : vector<24x128xf32>
    %223 = vector.extract_strided_slice %222 {offsets = [0, 0], sizes = [1, 16], strides = [1, 1]} : vector<24x128xf32> to vector<1x16xf32>
    %c0_161 = arith.constant 0 : index
    %c0_162 = arith.constant 0 : index
    %224 = vector.load %arg5[%c0_161, %c0_162] : memref<1x256xf32, #tpu.memory_space<vmem>>, vector<1x16xf32>
    tpu.vector_store %arg5[%c0_161, %c0_162], %223 {strides = array<i32>} : memref<1x256xf32, #tpu.memory_space<vmem>>, vector<1x16xf32>,
    %225 = vector.extract_strided_slice %222 {offsets = [1, 0], sizes = [1, 16], strides = [1, 1]} : vector<24x128xf32> to vector<1x16xf32>
    %c0_163 = arith.constant 0 : index
    %c16 = arith.constant 16 : index
    %226 = vector.load %arg5[%c0_163, %c16] : memref<1x256xf32, #tpu.memory_space<vmem>>, vector<1x16xf32>
    tpu.vector_store %arg5[%c0_163, %c16], %225 {strides = array<i32>} : memref<1x256xf32, #tpu.memory_space<vmem>>, vector<1x16xf32>,
    %227 = vector.extract_strided_slice %222 {offsets = [2, 0], sizes = [1, 16], strides = [1, 1]} : vector<24x128xf32> to vector<1x16xf32>
    %c0_164 = arith.constant 0 : index
    %c32 = arith.constant 32 : index
    %228 = vector.load %arg5[%c0_164, %c32] : memref<1x256xf32, #tpu.memory_space<vmem>>, vector<1x16xf32>
    tpu.vector_store %arg5[%c0_164, %c32], %227 {strides = array<i32>} : memref<1x256xf32, #tpu.memory_space<vmem>>, vector<1x16xf32>,
    %229 = vector.extract_strided_slice %222 {offsets = [3, 0], sizes = [1, 16], strides = [1, 1]} : vector<24x128xf32> to vector<1x16xf32>
    %c0_165 = arith.constant 0 : index
    %c48 = arith.constant 48 : index
    %230 = vector.load %arg5[%c0_165, %c48] : memref<1x256xf32, #tpu.memory_space<vmem>>, vector<1x16xf32>
    tpu.vector_store %arg5[%c0_165, %c48], %229 {strides = array<i32>} : memref<1x256xf32, #tpu.memory_space<vmem>>, vector<1x16xf32>,
    %231 = vector.extract_strided_slice %222 {offsets = [4, 0], sizes = [1, 16], strides = [1, 1]} : vector<24x128xf32> to vector<1x16xf32>
    %c0_166 = arith.constant 0 : index
    %c64 = arith.constant 64 : index
    %232 = vector.load %arg5[%c0_166, %c64] : memref<1x256xf32, #tpu.memory_space<vmem>>, vector<1x16xf32>
    tpu.vector_store %arg5[%c0_166, %c64], %231 {strides = array<i32>} : memref<1x256xf32, #tpu.memory_space<vmem>>, vector<1x16xf32>,
    %233 = vector.extract_strided_slice %222 {offsets = [5, 0], sizes = [1, 16], strides = [1, 1]} : vector<24x128xf32> to vector<1x16xf32>
    %c0_167 = arith.constant 0 : index
    %c80 = arith.constant 80 : index
    %234 = vector.load %arg5[%c0_167, %c80] : memref<1x256xf32, #tpu.memory_space<vmem>>, vector<1x16xf32>
    tpu.vector_store %arg5[%c0_167, %c80], %233 {strides = array<i32>} : memref<1x256xf32, #tpu.memory_space<vmem>>, vector<1x16xf32>,
    %235 = vector.extract_strided_slice %222 {offsets = [6, 0], sizes = [1, 16], strides = [1, 1]} : vector<24x128xf32> to vector<1x16xf32>
    %c0_168 = arith.constant 0 : index
    %c96 = arith.constant 96 : index
    %236 = vector.load %arg5[%c0_168, %c96] : memref<1x256xf32, #tpu.memory_space<vmem>>, vector<1x16xf32>
    tpu.vector_store %arg5[%c0_168, %c96], %235 {strides = array<i32>} : memref<1x256xf32, #tpu.memory_space<vmem>>, vector<1x16xf32>,
    %237 = vector.extract_strided_slice %222 {offsets = [7, 0], sizes = [1, 16], strides = [1, 1]} : vector<24x128xf32> to vector<1x16xf32>
    %c0_169 = arith.constant 0 : index
    %c112 = arith.constant 112 : index
    %238 = vector.load %arg5[%c0_169, %c112] : memref<1x256xf32, #tpu.memory_space<vmem>>, vector<1x16xf32>
    tpu.vector_store %arg5[%c0_169, %c112], %237 {strides = array<i32>} : memref<1x256xf32, #tpu.memory_space<vmem>>, vector<1x16xf32>,
    %239 = vector.extract_strided_slice %222 {offsets = [8, 0], sizes = [1, 16], strides = [1, 1]} : vector<24x128xf32> to vector<1x16xf32>
    %c0_170 = arith.constant 0 : index
    %c128 = arith.constant 128 : index
    %240 = vector.load %arg5[%c0_170, %c128] : memref<1x256xf32, #tpu.memory_space<vmem>>, vector<1x16xf32>
    tpu.vector_store %arg5[%c0_170, %c128], %239 {strides = array<i32>} : memref<1x256xf32, #tpu.memory_space<vmem>>, vector<1x16xf32>,
    %241 = vector.extract_strided_slice %222 {offsets = [9, 0], sizes = [1, 16], strides = [1, 1]} : vector<24x128xf32> to vector<1x16xf32>
    %c0_171 = arith.constant 0 : index
    %c144 = arith.constant 144 : index
    %242 = vector.load %arg5[%c0_171, %c144] : memref<1x256xf32, #tpu.memory_space<vmem>>, vector<1x16xf32>
    tpu.vector_store %arg5[%c0_171, %c144], %241 {strides = array<i32>} : memref<1x256xf32, #tpu.memory_space<vmem>>, vector<1x16xf32>,
    %243 = vector.extract_strided_slice %222 {offsets = [10, 0], sizes = [1, 16], strides = [1, 1]} : vector<24x128xf32> to vector<1x16xf32>
    %c0_172 = arith.constant 0 : index
    %c160 = arith.constant 160 : index
    %244 = vector.load %arg5[%c0_172, %c160] : memref<1x256xf32, #tpu.memory_space<vmem>>, vector<1x16xf32>
    tpu.vector_store %arg5[%c0_172, %c160], %243 {strides = array<i32>} : memref<1x256xf32, #tpu.memory_space<vmem>>, vector<1x16xf32>,
    %245 = vector.extract_strided_slice %222 {offsets = [11, 0], sizes = [1, 16], strides = [1, 1]} : vector<24x128xf32> to vector<1x16xf32>
    %c0_173 = arith.constant 0 : index
    %c176 = arith.constant 176 : index
    %246 = vector.load %arg5[%c0_173, %c176] : memref<1x256xf32, #tpu.memory_space<vmem>>, vector<1x16xf32>
    tpu.vector_store %arg5[%c0_173, %c176], %245 {strides = array<i32>} : memref<1x256xf32, #tpu.memory_space<vmem>>, vector<1x16xf32>,
    %247 = vector.extract_strided_slice %222 {offsets = [12, 0], sizes = [1, 16], strides = [1, 1]} : vector<24x128xf32> to vector<1x16xf32>
    %c0_174 = arith.constant 0 : index
    %c192 = arith.constant 192 : index
    %248 = vector.load %arg5[%c0_174, %c192] : memref<1x256xf32, #tpu.memory_space<vmem>>, vector<1x16xf32>
    tpu.vector_store %arg5[%c0_174, %c192], %247 {strides = array<i32>} : memref<1x256xf32, #tpu.memory_space<vmem>>, vector<1x16xf32>,
    %249 = vector.extract_strided_slice %222 {offsets = [13, 0], sizes = [1, 16], strides = [1, 1]} : vector<24x128xf32> to vector<1x16xf32>
    %c0_175 = arith.constant 0 : index
    %c208 = arith.constant 208 : index
    %250 = vector.load %arg5[%c0_175, %c208] : memref<1x256xf32, #tpu.memory_space<vmem>>, vector<1x16xf32>
    tpu.vector_store %arg5[%c0_175, %c208], %249 {strides = array<i32>} : memref<1x256xf32, #tpu.memory_space<vmem>>, vector<1x16xf32>,
    %251 = vector.extract_strided_slice %222 {offsets = [14, 0], sizes = [1, 16], strides = [1, 1]} : vector<24x128xf32> to vector<1x16xf32>
    %c0_176 = arith.constant 0 : index
    %c224 = arith.constant 224 : index
    %252 = vector.load %arg5[%c0_176, %c224] : memref<1x256xf32, #tpu.memory_space<vmem>>, vector<1x16xf32>
    tpu.vector_store %arg5[%c0_176, %c224], %251 {strides = array<i32>} : memref<1x256xf32, #tpu.memory_space<vmem>>, vector<1x16xf32>,
    %253 = vector.extract_strided_slice %222 {offsets = [15, 0], sizes = [1, 16], strides = [1, 1]} : vector<24x128xf32> to vector<1x16xf32>
    %c0_177 = arith.constant 0 : index
    %c240 = arith.constant 240 : index
    %254 = vector.load %arg5[%c0_177, %c240] : memref<1x256xf32, #tpu.memory_space<vmem>>, vector<1x16xf32>
    tpu.vector_store %arg5[%c0_177, %c240], %253 {strides = array<i32>} : memref<1x256xf32, #tpu.memory_space<vmem>>, vector<1x16xf32>,
    %c0_178 = arith.constant 0 : index
    %c0_179 = arith.constant 0 : index
    %255 = vector.load %arg5[%c0_178, %c0_179] : memref<1x256xf32, #tpu.memory_space<vmem>>, vector<1x256xf32>
    %256 = vector.shape_cast %255 : vector<1x256xf32> to vector<1x256xf32>
    %257 = vector.broadcast %256 : vector<1x256xf32> to vector<4x256xf32>
    %c0_i32_180 = arith.constant 0 : i32
    %c4_i32_181 = arith.constant 4 : i32
    %258 = arith.muli %c0_i32_180, %c4_i32_181 : i32
    %259 = tpu.assume_multiple %258, 4 : i32
    %c0_182 = arith.constant 0 : index
    %260 = arith.index_cast %259 : i32 to index
    %c0_183 = arith.constant 0 : index
    %261 = vector.load %arg2[%c0_182, %260, %c0_183] : memref<1x4x256xf32, #tpu.memory_space<vmem>>, vector<1x4x256xf32>
    %262 = vector.shape_cast %261 : vector<1x4x256xf32> to vector<4x256xf32>
    %263 = arith.mulf %262, %257 : vector<4x256xf32>
    %c0_184 = arith.constant 0 : index
    %264 = arith.index_cast %259 : i32 to index
    %c0_185 = arith.constant 0 : index
    %265 = vector.load %arg3[%c0_184, %264, %c0_185] : memref<1x4x256xf32, #tpu.memory_space<vmem>>, vector<1x4x256xf32>
    %266 = vector.shape_cast %265 : vector<1x4x256xf32> to vector<4x256xf32>
    %267 = vector.shape_cast %263 : vector<4x256xf32> to vector<1x4x256xf32>
    tpu.vector_store %arg3[%c0_184, %264, %c0_185], %267 {strides = array<i32>} : memref<1x4x256xf32, #tpu.memory_space<vmem>>, vector<1x4x256xf32>,
    %c1_i32_186 = arith.constant 1 : i32
    return
  }
  func.func @transform_0(%arg0: i32) -> (i32, i32, i32) {
    %c0_i32 = arith.constant 0 : i32
    %c0_i32_0 = arith.constant 0 : i32
    %c0_i32_1 = arith.constant 0 : i32
    %c0_i32_2 = arith.constant 0 : i32
    return %c0_i32, %c0_i32_0, %c0_i32_1 : i32, i32, i32
  }
  func.func @transform_1(%arg0: i32) -> (i32, i32, i32) {
    %c0_i32 = arith.constant 0 : i32
    %c0_i32_0 = arith.constant 0 : i32
    %c0_i32_1 = arith.constant 0 : i32
    return %arg0, %c0_i32, %c0_i32_0 : i32, i32, i32
  }
  func.func @transform_2(%arg0: i32) -> (i32, i32, i32) {
    %c0_i32 = arith.constant 0 : i32
    %c0_i32_0 = arith.constant 0 : i32
    %c0_i32_1 = arith.constant 0 : i32
    return %arg0, %c0_i32, %c0_i32_0 : i32, i32, i32
  }
}

</mosaic_0001>

<bundles_post_ra>
// kernel: tpu_custom_call.1
= control target key start
LH: loop header
LB: loop body
LE: loop exit
PB: predicated region body
PF: predicated region fallthrough
CT: control target
= control target key end

     0   :  { %7 = vsyncpa [#allocation5], 0  ;;  %s11644_s0 = inlined_call_operand.hbm [shape: f32[14,128,128], index: 0, kind: input, shape index: {}]   ;;  %s11645_s1 = inlined_call_operand.hbm [shape: f32[2,4,256], index: 1, kind: input, shape index: {}]   ;;  %s11646_s2 = inlined_call_operand.hbm [shape: f32[2,4,256], index: 2, kind: output, shape index: {}]  }
   0x1   :  { %8 = vsyncpa [#allocation8], 0 }
   0x2   :  { %10 = vsyncpa [#allocation8 + $0x1], 0 }
   0x3   :  { %11 = vsyncpa [#allocation6], 0 }
   0x4   :  { %13 = vsyncpa [#allocation6 + $0x1], 0  ;;  %s6798_s9 = smov 0   ;;  %s6800_s10 = smov 0  }
   0x5   :  { %s6802_s11 = smov 0   ;;  %s6804_s12 = smov 0  }
   0x6 LB: > { %s108_s15 = sshll.u32 %s11644_s0, 4  ;;  %s6822_s16 = sadd.s32 4294967295, %s6770_s12   ;;  %s6770_s12 = sphi %s6804_s12, %s12476_s12   ;;  %s6766_s11 = sphi %s6802_s11, %s12475_s11   ;;  %s6762_s10 = sphi %s6800_s10, %s12474_s10   ;;  %s6758_s9 = sphi %s6798_s9, %s12473_s9   ;;  %s109_s15 = int_to_ptr.hbm [resolvable:$true] %s108_s15 }
   0x7   : > { %p6537_p0 = scmp.ge.s32.totalorder %s6770_s12, 1  ;;  %p61_p1 = scmp.eq.s32.totalorder %s6822_s16, 0 }
   0x8   : > { %p97_p2 = scmp.lt.s32.totalorder %s6770_s12, 3  ;;  %s6772_s18 = smov [#allocation4]  }
   0x9   : > { %s110_s19 = sshll.u32 %s6772_s18, 4  ;;  %s6773_s20 = smov 128   ;;  %s111_s19 = int_to_ptr.vmem [resolvable:$true] %s110_s19 }
   0xa   : > { %p6827_p3 = pnand %p6537_p0, %p97_p2  ;;  %s6774_s21 = smov 8  }
   0xb   : > { %s6536_s22 = sadd.s32 4294967294, %s6770_s12   ;;  %s6838_s23 = sadd.s32 1, %s6770_s12  }
   0xc   : > { %p6564_p4 = pneg %p6827_p3  ;;  %s47_s24 = sadd.s32 1, %s6766_s11 }
   0xd   : > { %s44_s25 = ssub.s32 %s6770_s12, %s6838_s23  ;;  %p54_p7 = scmp.ne.s32.totalorder %s6766_s11, %s6762_s10 }
   0xe   : > { %p6565_p6 = pnand %p6564_p4, %p61_p1  ;;  %p45_p8 = scmp.eq.s32.totalorder %s44_s25, 0 }
   0xf   : > { %p55_p9 = scmp.eq.s32.totalorder %s6770_s12, 0  ;;  %p60_p10 = scmp.ne.s32.totalorder %s6762_s10, %s6758_s9 }
  0x10   : > { %6567 = dma.hbm_to_vmem [thread:$0]  (!%p6565_p6), %s109_s15, 28672, %s111_s19, [#allocation5], %s6773_s20, %s6773_s20, %s6774_s21  }
  0x11   : > { %p84_p11 = scmp.eq.s32.totalorder %s6822_s16, 1  ;;  %p6854_p12 = por %p61_p1, %p60_p10 }
  0x12   : > { %s6850_s26 = scalar_select %p45_p8, %s6766_s11, %s47_s24  }
  0x13   : > { %p6858_p13 = por %p84_p11, %p54_p7  ;;  %p90_p0 = scmp.eq.s32.totalorder %s6536_s22, 1 }
  0x14   : > { %p56_p2 = por %p55_p9, %p54_p7  ;;  %s124_s29 = sand.u32 1, %s6766_s11  }
  0x15   : > { %p6863_p4 = por %p90_p0, %p60_p10  ;;  %p6577_p6 = scmp.lt.s32.totalorder %s6770_s12, 2 }
  0x16   : > { %s6540_s3 = sshll.u32 %s124_s29, 3  ;;  %s6554_s4 = sshll.u32 %s6770_s12, 3 }
  0x17   : > { %s133_s7 = scalar_lea.hbm %s11645_s1, %s6554_s4  ;;  %s128_s13 = scalar_lea.vmem [#allocation7], %s6540_s3 }
  0x18   : > { %s135_s8 = sshll.u32 %s133_s7, 4  ;;  %s137_s14 = sshll.u32 %s128_s13, 4  ;;  %s136_s8 = int_to_ptr.hbm [resolvable:$true] %s135_s8  ;;  %s138_s14 = int_to_ptr.vmem [resolvable:$true] %s137_s14 }
  0x19   : > { %p6872_p8 = pnand %p6577_p6, %p56_p2  ;;  %s125_s18 = scalar_lea.sflag [#allocation8], %s124_s29 }
  0x1a   : > { %s6670_s19 = sshra.s32 %s136_s8, 4  ;;  %s6677_s24 = scalar_lea.hbm %s11645_s1, 16  ;;  %s6671_s19 = int_to_ptr.hbm [resolvable:$true] %s6670_s19 }
  0x1b   : > { %s6672_s20 = scalar_lea.hbm %s6671_s19, 8  ;;  %p6674_p9 = pneg %p6872_p8 }
  0x1c   : > { %p6673_p7 = scmp.ne.s32.totalorder %s6671_s19, %s6672_s20  ;;  %p6678_p0 = scmp.lt.s32.totalorder %s6671_s19, %s11645_s1 }
  0x1d   : > { %p6679_p2 = scmp.lt.s32.totalorder %s6677_s24, %s6672_s20 }
  0x1e   : > { %p6675_p10 = pnand %p6674_p9, %p6673_p7 }
  0x1f   : > { %p6680_p6 = por %p6679_p2, %p6678_p0 }
  0x20   : > { %p6676_p11 = pneg %p6675_p10 }
  0x22   : > { %p6681_p5 = pnand %p6680_p6, %p6676_p11 }
  0x24   : > { %6684 = shalt.err (!%p6681_p5)
}
  0x25   : > { %6571 = dma.hbm_to_vmem [thread:$0]  (!%p6872_p8), %s136_s8, 128, %s138_s14, %s125_s18  }
  0x26   : > { %146 = sbr.rel (%p6827_p3) target bundleno = 1361 (0x551), region = 28 }
  0x2b   : > { %6745 = dma.done.wait (%p61_p1), [#allocation5], 28672  }
  0x2c   : > { %6747 = vsyncadd (%p61_p1), [#allocation5], 4294938624  ;;  %s6893_s29 = sand.u32 1, %s6762_s10  }
  0x2d   : > { %s6545_s4 = sshll.u32 %s6893_s29, 3  ;;  %s154_s5 = scalar_lea.sflag [#allocation8], %s6893_s29 }
  0x2e   : > { %s6899_s6 = scalar_lea.vmem [#allocation7], %s6545_s4 }
  0x2f   : > { %6749 = dma.done.wait (%p6854_p12), %s154_s5, 128  }
  0x30   : > { %6751 = vsyncadd (%p6854_p12), %s154_s5, 4294967168  ;;  %v182_v0 = vld [vmem:[%s6899_s6] sm:$0xff]  ;;  %vm11855_vm0 = vcmask 1043456   ;;  %s6775_s17 = smov 80   ;;  %s6776_s27 = smov 112   ;;  %v406_v16 = vld [vmem:[#allocation4 + $0xf8] sm:$0xff] }
  0x31   : > { %185 = vst [vmem:[#allocation1] ss:$2 sm:$0xff] %v182_v0  ;;  %v405_v17 = vld [vmem:[#allocation4 + $0xf0] sm:$0xff]  ;;  %v404_v18 = vld [vmem:[#allocation4 + $0xe8] sm:$0xff]  ;;  %s6777_s7 = smov 48   ;;  %v6916_v19 = vand.u32 4294901760, %v406_v16 }
  0x32   : > { %v6918_v20 = vand.u32 4294901760, %v405_v17  ;;  %v6920_v21 = vand.u32 4294901760, %v404_v18  ;;  %v403_v22 = vld [vmem:[#allocation4 + $0xe0] sm:$0xff]  ;;  %v402_v23 = vld [vmem:[#allocation4 + $0xd8] sm:$0xff]  ;;  %v401_v24 = vld [vmem:[#allocation4 + $0xd0] sm:$0xff]  ;;  %s6778_s8 = smov 64  }
  0x33   : > { %v6922_v26 = vand.u32 4294901760, %v403_v22  ;;  %v6924_v27 = vand.u32 4294901760, %v402_v23  ;;  %v6926_v28 = vand.u32 4294901760, %v401_v24  ;;  %v400_v29 = vld [vmem:[#allocation4 + $0xc8] sm:$0xff]  ;;  %v399_v30 = vld [vmem:[#allocation4 + $0xc0] sm:$0xff]  ;;  %v6929_v31 = vsub.f32 %v406_v16, %v6916_v19  ;;  %635 = vmatpush.msra.mxu3 %v6916_v19  ;;  %408 = vmatpush.msra.mxu0 %v6916_v19  ;;  %s6779_s13 = smov 96  }
  0x34   : > { %v6932_v32 = vsub.f32 %v405_v17, %v6918_v20  ;;  %v6935_v33 = vsub.f32 %v404_v18, %v6920_v21  ;;  %v6939_v34 = vand.u32 4294901760, %v400_v29  ;;  %v6950_v38 = vand.u32 4294901760, %v399_v30  ;;  %v398_v51 = vld [vmem:[#allocation4 + $0xb8] sm:$0xff]  ;;  %v397_v52 = vld [vmem:[#allocation4 + $0xb0] sm:$0xff]  ;;  %v396_v53 = vld [vmem:[#allocation4 + $0xa8] sm:$0xff]  ;;  %s6780_s14 = smov 32  }
  0x35   : > { %v6942_v35 = vsub.f32 %v403_v22, %v6922_v26  ;;  %v6945_v36 = vsub.f32 %v402_v23, %v6924_v27  ;;  %v6948_v37 = vsub.f32 %v401_v24, %v6926_v28  ;;  %v465_v39 = vand.u32 4294901760, %v6929_v31  ;;  %573 = vmatpush.msra.mxu2 %v6929_v31  ;;  %637 = vmatpush.msra.mxu3 %v6918_v20  ;;  %v395_v59 = vld [vmem:[#allocation4 + $0xa0] sm:$0xff]  ;;  %s6781_s15 = smov 16   ;;  %v392_v17 = vld [vmem:[#allocation4 + $0x88] sm:$0xff]  ;;  %s6555_s18 = sshll.u32 %s6822_s16, 3 }
  0x36   : > { %v471_v40 = vand.u32 4294901760, %v6932_v32  ;;  %v477_v41 = vand.u32 4294901760, %v6935_v33  ;;  %410 = vmatpush.msra.mxu0 %v6918_v20  ;;  %v6961_v44 = vsub.f32 %v400_v29, %v6939_v34  ;;  %v6980_v50 = vsub.f32 %v399_v30, %v6950_v38  ;;  %s6449_s21 = scalar_lea.hbm %s11646_s2, %s6555_s18  ;;  %s178_s22 = scalar_lea.vmem [#allocation9], %s6545_s4 }
  0x37   : > { %v483_v42 = vand.u32 4294901760, %v6942_v35  ;;  %v489_v43 = vand.u32 4294901760, %v6945_v36  ;;  %v466_v45 = vsub.f32 %v6929_v31, %v465_v39  ;;  %576 = vmatpush.msra.mxu2 %v6932_v32  ;;  %639 = vmatpush.msra.mxu3 %v6920_v21  ;;  %v495_v49 = vand.u32 4294901760, %v6948_v37  ;;  %s6451_s24 = sshll.u32 %s178_s22, 4  ;;  %s6453_s25 = sshll.u32 %s6449_s21, 4  ;;  %s6452_s24 = int_to_ptr.vmem [resolvable:$true] %s6451_s24  ;;  %s6454_s25 = int_to_ptr.hbm [resolvable:$true] %s6453_s25 }
  0x38   : > { %v186_v1 = vld.sshfl [vmem:[#allocation1] sm:$0xff pattern:$0x75316420]  ;;  %v187_v2 = vld.sshfl [vmem:[#allocation1 + $0x8] sm:$0xff pattern:$0x75316420]  ;;  %v472_v46 = vsub.f32 %v6932_v32, %v471_v40  ;;  %v478_v47 = vsub.f32 %v6935_v33, %v477_v41  ;;  %412 = vmatpush.msra.mxu0 %v6920_v21 }
  0x39   : > { %v191_v3 = vsel %vm11855_vm0, %v186_v1, 0.0  ;;  %v198_v4 = vsel %vm11855_vm0, %v187_v2, 0.0  ;;  %206 = vst [vmem:[#allocation1] ss:$2 sm:$0xff] %v182_v0  ;;  %v467_v54 = vand.u32 4294901760, %v466_v45  ;;  %v484_v56 = vsub.f32 %v6942_v35, %v483_v42  ;;  %579 = vmatpush.msra.mxu2 %v6935_v33  ;;  %641 = vmatpush.msra.mxu3 %v6922_v26  ;;  %s6438_s16 = scalar_lea.sflag [#allocation6], %s6893_s29 }
  0x3a   : > { %v192_v5 = vrot.slane %v191_v3, 4  ;;  %v199_v6 = vrot.slane %v198_v4, 4  ;;  %v473_v55 = vand.u32 4294901760, %v472_v46  ;;  %v490_v57 = vsub.f32 %v6945_v36, %v489_v43  ;;  %414 = vmatpush.msra.mxu0 %v6922_v26  ;;  %s6714_s3 = sshra.s32 %s6454_s25, 4  ;;  %s6720_s4 = scalar_lea.hbm %s11646_s2, 16  ;;  %s6715_s3 = int_to_ptr.hbm [resolvable:$true] %s6714_s3 }
  0x3b   : > { %v501_v58 = vand.u32 4294901760, %v6961_v44  ;;  %468 = vmatpush.msra.mxu1 %v467_v54  ;;  %v479_v60 = vand.u32 4294901760, %v478_v47  ;;  %582 = vmatpush.msra.mxu2 %v6942_v35  ;;  %v6995_v61 = vand.u32 4294901760, %v398_v51  ;;  %v6997_v62 = vand.u32 4294901760, %v397_v52  ;;  %s6716_s5 = scalar_lea.hbm %s6715_s3, 8  ;;  %p6721_p12 = scmp.lt.s32.totalorder %s6715_s3, %s11646_s2 }
  0x3c   : > { %v193_v7 = vadd.f32 %v192_v5, %v191_v3  ;;  %v200_v9 = vadd.f32 %v199_v6, %v198_v4  ;;  %v6999_v63 = vand.u32 4294901760, %v396_v53  ;;  %v496_v1 = vsub.f32 %v6948_v37, %v495_v49  ;;  %643 = vmatpush.msra.mxu3 %v6924_v27  ;;  %v394_v3 = vld [vmem:[#allocation4 + $0x98] sm:$0xff]  ;;  %416 = vmatpush.msra.mxu0 %v6924_v27  ;;  %p6717_p1 = scmp.ne.s32.totalorder %s6715_s3, %s6716_s5  ;;  %p6722_p8 = scmp.lt.s32.totalorder %s6720_s4, %s6716_s5 }
  0x3d   : > { %v507_v2 = vand.u32 4294901760, %v6980_v50  ;;  %474 = vmatpush.msra.mxu1 %v473_v55  ;;  %v485_v4 = vand.u32 4294901760, %v484_v56  ;;  %585 = vmatpush.msra.mxu2 %v6945_v36  ;;  %v7011_v5 = vsub.f32 %v398_v51, %v6995_v61  ;;  %v7014_v6 = vsub.f32 %v397_v52, %v6997_v62 }
  0x3e   : > { %v194_v8 = vrot.slane %v193_v7, 2  ;;  %v201_v12 = vrot.slane %v200_v9, 2  ;;  %645 = vmatpush.msra.mxu3 %v6926_v28  ;;  %v497_v18 = vand.u32 4294901760, %v496_v1  ;;  %418 = vmatpush.msra.mxu0 %v6926_v28  ;;  %v7055_v46 = vand.u32 4294901760, %v392_v17  ;;  %p6718_p3 = pnand %p6717_p1, %p6858_p13  ;;  %p6723_p7 = por %p6722_p8, %p6721_p12 }
  0x3f   : > { %480 = vmatpush.msra.mxu1 %v479_v60  ;;  %588 = vmatpush.msra.mxu2 %v6948_v37  ;;  %v519_v22 = vand.u32 4294901760, %v7014_v6  ;;  %v6782_v54 = vmov 0.0   ;;  %vm233_vm1 = vcmask 122880  }
  0x40   : > { %v195_v10 = vadd.f32 %v194_v8, %v193_v7  ;;  %v202_v15 = vadd.f32 %v201_v12, %v200_v9  ;;  %v7016_v7 = vand.u32 4294901760, %v395_v59  ;;  %v393_v8 = vld [vmem:[#allocation4 + $0x90] sm:$0xff]  ;;  %v502_v9 = vsub.f32 %v6961_v44, %v501_v58  ;;  %647 = vmatpush.msra.mxu3 %v6939_v34  ;;  %420 = vmatpush.msra.mxu0 %v6939_v34  ;;  %p6719_p5 = pneg %p6718_p3 }
  0x41   : > { %v7026_v12 = vsub.f32 %v396_v53, %v6999_v63  ;;  %v7037_v16 = vand.u32 4294901760, %v393_v8  ;;  %486 = vmatpush.msra.mxu1 %v485_v4  ;;  %591 = vmatpush.msra.mxu2 %v6961_v44  ;;  %v520_v51 = vsub.f32 %v7014_v6, %v519_v22  ;;  %227 = vst [vmem:[#allocation2] sm:$0xff] %v6782_v54 }
  0x42   : > { %v196_v11 = vrot.slane %v195_v10, 1  ;;  %v203_v25 = vrot.slane %v202_v15, 1  ;;  %v7043_v23 = vsub.f32 %v395_v59, %v7016_v7  ;;  %v503_v24 = vand.u32 4294901760, %v502_v9  ;;  %649 = vmatpush.msra.mxu3 %v6950_v38  ;;  %422 = vmatpush.msra.mxu0 %v6950_v38  ;;  %229 = vst [vmem:[#allocation2 + $0x10] sm:$0xff] %v6782_v54  ;;  %p6724_p9 = pnand %p6723_p7, %p6719_p5 }
  0x43   : > { %v525_v30 = vand.u32 4294901760, %v7026_v12  ;;  %594 = vmatpush.msra.mxu2 %v6980_v50  ;;  %v7078_v59 = vsub.f32 %v392_v17, %v7055_v46  ;;  %v521_v60 = vand.u32 4294901760, %v520_v51  ;;  %228 = vst [vmem:[#allocation2 + $0x8] sm:$0xff] %v6782_v54 }
  0x44   : > { %v197_v13 = vadd.f32 %v196_v11, %v195_v10  ;;  %v204_v48 = vadd.f32 %v203_v25, %v202_v15  ;;  %v491_v10 = vand.u32 4294901760, %v490_v57  ;;  %v513_v11 = vand.u32 4294901760, %v7011_v5  ;;  %v391_v25 = vld [vmem:[#allocation4 + $0x80] sm:$0xff]  ;;  %651 = vmatpush.msra.mxu3 %v6995_v61  ;;  %424 = vmatpush.msra.mxu0 %v6995_v61  ;;  %230 = vst [vmem:[#allocation2 + $0x18] sm:$0xff] %v6782_v54 }
  0x45   : > { %v508_v15 = vsub.f32 %v6980_v50, %v507_v2  ;;  %v531_v52 = vand.u32 4294901760, %v7043_v23  ;;  %v7067_v53 = vand.u32 4294901760, %v391_v25  ;;  %597 = vmatpush.msra.mxu2 %v7011_v5  ;;  %v526_v56 = vsub.f32 %v7026_v12, %v525_v30  ;;  %231 = vst [vmem:[#allocation2 + $0x20] sm:$0xff] %v6782_v54 }
  0x46   : > { %v6908_v14 = vmul.f32 0.25, %v197_v13  ;;  %v7001_v0 = vmul.f32 0.25, %v204_v48  ;;  %v7028_v13 = vand.u32 4294901760, %v394_v3  ;;  %492 = vmatpush.msra.mxu1 %v491_v10  ;;  %v514_v29 = vsub.f32 %v7011_v5, %v513_v11  ;;  %653 = vmatpush.msra.mxu3 %v6997_v62 }
  0x47   : > { %v509_v47 = vand.u32 4294901760, %v508_v15  ;;  %v7060_v48 = vsub.f32 %v393_v8, %v7037_v16  ;;  %v532_v1 = vsub.f32 %v7043_v23, %v531_v52  ;;  %v7092_v4 = vsub.f32 %v391_v25, %v7067_v53  ;;  %600 = vmatpush.msra.mxu2 %v7014_v6  ;;  %426 = vmatpush.msra.mxu0 %v6997_v62 }
  0x48   : > { %255 = vrot.lane.b32.xlu1 %v6908_v14, %s6775_s17  ;;  %238 = vrot.lane.b32.xlu0 %v6908_v14, %s6776_s27  ;;  %v7053_v45 = vsub.f32 %v394_v3, %v7028_v13  ;;  %v515_v55 = vand.u32 4294901760, %v514_v29  ;;  %234 = vst.msk [vmem:[#allocation2] sm:$0x1] %vm233_vm1, %v6908_v14  ;;  %v527_v8 = vand.u32 4294901760, %v526_v56  ;;  %v549_v10 = vand.u32 4294901760, %v7078_v59 }
  0x49   : > { %271 = vrot.lane.b32.xlu2 %v6908_v14, %s6777_s7  ;;  %498 = vmatpush.msra.mxu1 %v497_v18  ;;  %v543_v3 = vand.u32 4294901760, %v7060_v48  ;;  %v555_v17 = vand.u32 4294901760, %v7092_v4  ;;  %295 = vst.msk [vmem:[#allocation2 + $0x8] sm:$0x1] %vm233_vm1, %v7001_v0 }
  0x4a   : > { %v537_v57 = vand.u32 4294901760, %v7053_v45  ;;  %603 = vmatpush.msra.mxu2 %v7026_v12  ;;  %655 = vmatpush.msra.mxu3 %v6999_v63 }
  0x4b   : > { %504 = vmatpush.msra.mxu1 %v503_v24  ;;  %v544_v15 = vsub.f32 %v7060_v48, %v543_v3  ;;  %428 = vmatpush.msra.mxu0 %v6999_v63  ;;  %v550_v24 = vsub.f32 %v7078_v59, %v549_v10  ;;  %v556_v29 = vsub.f32 %v7092_v4, %v555_v17 }
  0x4c   : > { %v538_v9 = vsub.f32 %v7053_v45, %v537_v57  ;;  %606 = vmatpush.msra.mxu2 %v7043_v23  ;;  %657 = vmatpush.msra.mxu3 %v7016_v7 }
  0x4d   : > { %510 = vmatpush.msra.mxu1 %v509_v47  ;;  %v545_v25 = vand.u32 4294901760, %v544_v15  ;;  %430 = vmatpush.msra.mxu0 %v7016_v7  ;;  %v551_v47 = vand.u32 4294901760, %v550_v24 }
  0x4e   : > { %v539_v18 = vand.u32 4294901760, %v538_v9  ;;  %609 = vmatpush.msra.mxu2 %v7053_v45  ;;  %659 = vmatpush.msra.mxu3 %v7028_v13 }
  0x4f   : > { %516 = vmatpush.msra.mxu1 %v515_v55  ;;  %432 = vmatpush.msra.mxu0 %v7028_v13 }
  0x50   : > { %263 = vrot.lane.b32.xlu1 %v6908_v14, %s6778_s8  ;;  %247 = vrot.lane.b32.xlu0 %v6908_v14, %s6779_s13 }
  0x51   : > { %279 = vrot.lane.b32.xlu2 %v6908_v14, %s6780_s14  ;;  %522 = vmatpush.msra.mxu1 %v521_v60 }
  0x52   : > { %612 = vmatpush.msra.mxu2 %v7060_v48  ;;  %661 = vmatpush.msra.mxu3 %v7037_v16  ;;  %v374_v48 = vld [vmem:[#allocation4 + $0x38] sm:$0xff] }
  0x53   : > { %528 = vmatpush.msra.mxu1 %v527_v8  ;;  %434 = vmatpush.msra.mxu0 %v7037_v16  ;;  %v7256_v55 = vand.u32 4294901760, %v374_v48  ;;  %v372_v8 = vld [vmem:[#allocation4 + $0x28] sm:$0xff] }
  0x54   : > { %615 = vmatpush.msra.mxu2 %v7078_v59  ;;  %663 = vmatpush.msra.mxu3 %v7055_v46 }
  0x55   : > { %436 = vmatpush.msra.mxu0 %v7055_v46 }
  0x56   : > { %618 = vmatpush.msra.mxu2 %v7092_v4  ;;  %665 = vmatpush.msra.mxu3 %v7067_v53 }
  0x57   : > { %438 = vmatpush.msra.mxu0 %v7067_v53 }
  0x58   : > { %298 = vrot.lane.b32.xlu1 %v7001_v0, %s6776_s27  ;;  %287 = vrot.lane.b32.xlu0 %v6908_v14, %s6781_s15  ;;  %v533_v14 = vand.u32 4294901760, %v532_v1 }
  0x59   : > { %307 = vrot.lane.b32.xlu2 %v7001_v0, %s6779_s13  ;;  %687 = vmatpush.msrb.mxu0 %v465_v39  ;;  %v378_v39 = vld [vmem:[#allocation4 + $0x58] sm:$0xff] }
  0x5a   : > { %534 = vmatpush.msra.mxu1 %v533_v14  ;;  %v7273_v14 = vand.u32 4294901760, %v372_v8 }
  0x5b   : > { %691 = vmatpush.msrb.mxu0 %v471_v40 }
  0x5c   : > { %540 = vmatpush.msra.mxu1 %v539_v18  ;;  %v371_v18 = vld [vmem:[#allocation4 + $0x20] sm:$0xff] }
  0x5d   : > { %695 = vmatpush.msrb.mxu0 %v477_v41 }
  0x5e   : > { %546 = vmatpush.msra.mxu1 %v545_v25 }
  0x5f   : > { %699 = vmatpush.msrb.mxu0 %v483_v42 }
  0x60   : > { %323 = vrot.lane.b32.xlu1 %v7001_v0, %s6778_s8  ;;  %315 = vrot.lane.b32.xlu0 %v7001_v0, %s6775_s17 }
  0x61   : > { %331 = vrot.lane.b32.xlu2 %v7001_v0, %s6777_s7  ;;  %552 = vmatpush.msra.mxu1 %v551_v47  ;;  %v7286_v47 = vand.u32 4294901760, %v371_v18 }
  0x62   : > { %703 = vmatpush.msrb.mxu0 %v489_v43  ;;  %v7215_v43 = vand.u32 4294901760, %v378_v39 }
  0x64   : > { %707 = vmatpush.msrb.mxu0 %v495_v49  ;;  %v377_v49 = vld [vmem:[#allocation4 + $0x50] sm:$0xff] }
  0x66   : > { %711 = vmatpush.msrb.mxu0 %v501_v58 }
  0x68   : > { %347 = vrot.lane.b32.xlu1 %v7001_v0, %s6781_s15  ;;  %339 = vrot.lane.b32.xlu0 %v7001_v0, %s6780_s14  ;;  %v557_v0 = vand.u32 4294901760, %v556_v29 }
  0x69   : > { %715 = vmatpush.msrb.mxu0 %v507_v2  ;;  %v376_v2 = vld [vmem:[#allocation4 + $0x48] sm:$0xff] }
  0x6a   : > { %558 = vmatpush.msra.mxu1 %v557_v0  ;;  %v7289_v0 = vsub.f32 %v372_v8, %v7273_v14 }
  0x6b   : > { %719 = vmatpush.msrb.mxu0 %v513_v11 }
  0x6c   : > { %761 = vmatpush.msrb.mxu1 %v6916_v19  ;;  %v382_v19 = vld [vmem:[#allocation4 + $0x78] sm:$0xff] }
  0x6d   : > { %723 = vmatpush.msrb.mxu0 %v519_v22 }
  0x6e   : > { %763 = vmatpush.msrb.mxu1 %v6918_v20  ;;  %v7185_v20 = vand.u32 4294901760, %v382_v19 }
  0x6f   : > { %727 = vmatpush.msrb.mxu0 %v525_v30 }
  0x70   : > { %765 = vmatpush.msrb.mxu1 %v6920_v21  ;;  %v381_v21 = vld [vmem:[#allocation4 + $0x70] sm:$0xff]  ;;  %805 = vmatpush.msrb.mxu2 %v7185_v20 }
  0x71   : > { %731 = vmatpush.msrb.mxu0 %v531_v52 }
  0x72   : > { %767 = vmatpush.msrb.mxu1 %v6922_v26  ;;  %v7188_v26 = vand.u32 4294901760, %v381_v21 }
  0x73   : > { %735 = vmatpush.msrb.mxu0 %v537_v57  ;;  %v373_v57 = vld [vmem:[#allocation4 + $0x30] sm:$0xff] }
  0x74   : > { %769 = vmatpush.msrb.mxu1 %v6924_v27  ;;  %v7191_v27 = vsub.f32 %v382_v19, %v7185_v20  ;;  %807 = vmatpush.msrb.mxu2 %v7188_v26  ;;  %v7198_v33 = vsub.f32 %v381_v21, %v7188_v26  ;;  %v7265_v1 = vand.u32 4294901760, %v373_v57  ;;  %v370_v21 = vld [vmem:[#allocation4 + $0x18] sm:$0xff] }
  0x75   : > { %739 = vmatpush.msrb.mxu0 %v543_v3  ;;  %v7268_v3 = vsub.f32 %v374_v48, %v7256_v55 }
  0x76   : > { %771 = vmatpush.msrb.mxu1 %v6926_v28  ;;  %v380_v28 = vld [vmem:[#allocation4 + $0x68] sm:$0xff]  ;;  %v862_v31 = vand.u32 4294901760, %v7191_v27  ;;  %v868_v36 = vand.u32 4294901760, %v7198_v33  ;;  %v7276_v15 = vsub.f32 %v373_v57, %v7265_v1 }
  0x77   : > { %743 = vmatpush.msrb.mxu0 %v549_v10  ;;  %v7195_v32 = vand.u32 4294901760, %v380_v28  ;;  %v910_v10 = vand.u32 4294901760, %v7268_v3 }
  0x78   : > { %773 = vmatpush.msrb.mxu1 %v6939_v34  ;;  %v379_v34 = vld [vmem:[#allocation4 + $0x60] sm:$0xff]  ;;  %v863_v35 = vsub.f32 %v7191_v27, %v862_v31  ;;  %v869_v41 = vsub.f32 %v7198_v33, %v868_v36  ;;  %v916_v29 = vand.u32 4294901760, %v7276_v15 }
  0x79   : > { %747 = vmatpush.msrb.mxu0 %v555_v17  ;;  %809 = vmatpush.msrb.mxu2 %v7195_v32  ;;  %v7205_v37 = vand.u32 4294901760, %v379_v34  ;;  %v911_v25 = vsub.f32 %v7268_v3, %v910_v10 }
  0x7a   : > { %775 = vmatpush.msrb.mxu1 %v6950_v38  ;;  %v7208_v38 = vsub.f32 %v380_v28, %v7195_v32  ;;  %v864_v40 = vand.u32 4294901760, %v863_v35  ;;  %v870_v50 = vand.u32 4294901760, %v869_v41  ;;  %v922_v35 = vand.u32 4294901760, %v7289_v0  ;;  %v369_v41 = vld [vmem:[#allocation4 + $0x10] sm:$0xff] }
  0x7b   : > { %811 = vmatpush.msrb.mxu2 %v7205_v37  ;;  %v7218_v44 = vsub.f32 %v379_v34, %v7205_v37  ;;  %v912_v28 = vand.u32 4294901760, %v911_v25  ;;  %v917_v34 = vsub.f32 %v7276_v15, %v916_v29 }
  0x7c   : > { %777 = vmatpush.msrb.mxu1 %v6995_v61  ;;  %v874_v42 = vand.u32 4294901760, %v7208_v38  ;;  %865 = vmatpush.msrb.mxu3 %v864_v40  ;;  %v7224_v61 = vand.u32 4294901760, %v377_v49  ;;  %v7300_v40 = vsub.f32 %v371_v18, %v7286_v47 }
  0x7d   : > { %813 = vmatpush.msrb.mxu2 %v7215_v43 }
  0x7e   : > { %779 = vmatpush.msrb.mxu1 %v6997_v62  ;;  %v875_v58 = vsub.f32 %v7208_v38, %v874_v42  ;;  %v7227_v62 = vsub.f32 %v378_v39, %v7215_v43  ;;  %871 = vmatpush.msrb.mxu3 %v870_v50  ;;  %v7235_v11 = vsub.f32 %v377_v49, %v7224_v61  ;;  %v7297_v39 = vand.u32 4294901760, %v370_v21 }
  0x7f   : > { %815 = vmatpush.msrb.mxu2 %v7224_v61  ;;  %v918_v49 = vand.u32 4294901760, %v917_v34  ;;  %v923_v50 = vsub.f32 %v7289_v0, %v922_v35 }
  0x80   : > { %781 = vmatpush.msrb.mxu1 %v6999_v63  ;;  %v880_v63 = vand.u32 4294901760, %v7218_v44  ;;  %v876_v5 = vand.u32 4294901760, %v875_v58  ;;  %v886_v6 = vand.u32 4294901760, %v7227_v62  ;;  %v892_v23 = vand.u32 4294901760, %v7235_v11 }
  0x81   : > { %v7306_v58 = vand.u32 4294901760, %v369_v41 }
  0x82   : > { %783 = vmatpush.msrb.mxu1 %v7016_v7  ;;  %v7232_v7 = vand.u32 4294901760, %v376_v2  ;;  %v881_v12 = vsub.f32 %v7218_v44, %v880_v63  ;;  %877 = vmatpush.msrb.mxu3 %v876_v5  ;;  %v887_v22 = vsub.f32 %v7227_v62, %v886_v6  ;;  %v893_v52 = vsub.f32 %v7235_v11, %v892_v23 }
  0x83   : > { %v928_v5 = vand.u32 4294901760, %v7300_v40  ;;  %v7320_v48 = vsub.f32 %v369_v41, %v7306_v58 }
  0x84   : > { %785 = vmatpush.msrb.mxu1 %v7028_v13  ;;  %v375_v13 = vld [vmem:[#allocation4 + $0x40] sm:$0xff]  ;;  %817 = vmatpush.msrb.mxu2 %v7232_v7  ;;  %v7248_v45 = vsub.f32 %v376_v2, %v7232_v7  ;;  %v888_v51 = vand.u32 4294901760, %v887_v22  ;;  %v894_v59 = vand.u32 4294901760, %v893_v52  ;;  %v7309_v2 = vsub.f32 %v370_v21, %v7297_v39 }
  0x85   : > { %v7245_v30 = vand.u32 4294901760, %v375_v13 }
  0x86   : > { %787 = vmatpush.msrb.mxu1 %v7037_v16 }
  0x87   : > { %819 = vmatpush.msrb.mxu2 %v7245_v30  ;;  %v7259_v56 = vsub.f32 %v375_v13, %v7245_v30  ;;  %v924_v13 = vand.u32 4294901760, %v923_v50 }
  0x88   : > { %789 = vmatpush.msrb.mxu1 %v7055_v46  ;;  %v882_v46 = vand.u32 4294901760, %v881_v12  ;;  %v368_v12 = vld [vmem:[#allocation4 + $0x8] sm:$0xff] }
  0x89   : > { %821 = vmatpush.msrb.mxu2 %v7256_v55  ;;  %v904_v4 = vand.u32 4294901760, %v7259_v56  ;;  %v7314_v22 = vand.u32 4294901760, %v368_v12 }
  0x8a   : > { %791 = vmatpush.msrb.mxu1 %v7067_v53  ;;  %v898_v53 = vand.u32 4294901760, %v7248_v45  ;;  %883 = vmatpush.msrb.mxu3 %v882_v46  ;;  %v929_v46 = vsub.f32 %v7300_v40, %v928_v5 }
  0x8b   : > { %823 = vmatpush.msrb.mxu2 %v7265_v1  ;;  %v905_v17 = vsub.f32 %v7259_v56, %v904_v4 }
  0x8c   : > { %v899_v60 = vsub.f32 %v7248_v45, %v898_v53  ;;  %889 = vmatpush.msrb.mxu3 %v888_v51  ;;  %v367_v51 = vld [vmem:[#allocation4] sm:$0xff]  ;;  %v930_v8 = vand.u32 4294901760, %v929_v46 }
  0x8d   : > { %825 = vmatpush.msrb.mxu2 %v7273_v14  ;;  %v906_v19 = vand.u32 4294901760, %v905_v17 }
  0x8e   : > { %v900_v9 = vand.u32 4294901760, %v899_v60  ;;  %895 = vmatpush.msrb.mxu3 %v894_v59  ;;  %v7326_v59 = vand.u32 4294901760, %v367_v51  ;;  %v7329_v60 = vsub.f32 %v368_v12, %v7314_v22 }
  0x8f   : > { %827 = vmatpush.msrb.mxu2 %v7286_v47 }
  0x90   : > { %901 = vmatpush.msrb.mxu3 %v900_v9  ;;  %v940_v9 = vand.u32 4294901760, %v7320_v48  ;;  %v946_v18 = vand.u32 4294901760, %v7329_v60 }
  0x91   : > { %829 = vmatpush.msrb.mxu2 %v7297_v39 }
  0x92   : > { %907 = vmatpush.msrb.mxu3 %v906_v19  ;;  %v941_v25 = vsub.f32 %v7320_v48, %v940_v9  ;;  %v947_v19 = vsub.f32 %v7329_v60, %v946_v18 }
  0x93   : > { %831 = vmatpush.msrb.mxu2 %v7306_v58 }
  0x94   : > { %913 = vmatpush.msrb.mxu3 %v912_v28  ;;  %v942_v28 = vand.u32 4294901760, %v941_v25  ;;  %v948_v34 = vand.u32 4294901760, %v947_v19 }
  0x95   : > { %833 = vmatpush.msrb.mxu2 %v7314_v22 }
  0x96   : > { %919 = vmatpush.msrb.mxu3 %v918_v49 }
  0x97   : > { %835 = vmatpush.msrb.mxu2 %v7326_v59 }
  0x98   : > { %925 = vmatpush.msrb.mxu3 %v924_v13 }
  0x9a   : > { %931 = vmatpush.msrb.mxu3 %v930_v8  ;;  %v11647_v8 = vlaneseq }
  0xa3   : > { %v272_v16 = vpop.permute.xlu2 %271 }
  0xa4   : > { %274 = vst.msk [vmem:[#allocation2 + $0x5] sm:$0x1] %vm233_vm1, %v272_v16  ;;  %v934_v16 = vand.u32 4294901760, %v7309_v2 }
  0xa6   : > { %v935_v57 = vsub.f32 %v7309_v2, %v934_v16 }
  0xa8   : > { %v936_v17 = vand.u32 4294901760, %v935_v57 }
  0xaa   : > { %937 = vmatpush.msrb.mxu3 %v936_v17  ;;  %v7356_v17 = vshrl.u32 %v11647_v8, 7 }
  0xab   : > { %v280_v24 = vpop.permute.xlu2 %279 }
  0xac   : > { %282 = vst.msk [vmem:[#allocation2 + $0x6] sm:$0x1] %vm233_vm1, %v280_v24  ;;  %v7336_v24 = vsub.f32 %v367_v51, %v7326_v59  ;;  %943 = vmatpush.msrb.mxu3 %v942_v28  ;;  %v385_v28 = vrot.slane %v6782_v54, 6  ;;  %vm386_vm2 = vcmp.lt.s32.totalorder %v7356_v17, 2  ;;  %vm363_vm3 = vcmp.lt.s32.totalorder %v7356_v17, 3 }
  0xad   : > { %vm1204_vm4 = vcmp.lt.s32.totalorder %v7356_v17, 1  ;;  %vm2043_vm5 = vcmp.lt.s32.totalorder %v7356_v17, 7  ;;  %vm2466_vm6 = vcmp.lt.s32.totalorder %v7356_v17, 6  ;;  %vm2889_vm7 = vcmp.lt.s32.totalorder %v7356_v17, 5 }
  0xae   : > { %v952_v21 = vand.u32 4294901760, %v7336_v24  ;;  %949 = vmatpush.msrb.mxu3 %v948_v34 }
  0xb0   : > { %v953_v41 = vsub.f32 %v7336_v24, %v952_v21 }
  0xb2   : > { %v954_v13 = vand.u32 4294901760, %v953_v41 }
  0xb3   : > { %v308_v52 = vpop.permute.xlu2 %307 }
  0xb4   : > { %310 = vst.msk [vmem:[#allocation2 + $0xa] sm:$0x1] %vm233_vm1, %v308_v52  ;;  %955 = vmatpush.msrb.mxu3 %v954_v13 }
  0xba   : > { %v256_v49 = vpop.permute.xlu1 %255  ;;  %v239_v50 = vpop.permute.xlu0 %238 }
  0xbb   : > { %258 = vst.msk [vmem:[#allocation2 + $0x3] sm:$0x1] %vm233_vm1, %v256_v49  ;;  %v332_v12 = vpop.permute.xlu2 %331 }
  0xbc   : > { %241 = vst.msk [vmem:[#allocation2 + $0x1] sm:$0x1] %vm233_vm1, %v239_v50 }
  0xbd   : > { %334 = vst.msk [vmem:[#allocation2 + $0xd] sm:$0x1] %vm233_vm1, %v332_v12 }
  0xc2   : > { %v264_v46 = vpop.permute.xlu1 %263  ;;  %v248_v51 = vpop.permute.xlu0 %247 }
  0xc3   : > { %266 = vst.msk [vmem:[#allocation2 + $0x4] sm:$0x1] %vm233_vm1, %v264_v46 }
  0xc4   : > { %250 = vst.msk [vmem:[#allocation2 + $0x2] sm:$0x1] %vm233_vm1, %v248_v51 }
  0xca   : > { %v299_v52 = vpop.permute.xlu1 %298  ;;  %v288_v57 = vpop.permute.xlu0 %287 }
  0xcb   : > { %301 = vst.msk [vmem:[#allocation2 + $0x9] sm:$0x1] %vm233_vm1, %v299_v52 }
  0xcc   : > { %290 = vst.msk [vmem:[#allocation2 + $0x7] sm:$0x1] %vm233_vm1, %v288_v57 }
  0xd2   : > { %v324_v25 = vpop.permute.xlu1 %323  ;;  %v316_v19 = vpop.permute.xlu0 %315 }
  0xd3   : > { %326 = vst.msk [vmem:[#allocation2 + $0xc] sm:$0x1] %vm233_vm1, %v324_v25  ;;  %v7360_v34 = vld [vmem:[#allocation2] sm:$0xff] }
  0xd4   : > { %318 = vst.msk [vmem:[#allocation2 + $0xb] sm:$0x1] %vm233_vm1, %v316_v19  ;;  %v383_v41 = vrot.slane %v7360_v34, 6 }
  0xd6   : > { %v389_v49 = vsel %vm386_vm2, %v385_v28, %v383_v41 }
  0xd7   : > { %v7367_v50 = vand.u32 4294901760, %v389_v49 }
  0xd9   : > { %560 = vmatmul.f32.vlgmr.msra.gmra.mxu1 %v7367_v50  ;;  %v440_v12 = vsub.f32 %v389_v49, %v7367_v50 }
  0xda   : > { %1032 = vmatpush.msra.mxu1 %v7185_v20  ;;  %v348_v13 = vpop.permute.xlu1 %347  ;;  %v340_v46 = vpop.permute.xlu0 %339 }
  0xdb   : > { %350 = vst.msk [vmem:[#allocation2 + $0xf] sm:$0x1] %vm233_vm1, %v348_v13  ;;  %621 = vmatmul.f32.vlgmr.msra.gmra.mxu2 %v440_v12  ;;  %v441_v51 = vand.u32 4294901760, %v440_v12  ;;  %v1219_v13 = vld [vmem:[#allocation4 + $0x150] sm:$0xff] }
  0xdc   : > { %342 = vst.msk [vmem:[#allocation2 + $0xe] sm:$0x1] %vm233_vm1, %v340_v46  ;;  %1034 = vmatpush.msra.mxu1 %v7188_v26  ;;  %1084 = vmatpush.msra.mxu2 %v862_v31 }
  0xdd   : > { %669 = vmatmul.f32.vlgmr.msra.gmra.mxu3 %v441_v51  ;;  %v442_v52 = vsub.f32 %v440_v12, %v441_v51 }
  0xde   : > { %1036 = vmatpush.msra.mxu1 %v7195_v32  ;;  %1088 = vmatpush.msra.mxu2 %v868_v36  ;;  %v1224_v36 = vld [vmem:[#allocation4 + $0x178] sm:$0xff] }
  0xdf   : > { %1158 = vmatpush.msra.mxu3 %v7185_v20  ;;  %v443_v57 = vand.u32 4294901760, %v442_v52 }
  0xe0   : > { %1038 = vmatpush.msra.mxu1 %v7205_v37  ;;  %1092 = vmatpush.msra.mxu2 %v874_v42  ;;  %v1223_v42 = vld [vmem:[#allocation4 + $0x170] sm:$0xff] }
  0xe1   : > { %1160 = vmatpush.msra.mxu3 %v7188_v26  ;;  %444 = vmatmul.f32.vlgmr.msra.gmra.mxu0 %v443_v57  ;;  %v358_v26 = vrot.slane %v7360_v34, 5 }
  0xe2   : > { %970 = vmatpush.msra.mxu0 %v7191_v27  ;;  %1040 = vmatpush.msra.mxu1 %v7215_v43  ;;  %v7400_v27 = vrot.slane %v6782_v54, 5 }
  0xe3   : > { %1096 = vmatpush.msra.mxu2 %v880_v63  ;;  %1162 = vmatpush.msra.mxu3 %v7195_v32  ;;  %v7390_v31 = vld [vmem:[#allocation2 + $0x8] sm:$0xff]  ;;  %v1222_v63 = vld [vmem:[#allocation4 + $0x168] sm:$0xff] }
  0xe4   : > { %973 = vmatpush.msra.mxu0 %v7198_v33  ;;  %1042 = vmatpush.msra.mxu1 %v7224_v61  ;;  %v384_v20 = vrot.slane %v7390_v31, 6  ;;  %v359_v49 = vrot.slane %v7390_v31, 5 }
  0xe5   : > { %1100 = vmatpush.msra.mxu2 %v886_v6  ;;  %1164 = vmatpush.msra.mxu3 %v7205_v37 }
  0xe6   : > { %976 = vmatpush.msra.mxu0 %v7208_v38  ;;  %1044 = vmatpush.msra.mxu1 %v7232_v7  ;;  %v388_v32 = vsel %vm386_vm2, %v383_v41, %v384_v20  ;;  %v387_v54 = vsel %vm386_vm2, %v384_v20, %v385_v28  ;;  %v366_v38 = vsel %vm363_vm3, %v7400_v27, %v358_v26  ;;  %v11672_v28 = vrot.slane %v7360_v34, 7  ;;  %v1220_v41 = vld [vmem:[#allocation4 + $0x158] sm:$0xff] }
  0xe7   : > { %1104 = vmatpush.msra.mxu2 %v892_v23  ;;  %1166 = vmatpush.msra.mxu3 %v7215_v43  ;;  %v7410_v33 = vand.u32 4294901760, %v388_v32  ;;  %v7435_v6 = vand.u32 4294901760, %v366_v38  ;;  %v7439_v23 = vand.u32 4294901760, %v1223_v42  ;;  %v7486_v46 = vand.u32 4294901760, %v1220_v41 }
  0xe8   : > { %979 = vmatpush.msra.mxu0 %v7218_v44  ;;  %1046 = vmatpush.msra.mxu1 %v7245_v30  ;;  %v7430_v44 = vand.u32 4294901760, %v387_v54 }
  0xe9   : > { %1108 = vmatpush.msra.mxu2 %v898_v53  ;;  %1168 = vmatpush.msra.mxu3 %v7224_v61  ;;  %v448_v37 = vsub.f32 %v388_v32, %v7410_v33  ;;  %v7432_v61 = vand.u32 4294901760, %v1224_v36  ;;  %v11653_v53 = vrot.slane %v7390_v31, 7  ;;  %v1218_v32 = vld [vmem:[#allocation4 + $0x148] sm:$0xff] }
  0xea   : > { %564 = vmatmul.f32.gmra.mxu1 %v7410_v33  ;;  %982 = vmatpush.msra.mxu0 %v7227_v62 }
  0xeb   : > { %1048 = vmatpush.msra.mxu1 %v7256_v55  ;;  %1112 = vmatpush.msra.mxu2 %v904_v4  ;;  %v449_v43 = vand.u32 4294901760, %v448_v37  ;;  %v7445_v4 = vand.u32 4294901760, %v1222_v63  ;;  %v7450_v19 = vsub.f32 %v1224_v36, %v7432_v61 }
  0xec   : > { %1170 = vmatpush.msra.mxu3 %v7232_v7  ;;  %626 = vmatmul.f32.gmra.mxu2 %v448_v37  ;;  %v1221_v7 = vld [vmem:[#allocation4 + $0x160] sm:$0xff] }
  0xed   : > { %985 = vmatpush.msra.mxu0 %v7235_v11  ;;  %1050 = vmatpush.msra.mxu1 %v7265_v1  ;;  %v450_v62 = vsub.f32 %v448_v37, %v449_v43  ;;  %v456_v11 = vsub.f32 %v387_v54, %v7430_v44  ;;  %v11673_v12 = vand.u32 4294901760, %v7450_v19  ;;  %v11652_v54 = vrot.slane %v7390_v31, 1  ;;  %v1217_v37 = vld [vmem:[#allocation4 + $0x140] sm:$0xff] }
  0xee   : > { %1116 = vmatpush.msra.mxu2 %v910_v10  ;;  %1172 = vmatpush.msra.mxu3 %v7245_v30  ;;  %v7457_v30 = vsub.f32 %v366_v38, %v7435_v6  ;;  %v7465_v10 = vand.u32 4294901760, %v1221_v7 }
  0xef   : > { %675 = vmatmul.f32.gmra.mxu3 %v449_v43  ;;  %988 = vmatpush.msra.mxu0 %v7248_v45  ;;  %v451_v25 = vand.u32 4294901760, %v450_v62  ;;  %v7463_v45 = vsub.f32 %v1223_v42, %v7439_v23  ;;  %v1284_v20 = vsub.f32 %v7450_v19, %v11673_v12  ;;  %v7539_v42 = vand.u32 4294901760, %v1218_v32 }
  0xf0   : > { %1052 = vmatpush.msra.mxu1 %v7273_v14  ;;  %1120 = vmatpush.msra.mxu2 %v916_v29  ;;  %v7474_v29 = vsel %vm1204_vm4, %v11672_v28, %v11653_v53  ;;  %v7494_v51 = vsub.f32 %v1221_v7, %v7465_v10  ;;  %v1635_v28 = vld [vmem:[#allocation4 + $0x1d0] sm:$0xff] }
  0xf1   : > { %1174 = vmatpush.msra.mxu3 %v7256_v55  ;;  %991 = vmatpush.msra.mxu0 %v7259_v56  ;;  %v7480_v55 = vsub.f32 %v1222_v63, %v7445_v4  ;;  %v457_v56 = vand.u32 4294901760, %v456_v11  ;;  %v1285_v63 = vand.u32 4294901760, %v1284_v20  ;;  %v11650_v20 = vrot.slane %v7390_v31, 2 }
  0xf2   : > { %1054 = vmatpush.msra.mxu1 %v7286_v47  ;;  %1124 = vmatpush.msra.mxu2 %v922_v35  ;;  %v838_v35 = vand.u32 4294901760, %v7457_v30  ;;  %v7788_v12 = vand.u32 4294901760, %v1635_v28 }
  0xf3   : > { %1176 = vmatpush.msra.mxu3 %v7265_v1  ;;  %452 = vmatmul.f32.gmra.mxu0 %v451_v25  ;;  %v11668_v1 = vand.u32 4294901760, %v7463_v45  ;;  %v11663_v52 = vand.u32 4294901760, %v7480_v55  ;;  %v458_v57 = vsub.f32 %v456_v11, %v457_v56  ;;  %v7558_v25 = vand.u32 4294901760, %v1217_v37 }
  0xf4   : > { %568 = vmatmul.f32.gmra.mxu1 %v7430_v44  ;;  %994 = vmatpush.msra.mxu0 %v7268_v3  ;;  %v365_v3 = vsel %vm363_vm3, %v358_v26, %v359_v49  ;;  %v839_v36 = vsub.f32 %v7457_v30, %v838_v35 }
  0xf5   : > { %1056 = vmatpush.msra.mxu1 %v7297_v39  ;;  %1128 = vmatpush.msra.mxu2 %v928_v5  ;;  %v7504_v5 = vand.u32 4294901760, %v1219_v13  ;;  %v7518_v26 = vand.u32 4294901760, %v365_v3 }
  0xf6   : > { %1178 = vmatpush.msra.mxu3 %v7273_v14  ;;  %631 = vmatmul.f32.gmra.mxu2 %v456_v11  ;;  %v7516_v14 = vsub.f32 %v1220_v41, %v7486_v46  ;;  %v1216_v11 = vld [vmem:[#allocation4 + $0x138] sm:$0xff] }
  0xf7   : > { %997 = vmatpush.msra.mxu0 %v7276_v15  ;;  %1058 = vmatpush.msra.mxu1 %v7306_v58  ;;  %v11651_v15 = vrot.slane %v7360_v34, 1  ;;  %v7537_v38 = vsub.f32 %v1219_v13, %v7504_v5  ;;  %v7556_v7 = vsub.f32 %v365_v3, %v7518_v26  ;;  %v7568_v13 = vsub.f32 %v1218_v32, %v7539_v42  ;;  %v1215_v3 = vld [vmem:[#allocation4 + $0x130] sm:$0xff] }
  0xf8   : > { %1132 = vmatpush.msra.mxu2 %v934_v16  ;;  %1180 = vmatpush.msra.mxu3 %v7286_v47  ;;  %v1290_v16 = vsub.f32 %v7463_v45, %v11668_v1  ;;  %v11662_v47 = vand.u32 4294901760, %v7494_v51  ;;  %v11661_v62 = vand.u32 4294901760, %v7516_v14 }
  0xf9   : > { %681 = vmatmul.f32.gmra.mxu3 %v457_v56  ;;  %1000 = vmatpush.msra.mxu0 %v7289_v0  ;;  %v1296_v0 = vsub.f32 %v7480_v55, %v11663_v52  ;;  %v7547_v43 = vsel %vm2043_vm5, %v11651_v15, %v11652_v54  ;;  %v11659_v56 = vand.u32 4294901760, %v7537_v38  ;;  %v1211_v54 = vld [vmem:[#allocation4 + $0x110] sm:$0xff] }
  0xfa   : > { %1060 = vmatpush.msra.mxu1 %v7314_v22  ;;  %1136 = vmatpush.msra.mxu2 %v940_v9  ;;  %11863 = vst [vmem:[#allocation13_spill] sm:$0xff] %v7547_v43  ;;  %v459_v9 = vand.u32 4294901760, %v458_v57  ;;  %v11649_v57 = vrot.slane %v7360_v34, 2  ;;  %v1308_v32 = vsub.f32 %v7516_v14, %v11661_v62  ;;  %v7828_v43 = vld [vmem:[#allocation2 + $0x10] sm:$0xff] }
  0xfb   : > { %1182 = vmatpush.msra.mxu3 %v7297_v39  ;;  %1003 = vmatpush.msra.mxu0 %v7300_v40  ;;  %v1291_v39 = vand.u32 4294901760, %v1290_v16  ;;  %v1302_v40 = vsub.f32 %v7494_v51, %v11662_v47  ;;  %v1297_v41 = vand.u32 4294901760, %v1296_v0  ;;  %v1214_v16 = vld [vmem:[#allocation4 + $0x128] sm:$0xff] }
  0xfc   : > { %1062 = vmatpush.msra.mxu1 %v7326_v59  ;;  %1140 = vmatpush.msra.mxu2 %v946_v18  ;;  %v840_v18 = vand.u32 4294901760, %v839_v36  ;;  %v7587_v36 = vsub.f32 %v1217_v37, %v7558_v25  ;;  %v11655_v37 = vand.u32 4294901760, %v7568_v13 }
  0xfd   : > { %1184 = vmatpush.msra.mxu3 %v7306_v58  ;;  %460 = vmatmul.f32.gmra.mxu0 %v459_v9  ;;  %v7572_v58 = vand.u32 4294901760, %v1216_v11  ;;  %v1314_v9 = vsub.f32 %v7537_v38, %v11659_v56 }
  0xfe   : > { %793 = vmatmul.f32.vlgmr.msrb.gmra.mxu1 %v7367_v50  ;;  %1006 = vmatpush.msra.mxu0 %v7309_v2  ;;  %v364_v2 = vsel %vm363_vm3, %v359_v49, %v7400_v27  ;;  %v1303_v27 = vand.u32 4294901760, %v1302_v40  ;;  %v7591_v49 = vand.u32 4294901760, %v1215_v3  ;;  %v11654_v40 = vand.u32 4294901760, %v7587_v36 }
  0xff   : > { %1286 = vmatpush.msrb.mxu1 %v1285_v63  ;;  %1144 = vmatpush.msra.mxu2 %v952_v21  ;;  %v846_v21 = vand.u32 4294901760, %v7556_v7  ;;  %v7604_v0 = vand.u32 4294901760, %v364_v2  ;;  %v7611_v63 = vsub.f32 %v1216_v11, %v7572_v58 }
 0x100   : > { %1186 = vmatpush.msra.mxu3 %v7314_v22  ;;  %841 = vmatmul.f32.vlgmr.msrb.gmra.mxu2 %v840_v18  ;;  %v7599_v22 = vsel %vm2466_vm6, %v11649_v57, %v11650_v20  ;;  %v7619_v18 = vand.u32 4294901760, %v1214_v16  ;;  %v7623_v11 = vsub.f32 %v1215_v3, %v7591_v49  ;;  %v1212_v57 = vld [vmem:[#allocation4 + $0x118] sm:$0xff] }
 0x101   : > { %1292 = vmatpush.msrb.mxu1 %v1291_v39  ;;  %1391 = vmatpush.msrb.mxu2 %v7450_v19  ;;  %11864 = vst [vmem:[#allocation14_spill] sm:$0xff] %v7599_v22  ;;  %v1213_v39 = vld [vmem:[#allocation4 + $0x120] sm:$0xff]  ;;  %v11658_v3 = vand.u32 4294901760, %v7611_v63  ;;  %v7650_v53 = vand.u32 4294901760, %v1212_v57 }
 0x102   : > { %1009 = vmatpush.msra.mxu0 %v7320_v48  ;;  %1188 = vmatpush.msra.mxu3 %v7326_v59  ;;  %v1309_v48 = vand.u32 4294901760, %v1308_v32  ;;  %v847_v59 = vsub.f32 %v7556_v7, %v846_v21  ;;  %v7631_v32 = vsub.f32 %v364_v2, %v7604_v0  ;;  %v7633_v8 = vand.u32 4294901760, %v1213_v39 }
 0x103   : > { %957 = vmatmul.f32.vlgmr.msrb.gmra.mxu3 %v7435_v6  ;;  %1298 = vmatpush.msrb.mxu1 %v1297_v41  ;;  %v1320_v41 = vsub.f32 %v7568_v13, %v11655_v37  ;;  %v1326_v2 = vsub.f32 %v7587_v36, %v11654_v40  ;;  %v7644_v15 = vsub.f32 %v1214_v16, %v7619_v18  ;;  %v1210_v40 = vld [vmem:[#allocation4 + $0x108] sm:$0xff] }
 0x104   : > { %1394 = vmatpush.msrb.mxu2 %v7463_v45  ;;  %1453 = vmatpush.msrb.mxu3 %v7432_v61  ;;  %v848_v20 = vand.u32 4294901760, %v847_v59  ;;  %v11670_v16 = vand.u32 4294901760, %v7631_v32  ;;  %v7688_v56 = vand.u32 4294901760, %v1210_v40 }
 0x105   : > { %1012 = vmatpush.msra.mxu0 %v7329_v60  ;;  %1304 = vmatpush.msrb.mxu1 %v1303_v27  ;;  %v1315_v60 = vand.u32 4294901760, %v1314_v9  ;;  %v11657_v27 = vrot.slane %v7390_v31, 3  ;;  %v11660_v9 = vand.u32 4294901760, %v7623_v11  ;;  %v11664_v37 = vand.u32 4294901760, %v7644_v15 }
 0x106   : > { %1397 = vmatpush.msrb.mxu2 %v7480_v55  ;;  %1455 = vmatpush.msrb.mxu3 %v7439_v23 }
 0x107   : > { %1015 = vmatpush.msra.mxu0 %v7336_v24  ;;  %797 = vmatmul.f32.gmra.mxu1 %v7410_v33  ;;  %v11656_v24 = vrot.slane %v7360_v34, 3 }
 0x108   : > { %749 = vmatmul.f32.vlgmr.msrb.gmra.mxu0 %v7367_v50  ;;  %1310 = vmatpush.msrb.mxu1 %v1309_v48  ;;  %v1321_v50 = vand.u32 4294901760, %v1320_v41  ;;  %v7656_v48 = vsub.f32 %v1213_v39, %v7633_v8  ;;  %v7670_v41 = vand.u32 4294901760, %v1211_v54  ;;  %v1327_v39 = vand.u32 4294901760, %v1326_v2 }
 0x109   : > { %1226 = vmatpush.msrb.mxu0 %v7432_v61  ;;  %1400 = vmatpush.msrb.mxu2 %v7494_v51  ;;  %v7664_v59 = vsel %vm2889_vm7, %v11656_v24, %v11657_v27  ;;  %v7681_v24 = vsub.f32 %v1212_v57, %v7650_v53  ;;  %v1209_v27 = vld [vmem:[#allocation4 + $0x100] sm:$0xff]  ;;  %v855_v2 = vsub.f32 %v7631_v32, %v11670_v16 }
 0x10a   : > { %1457 = vmatpush.msrb.mxu3 %v7445_v4  ;;  %849 = vmatmul.f32.gmra.mxu2 %v848_v20  ;;  %11865 = vst [vmem:[#allocation15_spill] sm:$0xff] %v7664_v59  ;;  %v1332_v20 = vsub.f32 %v7611_v63, %v11658_v3  ;;  %v11665_v3 = vand.u32 4294901760, %v7656_v48  ;;  %v7693_v57 = vsub.f32 %v1211_v54, %v7670_v41  ;;  %v7699_v62 = vand.u32 4294901760, %v1209_v27  ;;  %v1637_v16 = vld [vmem:[#allocation4 + $0x1e0] sm:$0xff]  ;;  %v1632_v59 = vld [vmem:[#allocation4 + $0x1b8] sm:$0xff] }
 0x10b   : > { %1228 = vmatpush.msrb.mxu0 %v7439_v23  ;;  %1316 = vmatpush.msrb.mxu1 %v1315_v60  ;;  %v1338_v60 = vsub.f32 %v7623_v11, %v11660_v9  ;;  %v11667_v52 = vand.u32 4294901760, %v7681_v24  ;;  %v856_v54 = vand.u32 4294901760, %v855_v2  ;;  %v1640_v2 = vld [vmem:[#allocation4 + $0x1f8] sm:$0xff] }
 0x10c   : > { %1403 = vmatpush.msrb.mxu2 %v7516_v14  ;;  %1459 = vmatpush.msrb.mxu3 %v7465_v10  ;;  %v1333_v9 = vand.u32 4294901760, %v1332_v20  ;;  %v1350_v20 = vsub.f32 %v7656_v48, %v11665_v3 }
 0x10d   : > { %961 = vmatmul.f32.gmra.mxu3 %v7518_v26  ;;  %1230 = vmatpush.msrb.mxu0 %v7445_v4  ;;  %v1339_v47 = vand.u32 4294901760, %v1338_v60 }
 0x10e   : > { %1322 = vmatpush.msrb.mxu1 %v1321_v50  ;;  %1406 = vmatpush.msrb.mxu2 %v7537_v38  ;;  %v1344_v50 = vsub.f32 %v7644_v15, %v11664_v37  ;;  %v7716_v37 = vsub.f32 %v1209_v27, %v7699_v62  ;;  %v1639_v27 = vld [vmem:[#allocation4 + $0x1f0] sm:$0xff] }
 0x10f   : > { %1461 = vmatpush.msrb.mxu3 %v7486_v46  ;;  %1232 = vmatpush.msrb.mxu0 %v7465_v10 }
 0x110   : > { %1328 = vmatpush.msrb.mxu1 %v1327_v39  ;;  %1409 = vmatpush.msrb.mxu2 %v7568_v13  ;;  %v7710_v39 = vsub.f32 %v1210_v40, %v7688_v56  ;;  %v1345_v60 = vand.u32 4294901760, %v1344_v50  ;;  %11866 = vst [vmem:[#allocation16_spill] sm:$0xff] %v7716_v37  ;;  %v1356_v40 = vsub.f32 %v7681_v24, %v11667_v52  ;;  %v11671_v50 = vand.u32 4294901760, %v7716_v37 }
 0x111   : > { %1463 = vmatpush.msrb.mxu3 %v7504_v5  ;;  %753 = vmatmul.f32.gmra.mxu0 %v7410_v33  ;;  %v11666_v33 = vand.u32 4294901760, %v7693_v57  ;;  %v7740_v52 = vand.u32 4294901760, %v1639_v27 }
 0x112   : > { %801 = vmatmul.f32.gmra.mxu1 %v7430_v44  ;;  %1234 = vmatpush.msrb.mxu0 %v7486_v46  ;;  %v11669_v3 = vand.u32 4294901760, %v7710_v39 }
 0x113   : > { %1334 = vmatpush.msrb.mxu1 %v1333_v9  ;;  %1412 = vmatpush.msrb.mxu2 %v7587_v36  ;;  %v1351_v9 = vand.u32 4294901760, %v1350_v20  ;;  %v1357_v20 = vand.u32 4294901760, %v1356_v40  ;;  %v1374_v40 = vsub.f32 %v7716_v37, %v11671_v50  ;;  %v7765_v50 = vand.u32 4294901760, %v1637_v16 }
 0x114   : > { %1465 = vmatpush.msrb.mxu3 %v7539_v42  ;;  %857 = vmatmul.f32.gmra.mxu2 %v856_v54  ;;  %v7732_v54 = vand.u32 4294901760, %v1640_v2 }
 0x115   : > { %1236 = vmatpush.msrb.mxu0 %v7504_v5  ;;  %1340 = vmatpush.msrb.mxu1 %v1339_v47  ;;  %v1362_v47 = vsub.f32 %v7693_v57, %v11666_v33  ;;  %v1368_v33 = vsub.f32 %v7710_v39, %v11669_v3 }
 0x116   : > { %1415 = vmatpush.msrb.mxu2 %v7611_v63  ;;  %1467 = vmatpush.msrb.mxu3 %v7558_v25 }
 0x117   : > { %965 = vmatmul.f32.gmra.mxu3 %v7604_v0  ;;  %1238 = vmatpush.msrb.mxu0 %v7539_v42  ;;  %v1363_v1 = vand.u32 4294901760, %v1362_v47  ;;  %v1636_v47 = vld [vmem:[#allocation4 + $0x1d8] sm:$0xff] }
 0x118   : > { %1346 = vmatpush.msrb.mxu1 %v1345_v60  ;;  %1418 = vmatpush.msrb.mxu2 %v7623_v11  ;;  %v1638_v60 = vld [vmem:[#allocation4 + $0x1e8] sm:$0xff] }
 0x119   : > { %1469 = vmatpush.msrb.mxu3 %v7572_v58  ;;  %1240 = vmatpush.msrb.mxu0 %v7558_v25  ;;  %v7754_v3 = vand.u32 4294901760, %v1638_v60 }
 0x11a   : > { %1352 = vmatpush.msrb.mxu1 %v1351_v9  ;;  %1421 = vmatpush.msrb.mxu2 %v7644_v15  ;;  %v7751_v9 = vsub.f32 %v1640_v2, %v7732_v54  ;;  %v1375_v2 = vand.u32 4294901760, %v1374_v40  ;;  %v1634_v40 = vld [vmem:[#allocation4 + $0x1c8] sm:$0xff] }
 0x11b   : > { %1471 = vmatpush.msrb.mxu3 %v7591_v49  ;;  %757 = vmatmul.f32.gmra.mxu0 %v7430_v44  ;;  %v1369_v44 = vand.u32 4294901760, %v1368_v33  ;;  %v7770_v33 = vsub.f32 %v1638_v60, %v7754_v3  ;;  %v7783_v60 = vsub.f32 %v1637_v16, %v7765_v50 }
 0x11c   : > { %1066 = vmatmul.f32.vlgmr.msra.gmra.mxu1 %v838_v35  ;;  %1242 = vmatpush.msrb.mxu0 %v7572_v58  ;;  %v7759_v35 = vsub.f32 %v1639_v27, %v7740_v52  ;;  %v7774_v27 = vand.u32 4294901760, %v1636_v47 }
 0x11d   : > { %1358 = vmatpush.msrb.mxu1 %v1357_v20  ;;  %1424 = vmatpush.msrb.mxu2 %v7656_v48  ;;  %v11674_v20 = vand.u32 4294901760, %v7751_v9  ;;  %11867 = vst [vmem:[#allocation17_spill] sm:$0xff] %v7770_v33 }
 0x11e   : > { %1473 = vmatpush.msrb.mxu3 %v7619_v18  ;;  %1146 = vmatmul.f32.vlgmr.msra.gmra.mxu2 %v7435_v6  ;;  %11868 = vst [vmem:[#allocation18_spill] sm:$0xff] %v7783_v60  ;;  %v7797_v16 = vsub.f32 %v1636_v47, %v7774_v27 }
 0x11f   : > { %1244 = vmatpush.msrb.mxu0 %v7591_v49  ;;  %1364 = vmatpush.msrb.mxu1 %v1363_v1  ;;  %v11675_v1 = vand.u32 4294901760, %v7759_v35 }
 0x120   : > { %1427 = vmatpush.msrb.mxu2 %v7681_v24  ;;  %1475 = vmatpush.msrb.mxu3 %v7633_v8  ;;  %11869 = vst [vmem:[#allocation19_spill] sm:$0xff] %v7797_v16 }
 0x121   : > { %1190 = vmatmul.f32.vlgmr.msra.gmra.mxu3 %v7435_v6  ;;  %1246 = vmatpush.msrb.mxu0 %v7619_v18  ;;  %v1700_v6 = vsub.f32 %v7751_v9, %v11674_v20  ;;  %v1633_v20 = vld [vmem:[#allocation4 + $0x1c0] sm:$0xff] }
 0x122   : > { %1370 = vmatpush.msrb.mxu1 %v1369_v44  ;;  %1430 = vmatpush.msrb.mxu2 %v7693_v57  ;;  %v11678_v44 = vand.u32 4294901760, %v7770_v33 }
 0x123   : > { %1477 = vmatpush.msrb.mxu3 %v7650_v53  ;;  %1248 = vmatpush.msrb.mxu0 %v7633_v8 }
 0x124   : > { %1376 = vmatpush.msrb.mxu1 %v1375_v2  ;;  %1433 = vmatpush.msrb.mxu2 %v7710_v39  ;;  %v1706_v2 = vsub.f32 %v7759_v35, %v11675_v1  ;;  %v1712_v47 = vsub.f32 %v7770_v33, %v11678_v44  ;;  %v7812_v1 = vsub.f32 %v1635_v28, %v7788_v12  ;;  %v11870_v28 = vand.u32 4294901760, %v7783_v60 }
 0x125   : > { %1479 = vmatpush.msrb.mxu3 %v7670_v41  ;;  %1018 = vmatmul.f32.vlgmr.msra.gmra.mxu0 %v7457_v30  ;;  %v1701_v30 = vand.u32 4294901760, %v1700_v6  ;;  %v7831_v6 = vand.u32 4294901760, %v1632_v59  ;;  %v11877_v33 = vand.u32 4294901760, %v7463_v45  ;;  %v1627_v45 = vld [vmem:[#allocation4 + $0x190] sm:$0xff] }
 0x126   : > { %1579 = vmatpush.msra.mxu1 %v7432_v61  ;;  %1250 = vmatpush.msrb.mxu0 %v7650_v53  ;;  %v7801_v61 = vand.u32 4294901760, %v1634_v40  ;;  %v1718_v44 = vsub.f32 %v7783_v60, %v11870_v28 }
 0x127   : > { %1072 = vmatmul.f32.gmra.mxu1 %v846_v21  ;;  %1436 = vmatpush.msrb.mxu2 %v7716_v37  ;;  %v7817_v21 = vand.u32 4294901760, %v1633_v20  ;;  %v1631_v37 = vld [vmem:[#allocation4 + $0x1b0] sm:$0xff] }
 0x128   : > { %1481 = vmatpush.msrb.mxu3 %v7688_v56  ;;  %1581 = vmatpush.msra.mxu1 %v7439_v23  ;;  %v1707_v23 = vand.u32 4294901760, %v1706_v2  ;;  %v7822_v22 = vsub.f32 %v1634_v40, %v7801_v61  ;;  %v1630_v2 = vld [vmem:[#allocation4 + $0x1a8] sm:$0xff] }
 0x129   : > { %1642 = vmatpush.msra.mxu2 %v7732_v54  ;;  %1252 = vmatpush.msrb.mxu0 %v7670_v41  ;;  %v7841_v60 = vsub.f32 %v1633_v20, %v7817_v21  ;;  %v11874_v20 = vrot.slane %v7828_v43, 7 }
 0x12a   : > { %1150 = vmatmul.f32.gmra.mxu2 %v7518_v26  ;;  %1483 = vmatpush.msrb.mxu3 %v7699_v62 }
 0x12b   : > { %1583 = vmatpush.msra.mxu1 %v7445_v4  ;;  %1644 = vmatpush.msra.mxu2 %v7740_v52  ;;  %v1713_v4 = vand.u32 4294901760, %v1712_v47  ;;  %v11872_v47 = vand.u32 4294901760, %v7450_v19 }
 0x12c   : > { %1702 = vmatpush.msra.mxu3 %v1701_v30  ;;  %1254 = vmatpush.msrb.mxu0 %v7688_v56  ;;  %v11871_v30 = vand.u32 4294901760, %v7797_v16 }
 0x12d   : > { %1194 = vmatmul.f32.gmra.mxu3 %v7518_v26  ;;  %1585 = vmatpush.msra.mxu1 %v7465_v10  ;;  %v7846_v26 = vand.u32 4294901760, %v1631_v37  ;;  %v11876_v10 = vand.u32 4294901760, %v7631_v32 }
 0x12e   : > { %1646 = vmatpush.msra.mxu2 %v7754_v3  ;;  %1708 = vmatpush.msra.mxu3 %v1707_v23  ;;  %v1724_v28 = vsub.f32 %v7797_v16, %v11871_v30  ;;  %v1719_v23 = vand.u32 4294901760, %v1718_v44  ;;  %v11873_v30 = vrot.slane %v7360_v34, 7  ;;  %v7858_v16 = vsub.f32 %v1632_v59, %v7831_v6  ;;  %v1629_v44 = vld [vmem:[#allocation4 + $0x1a0] sm:$0xff] }
 0x12f   : > { %1256 = vmatpush.msrb.mxu0 %v7699_v62  ;;  %1587 = vmatpush.msra.mxu1 %v7486_v46  ;;  %v11875_v46 = vand.u32 4294901760, %v7812_v1  ;;  %v11687_v59 = vand.u32 4294901760, %v7841_v60 }
 0x130   : > { %1648 = vmatpush.msra.mxu2 %v7765_v50  ;;  %v1207_v40 = vsel %vm1204_vm4, %v11874_v20, %v11873_v30  ;;  %1714 = vmatpush.msra.mxu3 %v1713_v4  ;;  %v1725_v30 = vand.u32 4294901760, %v1724_v28 }
 0x131   : > { %1505 = vmatpush.msra.mxu0 %v11872_v47  ;;  %v1730_v19 = vsub.f32 %v7812_v1, %v11875_v46  ;;  %v7864_v47 = vand.u32 4294901760, %v1630_v2  ;;  %1078 = vmatmul.f32.gmra.mxu1 %v11876_v10  ;;  %v7876_v20 = vand.u32 4294901760, %v1207_v40  ;;  %v7879_v46 = vsub.f32 %v1631_v37, %v7846_v26  ;;  %v1628_v10 = vld [vmem:[#allocation4 + $0x198] sm:$0xff] }
 0x132   : > { %1023 = vmatmul.f32.gmra.mxu0 %v7556_v7  ;;  %1589 = vmatpush.msra.mxu1 %v7504_v5  ;;  %v11878_v7 = vand.u32 4294901760, %v7822_v22  ;;  %v11879_v5 = vand.u32 4294901760, %v7480_v55  ;;  %v1742_v37 = vsub.f32 %v7841_v60, %v11687_v59  ;;  %v11880_v55 = vand.u32 4294901760, %v7494_v51 }
 0x133   : > { %1509 = vmatpush.msra.mxu0 %v11877_v33  ;;  %1650 = vmatpush.msra.mxu2 %v7774_v27  ;;  %v7883_v33 = vand.u32 4294901760, %v1629_v44  ;;  %v1731_v28 = vand.u32 4294901760, %v1730_v19  ;;  %v1258_v19 = vsub.f32 %v1207_v40, %v7876_v20  ;;  %v11882_v51 = vand.u32 4294901760, %v7516_v14 }
 0x134   : > { %v1736_v4 = vsub.f32 %v7822_v22, %v11878_v7  ;;  %1720 = vmatpush.msra.mxu3 %v1719_v23  ;;  %1154 = vmatmul.f32.gmra.mxu2 %v7604_v0  ;;  %v7889_v7 = vsub.f32 %v1630_v2, %v7864_v47  ;;  %v7895_v23 = vand.u32 4294901760, %v1628_v10  ;;  %v11688_v2 = vand.u32 4294901760, %v7879_v46 }
 0x135   : > { %1513 = vmatpush.msra.mxu0 %v11879_v5  ;;  %1591 = vmatpush.msra.mxu1 %v7539_v42  ;;  %v7908_v59 = vsub.f32 %v1629_v44, %v7883_v33  ;;  %v1259_v44 = vand.u32 4294901760, %v1258_v19 }
 0x136   : > { %1652 = vmatpush.msra.mxu2 %v7788_v12  ;;  %1726 = vmatpush.msra.mxu3 %v1725_v30  ;;  %v1737_v42 = vand.u32 4294901760, %v1736_v4  ;;  %v11881_v30 = vand.u32 4294901760, %v7858_v16  ;;  %v11689_v40 = vand.u32 4294901760, %v7889_v7  ;;  %v7913_v4 = vand.u32 4294901760, %v1627_v45 }
 0x137   : > { %1198 = vmatmul.f32.gmra.mxu3 %v7604_v0  ;;  %1517 = vmatpush.msra.mxu0 %v11880_v55  ;;  %v1626_v0 = vld [vmem:[#allocation4 + $0x188] sm:$0xff]  ;;  %v7918_v55 = vsub.f32 %v1628_v10, %v7895_v23  ;;  %v1754_v14 = vsub.f32 %v7879_v46, %v11688_v2  ;;  %v1765_v10 = vand.u32 4294901760, %v7908_v59  ;;  %v1260_v2 = vsub.f32 %v1258_v19, %v1259_v44 }
 0x138   : > { %1593 = vmatpush.msra.mxu1 %v7558_v25  ;;  %1654 = vmatpush.msra.mxu2 %v7801_v61  ;;  %v1748_v5 = vsub.f32 %v7858_v16, %v11881_v30  ;;  %v1743_v25 = vand.u32 4294901760, %v1742_v37  ;;  %v1625_v30 = vld [vmem:[#allocation4 + $0x180] sm:$0xff] }
 0x139   : > { %1732 = vmatpush.msra.mxu3 %v1731_v28  ;;  %1521 = vmatpush.msra.mxu0 %v11882_v51  ;;  %v7924_v28 = vand.u32 4294901760, %v1626_v0  ;;  %v7939_v51 = vsub.f32 %v1627_v45, %v7913_v4  ;;  %v1766_v45 = vsub.f32 %v7908_v59, %v1765_v10 }
 0x13a   : > { %1595 = vmatpush.msra.mxu1 %v7572_v58  ;;  %1656 = vmatpush.msra.mxu2 %v7817_v21  ;;  %v11883_v58 = vand.u32 4294901760, %v7537_v38  ;;  %v1749_v37 = vand.u32 4294901760, %v1748_v5  ;;  %v1771_v38 = vand.u32 4294901760, %v7918_v55  ;;  %v7942_v5 = vand.u32 4294901760, %v1625_v30 }
 0x13b   : > { %1738 = vmatpush.msra.mxu3 %v1737_v42  ;;  %1028 = vmatmul.f32.gmra.mxu0 %v7631_v32  ;;  %v1760_v32 = vsub.f32 %v7889_v7, %v11689_v40  ;;  %v7936_v42 = vand.u32 4294901760, %v7474_v29  ;;  %v7948_v40 = vsub.f32 %v1626_v0, %v7924_v28 }
 0x13c   : > { %1378 = vmatmul.f32.vlgmr.msrb.gmra.mxu1 %v7876_v20  ;;  %1525 = vmatpush.msra.mxu0 %v11883_v58  ;;  %v1755_v58 = vand.u32 4294901760, %v1754_v14  ;;  %v1772_v0 = vsub.f32 %v7918_v55, %v1771_v38  ;;  %v7965_v14 = vsub.f32 %v1625_v30, %v7942_v5 }
 0x13d   : > { %1597 = vmatpush.msra.mxu1 %v7591_v49  ;;  %1658 = vmatpush.msra.mxu2 %v7831_v6  ;;  %v11884_v49 = vand.u32 4294901760, %v7568_v13  ;;  %v1761_v13 = vand.u32 4294901760, %v1760_v32  ;;  %v11888_v32 = vrot.slane %v7390_v31, 7 }
 0x13e   : > { %1744 = vmatpush.msra.mxu3 %v1743_v25  ;;  %1439 = vmatmul.f32.vlgmr.msrb.gmra.mxu2 %v1258_v19  ;;  %v11885_v25 = vand.u32 4294901760, %v7587_v36  ;;  %v1777_v19 = vand.u32 4294901760, %v7939_v51  ;;  %v11886_v36 = vand.u32 4294901760, %v7611_v63 }
 0x13f   : > { %1529 = vmatpush.msra.mxu0 %v11884_v49  ;;  %1599 = vmatpush.msra.mxu1 %v7619_v18  ;;  %v1266_v18 = vsub.f32 %v7474_v29, %v7936_v42  ;;  %v1783_v29 = vand.u32 4294901760, %v7948_v40 }
 0x140   : > { %1660 = vmatpush.msra.mxu2 %v7846_v26  ;;  %1750 = vmatpush.msra.mxu3 %v1749_v37  ;;  %v11887_v37 = vrot.slane %v7828_v43, 7  ;;  %v1778_v63 = vsub.f32 %v7939_v51, %v1777_v19 }
 0x141   : > { %1487 = vmatmul.f32.vlgmr.msrb.gmra.mxu3 %v1259_v44  ;;  %1533 = vmatpush.msra.mxu0 %v11885_v25  ;;  %v1261_v44 = vand.u32 4294901760, %v1260_v2  ;;  %v1267_v49 = vand.u32 4294901760, %v1266_v18  ;;  %v1773_v2 = vand.u32 4294901760, %v1772_v0  ;;  %v1784_v25 = vsub.f32 %v7948_v40, %v1783_v29 }
 0x142   : > { %1601 = vmatpush.msra.mxu1 %v7633_v8  ;;  %1662 = vmatpush.msra.mxu2 %v7864_v47  ;;  %v1767_v8 = vand.u32 4294901760, %v1766_v45  ;;  %v1205_v30 = vsel %vm1204_vm4, %v11888_v32, %v11887_v37  ;;  %v207_v45 = vld.sshfl [vmem:[#allocation1] sm:$0xff pattern:$0x75316420]  ;;  %v11890_v0 = vand.u32 4294901760, %v7644_v15  ;;  %v8001_v32 = vand.u32 4294901760, %v7360_v34 }
 0x143   : > { %1756 = vmatpush.msra.mxu3 %v1755_v58  ;;  %1537 = vmatpush.msra.mxu0 %v11886_v36  ;;  %v1789_v58 = vand.u32 4294901760, %v7965_v14  ;;  %v211_v36 = vsel %vm11855_vm0, %v207_v45, -inf  ;;  %v1785_v15 = vand.u32 4294901760, %v1784_v25  ;;  %v11893_v45 = vand.u32 4294901760, %v7751_v9 }
 0x144   : > { %1603 = vmatpush.msra.mxu1 %v7650_v53  ;;  %1664 = vmatpush.msra.mxu2 %v7883_v33  ;;  %v11889_v53 = vand.u32 4294901760, %v7623_v11  ;;  %v212_v11 = vrot.slane %v211_v36, 4 }
 0x145   : > { %1762 = vmatpush.msra.mxu3 %v1761_v13  ;;  %1262 = vmatmul.f32.vlgmr.msrb.gmra.mxu0 %v1261_v44  ;;  %v7990_v13 = vand.u32 4294901760, %v1205_v30  ;;  %v1779_v44 = vand.u32 4294901760, %v1778_v63  ;;  %v1790_v37 = vsub.f32 %v7965_v14, %v1789_v58 }
 0x146   : > { %1382 = vmatmul.f32.gmra.mxu1 %v7936_v42  ;;  %1541 = vmatpush.msra.mxu0 %v11889_v53  ;;  %v11891_v53 = vand.u32 4294901760, %v7656_v48  ;;  %v8014_v48 = vsub.f32 %v7360_v34, %v8001_v32 }
 0x147   : > { %1605 = vmatpush.msra.mxu1 %v7670_v41  ;;  %1666 = vmatpush.msra.mxu2 %v7895_v23  ;;  %v1268_v41 = vsub.f32 %v1266_v18, %v1267_v49 }
 0x148   : > { %1768 = vmatpush.msra.mxu3 %v1767_v8  ;;  %1444 = vmatmul.f32.gmra.mxu2 %v1266_v18  ;;  %v213_v8 = vmax.f32 %v211_v36, %v212_v11  ;;  %v1675_v36 = vand.u32 4294901760, %v8014_v48 }
 0x149   : > { %1545 = vmatpush.msra.mxu0 %v11890_v0  ;;  %1607 = vmatpush.msra.mxu1 %v7688_v56  ;;  %v1274_v56 = vsub.f32 %v1205_v30, %v7990_v13  ;;  %v1269_v63 = vand.u32 4294901760, %v1268_v41  ;;  %v11895_v0 = vand.u32 4294901760, %v7759_v35  ;;  %v11896_v41 = vand.u32 4294901760, %v7710_v39  ;;  %v11899_v39 = vld [vmem:[#allocation16_spill] sm:$0xff] }
 0x14a   : > { %1668 = vmatpush.msra.mxu2 %v7913_v4  ;;  %1774 = vmatpush.msra.mxu3 %v1773_v2  ;;  %v214_v18 = vrot.slane %v213_v8, 2  ;;  %v11892_v2 = vand.u32 4294901760, %v7681_v24  ;;  %v11894_v24 = vand.u32 4294901760, %v7693_v57  ;;  %v8032_v57 = vand.u32 4294901760, %v7390_v31 }
 0x14b   : > { %1493 = vmatmul.f32.gmra.mxu3 %v1267_v49  ;;  %1549 = vmatpush.msra.mxu0 %v11891_v53  ;;  %v1791_v49 = vand.u32 4294901760, %v1790_v37  ;;  %v11897_v37 = vld [vmem:[#allocation17_spill] sm:$0xff]  ;;  %v11900_v53 = vand.u32 4294901760, %v11899_v39 }
 0x14c   : > { %1609 = vmatpush.msra.mxu1 %v7699_v62  ;;  %1670 = vmatpush.msra.mxu2 %v7924_v28  ;;  %v215_v30 = vmax.f32 %v213_v8, %v214_v18  ;;  %v1275_v62 = vand.u32 4294901760, %v1274_v56  ;;  %v11898_v8 = vand.u32 4294901760, %v11897_v37 }
 0x14d   : > { %1780 = vmatpush.msra.mxu3 %v1779_v44  ;;  %1553 = vmatpush.msra.mxu0 %v11892_v2  ;;  %v11903_v2 = vld [vmem:[#allocation19_spill] sm:$0xff] }
 0x14e   : > { %1869 = vmatpush.msrb.mxu1 %v7732_v54  ;;  %1672 = vmatpush.msra.mxu2 %v7942_v5  ;;  %v216_v25 = vrot.slane %v215_v30, 1  ;;  %v1276_v44 = vsub.f32 %v1274_v56, %v1275_v62 }
 0x14f   : > { %1786 = vmatpush.msra.mxu3 %v1785_v15  ;;  %1270 = vmatmul.f32.gmra.mxu0 %v1269_v63  ;;  %v8051_v63 = vsub.f32 %v7390_v31, %v8032_v57 }
 0x150   : > { %1386 = vmatmul.f32.gmra.mxu1 %v7990_v13  ;;  %1921 = vmatpush.msrb.mxu2 %v11893_v45  ;;  %v8023_v11 = vmax.f32 %v215_v30, %v216_v25  ;;  %v1277_v15 = vand.u32 4294901760, %v1276_v44  ;;  %v8062_v30 = vand.u32 4294901760, %v7828_v43  ;;  %v11906_v25 = vand.u32 4294901760, %v7822_v22 }
 0x151   : > { %1871 = vmatpush.msrb.mxu1 %v7740_v52  ;;  %1557 = vmatpush.msra.mxu0 %v11894_v24 }
 0x152   : > { %1792 = vmatpush.msra.mxu3 %v1791_v49  ;;  %1449 = vmatmul.f32.gmra.mxu2 %v1274_v56  ;;  %236 = vst.msk [vmem:[#allocation2 + $0x18] sm:$0x1] %vm233_vm1, %v8023_v11  ;;  %v11901_v56 = vld [vmem:[#allocation18_spill] sm:$0xff]  ;;  %v11904_v49 = vand.u32 4294901760, %v11903_v2 }
 0x153   : > { %1873 = vmatpush.msrb.mxu1 %v7754_v3  ;;  %1925 = vmatpush.msrb.mxu2 %v11895_v0  ;;  %v11902_v18 = vand.u32 4294901760, %v11901_v56  ;;  %v2062_v0 = vld [vmem:[#allocation4 + $0x270] sm:$0xff] }
 0x154   : > { %1995 = vmatpush.msrb.mxu3 %v7732_v54  ;;  %1561 = vmatpush.msra.mxu0 %v11896_v41  ;;  %v1676_v54 = vsub.f32 %v8014_v48, %v1675_v36  ;;  %v11907_v41 = vand.u32 4294901760, %v7841_v60 }
 0x155   : > { %1499 = vmatmul.f32.gmra.mxu3 %v1275_v62  ;;  %1875 = vmatpush.msrb.mxu1 %v7765_v50 }
 0x156   : > { %1929 = vmatpush.msrb.mxu2 %v11898_v8  ;;  %1997 = vmatpush.msrb.mxu3 %v7740_v52  ;;  %v1677_v52 = vand.u32 4294901760, %v1676_v54  ;;  %v8091_v8 = vpop.f32.mrf.mxu1 }
 0x157   : > { %1565 = vmatpush.msra.mxu0 %v11900_v53  ;;  %1877 = vmatpush.msrb.mxu1 %v7774_v27  ;;  %11908 = vst [vmem:[#allocation17_spill] sm:$0xff] %v8091_v8  ;;  %v8096_v53 = vand.u32 4294901760, %v2062_v0 }
 0x158   : > { %1933 = vmatpush.msrb.mxu2 %v11902_v18  ;;  %1999 = vmatpush.msrb.mxu3 %v7754_v3  ;;  %v208_v3 = vld.sshfl [vmem:[#allocation1 + $0x8] sm:$0xff pattern:$0x75316420]  ;;  %v2060_v18 = vld [vmem:[#allocation4 + $0x260] sm:$0xff] }
 0x159   : > { %1807 = vmatpush.msrb.mxu0 %v7751_v9  ;;  %1611 = vmatmul.f32.vlgmr.msra.gmra.mxu1 %v7876_v20  ;;  %v1683_v9 = vand.u32 4294901760, %v8051_v63  ;;  %v218_v62 = vsel %vm11855_vm0, %v208_v3, -inf }
 0x15a   : > { %1278 = vmatmul.f32.gmra.mxu0 %v1277_v15  ;;  %1879 = vmatpush.msrb.mxu1 %v7788_v12  ;;  %v219_v45 = vrot.slane %v218_v62, 4  ;;  %v2061_v15 = vld [vmem:[#allocation4 + $0x268] sm:$0xff] }
 0x15b   : > { %1810 = vmatpush.msrb.mxu0 %v7759_v35  ;;  %1937 = vmatpush.msrb.mxu2 %v11904_v49  ;;  %v11905_v35 = vand.u32 4294901760, %v7812_v1  ;;  %v1684_v24 = vsub.f32 %v8051_v63, %v1683_v9  ;;  %v8116_v49 = vsub.f32 %v2062_v0, %v8096_v53 }
 0x15c   : > { %2001 = vmatpush.msrb.mxu3 %v7765_v50  ;;  %1678 = vmatmul.f32.vlgmr.msra.gmra.mxu2 %v1677_v52  ;;  %v2063_v50 = vld [vmem:[#allocation4 + $0x278] sm:$0xff]  ;;  %v220_v44 = vmax.f32 %v218_v62, %v219_v45 }
 0x15d   : > { %1813 = vmatpush.msrb.mxu0 %v11897_v37  ;;  %1881 = vmatpush.msrb.mxu1 %v7801_v61  ;;  %v8087_v37 = vand.u32 4294901760, %v2063_v50  ;;  %v2059_v62 = vld [vmem:[#allocation4 + $0x258] sm:$0xff] }
 0x15e   : > { %1941 = vmatpush.msrb.mxu2 %v11905_v35  ;;  %2003 = vmatpush.msrb.mxu3 %v7774_v27  ;;  %v8080_v27 = vsub.f32 %v7828_v43, %v8062_v30  ;;  %v221_v54 = vrot.slane %v220_v44, 2  ;;  %v11911_v35 = vand.u32 4294901760, %v7889_v7  ;;  %v8153_v0 = vpop.f32.mrf.mxu0 }
 0x15f   : > { %1794 = vmatmul.f32.vlgmr.msra.gmra.mxu3 %v8001_v32  ;;  %1816 = vmatpush.msrb.mxu0 %v11901_v56  ;;  %v11909_v56 = vand.u32 4294901760, %v7858_v16  ;;  %11913 = vst [vmem:[#allocation18_spill] sm:$0xff] %v8153_v0 }
 0x160   : > { %1883 = vmatpush.msrb.mxu1 %v7817_v21  ;;  %1945 = vmatpush.msrb.mxu2 %v11906_v25  ;;  %v1691_v39 = vand.u32 4294901760, %v8080_v27  ;;  %v11700_v25 = vand.u32 4294901760, %v8116_v49 }
 0x161   : > { %2005 = vmatpush.msrb.mxu3 %v7788_v12  ;;  %1819 = vmatpush.msrb.mxu0 %v11903_v2  ;;  %v1685_v12 = vand.u32 4294901760, %v1684_v24  ;;  %v11910_v2 = vand.u32 4294901760, %v7879_v46  ;;  %v2058_v24 = vld [vmem:[#allocation4 + $0x250] sm:$0xff] }
 0x162   : > { %1885 = vmatpush.msrb.mxu1 %v7831_v6  ;;  %1949 = vmatpush.msrb.mxu2 %v11907_v41  ;;  %v2057_v41 = vld [vmem:[#allocation4 + $0x248] sm:$0xff] }
 0x163   : > { %2007 = vmatpush.msrb.mxu3 %v7801_v61  ;;  %1567 = vmatmul.f32.vlgmr.msra.gmra.mxu0 %v7876_v20  ;;  %v222_v61 = vmax.f32 %v220_v44, %v221_v54  ;;  %v8103_v20 = vsub.f32 %v2063_v50, %v8087_v37  ;;  %v8155_v44 = vpop.f32.mrf.mxu2  ;;  %v8167_v54 = vpop.f32.mrf.mxu3 }
 0x164   : > { %1615 = vmatmul.f32.gmra.mxu1 %v7936_v42  ;;  %1822 = vmatpush.msrb.mxu0 %v7812_v1  ;;  %v8107_v1 = vand.u32 4294901760, %v2061_v15  ;;  %11914 = vst [vmem:[#allocation19_spill] sm:$0xff] %v8155_v44 }
 0x165   : > { %1887 = vmatpush.msrb.mxu1 %v7846_v26  ;;  %1953 = vmatpush.msrb.mxu2 %v11909_v56  ;;  %v223_v52 = vrot.slane %v222_v61, 1  ;;  %11915 = vst [vmem:[#allocation20_spill] sm:$0xff] %v8167_v54  ;;  %v2056_v56 = vld [vmem:[#allocation4 + $0x240] sm:$0xff] }
 0x166   : > { %2009 = vmatpush.msrb.mxu3 %v7817_v21  ;;  %1686 = vmatmul.f32.gmra.mxu2 %v1685_v12  ;;  %v1692_v21 = vsub.f32 %v8080_v27, %v1691_v39  ;;  %v8131_v50 = vsub.f32 %v2061_v15, %v8107_v1  ;;  %v8178_v15 = vand.u32 4294901760, %v2057_v41 }
 0x167   : > { %1825 = vmatpush.msrb.mxu0 %v7822_v22  ;;  %1889 = vmatpush.msrb.mxu1 %v7864_v47  ;;  %v8120_v22 = vand.u32 4294901760, %v2060_v18  ;;  %v8122_v3 = vmax.f32 %v222_v61, %v223_v52 }
 0x168   : > { %1957 = vmatpush.msrb.mxu2 %v11910_v2  ;;  %2011 = vmatpush.msrb.mxu3 %v7831_v6  ;;  %v11703_v6 = vand.u32 4294901760, %v8103_v20  ;;  %v1693_v45 = vand.u32 4294901760, %v1692_v21  ;;  %v8198_v2 = vand.u32 4294901760, %v2056_v56  ;;  %v2055_v21 = vld [vmem:[#allocation4 + $0x238] sm:$0xff] }
 0x169   : > { %1798 = vmatmul.f32.gmra.mxu3 %v8032_v57  ;;  %1828 = vmatpush.msrb.mxu0 %v7841_v60  ;;  %296 = vst.msk [vmem:[#allocation2 + $0x20] sm:$0x1] %vm233_vm1, %v8122_v3  ;;  %v8135_v60 = vpop.f32.mrf.mxu1 }
 0x16a   : > { %1891 = vmatpush.msrb.mxu1 %v7883_v33  ;;  %1961 = vmatpush.msrb.mxu2 %v11911_v35  ;;  %11912 = vst [vmem:[#allocation16_spill] sm:$0xff] %v8135_v60 }
 0x16b   : > { %2013 = vmatpush.msrb.mxu3 %v7846_v26  ;;  %1831 = vmatpush.msrb.mxu0 %v7858_v16  ;;  %v8144_v16 = vsub.f32 %v2060_v18, %v8120_v22  ;;  %v8146_v26 = vand.u32 4294901760, %v2059_v62 }
 0x16c   : > { %1893 = vmatpush.msrb.mxu1 %v7895_v23  ;;  %1965 = vmatpush.msrb.mxu2 %v1765_v10  ;;  %v2123_v10 = vsub.f32 %v8103_v20, %v11703_v6 }
 0x16d   : > { %2015 = vmatpush.msrb.mxu3 %v7864_v47  ;;  %1571 = vmatmul.f32.gmra.mxu0 %v7936_v42  ;;  %v11699_v47 = vand.u32 4294901760, %v8131_v50  ;;  %v8161_v42 = vand.u32 4294901760, %v2058_v24  ;;  %v8173_v12 = vsub.f32 %v2059_v62, %v8146_v26 }
 0x16e   : > { %1619 = vmatmul.f32.gmra.mxu1 %v7990_v13  ;;  %1834 = vmatpush.msrb.mxu0 %v7879_v46  ;;  %v2129_v46 = vsub.f32 %v8116_v49, %v11700_v25 }
 0x16f   : > { %1895 = vmatpush.msrb.mxu1 %v7913_v4  ;;  %1969 = vmatpush.msrb.mxu2 %v1771_v38  ;;  %v11696_v38 = vand.u32 4294901760, %v8144_v16  ;;  %v8187_v61 = vsub.f32 %v2058_v24, %v8161_v42  ;;  %v11695_v52 = vand.u32 4294901760, %v8173_v12 }
 0x170   : > { %2017 = vmatpush.msrb.mxu3 %v7883_v33  ;;  %1694 = vmatmul.f32.gmra.mxu2 %v1693_v45  ;;  %v2124_v33 = vand.u32 4294901760, %v2123_v10  ;;  %v8204_v35 = vpop.f32.mrf.mxu0  ;;  %v2054_v45 = vld [vmem:[#allocation4 + $0x230] sm:$0xff] }
 0x171   : > { %1837 = vmatpush.msrb.mxu0 %v7889_v7  ;;  %1897 = vmatpush.msrb.mxu1 %v7924_v28  ;;  %v2135_v7 = vsub.f32 %v8131_v50, %v11699_v47  ;;  %v569_v18 = vpop.f32.mrf.mxu1  ;;  %11916 = vst [vmem:[#allocation21_spill] sm:$0xff] %v8204_v35  ;;  %v11693_v62 = vand.u32 4294901760, %v8187_v61  ;;  %v2480_v35 = vld [vmem:[#allocation4 + $0x2c8] sm:$0xff] }
 0x172   : > { %1973 = vmatpush.msrb.mxu2 %v1777_v19  ;;  %2019 = vmatpush.msrb.mxu3 %v7895_v23  ;;  %v2130_v23 = vand.u32 4294901760, %v2129_v46  ;;  %v2141_v19 = vsub.f32 %v8144_v16, %v11696_v38  ;;  %v8215_v24 = vpop.f32.mrf.mxu3  ;;  %v8457_v0 = vand.u32 4294901760, %v2480_v35 }
 0x173   : > { %251 = vrot.lane.b32.xlu0 %v8023_v11, %s6779_s13  ;;  %1802 = vmatmul.f32.gmra.mxu3 %v8062_v30  ;;  %11918 = vst [vmem:[#allocation23_spill] sm:$0xff] %v8215_v24  ;;  %v2482_v24 = vld [vmem:[#allocation4 + $0x2d8] sm:$0xff] }
 0x174   : > { %1840 = vmatpush.msrb.mxu0 %v7908_v59  ;;  %1899 = vmatpush.msrb.mxu1 %v7942_v5  ;;  %v8202_v59 = vsub.f32 %v2057_v41, %v8178_v15  ;;  %v2142_v10 = vand.u32 4294901760, %v2141_v19  ;;  %v2053_v41 = vld [vmem:[#allocation4 + $0x228] sm:$0xff] }
 0x175   : > { %1977 = vmatpush.msrb.mxu2 %v1783_v29  ;;  %2021 = vmatpush.msrb.mxu3 %v7913_v4  ;;  %v8206_v29 = vpop.f32.mrf.mxu2  ;;  %v2136_v4 = vand.u32 4294901760, %v2135_v7 }
 0x176   : > { %2125 = vmatpush.msra.mxu1 %v2124_v33  ;;  %1843 = vmatpush.msrb.mxu0 %v7918_v55  ;;  %11917 = vst [vmem:[#allocation22_spill] sm:$0xff] %v8206_v29  ;;  %v8213_v55 = vand.u32 4294901760, %v2055_v21  ;;  %v11690_v46 = vand.u32 4294901760, %v8202_v59  ;;  %v8229_v33 = vand.u32 4294901760, %v2054_v45  ;;  %v11933_v29 = vrot.slane %v7390_v31, 1 }
 0x177   : > { %1981 = vmatpush.msrb.mxu2 %v1789_v58  ;;  %2023 = vmatpush.msrb.mxu3 %v7924_v28  ;;  %v2147_v28 = vsub.f32 %v8173_v12, %v11695_v52  ;;  %v8224_v58 = vsub.f32 %v2056_v56, %v8198_v2 }
 0x178   : > { %2131 = vmatpush.msra.mxu1 %v2130_v23  ;;  %1575 = vmatmul.f32.gmra.mxu0 %v7990_v13  ;;  %v2153_v13 = vsub.f32 %v8187_v61, %v11693_v62  ;;  %v2159_v18 = vsub.f32 %v8202_v59, %v11690_v46 }
 0x179   : > { %2230 = vmatpush.msra.mxu2 %v8103_v20  ;;  %1903 = vmatmul.f32.vlgmr.msrb.gmra.mxu1 %v1675_v36  ;;  %v2052_v36 = vld [vmem:[#allocation4 + $0x220] sm:$0xff]  ;;  %v2148_v56 = vand.u32 4294901760, %v2147_v28  ;;  %v11691_v7 = vand.u32 4294901760, %v8224_v58  ;;  %v2051_v28 = vld [vmem:[#allocation4 + $0x218] sm:$0xff] }
 0x17a   : > { %1846 = vmatpush.msrb.mxu0 %v7939_v51  ;;  %2025 = vmatpush.msrb.mxu3 %v7942_v5  ;;  %v8238_v51 = vsub.f32 %v2055_v21, %v8213_v55  ;;  %v8240_v5 = vand.u32 4294901760, %v2053_v41  ;;  %v8252_v23 = vand.u32 4294901760, %v2052_v36  ;;  %v461_v19 = vpop.f32.mrf.mxu0 }
 0x17b   : > { %2137 = vmatpush.msra.mxu1 %v2136_v4  ;;  %2233 = vmatpush.msra.mxu2 %v8116_v49  ;;  %v2154_v4 = vand.u32 4294901760, %v2153_v13  ;;  %v2165_v19 = vsub.f32 %v8224_v58, %v11691_v7  ;;  %v2049_v7 = vld [vmem:[#allocation4 + $0x208] sm:$0xff] }
 0x17c   : > { %2292 = vmatpush.msra.mxu3 %v8087_v37  ;;  %1849 = vmatpush.msrb.mxu0 %v7948_v40  ;;  %v8250_v40 = vsub.f32 %v2054_v45, %v8229_v33  ;;  %v8262_v45 = vsub.f32 %v2053_v41, %v8240_v5  ;;  %v682_v46 = vpop.f32.mrf.mxu3  ;;  %v8272_v13 = vsub.f32 %v2052_v36, %v8252_v23  ;;  %v2050_v41 = vld [vmem:[#allocation4 + $0x210] sm:$0xff] }
 0x17d   : > { %1983 = vmatmul.f32.vlgmr.msrb.gmra.mxu2 %v8001_v32  ;;  %2143 = vmatpush.msra.mxu1 %v2142_v10  ;;  %v632_v21 = vpop.f32.mrf.mxu2  ;;  %v11692_v10 = vand.u32 4294901760, %v8238_v51  ;;  %v8275_v46 = vand.u32 4294901760, %v2051_v28  ;;  %v2166_v36 = vand.u32 4294901760, %v2165_v19 }
 0x17e   : > { %2236 = vmatpush.msra.mxu2 %v8131_v50  ;;  %2294 = vmatpush.msra.mxu3 %v8096_v53  ;;  %v8283_v21 = vpop.f32.mrf.mxu1  ;;  %v11698_v62 = vand.u32 4294901760, %v8272_v13 }
 0x17f   : > { %259 = vrot.lane.b32.xlu1 %v8023_v11, %s6775_s17  ;;  %275 = vrot.lane.b32.xlu0 %v8023_v11, %s6777_s7  ;;  %11919 = vst [vmem:[#allocation24_spill] sm:$0xff] %v8283_v21 }
 0x180   : > { %1852 = vmatpush.msrb.mxu0 %v7965_v14  ;;  %2027 = vmatmul.f32.vlgmr.msrb.gmra.mxu3 %v8001_v32  ;;  %v2160_v14 = vand.u32 4294901760, %v2159_v18  ;;  %v11694_v32 = vand.u32 4294901760, %v8250_v40  ;;  %v11697_v18 = vand.u32 4294901760, %v8262_v45 }
 0x181   : > { %2149 = vmatpush.msra.mxu1 %v2148_v56  ;;  %2239 = vmatpush.msra.mxu2 %v8144_v16  ;;  %v2171_v56 = vsub.f32 %v8238_v51, %v11692_v10 }
 0x182   : > { %2065 = vmatpush.msra.mxu0 %v8087_v37  ;;  %2296 = vmatpush.msra.mxu3 %v8107_v1  ;;  %v2177_v10 = vsub.f32 %v8250_v40, %v11694_v32  ;;  %v8305_v32 = vand.u32 4294901760, %v2049_v7 }
 0x183   : > { %2155 = vmatpush.msra.mxu1 %v2154_v4  ;;  %2242 = vmatpush.msra.mxu2 %v8173_v12  ;;  %v8288_v4 = vand.u32 4294901760, %v2050_v41  ;;  %v2172_v19 = vand.u32 4294901760, %v2171_v56  ;;  %v2189_v56 = vsub.f32 %v8272_v13, %v11698_v62 }
 0x184   : > { %2067 = vmatpush.msra.mxu0 %v8096_v53  ;;  %2298 = vmatpush.msra.mxu3 %v8120_v22 }
 0x185   : > { %1855 = vmatmul.f32.vlgmr.msrb.gmra.mxu0 %v8014_v48  ;;  %1909 = vmatmul.f32.gmra.mxu1 %v1683_v9  ;;  %v8298_v48 = vsub.f32 %v2051_v28, %v8275_v46  ;;  %v2048_v9 = vld [vmem:[#allocation4 + $0x200] sm:$0xff]  ;;  %v8309_v52 = vsub.f32 %v2050_v41, %v8288_v4  ;;  %v2178_v28 = vand.u32 4294901760, %v2177_v10  ;;  %v2190_v62 = vand.u32 4294901760, %v2189_v56  ;;  %v8334_v47 = vpop.f32.mrf.mxu0  ;;  %v2486_v56 = vld [vmem:[#allocation4 + $0x2f8] sm:$0xff] }
 0x186   : > { %2069 = vmatpush.msra.mxu0 %v8107_v1  ;;  %2161 = vmatpush.msra.mxu1 %v2160_v14  ;;  %v2183_v14 = vsub.f32 %v8262_v45, %v11697_v18  ;;  %v8317_v38 = vand.u32 4294901760, %v2048_v9  ;;  %v8325_v18 = vsub.f32 %v2049_v7, %v8305_v32  ;;  %11922 = vst [vmem:[#allocation27_spill] sm:$0xff] %v8334_v47  ;;  %v8352_v25 = vpop.f32.mrf.mxu3  ;;  %v8364_v6 = vand.u32 4294901760, %v2486_v56 }
 0x187   : > { %2245 = vmatpush.msra.mxu2 %v8187_v61  ;;  %2300 = vmatpush.msra.mxu3 %v8146_v26  ;;  %v11701_v41 = vand.u32 4294901760, %v8298_v48  ;;  %v11702_v10 = vand.u32 4294901760, %v8309_v52  ;;  %11925 = vst [vmem:[#allocation30_spill] sm:$0xff] %v8352_v25 }
 0x188   : > { %1987 = vmatmul.f32.gmra.mxu2 %v8032_v57  ;;  %2071 = vmatpush.msra.mxu0 %v8120_v22  ;;  %11920 = vst [vmem:[#allocation25_spill] sm:$0xff] %v8325_v18 }
 0x189   : > { %2167 = vmatpush.msra.mxu1 %v2166_v36  ;;  %2248 = vmatpush.msra.mxu2 %v8202_v59  ;;  %v2184_v36 = vand.u32 4294901760, %v2183_v14  ;;  %v2195_v7 = vsub.f32 %v8298_v48, %v11701_v41  ;;  %v8343_v14 = vpop.f32.mrf.mxu2 }
 0x18a   : > { %2302 = vmatpush.msra.mxu3 %v8161_v42  ;;  %283 = vrot.lane.b32.xlu1 %v8023_v11, %s6780_s14  ;;  %11924 = vst [vmem:[#allocation29_spill] sm:$0xff] %v8343_v14  ;;  %v2484_v14 = vld [vmem:[#allocation4 + $0x2e8] sm:$0xff] }
 0x18b   : > { %303 = vrot.lane.b32.xlu0 %v8122_v3, %s6776_s27  ;;  %2031 = vmatmul.f32.gmra.mxu3 %v8032_v57  ;;  %v8332_v57 = vsub.f32 %v2048_v9, %v8317_v38  ;;  %v11704_v9 = vand.u32 4294901760, %v8325_v18 }
 0x18c   : > { %2073 = vmatpush.msra.mxu0 %v8146_v26  ;;  %2173 = vmatpush.msra.mxu1 %v2172_v19  ;;  %v8336_v19 = vpop.f32.mrf.mxu1 }
 0x18d   : > { %2251 = vmatpush.msra.mxu2 %v8224_v58  ;;  %2304 = vmatpush.msra.mxu3 %v8178_v15  ;;  %11921 = vst [vmem:[#allocation26_spill] sm:$0xff] %v8332_v57  ;;  %v11705_v41 = vand.u32 4294901760, %v8332_v57 }
 0x18e   : > { %2075 = vmatpush.msra.mxu0 %v8161_v42  ;;  %2179 = vmatpush.msra.mxu1 %v2178_v28  ;;  %11923 = vst [vmem:[#allocation28_spill] sm:$0xff] %v8336_v19  ;;  %v2201_v28 = vsub.f32 %v8309_v52, %v11702_v10  ;;  %v2207_v10 = vsub.f32 %v8325_v18, %v11704_v9  ;;  %v8384_v19 = vpop.f32.mrf.mxu0 }
 0x18f   : > { %2254 = vmatpush.msra.mxu2 %v8238_v51  ;;  %2306 = vmatpush.msra.mxu3 %v8198_v2  ;;  %11926 = vst [vmem:[#allocation31_spill] sm:$0xff] %v8384_v19 }
 0x190   : > { %1860 = vmatmul.f32.gmra.mxu0 %v8051_v63  ;;  %2185 = vmatpush.msra.mxu1 %v2184_v36  ;;  %v2196_v63 = vand.u32 4294901760, %v2195_v7  ;;  %v2485_v36 = vld [vmem:[#allocation4 + $0x2f0] sm:$0xff]  ;;  %v2213_v7 = vsub.f32 %v8332_v57, %v11705_v41  ;;  %v2483_v41 = vld [vmem:[#allocation4 + $0x2e0] sm:$0xff] }
 0x191   : > { %2077 = vmatpush.msra.mxu0 %v8178_v15  ;;  %2257 = vmatpush.msra.mxu2 %v8250_v40  ;;  %v8376_v25 = vand.u32 4294901760, %v2485_v36  ;;  %v8386_v21 = vpop.f32.mrf.mxu2  ;;  %v8405_v19 = vand.u32 4294901760, %v2483_v41 }
 0x192   : > { %2308 = vmatpush.msra.mxu3 %v8213_v55  ;;  %2191 = vmatpush.msra.mxu1 %v2190_v62  ;;  %v2202_v62 = vand.u32 4294901760, %v2201_v28  ;;  %v2208_v28 = vand.u32 4294901760, %v2207_v10  ;;  %11927 = vst [vmem:[#allocation32_spill] sm:$0xff] %v8386_v21  ;;  %v2214_v47 = vand.u32 4294901760, %v2213_v7  ;;  %v8394_v10 = vand.u32 4294901760, %v2484_v14  ;;  %v8401_v21 = vpop.f32.mrf.mxu3 }
 0x193   : > { %2079 = vmatpush.msra.mxu0 %v8198_v2  ;;  %2260 = vmatpush.msra.mxu2 %v8262_v45 }
 0x194   : > { %2310 = vmatpush.msra.mxu3 %v8229_v33  ;;  %243 = vrot.lane.b32.xlu2 %v8023_v11, %s6776_s27  ;;  %v802_v9 = vpop.f32.mrf.mxu1  ;;  %v8414_v7 = vsub.f32 %v2484_v14, %v8394_v10 }
 0x195   : > { %311 = vrot.lane.b32.xlu1 %v8122_v3, %s6779_s13  ;;  %327 = vrot.lane.b32.xlu0 %v8122_v3, %s6778_s8  ;;  %v11928_v9 = vld [vmem:[#allocation13_spill] sm:$0xff] }
 0x196   : > { %1915 = vmatmul.f32.gmra.mxu1 %v1691_v39  ;;  %2081 = vmatpush.msra.mxu0 %v8213_v55  ;;  %v8382_v39 = vsub.f32 %v2486_v56, %v8364_v6  ;;  %v8397_v56 = vsub.f32 %v2485_v36, %v8376_v25  ;;  %11929 = vst [vmem:[#allocation13_spill] sm:$0xff] %v8401_v21  ;;  %v8420_v21 = vand.u32 4294901760, %v2482_v24 }
 0x197   : > { %2197 = vmatpush.msra.mxu1 %v2196_v63  ;;  %2263 = vmatpush.msra.mxu2 %v8272_v13  ;;  %v8390_v63 = vand.u32 4294901760, %v11928_v9  ;;  %11930 = vst [vmem:[#allocation33_spill] sm:$0xff] %v8414_v7 }
 0x198   : > { %2312 = vmatpush.msra.mxu3 %v8240_v5  ;;  %1991 = vmatmul.f32.gmra.mxu2 %v8062_v30 }
 0x199   : > { %2083 = vmatpush.msra.mxu0 %v8229_v33  ;;  %2203 = vmatpush.msra.mxu1 %v2202_v62  ;;  %v2097_v36 = vsub.f32 %v11928_v9, %v8390_v63  ;;  %v2042_v62 = vrot.slane %v7828_v43, 1  ;;  %v8430_v9 = vsub.f32 %v2483_v41, %v8405_v19  ;;  %v858_v54 = vpop.f32.mrf.mxu2  ;;  %v11934_v41 = vand.u32 4294901760, %v8397_v56 }
 0x19a   : > { %2266 = vmatpush.msra.mxu2 %v8298_v48  ;;  %2314 = vmatpush.msra.mxu3 %v8252_v23 }
 0x19b   : > { %2035 = vmatmul.f32.gmra.mxu3 %v8062_v30  ;;  %2085 = vmatpush.msra.mxu0 %v8240_v5  ;;  %11932 = vst [vmem:[#allocation34_spill] sm:$0xff] %v8430_v9  ;;  %v758_v30 = vpop.f32.mrf.mxu0  ;;  %v2098_v43 = vand.u32 4294901760, %v2097_v36  ;;  %v2044_v44 = vsel %vm2043_vm5, %v11933_v29, %v2042_v62  ;;  %v2552_v54 = vsub.f32 %v8397_v56, %v11934_v41  ;;  %v2478_v41 = vld [vmem:[#allocation4 + $0x2b8] sm:$0xff] }
 0x19c   : > { %2209 = vmatpush.msra.mxu1 %v2208_v28  ;;  %2269 = vmatpush.msra.mxu2 %v8309_v52  ;;  %v2481_v28 = vld [vmem:[#allocation4 + $0x2d0] sm:$0xff]  ;;  %v8446_v30 = vpop.f32.mrf.mxu1  ;;  %v8451_v29 = vsub.f32 %v2482_v24, %v8420_v21  ;;  %v8454_v8 = vand.u32 4294901760, %v2044_v44 }
 0x19d   : > { %2316 = vmatpush.msra.mxu3 %v8275_v46  ;;  %2087 = vmatpush.msra.mxu0 %v8252_v23  ;;  %v8438_v60 = vand.u32 4294901760, %v2481_v28  ;;  %11935 = vst [vmem:[#allocation35_spill] sm:$0xff] %v8446_v30  ;;  %v2099_v30 = vsub.f32 %v2097_v36, %v2098_v43 }
 0x19e   : > { %2215 = vmatpush.msra.mxu1 %v2214_v47  ;;  %2272 = vmatpush.msra.mxu2 %v8325_v18  ;;  %v11931_v47 = vand.u32 4294901760, %v8382_v39  ;;  %11936 = vst [vmem:[#allocation36_spill] sm:$0xff] %v8451_v29 }
 0x19f   : > { %2318 = vmatpush.msra.mxu3 %v8288_v4  ;;  %267 = vrot.lane.b32.xlu2 %v8023_v11, %s6778_s8  ;;  %11937 = vst [vmem:[#allocation37_spill] sm:$0xff] %v8454_v8  ;;  %v8462_v24 = vsub.f32 %v2481_v28, %v8438_v60 }
 0x1a0   : > { %335 = vrot.lane.b32.xlu1 %v8122_v3, %s6777_s7  ;;  %351 = vrot.lane.b32.xlu0 %v8122_v3, %s6781_s15  ;;  %v2546_v14 = vsub.f32 %v8382_v39, %v11931_v47  ;;  %v966_v47 = vpop.f32.mrf.mxu3 }
 0x1a1   : > { %1865 = vmatmul.f32.gmra.mxu0 %v8080_v27  ;;  %2217 = vmatmul.f32.vlgmr.msra.gmra.mxu1 %v8390_v63  ;;  %v2479_v27 = vld [vmem:[#allocation4 + $0x2c0] sm:$0xff]  ;;  %11938 = vst [vmem:[#allocation38_spill] sm:$0xff] %v8462_v24 }
 0x1a2   : > { %2418 = vmatpush.msrb.mxu1 %v8087_v37  ;;  %2089 = vmatpush.msra.mxu0 %v8275_v46  ;;  %v2547_v37 = vand.u32 4294901760, %v2546_v14  ;;  %v11939_v14 = vand.u32 4294901760, %v8414_v7  ;;  %v8471_v18 = vand.u32 4294901760, %v2479_v27 }
 0x1a3   : > { %2275 = vmatpush.msra.mxu2 %v8332_v57  ;;  %2320 = vmatpush.msra.mxu3 %v8305_v32 }
 0x1a4   : > { %2278 = vmatmul.f32.vlgmr.msra.gmra.mxu2 %v2097_v36  ;;  %2420 = vmatpush.msrb.mxu1 %v8096_v53  ;;  %v2553_v53 = vand.u32 4294901760, %v2552_v54  ;;  %v2558_v47 = vsub.f32 %v8414_v7, %v11939_v14  ;;  %v2105_v36 = vsub.f32 %v2044_v44, %v8454_v8  ;;  %v8479_v54 = vsub.f32 %v2480_v35, %v8457_v0  ;;  %v2477_v14 = vld [vmem:[#allocation4 + $0x2b0] sm:$0xff]  ;;  %v8503_v7 = vpop.f32.mrf.mxu1 }
 0x1a5   : > { %2488 = vmatpush.msrb.mxu2 %v8364_v6  ;;  %2091 = vmatpush.msra.mxu0 %v8288_v4  ;;  %v11941_v35 = vand.u32 4294901760, %v8451_v29  ;;  %v8497_v57 = vsub.f32 %v2479_v27, %v8471_v18  ;;  %11944 = vst [vmem:[#allocation40_spill] sm:$0xff] %v8503_v7  ;;  %v11947_v27 = vand.u32 4294901760, %v8462_v24 }
 0x1a6   : > { %2322 = vmatpush.msra.mxu3 %v8317_v38  ;;  %2422 = vmatpush.msrb.mxu1 %v8107_v1  ;;  %v11940_v1 = vand.u32 4294901760, %v8430_v9  ;;  %v2559_v44 = vand.u32 4294901760, %v2558_v47  ;;  %v8501_v47 = vpop.f32.mrf.mxu0 }
 0x1a7   : > { %2326 = vmatmul.f32.vlgmr.msra.gmra.mxu3 %v2098_v43  ;;  %2490 = vmatpush.msrb.mxu2 %v8376_v25  ;;  %v2100_v43 = vand.u32 4294901760, %v2099_v30  ;;  %11943 = vst [vmem:[#allocation39_spill] sm:$0xff] %v8501_v47  ;;  %v2475_v47 = vld [vmem:[#allocation4 + $0x2a0] sm:$0xff] }
 0x1a8   : > { %2548 = vmatpush.msrb.mxu3 %v2547_v37  ;;  %2093 = vmatpush.msra.mxu0 %v8305_v32  ;;  %v2564_v28 = vsub.f32 %v8430_v9, %v11940_v1  ;;  %v8484_v37 = vand.u32 4294901760, %v2478_v41  ;;  %v2570_v1 = vsub.f32 %v8451_v29, %v11941_v35  ;;  %v2476_v9 = vld [vmem:[#allocation4 + $0x2a8] sm:$0xff]  ;;  %v2106_v35 = vand.u32 4294901760, %v2105_v36 }
 0x1a9   : > { %2424 = vmatpush.msrb.mxu1 %v8120_v22  ;;  %2492 = vmatpush.msrb.mxu2 %v8394_v10  ;;  %v11942_v22 = vrot.slane %v7360_v34, 1 }
 0x1aa   : > { %2554 = vmatpush.msrb.mxu3 %v2553_v53  ;;  %2095 = vmatpush.msra.mxu0 %v8317_v38  ;;  %v8499_v53 = vand.u32 4294901760, %v2477_v14  ;;  %v8517_v7 = vsub.f32 %v2478_v41, %v8484_v37  ;;  %v2571_v29 = vand.u32 4294901760, %v2570_v1 }
 0x1ab   : > { %291 = vrot.lane.b32.xlu2 %v8023_v11, %s6781_s15  ;;  %2101 = vmatmul.f32.vlgmr.msra.gmra.mxu0 %v2100_v43  ;;  %v2046_v30 = vsel %vm2043_vm5, %v2042_v62, %v11942_v22  ;;  %v11945_v11 = vand.u32 4294901760, %v8103_v20  ;;  %v2565_v43 = vand.u32 4294901760, %v2564_v28  ;;  %v8509_v62 = vpop.f32.mrf.mxu2  ;;  %v2576_v22 = vsub.f32 %v8462_v24, %v11947_v27  ;;  %v8519_v20 = vpop.f32.mrf.mxu3 }
 0x1ac   : > { %2221 = vmatmul.f32.gmra.mxu1 %v8454_v8  ;;  %11946 = vst [vmem:[#allocation41_spill] sm:$0xff] %v8509_v62  ;;  %2494 = vmatpush.msrb.mxu2 %v8405_v19  ;;  %v8521_v28 = vand.u32 4294901760, %v2046_v30  ;;  %v11719_v27 = vand.u32 4294901760, %v8497_v57  ;;  %v8530_v41 = vsub.f32 %v2477_v14, %v8499_v53  ;;  %v2474_v62 = vld [vmem:[#allocation4 + $0x298] sm:$0xff]  ;;  %v8536_v8 = vand.u32 4294901760, %v2475_v47  ;;  %v2473_v14 = vld [vmem:[#allocation4 + $0x290] sm:$0xff] }
 0x1ad   : > { %2344 = vmatpush.msrb.mxu0 %v11945_v11  ;;  %2426 = vmatpush.msrb.mxu1 %v8146_v26  ;;  %11948 = vst [vmem:[#allocation42_spill] sm:$0xff] %v8519_v20  ;;  %v8523_v11 = vand.u32 4294901760, %v2476_v9  ;;  %v11949_v26 = vand.u32 4294901760, %v8116_v49  ;;  %v11950_v20 = vand.u32 4294901760, %v8479_v54  ;;  %v11951_v49 = vand.u32 4294901760, %v8131_v50 }
 0x1ae   : > { %2560 = vmatpush.msrb.mxu3 %v2559_v44  ;;  %2283 = vmatmul.f32.gmra.mxu2 %v2105_v36  ;;  %v2107_v44 = vsub.f32 %v2105_v36, %v2106_v35  ;;  %v11718_v1 = vand.u32 4294901760, %v8517_v7  ;;  %v2113_v36 = vsub.f32 %v2046_v30, %v8521_v28  ;;  %v2588_v50 = vsub.f32 %v8497_v57, %v11719_v27 }
 0x1af   : > { %2348 = vmatpush.msrb.mxu0 %v11949_v26  ;;  %2428 = vmatpush.msrb.mxu1 %v8161_v42  ;;  %v2582_v24 = vsub.f32 %v8479_v54, %v11950_v20  ;;  %v2577_v42 = vand.u32 4294901760, %v2576_v22  ;;  %v8547_v20 = vand.u32 4294901760, %v2474_v62  ;;  %v11720_v22 = vand.u32 4294901760, %v8530_v41 }
 0x1b0   : > { %2496 = vmatpush.msrb.mxu2 %v8420_v21  ;;  %2566 = vmatpush.msrb.mxu3 %v2565_v43  ;;  %v8545_v43 = vsub.f32 %v2476_v9, %v8523_v11  ;;  %v2108_v30 = vand.u32 4294901760, %v2107_v44  ;;  %v8558_v26 = vsub.f32 %v2475_v47, %v8536_v8 }
 0x1b1   : > { %2332 = vmatmul.f32.gmra.mxu3 %v2106_v35  ;;  %2352 = vmatpush.msrb.mxu0 %v11951_v49  ;;  %v11952_v35 = vand.u32 4294901760, %v8144_v16  ;;  %v2583_v9 = vand.u32 4294901760, %v2582_v24  ;;  %v2472_v16 = vld [vmem:[#allocation4 + $0x288] sm:$0xff]  ;;  %v2594_v49 = vsub.f32 %v8517_v7, %v11718_v1  ;;  %v2114_v24 = vand.u32 4294901760, %v2113_v36 }
 0x1b2   : > { %2430 = vmatpush.msrb.mxu1 %v8178_v15  ;;  %2498 = vmatpush.msrb.mxu2 %v8438_v60  ;;  %v1079_v15 = vpop.f32.mrf.mxu1  ;;  %v8574_v44 = vsub.f32 %v2474_v62, %v8547_v20  ;;  %v2589_v1 = vand.u32 4294901760, %v2588_v50  ;;  %v2600_v27 = vsub.f32 %v8530_v41, %v11720_v22  ;;  %v11959_v62 = vand.u32 4294901760, %v8545_v43 }
 0x1b3   : > { %2572 = vmatpush.msrb.mxu3 %v2571_v29  ;;  %2356 = vmatpush.msrb.mxu0 %v11952_v35  ;;  %v8560_v29 = vand.u32 4294901760, %v2473_v14  ;;  %v8567_v35 = vpop.f32.mrf.mxu0  ;;  %v11955_v15 = vand.u32 4294901760, %v8173_v12  ;;  %v11957_v12 = vand.u32 4294901760, %v8187_v61  ;;  %v11960_v61 = vand.u32 4294901760, %v8202_v59 }
 0x1b4   : > { %2432 = vmatpush.msrb.mxu1 %v8198_v2  ;;  %2500 = vmatpush.msrb.mxu2 %v8457_v0  ;;  %11953 = vst [vmem:[#allocation43_spill] sm:$0xff] %v8567_v35  ;;  %v8569_v2 = vpop.f32.mrf.mxu2 }
 0x1b5   : > { %2578 = vmatpush.msrb.mxu3 %v2577_v42  ;;  %319 = vrot.lane.b32.xlu2 %v8122_v3, %s6775_s17  ;;  %11954 = vst [vmem:[#allocation44_spill] sm:$0xff] %v8569_v2  ;;  %v2471_v42 = vld [vmem:[#allocation4 + $0x280] sm:$0xff]  ;;  %v8584_v2 = vpop.f32.mrf.mxu3  ;;  %v8589_v47 = vsub.f32 %v2473_v14, %v8560_v29  ;;  %v2606_v14 = vsub.f32 %v8545_v43, %v11959_v62 }
 0x1b6   : > { %2109 = vmatmul.f32.gmra.mxu0 %v2108_v30  ;;  %2225 = vmatmul.f32.gmra.mxu1 %v8521_v28  ;;  %v8582_v30 = vand.u32 4294901760, %v2472_v16  ;;  %11956 = vst [vmem:[#allocation45_spill] sm:$0xff] %v8584_v2  ;;  %v8593_v50 = vand.u32 4294901760, %v2471_v42  ;;  %v2617_v2 = vand.u32 4294901760, %v8574_v44 }
 0x1b7   : > { %2360 = vmatpush.msrb.mxu0 %v11955_v15  ;;  %2434 = vmatpush.msrb.mxu1 %v8213_v55  ;;  %v2595_v55 = vand.u32 4294901760, %v2594_v49  ;;  %v11958_v15 = vld [vmem:[#allocation14_spill] sm:$0xff]  ;;  %v2601_v49 = vand.u32 4294901760, %v2600_v27  ;;  %v2623_v35 = vand.u32 4294901760, %v8589_v47  ;;  %v2607_v62 = vand.u32 4294901760, %v2606_v14 }
 0x1b8   : > { %2502 = vmatpush.msrb.mxu2 %v8471_v18  ;;  %2584 = vmatpush.msrb.mxu3 %v2583_v9  ;;  %v8596_v22 = vand.u32 4294901760, %v11958_v15  ;;  %v2115_v9 = vsub.f32 %v2113_v36, %v2114_v24  ;;  %v8620_v27 = vsub.f32 %v2471_v42, %v8593_v50  ;;  %v11964_v14 = vrot.slane %v7390_v31, 2 }
 0x1b9   : > { %2288 = vmatmul.f32.gmra.mxu2 %v2113_v36  ;;  %2364 = vmatpush.msrb.mxu0 %v11957_v12  ;;  %v8607_v12 = vsub.f32 %v2472_v16, %v8582_v30 }
 0x1ba   : > { %2436 = vmatpush.msrb.mxu1 %v8229_v33  ;;  %2504 = vmatpush.msrb.mxu2 %v8484_v37  ;;  %v11961_v33 = vand.u32 4294901760, %v8558_v26  ;;  %v8617_v59 = vsub.f32 %v11958_v15, %v8596_v22 }
 0x1bb   : > { %2590 = vmatpush.msrb.mxu3 %v2589_v1  ;;  %2368 = vmatpush.msrb.mxu0 %v11960_v61  ;;  %v1029_v1 = vpop.f32.mrf.mxu0  ;;  %v8628_v61 = vld [vmem:[#allocation2 + $0x10] sm:$0xff]  ;;  %v2629_v42 = vand.u32 4294901760, %v8607_v12 }
 0x1bc   : > { %2338 = vmatmul.f32.gmra.mxu3 %v2114_v24  ;;  %2438 = vmatpush.msrb.mxu1 %v8240_v5  ;;  %v2612_v36 = vsub.f32 %v8558_v26, %v11961_v33  ;;  %v1155_v16 = vpop.f32.mrf.mxu2  ;;  %v11962_v5 = vand.u32 4294901760, %v8224_v58  ;;  %v2116_v24 = vand.u32 4294901760, %v2115_v9  ;;  %v2465_v15 = vrot.slane %v8628_v61, 2  ;;  %v8633_v33 = vpop.f32.mrf.mxu1 }
 0x1bd   : > { %2506 = vmatpush.msrb.mxu2 %v8499_v53  ;;  %2596 = vmatpush.msrb.mxu3 %v2595_v55  ;;  %v2618_v55 = vsub.f32 %v8574_v44, %v2617_v2  ;;  %11963 = vst [vmem:[#allocation14_spill] sm:$0xff] %v8633_v33  ;;  %v1199_v58 = vpop.f32.mrf.mxu3  ;;  %v2624_v9 = vsub.f32 %v8589_v47, %v2623_v35  ;;  %v2521_v16 = vand.u32 4294901760, %v8617_v59 }
 0x1be   : > { %2372 = vmatpush.msrb.mxu0 %v11962_v5  ;;  %2440 = vmatpush.msrb.mxu1 %v8252_v23  ;;  %v2613_v23 = vand.u32 4294901760, %v2612_v36  ;;  %v2467_v1 = vsel %vm2466_vm6, %v11964_v14, %v2465_v15  ;;  %v11966_v5 = vand.u32 4294901760, %v8250_v40  ;;  %v11967_v58 = vand.u32 4294901760, %v8262_v45 }
 0x1bf   : > { %2508 = vmatpush.msrb.mxu2 %v8523_v11  ;;  %2602 = vmatpush.msrb.mxu3 %v2601_v49  ;;  %v11965_v49 = vand.u32 4294901760, %v8238_v51  ;;  %v2619_v36 = vand.u32 4294901760, %v2618_v55  ;;  %v2630_v51 = vsub.f32 %v8607_v12, %v2629_v42  ;;  %v2522_v40 = vsub.f32 %v8617_v59, %v2521_v16 }
 0x1c0   : > { %343 = vrot.lane.b32.xlu2 %v8122_v3, %s6780_s14  ;;  %2117 = vmatmul.f32.gmra.mxu0 %v2116_v24  ;;  %v2635_v3 = vand.u32 4294901760, %v8620_v27  ;;  %v8656_v24 = vand.u32 4294901760, %v2467_v1 }
 0x1c1   : > { %2376 = vmatpush.msrb.mxu0 %v11965_v49  ;;  %2442 = vmatpush.msrb.mxu1 %v8275_v46  ;;  %v2625_v46 = vand.u32 4294901760, %v2624_v9  ;;  %v2631_v45 = vand.u32 4294901760, %v2630_v51  ;;  %v11971_v9 = vand.u32 4294901760, %v8298_v48  ;;  %v11975_v48 = vand.u32 4294901760, %v8382_v39 }
 0x1c2   : > { %2510 = vmatpush.msrb.mxu2 %v8536_v8  ;;  %2608 = vmatpush.msrb.mxu3 %v2607_v62  ;;  %v11968_v62 = vand.u32 4294901760, %v8272_v13  ;;  %v8673_v55 = vsub.f32 %v2467_v1, %v8656_v24  ;;  %v2523_v13 = vand.u32 4294901760, %v2522_v40  ;;  %v11976_v51 = vand.u32 4294901760, %v8309_v52  ;;  %v11978_v40 = vld [vmem:[#allocation25_spill] sm:$0xff] }
 0x1c3   : > { %2380 = vmatpush.msrb.mxu0 %v11966_v5  ;;  %2444 = vmatpush.msrb.mxu1 %v8288_v4  ;;  %v2636_v4 = vsub.f32 %v8620_v27, %v2635_v3 }
 0x1c4   : > { %2512 = vmatpush.msrb.mxu2 %v8547_v20  ;;  %2614 = vmatpush.msrb.mxu3 %v2613_v23  ;;  %v8678_v23 = vpop.f32.mrf.mxu1  ;;  %v8683_v49 = vpop.f32.mrf.mxu2 }
 0x1c5   : > { %2384 = vmatpush.msrb.mxu0 %v11967_v58  ;;  %2446 = vmatpush.msrb.mxu1 %v8305_v32  ;;  %v8676_v32 = vpop.f32.mrf.mxu0  ;;  %11970 = vst [vmem:[#allocation47_spill] sm:$0xff] %v8678_v23  ;;  %v2637_v14 = vand.u32 4294901760, %v2636_v4  ;;  %v8692_v5 = vpop.f32.mrf.mxu3  ;;  %v11979_v4 = vand.u32 4294901760, %v11978_v40  ;;  %v3328_v23 = vld [vmem:[#allocation4 + $0x3c8] sm:$0xff] }
 0x1c6   : > { %2514 = vmatpush.msrb.mxu2 %v8560_v29  ;;  %2620 = vmatpush.msrb.mxu3 %v2619_v36  ;;  %11969 = vst [vmem:[#allocation46_spill] sm:$0xff] %v8676_v32  ;;  %v2529_v36 = vand.u32 4294901760, %v8673_v55  ;;  %v9102_v33 = vand.u32 4294901760, %v3328_v23 }
 0x1c7   : > { %2388 = vmatpush.msrb.mxu0 %v11968_v62  ;;  %2448 = vmatpush.msrb.mxu1 %v8317_v38  ;;  %11972 = vst [vmem:[#allocation48_spill] sm:$0xff] %v8683_v49  ;;  %v11973_v38 = vrot.slane %v7360_v34, 2  ;;  %v11980_v62 = vld [vmem:[#allocation33_spill] sm:$0xff] }
 0x1c8   : > { %2516 = vmatpush.msrb.mxu2 %v8582_v30  ;;  %2626 = vmatpush.msrb.mxu3 %v2625_v46  ;;  %11974 = vst [vmem:[#allocation49_spill] sm:$0xff] %v8692_v5  ;;  %v2530_v58 = vsub.f32 %v8673_v55, %v2529_v36 }
 0x1c9   : > { %2450 = vmatmul.f32.vlgmr.msrb.gmra.mxu1 %v8390_v63  ;;  %2392 = vmatpush.msrb.mxu0 %v11971_v9  ;;  %v2469_v1 = vsel %vm2466_vm6, %v2465_v15, %v11973_v38  ;;  %v11977_v15 = vand.u32 4294901760, %v8397_v56 }
 0x1ca   : > { %2715 = vmatpush.msra.mxu1 %v8364_v6  ;;  %2518 = vmatpush.msrb.mxu2 %v8593_v50  ;;  %v8699_v46 = vand.u32 4294901760, %v2469_v1 }
 0x1cb   : > { %2632 = vmatpush.msrb.mxu3 %v2631_v45  ;;  %2524 = vmatmul.f32.vlgmr.msrb.gmra.mxu2 %v2523_v13  ;;  %v11981_v45 = vand.u32 4294901760, %v11980_v62  ;;  %v11982_v13 = vld [vmem:[#allocation26_spill] sm:$0xff] }
 0x1cc   : > { %2717 = vmatpush.msra.mxu1 %v8376_v25  ;;  %2767 = vmatpush.msra.mxu2 %v11975_v48  ;;  %v8716_v9 = vsub.f32 %v2469_v1, %v8699_v46  ;;  %v8723_v48 = vpop.f32.mrf.mxu2 }
 0x1cd   : > { %2396 = vmatpush.msrb.mxu0 %v11976_v51  ;;  %2638 = vmatpush.msrb.mxu3 %v2637_v14  ;;  %v1387_v52 = vpop.f32.mrf.mxu1  ;;  %v11984_v14 = vld [vmem:[#allocation37_spill] sm:$0xff]  ;;  %v8721_v38 = vpop.f32.mrf.mxu0  ;;  %11986 = vst [vmem:[#allocation33_spill] sm:$0xff] %v8723_v48  ;;  %v2531_v51 = vand.u32 4294901760, %v2530_v58  ;;  %v2909_v58 = vld [vmem:[#allocation4 + $0x378] sm:$0xff]  ;;  %v12024_v48 = vrot.slane %v7390_v31, 3 }
 0x1ce   : > { %2640 = vmatmul.f32.vlgmr.msrb.gmra.mxu3 %v8596_v22  ;;  %2719 = vmatpush.msra.mxu1 %v8394_v10  ;;  %11985 = vst [vmem:[#allocation25_spill] sm:$0xff] %v8721_v38  ;;  %v11728_v1 = vand.u32 4294901760, %v8716_v9  ;;  %v8732_v40 = vpop.f32.mrf.mxu3 }
 0x1cf   : > { %2771 = vmatpush.msra.mxu2 %v11977_v15  ;;  %2841 = vmatpush.msra.mxu3 %v8364_v6  ;;  %v11983_v6 = vand.u32 4294901760, %v11982_v13  ;;  %11989 = vst [vmem:[#allocation26_spill] sm:$0xff] %v8732_v40  ;;  %v8754_v13 = vand.u32 4294901760, %v2909_v58 }
 0x1d0   : > { %2400 = vmatpush.msrb.mxu0 %v11979_v4  ;;  %2721 = vmatpush.msra.mxu1 %v8405_v19 }
 0x1d1   : > { %2775 = vmatpush.msra.mxu2 %v11981_v45  ;;  %2843 = vmatpush.msra.mxu3 %v8376_v25  ;;  %v11987_v25 = vld [vmem:[#allocation34_spill] sm:$0xff]  ;;  %v2908_v45 = vld [vmem:[#allocation4 + $0x370] sm:$0xff] }
 0x1d2   : > { %2404 = vmatpush.msrb.mxu0 %v11983_v6  ;;  %2454 = vmatmul.f32.gmra.mxu1 %v11984_v14  ;;  %v11988_v15 = vand.u32 4294901760, %v11987_v25  ;;  %v2907_v6 = vld [vmem:[#allocation4 + $0x368] sm:$0xff] }
 0x1d3   : > { %2406 = vmatmul.f32.vlgmr.msrb.gmra.mxu0 %v8390_v63  ;;  %2723 = vmatpush.msra.mxu1 %v8420_v21  ;;  %v11990_v63 = vld [vmem:[#allocation36_spill] sm:$0xff] }
 0x1d4   : > { %2653 = vmatpush.msra.mxu0 %v8382_v39  ;;  %2779 = vmatpush.msra.mxu2 %v11988_v15  ;;  %v11991_v4 = vand.u32 4294901760, %v11990_v63  ;;  %v11992_v39 = vld [vmem:[#allocation38_spill] sm:$0xff]  ;;  %v11996_v15 = vand.u32 4294901760, %v8497_v57 }
 0x1d5   : > { %2845 = vmatpush.msra.mxu3 %v8394_v10  ;;  %2532 = vmatmul.f32.gmra.mxu2 %v2531_v51  ;;  %v11993_v10 = vand.u32 4294901760, %v11992_v39 }
 0x1d6   : > { %2656 = vmatpush.msra.mxu0 %v8397_v56  ;;  %2725 = vmatpush.msra.mxu1 %v8438_v60  ;;  %v2538_v56 = vsub.f32 %v8716_v9, %v11728_v1  ;;  %v8758_v51 = vpop.f32.mrf.mxu1 }
 0x1d7   : > { %2783 = vmatpush.msra.mxu2 %v11991_v4  ;;  %2847 = vmatpush.msra.mxu3 %v8405_v19  ;;  %v1279_v52 = vpop.f32.mrf.mxu0  ;;  %v1450_v19 = vpop.f32.mrf.mxu2  ;;  %11995 = vst [vmem:[#allocation37_spill] sm:$0xff] %v8758_v51  ;;  %v8763_v4 = vand.u32 4294901760, %v2908_v45 }
 0x1d8   : > { %2644 = vmatmul.f32.gmra.mxu3 %v8656_v24  ;;  %2659 = vmatpush.msra.mxu0 %v11980_v62  ;;  %v11994_v62 = vand.u32 4294901760, %v8479_v54 }
 0x1d9   : > { %2727 = vmatpush.msra.mxu1 %v8457_v0  ;;  %2787 = vmatpush.msra.mxu2 %v11993_v10  ;;  %v11997_v10 = vand.u32 4294901760, %v8517_v7 }
 0x1da   : > { %2849 = vmatpush.msra.mxu3 %v8420_v21  ;;  %2662 = vmatpush.msra.mxu0 %v11987_v25  ;;  %v2539_v21 = vand.u32 4294901760, %v2538_v56  ;;  %v1500_v25 = vpop.f32.mrf.mxu3  ;;  %v2905_v56 = vld [vmem:[#allocation4 + $0x358] sm:$0xff] }
 0x1db   : > { %2729 = vmatpush.msra.mxu1 %v8471_v18  ;;  %2791 = vmatpush.msra.mxu2 %v11994_v62  ;;  %v8795_v19 = vand.u32 4294901760, %v2905_v56  ;;  %v2904_v62 = vld [vmem:[#allocation4 + $0x350] sm:$0xff] }
 0x1dc   : > { %2851 = vmatpush.msra.mxu3 %v8438_v60  ;;  %2410 = vmatmul.f32.gmra.mxu0 %v11984_v14  ;;  %v2906_v60 = vld [vmem:[#allocation4 + $0x360] sm:$0xff]  ;;  %v8769_v14 = vsub.f32 %v2909_v58, %v8754_v13  ;;  %v11998_v58 = vand.u32 4294901760, %v8530_v41  ;;  %v8816_v25 = vand.u32 4294901760, %v2904_v62 }
 0x1dd   : > { %2458 = vmatmul.f32.gmra.mxu1 %v8521_v28  ;;  %2665 = vmatpush.msra.mxu0 %v11990_v63  ;;  %v8771_v63 = vand.u32 4294901760, %v2907_v6 }
 0x1de   : > { %2731 = vmatpush.msra.mxu1 %v8484_v37  ;;  %2795 = vmatpush.msra.mxu2 %v11996_v15 }
 0x1df   : > { %2853 = vmatpush.msra.mxu3 %v8457_v0  ;;  %2540 = vmatmul.f32.gmra.mxu2 %v2539_v21  ;;  %v8779_v0 = vsub.f32 %v2908_v45, %v8763_v4  ;;  %v8790_v52 = vsub.f32 %v2907_v6, %v8771_v63  ;;  %v12002_v6 = vand.u32 4294901760, %v8558_v26  ;;  %v8818_v15 = vpop.f32.mrf.mxu2 }
 0x1e0   : > { %2668 = vmatpush.msra.mxu0 %v11992_v39  ;;  %2733 = vmatpush.msra.mxu1 %v8499_v53  ;;  %v8781_v39 = vand.u32 4294901760, %v2906_v60  ;;  %v8805_v45 = vpop.f32.mrf.mxu0  ;;  %12003 = vst [vmem:[#allocation38_spill] sm:$0xff] %v8818_v15 }
 0x1e1   : > { %2799 = vmatpush.msra.mxu2 %v11997_v10  ;;  %2855 = vmatpush.msra.mxu3 %v8471_v18  ;;  %v11727_v18 = vand.u32 4294901760, %v8769_v14  ;;  %12000 = vst [vmem:[#allocation34_spill] sm:$0xff] %v8805_v45  ;;  %v8807_v21 = vpop.f32.mrf.mxu1  ;;  %v8823_v10 = vsub.f32 %v2905_v56, %v8795_v19  ;;  %v3330_v45 = vld [vmem:[#allocation4 + $0x3d8] sm:$0xff] }
 0x1e2   : > { %2648 = vmatmul.f32.gmra.mxu3 %v8699_v46  ;;  %2671 = vmatpush.msra.mxu0 %v8479_v54  ;;  %v11999_v54 = vand.u32 4294901760, %v8545_v43  ;;  %12001 = vst [vmem:[#allocation36_spill] sm:$0xff] %v8807_v21  ;;  %v9068_v5 = vand.u32 4294901760, %v3330_v45 }
 0x1e3   : > { %2735 = vmatpush.msra.mxu1 %v8523_v11  ;;  %2803 = vmatpush.msra.mxu2 %v11998_v58 }
 0x1e4   : > { %2857 = vmatpush.msra.mxu3 %v8484_v37  ;;  %2674 = vmatpush.msra.mxu0 %v8497_v57  ;;  %v11721_v37 = vand.u32 4294901760, %v8779_v0  ;;  %v8801_v57 = vsub.f32 %v2906_v60, %v8781_v39 }
 0x1e5   : > { %2737 = vmatpush.msra.mxu1 %v8536_v8  ;;  %2807 = vmatpush.msra.mxu2 %v11999_v54  ;;  %v252_v60 = vpop.permute.xlu0 %251  ;;  %v2902_v54 = vld [vmem:[#allocation4 + $0x340] sm:$0xff] }
 0x1e6   : > { %2859 = vmatpush.msra.mxu3 %v8499_v53  ;;  %2414 = vmatmul.f32.gmra.mxu0 %v8521_v28  ;;  %v2969_v53 = vsub.f32 %v8769_v14, %v11727_v18  ;;  %v11723_v28 = vand.u32 4294901760, %v8790_v52  ;;  %254 = vst.msk [vmem:[#allocation2 + $0x1a] sm:$0x1] %vm233_vm1, %v252_v60  ;;  %v11722_v58 = vand.u32 4294901760, %v8801_v57  ;;  %v8851_v60 = vand.u32 4294901760, %v2902_v54 }
 0x1e7   : > { %2677 = vmatpush.msra.mxu0 %v8517_v7  ;;  %2739 = vmatpush.msra.mxu1 %v8547_v20  ;;  %v2903_v7 = vld [vmem:[#allocation4 + $0x348] sm:$0xff] }
 0x1e8   : > { %2811 = vmatpush.msra.mxu2 %v12002_v6  ;;  %2861 = vmatpush.msra.mxu3 %v8523_v11  ;;  %v2975_v11 = vsub.f32 %v8779_v0, %v11721_v37  ;;  %v8837_v56 = vand.u32 4294901760, %v2903_v7  ;;  %v8846_v6 = vsub.f32 %v2904_v62, %v8816_v25  ;;  %v2901_v37 = vld [vmem:[#allocation4 + $0x338] sm:$0xff] }
 0x1e9   : > { %2680 = vmatpush.msra.mxu0 %v8530_v41  ;;  %2741 = vmatpush.msra.mxu1 %v8560_v29  ;;  %v8833_v41 = vpop.f32.mrf.mxu3 }
 0x1ea   : > { %2815 = vmatpush.msra.mxu2 %v2617_v2  ;;  %2863 = vmatpush.msra.mxu3 %v8536_v8  ;;  %12004 = vst [vmem:[#allocation50_spill] sm:$0xff] %v8833_v41  ;;  %v2970_v8 = vand.u32 4294901760, %v2969_v53  ;;  %v2981_v2 = vsub.f32 %v8790_v52, %v11723_v28  ;;  %v2900_v53 = vld [vmem:[#allocation4 + $0x330] sm:$0xff]  ;;  %v8871_v28 = vpop.f32.mrf.mxu0 }
 0x1eb   : > { %2683 = vmatpush.msra.mxu0 %v8545_v43  ;;  %2743 = vmatpush.msra.mxu1 %v8582_v30  ;;  %v11724_v43 = vand.u32 4294901760, %v8823_v10  ;;  %12005 = vst [vmem:[#allocation51_spill] sm:$0xff] %v8871_v28  ;;  %v3334_v28 = vld [vmem:[#allocation4 + $0x3f8] sm:$0xff] }
 0x1ec   : > { %2819 = vmatpush.msra.mxu2 %v2623_v35  ;;  %2865 = vmatpush.msra.mxu3 %v8547_v20  ;;  %v2976_v20 = vand.u32 4294901760, %v2975_v11  ;;  %v2987_v35 = vsub.f32 %v8801_v57, %v11722_v58  ;;  %v11725_v11 = vand.u32 4294901760, %v8846_v6  ;;  %v8869_v58 = vand.u32 4294901760, %v2901_v37 }
 0x1ed   : > { %2686 = vmatpush.msra.mxu0 %v8558_v26  ;;  %2745 = vmatpush.msra.mxu1 %v8593_v50  ;;  %v8863_v26 = vsub.f32 %v2903_v7, %v8837_v56  ;;  %v8881_v7 = vsub.f32 %v2902_v54, %v8851_v60 }
 0x1ee   : > { %2823 = vmatpush.msra.mxu2 %v2629_v42  ;;  %2867 = vmatpush.msra.mxu3 %v8560_v29  ;;  %v244_v62 = vpop.permute.xlu2 %243  ;;  %v1620_v42 = vpop.f32.mrf.mxu1  ;;  %v2982_v29 = vand.u32 4294901760, %v2981_v2  ;;  %v8884_v2 = vand.u32 4294901760, %v2900_v53 }
 0x1ef   : > { %2749 = vmatmul.f32.vlgmr.msra.gmra.mxu1 %v2521_v16  ;;  %2689 = vmatpush.msra.mxu0 %v8574_v44  ;;  %246 = vst.msk [vmem:[#allocation2 + $0x19] sm:$0x1] %vm233_vm1, %v244_v62  ;;  %v8873_v16 = vpop.f32.mrf.mxu2  ;;  %v2993_v44 = vsub.f32 %v8823_v10, %v11724_v43  ;;  %v2899_v62 = vld [vmem:[#allocation4 + $0x328] sm:$0xff]  ;;  %v11726_v54 = vand.u32 4294901760, %v8863_v26 }
 0x1f0   : > { %2971 = vmatpush.msrb.mxu1 %v2970_v8  ;;  %2827 = vmatpush.msra.mxu2 %v2635_v3  ;;  %12006 = vst [vmem:[#allocation52_spill] sm:$0xff] %v8873_v16  ;;  %v2988_v8 = vand.u32 4294901760, %v2987_v35  ;;  %v8898_v35 = vsub.f32 %v2901_v37, %v8869_v58  ;;  %v8903_v43 = vand.u32 4294901760, %v2899_v62 }
 0x1f1   : > { %2869 = vmatpush.msra.mxu3 %v8582_v30  ;;  %2829 = vmatmul.f32.vlgmr.msra.gmra.mxu2 %v8596_v22  ;;  %v260_v3 = vpop.permute.xlu1 %259  ;;  %v276_v30 = vpop.permute.xlu0 %275  ;;  %v3005_v37 = vsub.f32 %v8863_v26, %v11726_v54 }
 0x1f2   : > { %2977 = vmatpush.msrb.mxu1 %v2976_v20  ;;  %3076 = vmatpush.msrb.mxu2 %v8769_v14  ;;  %262 = vst.msk [vmem:[#allocation2 + $0x1b] sm:$0x1] %vm233_vm1, %v260_v3  ;;  %v8887_v42 = vpop.f32.mrf.mxu3  ;;  %v2999_v20 = vsub.f32 %v8846_v6, %v11725_v11  ;;  %v2898_v3 = vld [vmem:[#allocation4 + $0x320] sm:$0xff]  ;;  %v8925_v18 = vsub.f32 %v2899_v62, %v8903_v43 }
 0x1f3   : > { %12007 = vst [vmem:[#allocation53_spill] sm:$0xff] %v8887_v42  ;;  %2692 = vmatpush.msra.mxu0 %v8589_v47  ;;  %2871 = vmatpush.msra.mxu3 %v8593_v50  ;;  %v2994_v47 = vand.u32 4294901760, %v2993_v44  ;;  %v11729_v50 = vand.u32 4294901760, %v8881_v7  ;;  %v8914_v44 = vand.u32 4294901760, %v2898_v3 }
 0x1f4   : > { %278 = vst.msk [vmem:[#allocation2 + $0x1d] sm:$0x1] %vm233_vm1, %v276_v30  ;;  %2873 = vmatmul.f32.vlgmr.msra.gmra.mxu3 %v8596_v22  ;;  %2983 = vmatpush.msrb.mxu1 %v2982_v29  ;;  %v8907_v22 = vsub.f32 %v2900_v53, %v8884_v2  ;;  %v2897_v29 = vld [vmem:[#allocation4 + $0x318] sm:$0xff]  ;;  %v11730_v53 = vand.u32 4294901760, %v8898_v35 }
 0x1f5   : > { %3079 = vmatpush.msrb.mxu2 %v8779_v0  ;;  %3138 = vmatpush.msrb.mxu3 %v8754_v13  ;;  %v1576_v30 = vpop.f32.mrf.mxu0  ;;  %v3011_v54 = vsub.f32 %v8881_v7, %v11729_v50  ;;  %v8936_v62 = vsub.f32 %v2898_v3, %v8914_v44 }
 0x1f6   : > { %2695 = vmatpush.msra.mxu0 %v8607_v12  ;;  %2989 = vmatpush.msrb.mxu1 %v2988_v8  ;;  %v3000_v12 = vand.u32 4294901760, %v2999_v20  ;;  %v2896_v8 = vld [vmem:[#allocation4 + $0x310] sm:$0xff]  ;;  %v3006_v20 = vand.u32 4294901760, %v3005_v37  ;;  %v3017_v30 = vsub.f32 %v8898_v35, %v11730_v53  ;;  %v11731_v37 = vand.u32 4294901760, %v8925_v18 }
 0x1f7   : > { %3082 = vmatpush.msrb.mxu2 %v8790_v52  ;;  %3140 = vmatpush.msrb.mxu3 %v8763_v4  ;;  %v1695_v11 = vpop.f32.mrf.mxu2  ;;  %v12008_v53 = vand.u32 4294901760, %v8907_v22 }
 0x1f8   : > { %2698 = vmatpush.msra.mxu0 %v8620_v27  ;;  %2755 = vmatmul.f32.gmra.mxu1 %v2529_v36  ;;  %v8927_v27 = vand.u32 4294901760, %v2897_v29 }
 0x1f9   : > { %2701 = vmatmul.f32.vlgmr.msra.gmra.mxu0 %v8617_v59  ;;  %2995 = vmatpush.msrb.mxu1 %v2994_v47  ;;  %v268_v1 = vpop.permute.xlu2 %267  ;;  %v2895_v59 = vld [vmem:[#allocation4 + $0x308] sm:$0xff]  ;;  %v8938_v47 = vand.u32 4294901760, %v2896_v8  ;;  %v3023_v21 = vsub.f32 %v8907_v22, %v12008_v53  ;;  %v3029_v53 = vsub.f32 %v8925_v18, %v11731_v37 }
 0x1fa   : > { %2911 = vmatpush.msrb.mxu0 %v8754_v13  ;;  %3085 = vmatpush.msrb.mxu2 %v8801_v57  ;;  %270 = vst.msk [vmem:[#allocation2 + $0x1c] sm:$0x1] %vm233_vm1, %v268_v1  ;;  %v1803_v11 = vpop.f32.mrf.mxu3  ;;  %v2894_v1 = vld [vmem:[#allocation4 + $0x300] sm:$0xff]  ;;  %v8948_v3 = vsub.f32 %v2897_v29, %v8927_v27  ;;  %v8950_v36 = vand.u32 4294901760, %v2895_v59 }
 0x1fb   : > { %3142 = vmatpush.msrb.mxu3 %v8771_v63  ;;  %2833 = vmatmul.f32.gmra.mxu2 %v8656_v24  ;;  %v3012_v11 = vand.u32 4294901760, %v3011_v54  ;;  %v8962_v29 = vsub.f32 %v2896_v8, %v8938_v47  ;;  %v8976_v8 = vpop.f32.mrf.mxu1  ;;  %v3024_v54 = vand.u32 4294901760, %v3023_v21 }
 0x1fc   : > { %2913 = vmatpush.msrb.mxu0 %v8763_v4  ;;  %3001 = vmatpush.msrb.mxu1 %v3000_v12  ;;  %v284_v50 = vpop.permute.xlu1 %283  ;;  %12010 = vst [vmem:[#allocation55_spill] sm:$0xff] %v8976_v8  ;;  %v12014_v21 = vand.u32 4294901760, %v8948_v3  ;;  %v9005_v8 = vand.u32 4294901760, %v3334_v28 }
 0x1fd   : > { %3088 = vmatpush.msrb.mxu2 %v8823_v10  ;;  %3144 = vmatpush.msrb.mxu3 %v8781_v39  ;;  %286 = vst.msk [vmem:[#allocation2 + $0x1e] sm:$0x1] %vm233_vm1, %v284_v50  ;;  %v304_v12 = vpop.permute.xlu0 %303  ;;  %v8964_v50 = vand.u32 4294901760, %v2894_v1 }
 0x1fe   : > { %2877 = vmatmul.f32.gmra.mxu3 %v8656_v24  ;;  %2915 = vmatpush.msrb.mxu0 %v8771_v63  ;;  %306 = vst.msk [vmem:[#allocation2 + $0x21] sm:$0x1] %vm233_vm1, %v304_v12  ;;  %v3018_v24 = vand.u32 4294901760, %v3017_v30  ;;  %v8974_v12 = vsub.f32 %v2895_v59, %v8950_v36  ;;  %v12011_v30 = vand.u32 4294901760, %v8716_v9 }
 0x1ff   : > { %3007 = vmatpush.msrb.mxu1 %v3006_v20  ;;  %3091 = vmatpush.msrb.mxu2 %v8846_v6  ;;  %v11732_v20 = vand.u32 4294901760, %v8962_v29  ;;  %v8988_v59 = vsub.f32 %v2894_v1, %v8964_v50  ;;  %v3333_v1 = vld [vmem:[#allocation4 + $0x3f0] sm:$0xff] }
 0x200   : > { %3146 = vmatpush.msrb.mxu3 %v8795_v19  ;;  %2917 = vmatpush.msrb.mxu0 %v8781_v39  ;;  %12009 = vst [vmem:[#allocation54_spill] sm:$0xff] %v8974_v12  ;;  %v9014_v40 = vand.u32 4294901760, %v3333_v1 }
 0x201   : > { %3013 = vmatpush.msrb.mxu1 %v3012_v11  ;;  %3094 = vmatpush.msrb.mxu2 %v8863_v26  ;;  %v12012_v11 = vand.u32 4294901760, %v8936_v62  ;;  %12013 = vst [vmem:[#allocation56_spill] sm:$0xff] %v8988_v59 }
 0x202   : > { %3148 = vmatpush.msrb.mxu3 %v8816_v25  ;;  %2706 = vmatmul.f32.gmra.mxu0 %v8673_v55  ;;  %v3030_v55 = vand.u32 4294901760, %v3029_v53  ;;  %v3047_v53 = vsub.f32 %v8962_v29, %v11732_v20 }
 0x203   : > { %2761 = vmatmul.f32.gmra.mxu1 %v12011_v30  ;;  %2919 = vmatpush.msrb.mxu0 %v8795_v19  ;;  %v3035_v37 = vsub.f32 %v8936_v62, %v12012_v11  ;;  %v3041_v30 = vsub.f32 %v8948_v3, %v12014_v21  ;;  %v9016_v21 = vpop.f32.mrf.mxu2  ;;  %v9028_v42 = vpop.f32.mrf.mxu1 }
 0x204   : > { %3019 = vmatpush.msrb.mxu1 %v3018_v24  ;;  %3097 = vmatpush.msrb.mxu2 %v8881_v7  ;;  %12016 = vst [vmem:[#allocation57_spill] sm:$0xff] %v9016_v21  ;;  %v9032_v21 = vpop.f32.mrf.mxu0 }
 0x205   : > { %3150 = vmatpush.msrb.mxu3 %v8837_v56  ;;  %2837 = vmatmul.f32.gmra.mxu2 %v8699_v46  ;;  %v292_v51 = vpop.permute.xlu2 %291  ;;  %v3036_v24 = vand.u32 4294901760, %v3035_v37  ;;  %v3042_v37 = vand.u32 4294901760, %v3041_v30  ;;  %v12017_v30 = vand.u32 4294901760, %v8988_v59  ;;  %12018 = vst [vmem:[#allocation58_spill] sm:$0xff] %v9028_v42  ;;  %v9043_v42 = vpop.f32.mrf.mxu3 }
 0x206   : > { %2921 = vmatpush.msrb.mxu0 %v8816_v25  ;;  %3025 = vmatpush.msrb.mxu1 %v3024_v54  ;;  %294 = vst.msk [vmem:[#allocation2 + $0x1f] sm:$0x1] %vm233_vm1, %v292_v51  ;;  %v12015_v54 = vand.u32 4294901760, %v8974_v12 }
 0x207   : > { %3100 = vmatpush.msrb.mxu2 %v8898_v35  ;;  %3152 = vmatpush.msrb.mxu3 %v8851_v60  ;;  %v312_v11 = vpop.permute.xlu1 %311  ;;  %v328_v51 = vpop.permute.xlu0 %327  ;;  %12019 = vst [vmem:[#allocation59_spill] sm:$0xff] %v9032_v21 }
 0x208   : > { %2881 = vmatmul.f32.gmra.mxu3 %v8699_v46  ;;  %2923 = vmatpush.msrb.mxu0 %v8837_v56  ;;  %314 = vst.msk [vmem:[#allocation2 + $0x22] sm:$0x1] %vm233_vm1, %v312_v11  ;;  %v3053_v20 = vsub.f32 %v8974_v12, %v12015_v54  ;;  %v3332_v46 = vld [vmem:[#allocation4 + $0x3e8] sm:$0xff]  ;;  %v3059_v11 = vsub.f32 %v8988_v59, %v12017_v30 }
 0x209   : > { %3031 = vmatpush.msrb.mxu1 %v3030_v55  ;;  %3103 = vmatpush.msrb.mxu2 %v8907_v22  ;;  %330 = vst.msk [vmem:[#allocation2 + $0x24] sm:$0x1] %vm233_vm1, %v328_v51  ;;  %v3048_v55 = vand.u32 4294901760, %v3047_v53  ;;  %v9026_v54 = vsub.f32 %v3334_v28, %v9005_v8  ;;  %v3331_v51 = vld [vmem:[#allocation4 + $0x3e0] sm:$0xff]  ;;  %v12020_v53 = vld [vmem:[#allocation15_spill] sm:$0xff]  ;;  %v9038_v30 = vand.u32 4294901760, %v3332_v46  ;;  %v9041_v28 = vsub.f32 %v3333_v1, %v9014_v40 }
 0x20a   : > { %3154 = vmatpush.msrb.mxu3 %v8869_v58  ;;  %2925 = vmatpush.msrb.mxu0 %v8851_v60  ;;  %v9036_v16 = vand.u32 4294901760, %v12020_v53  ;;  %12022 = vst [vmem:[#allocation60_spill] sm:$0xff] %v9043_v42  ;;  %v2888_v1 = vrot.slane %v8628_v61, 3  ;;  %v3329_v42 = vld [vmem:[#allocation4 + $0x3d0] sm:$0xff] }
 0x20b   : > { %3037 = vmatpush.msrb.mxu1 %v3036_v24  ;;  %3106 = vmatpush.msrb.mxu2 %v8925_v18  ;;  %v3054_v24 = vand.u32 4294901760, %v3053_v20  ;;  %12021 = vst [vmem:[#allocation15_spill] sm:$0xff] %v9041_v28  ;;  %v9060_v20 = vsub.f32 %v3332_v46, %v9038_v30  ;;  %v9077_v15 = vand.u32 4294901760, %v3329_v42  ;;  %v9079_v31 = vpop.f32.mrf.mxu2 }
 0x20c   : > { %3156 = vmatpush.msrb.mxu3 %v8884_v2  ;;  %2711 = vmatmul.f32.gmra.mxu0 %v8716_v9  ;;  %v3060_v9 = vand.u32 4294901760, %v3059_v11  ;;  %12027 = vst [vmem:[#allocation63_spill] sm:$0xff] %v9079_v31 }
 0x20d   : > { %2927 = vmatpush.msrb.mxu0 %v8869_v58  ;;  %3043 = vmatpush.msrb.mxu1 %v3042_v37  ;;  %v9049_v37 = vand.u32 4294901760, %v3331_v51  ;;  %12023 = vst [vmem:[#allocation61_spill] sm:$0xff] %v9060_v20  ;;  %v9098_v38 = vpop.f32.mrf.mxu0 }
 0x20e   : > { %3109 = vmatpush.msrb.mxu2 %v8936_v62  ;;  %3158 = vmatpush.msrb.mxu3 %v8903_v43  ;;  %12031 = vst [vmem:[#allocation66_spill] sm:$0xff] %v9098_v38  ;;  %v9107_v31 = vpop.f32.mrf.mxu3 }
 0x20f   : > { %2929 = vmatpush.msrb.mxu0 %v8884_v2  ;;  %3049 = vmatpush.msrb.mxu1 %v3048_v55  ;;  %v320_v21 = vpop.permute.xlu2 %319  ;;  %v2943_v55 = vsub.f32 %v12020_v53, %v9036_v16  ;;  %v12025_v53 = vand.u32 4294901760, %v9026_v54  ;;  %v9075_v11 = vsub.f32 %v3331_v51, %v9049_v37  ;;  %12032 = vst [vmem:[#allocation67_spill] sm:$0xff] %v9107_v31  ;;  %v12034_v31 = vrot.slane %v7360_v34, 3 }
 0x210   : > { %3112 = vmatpush.msrb.mxu2 %v8948_v3  ;;  %3160 = vmatpush.msrb.mxu3 %v8914_v44  ;;  %322 = vst.msk [vmem:[#allocation2 + $0x23] sm:$0x1] %vm233_vm1, %v320_v21  ;;  %v2890_v21 = vsel %vm2889_vm7, %v12024_v48, %v2888_v1 }
 0x211   : > { %2931 = vmatpush.msrb.mxu0 %v8903_v43  ;;  %3055 = vmatpush.msrb.mxu1 %v3054_v24  ;;  %v3394_v46 = vsub.f32 %v9026_v54, %v12025_v53  ;;  %12026 = vst [vmem:[#allocation62_spill] sm:$0xff] %v9075_v11  ;;  %v2944_v51 = vand.u32 4294901760, %v2943_v55 }
 0x212   : > { %3115 = vmatpush.msrb.mxu2 %v8962_v29  ;;  %3162 = vmatpush.msrb.mxu3 %v8927_v27  ;;  %v336_v24 = vpop.permute.xlu1 %335  ;;  %v352_v41 = vpop.permute.xlu0 %351 }
 0x213   : > { %2933 = vmatpush.msrb.mxu0 %v8914_v44  ;;  %3061 = vmatpush.msrb.mxu1 %v3060_v9  ;;  %338 = vst.msk [vmem:[#allocation2 + $0x25] sm:$0x1] %vm233_vm1, %v336_v24  ;;  %v1916_v48 = vpop.f32.mrf.mxu1  ;;  %v12028_v9 = vand.u32 4294901760, %v9041_v28  ;;  %v9093_v24 = vand.u32 4294901760, %v2890_v21  ;;  %v3395_v49 = vand.u32 4294901760, %v3394_v46  ;;  %v2945_v46 = vsub.f32 %v2943_v55, %v2944_v51 }
 0x214   : > { %3118 = vmatpush.msrb.mxu2 %v8974_v12  ;;  %3164 = vmatpush.msrb.mxu3 %v8938_v47  ;;  %354 = vst.msk [vmem:[#allocation2 + $0x27] sm:$0x1] %vm233_vm1, %v352_v41  ;;  %v9096_v48 = vsub.f32 %v3330_v45, %v9068_v5  ;;  %v3327_v41 = vld [vmem:[#allocation4 + $0x3c0] sm:$0xff]  ;;  %v3326_v45 = vld [vmem:[#allocation4 + $0x3b8] sm:$0xff]  ;;  %v2892_v12 = vsel %vm2889_vm7, %v2888_v1, %v12034_v31 }
 0x215   : > { %3063 = vmatmul.f32.vlgmr.msrb.gmra.mxu1 %v9036_v16  ;;  %2935 = vmatpush.msrb.mxu0 %v8927_v27  ;;  %v3400_v53 = vsub.f32 %v9041_v28, %v12028_v9  ;;  %12029 = vst [vmem:[#allocation64_spill] sm:$0xff] %v9093_v24  ;;  %v12033_v9 = vand.u32 4294901760, %v9060_v20  ;;  %v12039_v28 = vand.u32 4294901760, %v8769_v14 }
 0x216   : > { %3264 = vmatpush.msra.mxu1 %v8754_v13  ;;  %3121 = vmatpush.msrb.mxu2 %v8988_v59  ;;  %12030 = vst [vmem:[#allocation65_spill] sm:$0xff] %v9096_v48  ;;  %v9105_v13 = vsub.f32 %v3329_v42, %v9077_v15  ;;  %v9116_v59 = vand.u32 4294901760, %v3327_v41  ;;  %v3325_v42 = vld [vmem:[#allocation4 + $0x3b0] sm:$0xff] }
 0x217   : > { %3166 = vmatpush.msrb.mxu3 %v8950_v36  ;;  %3124 = vmatmul.f32.vlgmr.msrb.gmra.mxu2 %v2943_v55  ;;  %v3401_v38 = vand.u32 4294901760, %v3400_v53  ;;  %v3406_v32 = vsub.f32 %v9060_v20, %v12033_v9  ;;  %v12035_v55 = vand.u32 4294901760, %v9075_v11  ;;  %v3323_v20 = vld [vmem:[#allocation4 + $0x3a0] sm:$0xff] }
 0x218   : > { %3266 = vmatpush.msra.mxu1 %v8763_v4  ;;  %3336 = vmatpush.msra.mxu2 %v9005_v8  ;;  %v2951_v4 = vsub.f32 %v2890_v21, %v9093_v24  ;;  %v9133_v21 = vand.u32 4294901760, %v3326_v45  ;;  %v9140_v31 = vsub.f32 %v3327_v41, %v9116_v59  ;;  %v12037_v41 = vand.u32 4294901760, %v9105_v13 }
 0x219   : > { %2937 = vmatpush.msrb.mxu0 %v8938_v47  ;;  %3168 = vmatpush.msrb.mxu3 %v8964_v50  ;;  %v3412_v9 = vsub.f32 %v9075_v11, %v12035_v55  ;;  %v3407_v1 = vand.u32 4294901760, %v3406_v32 }
 0x21a   : > { %3172 = vmatmul.f32.vlgmr.msrb.gmra.mxu3 %v2944_v51  ;;  %3268 = vmatpush.msra.mxu1 %v8771_v63  ;;  %v344_v53 = vpop.permute.xlu2 %343  ;;  %v9131_v63 = vsub.f32 %v3328_v23, %v9102_v33  ;;  %v3324_v23 = vld [vmem:[#allocation4 + $0x3a8] sm:$0xff]  ;;  %v2952_v55 = vand.u32 4294901760, %v2951_v4  ;;  %v9147_v51 = vand.u32 4294901760, %v2892_v12 }
 0x21b   : > { %3338 = vmatpush.msra.mxu2 %v9014_v40  ;;  %3396 = vmatpush.msra.mxu3 %v3395_v49  ;;  %346 = vst.msk [vmem:[#allocation2 + $0x26] sm:$0x1] %vm233_vm1, %v344_v53  ;;  %v1992_v34 = vpop.f32.mrf.mxu2  ;;  %v2946_v49 = vand.u32 4294901760, %v2945_v46  ;;  %v12036_v53 = vand.u32 4294901760, %v9096_v48  ;;  %v3413_v32 = vand.u32 4294901760, %v3412_v9  ;;  %v3424_v46 = vsub.f32 %v9105_v13, %v12037_v41  ;;  %v9166_v9 = vld [vmem:[#allocation2 + $0x18] sm:$0xff] }
 0x21c   : > { %2939 = vmatpush.msrb.mxu0 %v8950_v36  ;;  %3270 = vmatpush.msra.mxu1 %v8781_v39  ;;  %v9149_v39 = vand.u32 4294901760, %v3325_v42  ;;  %v11745_v11 = vand.u32 4294901760, %v9131_v63  ;;  %v2953_v41 = vsub.f32 %v2951_v4, %v2952_v55 }
 0x21d   : > { %3340 = vmatpush.msra.mxu2 %v9038_v30  ;;  %3402 = vmatpush.msra.mxu3 %v3401_v38  ;;  %v3418_v34 = vsub.f32 %v9096_v48, %v12036_v53 }
 0x21e   : > { %2941 = vmatpush.msrb.mxu0 %v8964_v50  ;;  %3067 = vmatmul.f32.gmra.mxu1 %v9093_v24  ;;  %v1866_v38 = vpop.f32.mrf.mxu0  ;;  %v9157_v24 = vsub.f32 %v3326_v45, %v9133_v21  ;;  %v9159_v53 = vpop.f32.mrf.mxu1  ;;  %v12040_v45 = vand.u32 4294901760, %v8779_v0  ;;  %v9173_v14 = vsub.f32 %v3325_v42, %v9149_v39  ;;  %v2959_v0 = vsub.f32 %v2892_v12, %v9147_v51 }
 0x21f   : > { %2947 = vmatmul.f32.vlgmr.msrb.gmra.mxu0 %v2946_v49  ;;  %3272 = vmatpush.msra.mxu1 %v8795_v19  ;;  %12038 = vst [vmem:[#allocation68_spill] sm:$0xff] %v9159_v53  ;;  %v2036_v48 = vpop.f32.mrf.mxu3  ;;  %v9164_v19 = vand.u32 4294901760, %v3324_v23  ;;  %v3322_v38 = vld [vmem:[#allocation4 + $0x398] sm:$0xff]  ;;  %v3430_v49 = vsub.f32 %v9131_v63, %v11745_v11  ;;  %v12042_v12 = vand.u32 4294901760, %v9140_v31  ;;  %v12053_v53 = vand.u32 4294901760, %v8846_v6 }
 0x220   : > { %3190 = vmatpush.msra.mxu0 %v12039_v28  ;;  %3342 = vmatpush.msra.mxu2 %v9049_v37  ;;  %v3419_v48 = vand.u32 4294901760, %v3418_v34  ;;  %v9175_v28 = vand.u32 4294901760, %v3323_v20  ;;  %v9188_v34 = vand.u32 4294901760, %v3322_v38  ;;  %v12055_v6 = vand.u32 4294901760, %v8863_v26 }
 0x221   : > { %3408 = vmatpush.msra.mxu3 %v3407_v1  ;;  %3129 = vmatmul.f32.gmra.mxu2 %v2951_v4  ;;  %v3425_v1 = vand.u32 4294901760, %v3424_v46  ;;  %v12041_v4 = vand.u32 4294901760, %v8790_v52  ;;  %v9186_v42 = vsub.f32 %v3324_v23, %v9164_v19  ;;  %v12043_v52 = vand.u32 4294901760, %v8801_v57  ;;  %v3320_v46 = vld [vmem:[#allocation4 + $0x388] sm:$0xff] }
 0x222   : > { %3194 = vmatpush.msra.mxu0 %v12040_v45  ;;  %3274 = vmatpush.msra.mxu1 %v8816_v25  ;;  %v3321_v25 = vld [vmem:[#allocation4 + $0x390] sm:$0xff]  ;;  %v2954_v23 = vand.u32 4294901760, %v2953_v41  ;;  %v9201_v11 = vsub.f32 %v3323_v20, %v9175_v28  ;;  %v2960_v45 = vand.u32 4294901760, %v2959_v0  ;;  %v12044_v57 = vand.u32 4294901760, %v9157_v24 }
 0x223   : > { %3344 = vmatpush.msra.mxu2 %v9068_v5  ;;  %3414 = vmatpush.msra.mxu3 %v3413_v32  ;;  %v9203_v32 = vand.u32 4294901760, %v3321_v25  ;;  %v9212_v20 = vsub.f32 %v3322_v38, %v9188_v34  ;;  %v12057_v26 = vand.u32 4294901760, %v8881_v7 }
 0x224   : > { %3178 = vmatmul.f32.gmra.mxu3 %v2952_v55  ;;  %3198 = vmatpush.msra.mxu0 %v12041_v4  ;;  %v3436_v55 = vsub.f32 %v9140_v31, %v12042_v12  ;;  %v3319_v12 = vld [vmem:[#allocation4 + $0x380] sm:$0xff] }
 0x225   : > { %3276 = vmatpush.msra.mxu1 %v8837_v56  ;;  %3346 = vmatpush.msra.mxu2 %v9077_v15  ;;  %v3431_v56 = vand.u32 4294901760, %v3430_v49 }
 0x226   : > { %3420 = vmatpush.msra.mxu3 %v3419_v48  ;;  %3202 = vmatpush.msra.mxu0 %v12043_v52  ;;  %v3442_v48 = vsub.f32 %v9157_v24, %v12044_v57  ;;  %v12045_v52 = vrot.slane %v9166_v9, 5  ;;  %v9225_v57 = vand.u32 4294901760, %v3320_v46 }
 0x227   : > { %3278 = vmatpush.msra.mxu1 %v8851_v60  ;;  %3348 = vmatpush.msra.mxu2 %v9102_v33  ;;  %v12046_v60 = vrot.slane %v8628_v61, 5  ;;  %v9220_v4 = vpop.f32.mrf.mxu2 }
 0x228   : > { %3426 = vmatpush.msra.mxu3 %v3425_v1  ;;  %2955 = vmatmul.f32.gmra.mxu0 %v2954_v23  ;;  %12047 = vst [vmem:[#allocation69_spill] sm:$0xff] %v9220_v4  ;;  %v12048_v1 = vand.u32 4294901760, %v8823_v10  ;;  %v3437_v23 = vand.u32 4294901760, %v3436_v55  ;;  %v9227_v38 = vpop.f32.mrf.mxu0  ;;  %v9238_v10 = vsub.f32 %v3321_v25, %v9203_v32  ;;  %v9240_v55 = vand.u32 4294901760, %v3319_v12 }
 0x229   : > { %v3317_v49 = vsel %vm363_vm3, %v12046_v60, %v12045_v52  ;;  %3071 = vmatmul.f32.gmra.mxu1 %v9147_v51  ;;  %12049 = vst [vmem:[#allocation70_spill] sm:$0xff] %v9227_v38  ;;  %v9229_v41 = vpop.f32.mrf.mxu1  ;;  %3350 = vmatpush.msra.mxu2 %v9116_v59  ;;  %v12051_v52 = vand.u32 4294901760, %v9173_v14  ;;  %v2961_v4 = vsub.f32 %v2959_v0, %v2960_v45  ;;  %v12054_v25 = vand.u32 4294901760, %v9186_v42 }
 0x22a   : > { %3206 = vmatpush.msra.mxu0 %v12048_v1  ;;  %12050 = vst [vmem:[#allocation71_spill] sm:$0xff] %v9229_v41  ;;  %3280 = vmatpush.msra.mxu1 %v8869_v58  ;;  %v9242_v1 = vand.u32 4294901760, %v3317_v49  ;;  %v9244_v41 = vpop.f32.mrf.mxu3  ;;  %v9246_v58 = vld [vmem:[#allocation2 + $0x20] sm:$0xff]  ;;  %v3465_v38 = vand.u32 4294901760, %v9212_v20 }
 0x22b   : > { %v3448_v60 = vsub.f32 %v9173_v14, %v12051_v52  ;;  %3432 = vmatpush.msra.mxu3 %v3431_v56  ;;  %3134 = vmatmul.f32.gmra.mxu2 %v2959_v0  ;;  %12052 = vst [vmem:[#allocation72_spill] sm:$0xff] %v9244_v41  ;;  %v3443_v52 = vand.u32 4294901760, %v3442_v48  ;;  %v3454_v56 = vsub.f32 %v9186_v42, %v12054_v25  ;;  %v3471_v48 = vand.u32 4294901760, %v9238_v10 }
 0x22c   : > { %3210 = vmatpush.msra.mxu0 %v12053_v53  ;;  %3282 = vmatpush.msra.mxu1 %v8884_v2  ;;  %v9257_v41 = vsub.f32 %v3320_v46, %v9225_v57  ;;  %v12056_v2 = vand.u32 4294901760, %v9201_v11  ;;  %v3313_v25 = vrot.slane %v9246_v58, 5  ;;  %v9269_v46 = vsub.f32 %v3319_v12, %v9240_v55 }
 0x22d   : > { %3352 = vmatpush.msra.mxu2 %v9133_v21  ;;  %3438 = vmatpush.msra.mxu3 %v3437_v23  ;;  %v3449_v53 = vand.u32 4294901760, %v3448_v60  ;;  %v2962_v23 = vand.u32 4294901760, %v2961_v4  ;;  %v3455_v60 = vand.u32 4294901760, %v3454_v56  ;;  %v3472_v7 = vsub.f32 %v9238_v10, %v3471_v48 }
 0x22e   : > { %3184 = vmatmul.f32.gmra.mxu3 %v2960_v45  ;;  %3214 = vmatpush.msra.mxu0 %v12055_v6  ;;  %v3460_v0 = vsub.f32 %v9201_v11, %v12056_v2  ;;  %v9272_v45 = vsub.f32 %v3317_v49, %v9242_v1  ;;  %v3466_v6 = vsub.f32 %v9212_v20, %v3465_v38  ;;  %v12058_v4 = vrot.slane %v9166_v9, 5 }
 0x22f   : > { %3284 = vmatpush.msra.mxu1 %v8903_v43  ;;  %3354 = vmatpush.msra.mxu2 %v9149_v39  ;;  %v3477_v43 = vand.u32 4294901760, %v9257_v41  ;;  %v3483_v56 = vand.u32 4294901760, %v9269_v46 }
 0x230   : > { %3444 = vmatpush.msra.mxu3 %v3443_v52  ;;  %3218 = vmatpush.msra.mxu0 %v12057_v26  ;;  %v3461_v12 = vand.u32 4294901760, %v3460_v0  ;;  %v3316_v49 = vsel %vm363_vm3, %v12058_v4, %v3313_v25  ;;  %v3467_v26 = vand.u32 4294901760, %v3466_v6  ;;  %v12065_v6 = vand.u32 4294901760, %v8936_v62 }
 0x231   : > { %3286 = vmatpush.msra.mxu1 %v8914_v44  ;;  %3356 = vmatpush.msra.mxu2 %v9164_v19  ;;  %v9291_v52 = vpop.f32.mrf.mxu2  ;;  %v12060_v44 = vand.u32 4294901760, %v8898_v35  ;;  %v3478_v35 = vsub.f32 %v9257_v41, %v3477_v43 }
 0x232   : > { %3450 = vmatpush.msra.mxu3 %v3449_v53  ;;  %2963 = vmatmul.f32.gmra.mxu0 %v2962_v23  ;;  %12059 = vst [vmem:[#allocation73_spill] sm:$0xff] %v9291_v52  ;;  %v3369_v53 = vand.u32 4294901760, %v9272_v45  ;;  %v12062_v23 = vand.u32 4294901760, %v8907_v22  ;;  %v3484_v22 = vsub.f32 %v9269_v46, %v3483_v56 }
 0x233   : > { %3222 = vmatpush.msra.mxu0 %v12060_v44  ;;  %3288 = vmatpush.msra.mxu1 %v8927_v27  ;;  %v9298_v2 = vpop.f32.mrf.mxu0  ;;  %v2226_v0 = vpop.f32.mrf.mxu1  ;;  %v9307_v27 = vand.u32 4294901760, %v3316_v49  ;;  %v3473_v44 = vand.u32 4294901760, %v3472_v7 }
 0x234   : > { %12061 = vst [vmem:[#allocation74_spill] sm:$0xff] %v9298_v2  ;;  %3358 = vmatpush.msra.mxu2 %v9175_v28  ;;  %3456 = vmatpush.msra.mxu3 %v3455_v60  ;;  %v9309_v4 = vpop.f32.mrf.mxu3  ;;  %v12064_v60 = vand.u32 4294901760, %v8925_v18  ;;  %v3479_v18 = vand.u32 4294901760, %v3478_v35  ;;  %v3485_v7 = vand.u32 4294901760, %v3484_v22  ;;  %v12069_v35 = vld [vmem:[#allocation15_spill] sm:$0xff]  ;;  %v12071_v22 = vld [vmem:[#allocation54_spill] sm:$0xff] }
 0x235   : > { %3226 = vmatpush.msra.mxu0 %v12062_v23  ;;  %3290 = vmatpush.msra.mxu1 %v8938_v47  ;;  %12063 = vst [vmem:[#allocation75_spill] sm:$0xff] %v9309_v4  ;;  %v3370_v47 = vsub.f32 %v9272_v45, %v3369_v53  ;;  %v12068_v23 = vand.u32 4294901760, %v8962_v29  ;;  %v12073_v29 = vld [vmem:[#allocation61_spill] sm:$0xff] }
 0x236   : > { %3360 = vmatpush.msra.mxu2 %v9188_v34  ;;  %3462 = vmatpush.msra.mxu3 %v3461_v12  ;;  %v9326_v12 = vsub.f32 %v3316_v49, %v9307_v27 }
 0x237   : > { %3230 = vmatpush.msra.mxu0 %v12064_v60  ;;  %3292 = vmatpush.msra.mxu1 %v8950_v36  ;;  %v12066_v36 = vand.u32 4294901760, %v8948_v3  ;;  %v3371_v0 = vand.u32 4294901760, %v3370_v47  ;;  %v12072_v47 = vand.u32 4294901760, %v12071_v22  ;;  %v12087_v22 = vand.u32 4294901760, %v9140_v31 }
 0x238   : > { %3362 = vmatpush.msra.mxu2 %v9203_v32  ;;  %3468 = vmatpush.msra.mxu3 %v3467_v26  ;;  %v3377_v49 = vand.u32 4294901760, %v9326_v12 }
 0x239   : > { %3234 = vmatpush.msra.mxu0 %v12065_v6  ;;  %3294 = vmatpush.msra.mxu1 %v8964_v50  ;;  %v12067_v50 = vand.u32 4294901760, %v9026_v54  ;;  %v12074_v6 = vand.u32 4294901760, %v12073_v29 }
 0x23a   : > { %3364 = vmatpush.msra.mxu2 %v9225_v57  ;;  %3474 = vmatpush.msra.mxu3 %v3473_v44  ;;  %v12070_v44 = vand.u32 4294901760, %v12069_v35  ;;  %v3378_v60 = vsub.f32 %v9326_v12, %v3377_v49 }
 0x23b   : > { %3296 = vmatmul.f32.vlgmr.msra.gmra.mxu1 %v9036_v16  ;;  %3238 = vmatpush.msra.mxu0 %v12066_v36  ;;  %v12076_v36 = vld [vmem:[#allocation56_spill] sm:$0xff] }
 0x23c   : > { %3563 = vmatpush.msrb.mxu1 %v9005_v8  ;;  %3366 = vmatpush.msra.mxu2 %v9240_v55  ;;  %v2289_v62 = vpop.f32.mrf.mxu2 }
 0x23d   : > { %3480 = vmatpush.msra.mxu3 %v3479_v18  ;;  %v2118_v26 = vpop.f32.mrf.mxu0  ;;  %3242 = vmatpush.msra.mxu0 %v12068_v23  ;;  %v12075_v18 = vrot.slane %v8628_v61, 5  ;;  %v3379_v62 = vand.u32 4294901760, %v3378_v60  ;;  %v3756_v23 = vld [vmem:[#allocation4 + $0x478] sm:$0xff] }
 0x23e   : > { %3615 = vmatpush.msrb.mxu2 %v12067_v50  ;;  %3565 = vmatpush.msrb.mxu1 %v9014_v40 }
 0x23f   : > { %3486 = vmatpush.msra.mxu3 %v3485_v7  ;;  %3372 = vmatmul.f32.vlgmr.msra.gmra.mxu2 %v3371_v0  ;;  %v2339_v3 = vpop.f32.mrf.mxu3  ;;  %v12077_v7 = vand.u32 4294901760, %v12076_v36  ;;  %v12078_v0 = vld [vmem:[#allocation64_spill] sm:$0xff] }
 0x240   : > { %3488 = vmatmul.f32.vlgmr.msra.gmra.mxu3 %v9242_v1  ;;  %3567 = vmatpush.msrb.mxu1 %v9038_v30  ;;  %v3755_v3 = vld [vmem:[#allocation4 + $0x470] sm:$0xff] }
 0x241   : > { %3619 = vmatpush.msrb.mxu2 %v12070_v44  ;;  %3689 = vmatpush.msrb.mxu3 %v9005_v8  ;;  %v3315_v8 = vsel %vm363_vm3, %v3313_v25, %v12075_v18  ;;  %v12082_v25 = vld [vmem:[#allocation65_spill] sm:$0xff]  ;;  %v9394_v44 = vand.u32 4294901760, %v3756_v23 }
 0x242   : > { %3246 = vmatpush.msra.mxu0 %v12072_v47  ;;  %3569 = vmatpush.msrb.mxu1 %v9049_v37  ;;  %v9368_v61 = vand.u32 4294901760, %v3315_v8  ;;  %v9403_v47 = vand.u32 4294901760, %v3755_v3 }
 0x243   : > { %3623 = vmatpush.msrb.mxu2 %v12074_v6  ;;  %3691 = vmatpush.msrb.mxu3 %v9014_v40  ;;  %v12079_v40 = vld [vmem:[#allocation62_spill] sm:$0xff]  ;;  %v3753_v6 = vld [vmem:[#allocation4 + $0x460] sm:$0xff] }
 0x244   : > { %3250 = vmatpush.msra.mxu0 %v12077_v7  ;;  %3300 = vmatmul.f32.gmra.mxu1 %v12078_v0  ;;  %v12080_v50 = vand.u32 4294901760, %v12079_v40  ;;  %v9420_v7 = vsub.f32 %v3756_v23, %v9394_v44 }
 0x245   : > { %3252 = vmatmul.f32.vlgmr.msra.gmra.mxu0 %v9036_v16  ;;  %3571 = vmatpush.msrb.mxu1 %v9068_v5  ;;  %v12083_v16 = vand.u32 4294901760, %v12082_v25 }
 0x246   : > { %3501 = vmatpush.msrb.mxu0 %v9026_v54  ;;  %3627 = vmatpush.msrb.mxu2 %v12080_v50  ;;  %v9370_v26 = vpop.f32.mrf.mxu1  ;;  %v9381_v54 = vsub.f32 %v3315_v8, %v9368_v61  ;;  %v12091_v8 = vand.u32 4294901760, %v9157_v24  ;;  %v11757_v50 = vand.u32 4294901760, %v9420_v7 }
 0x247   : > { %12081 = vst [vmem:[#allocation15_spill] sm:$0xff] %v9370_v26  ;;  %3693 = vmatpush.msrb.mxu3 %v9038_v30  ;;  %3573 = vmatpush.msrb.mxu1 %v9077_v15  ;;  %v12084_v30 = vand.u32 4294901760, %v9105_v13  ;;  %v4175_v26 = vld [vmem:[#allocation4 + $0x4e0] sm:$0xff] }
 0x248   : > { %3504 = vmatpush.msrb.mxu0 %v12069_v35  ;;  %3631 = vmatpush.msrb.mxu2 %v12083_v16  ;;  %v3385_v35 = vand.u32 4294901760, %v9381_v54 }
 0x249   : > { %3695 = vmatpush.msrb.mxu3 %v9049_v37  ;;  %3380 = vmatmul.f32.gmra.mxu2 %v3379_v62  ;;  %v12085_v37 = vand.u32 4294901760, %v9131_v63  ;;  %v9432_v62 = vand.u32 4294901760, %v3753_v6 }
 0x24a   : > { %3492 = vmatmul.f32.gmra.mxu3 %v9307_v27  ;;  %3507 = vmatpush.msrb.mxu0 %v12073_v29  ;;  %v3386_v36 = vsub.f32 %v9381_v54, %v3385_v35 }
 0x24b   : > { %3575 = vmatpush.msrb.mxu1 %v9102_v33  ;;  %3635 = vmatpush.msrb.mxu2 %v12084_v30  ;;  %v9451_v30 = vsub.f32 %v3753_v6, %v9432_v62 }
 0x24c   : > { %3697 = vmatpush.msrb.mxu3 %v9068_v5  ;;  %3510 = vmatpush.msrb.mxu0 %v12079_v40  ;;  %v3754_v5 = vld [vmem:[#allocation4 + $0x468] sm:$0xff]  ;;  %v3752_v40 = vld [vmem:[#allocation4 + $0x458] sm:$0xff] }
 0x24d   : > { %3577 = vmatpush.msrb.mxu1 %v9116_v59  ;;  %3639 = vmatpush.msrb.mxu2 %v12085_v37  ;;  %v9445_v16 = vand.u32 4294901760, %v3752_v40  ;;  %v12095_v37 = vand.u32 4294901760, %v9201_v11 }
 0x24e   : > { %3699 = vmatpush.msrb.mxu3 %v9077_v15  ;;  %3256 = vmatmul.f32.gmra.mxu0 %v12078_v0  ;;  %v9396_v60 = vpop.f32.mrf.mxu2  ;;  %v9422_v0 = vand.u32 4294901760, %v3754_v5 }
 0x24f   : > { %12086 = vst [vmem:[#allocation54_spill] sm:$0xff] %v9396_v60  ;;  %3304 = vmatmul.f32.gmra.mxu1 %v9147_v51  ;;  %3513 = vmatpush.msrb.mxu0 %v12082_v25  ;;  %v9407_v29 = vpop.f32.mrf.mxu1 }
 0x250   : > { %3579 = vmatpush.msrb.mxu1 %v9133_v21  ;;  %3643 = vmatpush.msrb.mxu2 %v12087_v22  ;;  %v9405_v15 = vpop.f32.mrf.mxu0  ;;  %12089 = vst [vmem:[#allocation56_spill] sm:$0xff] %v9407_v29  ;;  %v9441_v25 = vsub.f32 %v3754_v5, %v9422_v0  ;;  %v3750_v5 = vld [vmem:[#allocation4 + $0x448] sm:$0xff]  ;;  %v4177_v29 = vld [vmem:[#allocation4 + $0x4f0] sm:$0xff] }
 0x251   : > { %12088 = vst [vmem:[#allocation61_spill] sm:$0xff] %v9405_v15  ;;  %3701 = vmatpush.msrb.mxu3 %v9102_v33  ;;  %3516 = vmatpush.msrb.mxu0 %v9105_v13  ;;  %v9411_v18 = vpop.f32.mrf.mxu3  ;;  %v12092_v33 = vand.u32 4294901760, %v9173_v14  ;;  %v9430_v13 = vsub.f32 %v3755_v3, %v9403_v47  ;;  %v4171_v15 = vld [vmem:[#allocation4 + $0x4c0] sm:$0xff] }
 0x252   : > { %12090 = vst [vmem:[#allocation64_spill] sm:$0xff] %v9411_v18  ;;  %3581 = vmatpush.msrb.mxu1 %v9149_v39  ;;  %3647 = vmatpush.msrb.mxu2 %v12091_v8  ;;  %v11752_v8 = vand.u32 4294901760, %v9451_v30  ;;  %v9754_v60 = vand.u32 4294901760, %v4171_v15 }
 0x253   : > { %3703 = vmatpush.msrb.mxu3 %v9116_v59  ;;  %3519 = vmatpush.msrb.mxu0 %v9131_v63  ;;  %v12093_v59 = vand.u32 4294901760, %v9186_v42  ;;  %v3387_v63 = vand.u32 4294901760, %v3386_v36  ;;  %v3749_v36 = vld [vmem:[#allocation4 + $0x440] sm:$0xff] }
 0x254   : > { %3583 = vmatpush.msrb.mxu1 %v9164_v19  ;;  %3651 = vmatpush.msrb.mxu2 %v12092_v33 }
 0x255   : > { %3705 = vmatpush.msrb.mxu3 %v9133_v21  ;;  %3522 = vmatpush.msrb.mxu0 %v9140_v31  ;;  %v3751_v21 = vld [vmem:[#allocation4 + $0x450] sm:$0xff]  ;;  %v11756_v31 = vand.u32 4294901760, %v9430_v13 }
 0x256   : > { %3585 = vmatpush.msrb.mxu1 %v9175_v28  ;;  %3655 = vmatpush.msrb.mxu2 %v12093_v59  ;;  %v9465_v3 = vand.u32 4294901760, %v3751_v21  ;;  %v9497_v59 = vand.u32 4294901760, %v3749_v36 }
 0x257   : > { %3707 = vmatpush.msrb.mxu3 %v9149_v39  ;;  %3260 = vmatmul.f32.gmra.mxu0 %v9147_v51  ;;  %v11753_v39 = vand.u32 4294901760, %v9441_v25 }
 0x258   : > { %3525 = vmatpush.msrb.mxu0 %v9157_v24  ;;  %3587 = vmatpush.msrb.mxu1 %v9188_v34  ;;  %v9453_v23 = vpop.f32.mrf.mxu2  ;;  %v3816_v24 = vsub.f32 %v9420_v7, %v11757_v50  ;;  %v9492_v33 = vsub.f32 %v3751_v21, %v9465_v3  ;;  %v3747_v21 = vld [vmem:[#allocation4 + $0x430] sm:$0xff]  ;;  %v9641_v50 = vld [vmem:[#allocation2 + $0x10] sm:$0xff] }
 0x259   : > { %12094 = vst [vmem:[#allocation62_spill] sm:$0xff] %v9453_v23  ;;  %3659 = vmatpush.msrb.mxu2 %v12095_v37  ;;  %3709 = vmatpush.msrb.mxu3 %v9164_v19  ;;  %v9458_v51 = vpop.f32.mrf.mxu0  ;;  %v9471_v19 = vsub.f32 %v3752_v40, %v9445_v16  ;;  %v4174_v23 = vld [vmem:[#allocation4 + $0x4d8] sm:$0xff] }
 0x25a   : > { %12096 = vst [vmem:[#allocation65_spill] sm:$0xff] %v9458_v51  ;;  %3388 = vmatmul.f32.gmra.mxu2 %v3387_v63  ;;  %3528 = vmatpush.msrb.mxu0 %v9173_v14  ;;  %v2459_v22 = vpop.f32.mrf.mxu1  ;;  %v3822_v14 = vsub.f32 %v9430_v13, %v11756_v31  ;;  %v3748_v63 = vld [vmem:[#allocation4 + $0x438] sm:$0xff]  ;;  %v4176_v51 = vld [vmem:[#allocation4 + $0x4e8] sm:$0xff] }
 0x25b   : > { %3589 = vmatpush.msrb.mxu1 %v9203_v32  ;;  %3663 = vmatpush.msrb.mxu2 %v3465_v38  ;;  %v9473_v6 = vpop.f32.mrf.mxu3  ;;  %v9483_v38 = vand.u32 4294901760, %v3750_v5  ;;  %v11749_v40 = vand.u32 4294901760, %v9471_v19  ;;  %v9514_v37 = vand.u32 4294901760, %v3748_v63  ;;  %v9525_v22 = vand.u32 4294901760, %v3747_v21 }
 0x25c   : > { %12097 = vst [vmem:[#allocation76_spill] sm:$0xff] %v9473_v6  ;;  %3711 = vmatpush.msrb.mxu3 %v9175_v28  ;;  %3531 = vmatpush.msrb.mxu0 %v9186_v42  ;;  %v3817_v28 = vand.u32 4294901760, %v3816_v24  ;;  %v3828_v42 = vsub.f32 %v9441_v25, %v11753_v39 }
 0x25d   : > { %3496 = vmatmul.f32.gmra.mxu3 %v9368_v61  ;;  %3591 = vmatpush.msrb.mxu1 %v9225_v57 }
 0x25e   : > { %3667 = vmatpush.msrb.mxu2 %v3471_v48  ;;  %3713 = vmatpush.msrb.mxu3 %v9188_v34  ;;  %v3823_v34 = vand.u32 4294901760, %v3822_v14  ;;  %v3834_v48 = vsub.f32 %v9451_v30, %v11752_v8  ;;  %v3746_v14 = vld [vmem:[#allocation4 + $0x428] sm:$0xff] }
 0x25f   : > { %3534 = vmatpush.msrb.mxu0 %v9201_v11  ;;  %3593 = vmatpush.msrb.mxu1 %v9240_v55  ;;  %v9509_v11 = vsub.f32 %v3750_v5, %v9483_v38 }
 0x260   : > { %3671 = vmatpush.msrb.mxu2 %v3477_v43  ;;  %3715 = vmatpush.msrb.mxu3 %v9203_v32  ;;  %v3829_v43 = vand.u32 4294901760, %v3828_v42  ;;  %v11748_v32 = vand.u32 4294901760, %v9492_v33  ;;  %v9535_v42 = vsub.f32 %v3748_v63, %v9514_v37 }
 0x261   : > { %3597 = vmatmul.f32.vlgmr.msrb.gmra.mxu1 %v3369_v53  ;;  %3537 = vmatpush.msrb.mxu0 %v9212_v20  ;;  %v3840_v20 = vsub.f32 %v9471_v19, %v11749_v40  ;;  %v9522_v53 = vsub.f32 %v3749_v36, %v9497_v59 }
 0x262   : > { %3818 = vmatpush.msra.mxu1 %v3817_v28  ;;  %3675 = vmatpush.msrb.mxu2 %v3483_v56  ;;  %v2541_v24 = vpop.f32.mrf.mxu2  ;;  %v3835_v56 = vand.u32 4294901760, %v3834_v48  ;;  %v3846_v36 = vsub.f32 %v9492_v33, %v11748_v32  ;;  %v9540_v48 = vand.u32 4294901760, %v3746_v14 }
 0x263   : > { %3717 = vmatpush.msrb.mxu3 %v9225_v57  ;;  %3677 = vmatmul.f32.vlgmr.msrb.gmra.mxu2 %v9242_v1  ;;  %v2415_v5 = vpop.f32.mrf.mxu0  ;;  %v11747_v57 = vand.u32 4294901760, %v9509_v11 }
 0x264   : > { %3824 = vmatpush.msra.mxu1 %v3823_v34  ;;  %3923 = vmatpush.msra.mxu2 %v9420_v7  ;;  %v3745_v34 = vld [vmem:[#allocation4 + $0x420] sm:$0xff] }
 0x265   : > { %3540 = vmatpush.msrb.mxu0 %v9238_v10  ;;  %3719 = vmatpush.msrb.mxu3 %v9240_v55  ;;  %v2649_v28 = vpop.f32.mrf.mxu3  ;;  %v3841_v10 = vand.u32 4294901760, %v3840_v20  ;;  %v11746_v55 = vand.u32 4294901760, %v9522_v53  ;;  %v3852_v63 = vsub.f32 %v9509_v11, %v11747_v57  ;;  %v9551_v24 = vand.u32 4294901760, %v3745_v34  ;;  %v3743_v20 = vld [vmem:[#allocation4 + $0x410] sm:$0xff]  ;;  %v3741_v57 = vld [vmem:[#allocation4 + $0x400] sm:$0xff] }
 0x266   : > { %3721 = vmatmul.f32.vlgmr.msrb.gmra.mxu3 %v9242_v1  ;;  %3830 = vmatpush.msra.mxu1 %v3829_v43  ;;  %v9544_v1 = vsub.f32 %v3747_v21, %v9525_v22  ;;  %v3744_v43 = vld [vmem:[#allocation4 + $0x418] sm:$0xff]  ;;  %v11750_v21 = vand.u32 4294901760, %v9535_v42 }
 0x267   : > { %3926 = vmatpush.msra.mxu2 %v9430_v13  ;;  %3985 = vmatpush.msra.mxu3 %v9394_v44  ;;  %v3858_v5 = vsub.f32 %v9522_v53, %v11746_v55  ;;  %v9564_v28 = vand.u32 4294901760, %v3744_v43 }
 0x268   : > { %3543 = vmatpush.msrb.mxu0 %v9257_v41  ;;  %3836 = vmatpush.msra.mxu1 %v3835_v56  ;;  %v3847_v41 = vand.u32 4294901760, %v3846_v36  ;;  %v9562_v56 = vsub.f32 %v3746_v14, %v9540_v48  ;;  %v9576_v14 = vand.u32 4294901760, %v3743_v20  ;;  %v3864_v55 = vsub.f32 %v9535_v42, %v11750_v21 }
 0x269   : > { %3929 = vmatpush.msra.mxu2 %v9441_v25  ;;  %3987 = vmatpush.msra.mxu3 %v9403_v47  ;;  %v3859_v32 = vand.u32 4294901760, %v3858_v5 }
 0x26a   : > { %3546 = vmatpush.msrb.mxu0 %v9269_v46  ;;  %3603 = vmatmul.f32.gmra.mxu1 %v3377_v49  ;;  %v11751_v46 = vand.u32 4294901760, %v9544_v1  ;;  %v3742_v49 = vld [vmem:[#allocation4 + $0x408] sm:$0xff]  ;;  %v9598_v21 = vsub.f32 %v3743_v20, %v9576_v14 }
 0x26b   : > { %3549 = vmatmul.f32.vlgmr.msrb.gmra.mxu0 %v9272_v45  ;;  %3842 = vmatpush.msra.mxu1 %v3841_v10  ;;  %v3853_v45 = vand.u32 4294901760, %v3852_v63  ;;  %v9574_v10 = vsub.f32 %v3745_v34, %v9551_v24  ;;  %v11754_v63 = vand.u32 4294901760, %v9562_v56  ;;  %v9586_v34 = vsub.f32 %v3744_v43, %v9564_v28 }
 0x26c   : > { %3758 = vmatpush.msra.mxu0 %v9394_v44  ;;  %3932 = vmatpush.msra.mxu2 %v9451_v30  ;;  %v9569_v36 = vpop.f32.mrf.mxu1  ;;  %v9588_v40 = vand.u32 4294901760, %v3742_v49  ;;  %v9600_v43 = vand.u32 4294901760, %v3741_v57 }
 0x26d   : > { %12098 = vst [vmem:[#allocation77_spill] sm:$0xff] %v9569_v36  ;;  %3989 = vmatpush.msra.mxu3 %v9422_v0  ;;  %3681 = vmatmul.f32.gmra.mxu2 %v9307_v27  ;;  %v11755_v5 = vand.u32 4294901760, %v9574_v10 }
 0x26e   : > { %3760 = vmatpush.msra.mxu0 %v9403_v47  ;;  %3848 = vmatpush.msra.mxu1 %v3847_v41  ;;  %v3870_v41 = vsub.f32 %v9544_v1, %v11751_v46  ;;  %v11758_v46 = vand.u32 4294901760, %v9586_v34  ;;  %v9610_v8 = vsub.f32 %v3742_v49, %v9588_v40  ;;  %v9624_v49 = vsub.f32 %v3741_v57, %v9600_v43 }
 0x26f   : > { %3935 = vmatpush.msra.mxu2 %v9471_v19  ;;  %3991 = vmatpush.msra.mxu3 %v9432_v62 }
 0x270   : > { %3725 = vmatmul.f32.gmra.mxu3 %v9307_v27  ;;  %3762 = vmatpush.msra.mxu0 %v9422_v0  ;;  %v3865_v27 = vand.u32 4294901760, %v3864_v55  ;;  %v3871_v20 = vand.u32 4294901760, %v3870_v41  ;;  %12100 = vst [vmem:[#allocation79_spill] sm:$0xff] %v9624_v49  ;;  %v12105_v55 = vand.u32 4294901760, %v9610_v8 }
 0x271   : > { %3854 = vmatpush.msra.mxu1 %v3853_v45  ;;  %3938 = vmatpush.msra.mxu2 %v9492_v33  ;;  %v3876_v45 = vsub.f32 %v9562_v56, %v11754_v63 }
 0x272   : > { %3993 = vmatpush.msra.mxu3 %v9445_v16  ;;  %3764 = vmatpush.msra.mxu0 %v9432_v62 }
 0x273   : > { %3860 = vmatpush.msra.mxu1 %v3859_v32  ;;  %3941 = vmatpush.msra.mxu2 %v9509_v11  ;;  %v3882_v32 = vsub.f32 %v9574_v10, %v11755_v5  ;;  %v3888_v5 = vsub.f32 %v9586_v34, %v11758_v46  ;;  %v12104_v46 = vand.u32 4294901760, %v9598_v21 }
 0x274   : > { %3995 = vmatpush.msra.mxu3 %v9465_v3  ;;  %3554 = vmatmul.f32.gmra.mxu0 %v9326_v12  ;;  %v9614_v39 = vpop.f32.mrf.mxu2  ;;  %v4178_v12 = vld [vmem:[#allocation4 + $0x4f8] sm:$0xff] }
 0x275   : > { %12099 = vst [vmem:[#allocation78_spill] sm:$0xff] %v9614_v39  ;;  %3609 = vmatmul.f32.gmra.mxu1 %v3385_v35  ;;  %3766 = vmatpush.msra.mxu0 %v9445_v16  ;;  %v9629_v63 = vpop.f32.mrf.mxu1  ;;  %v3877_v35 = vand.u32 4294901760, %v3876_v45  ;;  %v3883_v45 = vand.u32 4294901760, %v3882_v32  ;;  %v3894_v57 = vsub.f32 %v9598_v21, %v12104_v46  ;;  %v3900_v32 = vsub.f32 %v9610_v8, %v12105_v55 }
 0x276   : > { %3866 = vmatpush.msra.mxu1 %v3865_v27  ;;  %3944 = vmatpush.msra.mxu2 %v9522_v53  ;;  %v9627_v41 = vpop.f32.mrf.mxu0  ;;  %12102 = vst [vmem:[#allocation81_spill] sm:$0xff] %v9629_v63  ;;  %v9650_v63 = vand.u32 4294901760, %v4178_v12  ;;  %v9658_v27 = vand.u32 4294901760, %v4177_v29  ;;  %v12106_v46 = vrot.slane %v9166_v9, 6  ;;  %v12108_v55 = vand.u32 4294901760, %v9624_v49 }
 0x277   : > { %12101 = vst [vmem:[#allocation80_spill] sm:$0xff] %v9627_v41  ;;  %3997 = vmatpush.msra.mxu3 %v9483_v38  ;;  %3685 = vmatmul.f32.gmra.mxu2 %v9368_v61  ;;  %v9637_v31 = vpop.f32.mrf.mxu3 }
 0x278   : > { %12103 = vst [vmem:[#allocation82_spill] sm:$0xff] %v9637_v31  ;;  %3768 = vmatpush.msra.mxu0 %v9465_v3  ;;  %3872 = vmatpush.msra.mxu1 %v3871_v20  ;;  %v3889_v20 = vand.u32 4294901760, %v3888_v5  ;;  %v3895_v5 = vand.u32 4294901760, %v3894_v57  ;;  %v3906_v31 = vsub.f32 %v9624_v49, %v12108_v55  ;;  %v9673_v39 = vsub.f32 %v4178_v12, %v9650_v63 }
 0x279   : > { %3947 = vmatpush.msra.mxu2 %v9535_v42  ;;  %3999 = vmatpush.msra.mxu3 %v9497_v59  ;;  %v9682_v57 = vand.u32 4294901760, %v4176_v51 }
 0x27a   : > { %3729 = vmatmul.f32.gmra.mxu3 %v9368_v61  ;;  %3770 = vmatpush.msra.mxu0 %v9483_v38  ;;  %v12107_v61 = vrot.slane %v9641_v50, 6  ;;  %v3907_v55 = vand.u32 4294901760, %v3906_v31  ;;  %v12115_v31 = vrot.slane %v9166_v9, 6 }
 0x27b   : > { %3878 = vmatpush.msra.mxu1 %v3877_v35  ;;  %3950 = vmatpush.msra.mxu2 %v9544_v1 }
 0x27c   : > { %4001 = vmatpush.msra.mxu3 %v9514_v37  ;;  %3772 = vmatpush.msra.mxu0 %v9497_v59  ;;  %v3739_v35 = vsel %vm386_vm2, %v12107_v61, %v12106_v46  ;;  %v9685_v61 = vsub.f32 %v4177_v29, %v9658_v27 }
 0x27d   : > { %3884 = vmatpush.msra.mxu1 %v3883_v45  ;;  %3953 = vmatpush.msra.mxu2 %v9562_v56  ;;  %v3901_v45 = vand.u32 4294901760, %v3900_v32  ;;  %v9680_v46 = vand.u32 4294901760, %v3739_v35  ;;  %v4173_v32 = vld [vmem:[#allocation4 + $0x4d0] sm:$0xff] }
 0x27e   : > { %4003 = vmatpush.msra.mxu3 %v9525_v22  ;;  %3559 = vmatmul.f32.gmra.mxu0 %v9381_v54  ;;  %v9677_v6 = vpop.f32.mrf.mxu2  ;;  %v9725_v4 = vand.u32 4294901760, %v4173_v32  ;;  %v12117_v9 = vand.u32 4294901760, %v9685_v61 }
 0x27f   : > { %12109 = vst [vmem:[#allocation83_spill] sm:$0xff] %v9677_v6  ;;  %3774 = vmatpush.msra.mxu0 %v9514_v37  ;;  %3890 = vmatpush.msra.mxu1 %v3889_v20  ;;  %v9687_v12 = vpop.f32.mrf.mxu0  ;;  %v9694_v6 = vand.u32 4294901760, %v4175_v26  ;;  %v9708_v20 = vand.u32 4294901760, %v4174_v23 }
 0x280   : > { %12110 = vst [vmem:[#allocation84_spill] sm:$0xff] %v9687_v12  ;;  %3956 = vmatpush.msra.mxu2 %v9574_v10  ;;  %4005 = vmatpush.msra.mxu3 %v9540_v48  ;;  %v2762_v54 = vpop.f32.mrf.mxu1  ;;  %v4244_v36 = vsub.f32 %v9685_v61, %v12117_v9 }
 0x281   : > { %3776 = vmatpush.msra.mxu0 %v9525_v22  ;;  %3896 = vmatpush.msra.mxu1 %v3895_v5  ;;  %v9696_v29 = vpop.f32.mrf.mxu3  ;;  %v3790_v54 = vsub.f32 %v3739_v35, %v9680_v46  ;;  %v9704_v5 = vsub.f32 %v4176_v51, %v9682_v57  ;;  %v12114_v35 = vrot.slane %v9246_v58, 6  ;;  %v9721_v12 = vsub.f32 %v4175_v26, %v9694_v6 }
 0x282   : > { %12111 = vst [vmem:[#allocation85_spill] sm:$0xff] %v9696_v29  ;;  %3959 = vmatpush.msra.mxu2 %v9586_v34  ;;  %4007 = vmatpush.msra.mxu3 %v9551_v24  ;;  %v12113_v29 = vand.u32 4294901760, %v9673_v39 }
 0x283   : > { %3778 = vmatpush.msra.mxu0 %v9540_v48  ;;  %3902 = vmatpush.msra.mxu1 %v3901_v45  ;;  %12112 = vst [vmem:[#allocation86_spill] sm:$0xff] %v9704_v5  ;;  %v3738_v51 = vsel %vm386_vm2, %v12115_v31, %v12114_v35  ;;  %v9738_v35 = vsub.f32 %v4174_v23, %v9708_v20 }
 0x284   : > { %3962 = vmatpush.msra.mxu2 %v9598_v21  ;;  %4009 = vmatpush.msra.mxu3 %v9564_v28  ;;  %v4238_v45 = vsub.f32 %v9673_v39, %v12113_v29  ;;  %12116 = vst [vmem:[#allocation87_spill] sm:$0xff] %v9721_v12  ;;  %v3791_v29 = vand.u32 4294901760, %v3790_v54  ;;  %v9735_v26 = vand.u32 4294901760, %v3738_v51 }
 0x285   : > { %3780 = vmatpush.msra.mxu0 %v9551_v24  ;;  %3908 = vmatpush.msra.mxu1 %v3907_v55  ;;  %v4172_v55 = vld [vmem:[#allocation4 + $0x4c8] sm:$0xff]  ;;  %12119 = vst [vmem:[#allocation89_spill] sm:$0xff] %v9738_v35 }
 0x286   : > { %3965 = vmatpush.msra.mxu2 %v9610_v8  ;;  %4011 = vmatpush.msra.mxu3 %v9576_v14  ;;  %12118 = vst [vmem:[#allocation88_spill] sm:$0xff] %v9735_v26  ;;  %v4239_v41 = vand.u32 4294901760, %v4238_v45  ;;  %v9742_v9 = vand.u32 4294901760, %v4172_v55  ;;  %v3792_v23 = vsub.f32 %v3790_v54, %v3791_v29  ;;  %v12121_v45 = vand.u32 4294901760, %v9704_v5 }
 0x287   : > { %3910 = vmatmul.f32.vlgmr.msra.gmra.mxu1 %v9680_v46  ;;  %3782 = vmatpush.msra.mxu0 %v9564_v28 }
 0x288   : > { %4111 = vmatpush.msrb.mxu1 %v9394_v44  ;;  %3968 = vmatpush.msra.mxu2 %v9624_v49  ;;  %v2838_v52 = vpop.f32.mrf.mxu2  ;;  %v9747_v44 = vsub.f32 %v4173_v32, %v9725_v4  ;;  %v4250_v18 = vsub.f32 %v9704_v5, %v12121_v45  ;;  %v9764_v45 = vsub.f32 %v4172_v55, %v9742_v9  ;;  %v4169_v49 = vld [vmem:[#allocation4 + $0x4b0] sm:$0xff]  ;;  %v3793_v55 = vand.u32 4294901760, %v3792_v23  ;;  %v4167_v23 = vld [vmem:[#allocation4 + $0x4a0] sm:$0xff] }
 0x289   : > { %4013 = vmatpush.msra.mxu3 %v9588_v40  ;;  %3971 = vmatmul.f32.vlgmr.msra.gmra.mxu2 %v3790_v54  ;;  %v2712_v31 = vpop.f32.mrf.mxu0  ;;  %v4245_v52 = vand.u32 4294901760, %v4244_v36  ;;  %v12122_v36 = vand.u32 4294901760, %v9721_v12  ;;  %v9779_v32 = vsub.f32 %v4171_v15, %v9754_v60  ;;  %v4166_v15 = vld [vmem:[#allocation4 + $0x498] sm:$0xff] }
 0x28a   : > { %4113 = vmatpush.msrb.mxu1 %v9403_v47  ;;  %4180 = vmatpush.msrb.mxu2 %v9650_v63  ;;  %12120 = vst [vmem:[#allocation90_spill] sm:$0xff] %v9747_v44  ;;  %v4170_v31 = vld [vmem:[#allocation4 + $0x4b8] sm:$0xff]  ;;  %v3798_v47 = vsub.f32 %v3738_v51, %v9735_v26  ;;  %v12124_v51 = vrot.slane %v9246_v58, 6  ;;  %v12126_v58 = vand.u32 4294901760, %v9738_v35 }
 0x28b   : > { %3784 = vmatpush.msra.mxu0 %v9576_v14  ;;  %4015 = vmatpush.msra.mxu3 %v9600_v43  ;;  %v2882_v2 = vpop.f32.mrf.mxu3  ;;  %v4256_v54 = vsub.f32 %v9721_v12, %v12122_v36  ;;  %v4251_v36 = vand.u32 4294901760, %v4250_v18  ;;  %12125 = vst [vmem:[#allocation91_spill] sm:$0xff] %v9779_v32  ;;  %v12127_v12 = vand.u32 4294901760, %v9420_v7  ;;  %v12130_v7 = vand.u32 4294901760, %v9430_v13  ;;  %v4165_v13 = vld [vmem:[#allocation4 + $0x490] sm:$0xff] }
 0x28c   : > { %4019 = vmatmul.f32.vlgmr.msra.gmra.mxu3 %v3791_v29  ;;  %4115 = vmatpush.msrb.mxu1 %v9422_v0  ;;  %v12123_v0 = vrot.slane %v9641_v50, 6  ;;  %v9775_v29 = vand.u32 4294901760, %v4170_v31  ;;  %v3799_v2 = vand.u32 4294901760, %v3798_v47 }
 0x28d   : > { %4182 = vmatpush.msrb.mxu2 %v9658_v27  ;;  %4240 = vmatpush.msrb.mxu3 %v4239_v41 }
 0x28e   : > { %3786 = vmatpush.msra.mxu0 %v9588_v40  ;;  %4117 = vmatpush.msrb.mxu1 %v9432_v62  ;;  %v3737_v41 = vsel %vm386_vm2, %v12124_v51, %v12123_v0  ;;  %v4168_v62 = vld [vmem:[#allocation4 + $0x4a8] sm:$0xff]  ;;  %v4262_v0 = vsub.f32 %v9738_v35, %v12126_v58  ;;  %v9786_v51 = vand.u32 4294901760, %v4169_v49  ;;  %v9799_v35 = vsub.f32 %v4170_v31, %v9775_v29 }
 0x28f   : > { %4184 = vmatpush.msrb.mxu2 %v9682_v57  ;;  %4246 = vmatpush.msrb.mxu3 %v4245_v52  ;;  %v4257_v52 = vand.u32 4294901760, %v4256_v54  ;;  %v9789_v18 = vand.u32 4294901760, %v3737_v41  ;;  %v3800_v5 = vsub.f32 %v3798_v47, %v3799_v2  ;;  %v9812_v31 = vand.u32 4294901760, %v4167_v23 }
 0x290   : > { %3788 = vmatpush.msra.mxu0 %v9600_v43  ;;  %3914 = vmatmul.f32.gmra.mxu1 %v9735_v26  ;;  %v12128_v26 = vand.u32 4294901760, %v9747_v44 }
 0x291   : > { %3794 = vmatmul.f32.vlgmr.msra.gmra.mxu0 %v3793_v55  ;;  %4119 = vmatpush.msrb.mxu1 %v9445_v16  ;;  %v9801_v55 = vand.u32 4294901760, %v4168_v62 }
 0x292   : > { %4037 = vmatpush.msrb.mxu0 %v12127_v12  ;;  %4186 = vmatpush.msrb.mxu2 %v9694_v6  ;;  %v4268_v58 = vsub.f32 %v9747_v44, %v12128_v26  ;;  %v9803_v16 = vpop.f32.mrf.mxu1  ;;  %v4263_v12 = vand.u32 4294901760, %v4262_v0  ;;  %v9810_v26 = vsub.f32 %v4169_v49, %v9786_v51  ;;  %v12132_v49 = vand.u32 4294901760, %v9441_v25 }
 0x293   : > { %12129 = vst [vmem:[#allocation92_spill] sm:$0xff] %v9803_v16  ;;  %4252 = vmatpush.msrb.mxu3 %v4251_v36  ;;  %3976 = vmatmul.f32.gmra.mxu2 %v3798_v47  ;;  %v12131_v36 = vand.u32 4294901760, %v9764_v45  ;;  %v3806_v16 = vsub.f32 %v3737_v41, %v9789_v18  ;;  %v9827_v44 = vsub.f32 %v4168_v62, %v9801_v55  ;;  %v12133_v41 = vand.u32 4294901760, %v9779_v32 }
 0x294   : > { %4041 = vmatpush.msrb.mxu0 %v12130_v7  ;;  %4121 = vmatpush.msrb.mxu1 %v9465_v3  ;;  %v9819_v7 = vld [vmem:[#allocation2 + $0x18] sm:$0xff]  ;;  %v4269_v0 = vand.u32 4294901760, %v4268_v58  ;;  %v12134_v25 = vand.u32 4294901760, %v9451_v30  ;;  %v9840_v62 = vsub.f32 %v4167_v23, %v9812_v31  ;;  %v12136_v23 = vand.u32 4294901760, %v9799_v35 }
 0x295   : > { %4188 = vmatpush.msrb.mxu2 %v9708_v20  ;;  %4258 = vmatpush.msrb.mxu3 %v4257_v52  ;;  %v4274_v54 = vsub.f32 %v9764_v45, %v12131_v36  ;;  %v11772_v3 = vrot.slane %v9819_v7, 7  ;;  %v9829_v36 = vand.u32 4294901760, %v4166_v15  ;;  %v4280_v47 = vsub.f32 %v9779_v32, %v12133_v41  ;;  %v4164_v52 = vld [vmem:[#allocation4 + $0x488] sm:$0xff] }
 0x296   : > { %4025 = vmatmul.f32.gmra.mxu3 %v3799_v2  ;;  %4045 = vmatpush.msrb.mxu0 %v12132_v49  ;;  %v3801_v2 = vand.u32 4294901760, %v3800_v5  ;;  %v9842_v49 = vand.u32 4294901760, %v4165_v13  ;;  %v3807_v5 = vand.u32 4294901760, %v3806_v16  ;;  %v4286_v41 = vsub.f32 %v9799_v35, %v12136_v23 }
 0x297   : > { %4123 = vmatpush.msrb.mxu1 %v9483_v38  ;;  %4190 = vmatpush.msrb.mxu2 %v9725_v4  ;;  %v4275_v38 = vand.u32 4294901760, %v4274_v54  ;;  %v4163_v54 = vld [vmem:[#allocation4 + $0x480] sm:$0xff]  ;;  %v12138_v32 = vand.u32 4294901760, %v9471_v19  ;;  %v12144_v23 = vand.u32 4294901760, %v9827_v44 }
 0x298   : > { %4264 = vmatpush.msrb.mxu3 %v4263_v12  ;;  %4049 = vmatpush.msrb.mxu0 %v12134_v25  ;;  %v12135_v12 = vrot.slane %v9641_v50, 7 }
 0x299   : > { %4125 = vmatpush.msrb.mxu1 %v9497_v59  ;;  %4192 = vmatpush.msrb.mxu2 %v9742_v9  ;;  %v9857_v59 = vsub.f32 %v4166_v15, %v9829_v36 }
 0x29a   : > { %v4161_v30 = vsel %vm1204_vm4, %v12135_v12, %v11772_v3  ;;  %4270 = vmatpush.msrb.mxu3 %v4269_v0  ;;  %3802 = vmatmul.f32.gmra.mxu0 %v3801_v2  ;;  %v9859_v58 = vpop.f32.mrf.mxu2  ;;  %v4281_v0 = vand.u32 4294901760, %v4280_v47  ;;  %v9864_v2 = vand.u32 4294901760, %v4164_v52  ;;  %v12139_v12 = vand.u32 4294901760, %v9810_v26 }
 0x29b   : > { %12137 = vst [vmem:[#allocation93_spill] sm:$0xff] %v9859_v58  ;;  %3918 = vmatmul.f32.gmra.mxu1 %v9789_v18  ;;  %4053 = vmatpush.msrb.mxu0 %v12138_v32  ;;  %v9873_v3 = vsub.f32 %v4165_v13, %v9842_v49  ;;  %v9877_v19 = vpop.f32.mrf.mxu1  ;;  %v9879_v32 = vand.u32 4294901760, %v4163_v54  ;;  %v12143_v58 = vand.u32 4294901760, %v9492_v33  ;;  %v3808_v13 = vsub.f32 %v3806_v16, %v3807_v5 }
 0x29c   : > { %4127 = vmatpush.msrb.mxu1 %v9514_v37  ;;  %4194 = vmatpush.msrb.mxu2 %v9754_v60  ;;  %v4292_v15 = vsub.f32 %v9810_v26, %v12139_v12  ;;  %v9875_v25 = vpop.f32.mrf.mxu0  ;;  %12141 = vst [vmem:[#allocation95_spill] sm:$0xff] %v9877_v19  ;;  %v9881_v37 = vand.u32 4294901760, %v4161_v30  ;;  %v4287_v12 = vand.u32 4294901760, %v4286_v41  ;;  %v9894_v19 = vsub.f32 %v4164_v52, %v9864_v2 }
 0x29d   : > { %12140 = vst [vmem:[#allocation94_spill] sm:$0xff] %v9875_v25  ;;  %4276 = vmatpush.msrb.mxu3 %v4275_v38  ;;  %3981 = vmatmul.f32.gmra.mxu2 %v3806_v16  ;;  %v9883_v47 = vpop.f32.mrf.mxu3  ;;  %v4298_v25 = vsub.f32 %v9827_v44, %v12144_v23  ;;  %v12145_v33 = vand.u32 4294901760, %v9509_v11  ;;  %v4315_v41 = vand.u32 4294901760, %v9873_v3  ;;  %v9902_v23 = vld [vmem:[#allocation2 + $0x20] sm:$0xff]  ;;  %v9911_v11 = vsub.f32 %v4163_v54, %v9879_v32 }
 0x29e   : > { %12142 = vst [vmem:[#allocation96_spill] sm:$0xff] %v9883_v47  ;;  %4057 = vmatpush.msrb.mxu0 %v12143_v58  ;;  %4129 = vmatpush.msrb.mxu1 %v9525_v22  ;;  %v4293_v58 = vand.u32 4294901760, %v4292_v15  ;;  %v12146_v22 = vand.u32 4294901760, %v9840_v62  ;;  %v4157_v38 = vrot.slane %v9902_v23, 7  ;;  %v9908_v52 = vsub.f32 %v4161_v30, %v9881_v37 }
 0x29f   : > { %4196 = vmatpush.msrb.mxu2 %v9775_v29  ;;  %4282 = vmatpush.msrb.mxu3 %v4281_v0  ;;  %v3809_v0 = vand.u32 4294901760, %v3808_v13  ;;  %v4299_v15 = vand.u32 4294901760, %v4298_v25  ;;  %v12149_v54 = vrot.slane %v9819_v7, 7 }
 0x2a0   : > { %4031 = vmatmul.f32.gmra.mxu3 %v3807_v5  ;;  %4061 = vmatpush.msrb.mxu0 %v12145_v33  ;;  %v4304_v16 = vsub.f32 %v9840_v62, %v12146_v22  ;;  %v12147_v5 = vand.u32 4294901760, %v9522_v53  ;;  %v12148_v33 = vand.u32 4294901760, %v9857_v59  ;;  %v4316_v53 = vsub.f32 %v9873_v3, %v4315_v41 }
 0x2a1   : > { %4131 = vmatpush.msrb.mxu1 %v9540_v48  ;;  %4198 = vmatpush.msrb.mxu2 %v9786_v51  ;;  %v4321_v48 = vand.u32 4294901760, %v9894_v19  ;;  %v4160_v25 = vsel %vm1204_vm4, %v12149_v54, %v4157_v38  ;;  %v4213_v13 = vand.u32 4294901760, %v9908_v52 }
 0x2a2   : > { %4288 = vmatpush.msrb.mxu3 %v4287_v12  ;;  %4065 = vmatpush.msrb.mxu0 %v12147_v5  ;;  %v4310_v22 = vsub.f32 %v9857_v59, %v12148_v33  ;;  %v4305_v30 = vand.u32 4294901760, %v4304_v16  ;;  %v12153_v33 = vand.u32 4294901760, %v9544_v1 }
 0x2a3   : > { %4133 = vmatpush.msrb.mxu1 %v9551_v24  ;;  %4200 = vmatpush.msrb.mxu2 %v9801_v55  ;;  %v12151_v24 = vand.u32 4294901760, %v9535_v42  ;;  %v4322_v42 = vsub.f32 %v9894_v19, %v4321_v48  ;;  %v4214_v1 = vsub.f32 %v9908_v52, %v4213_v13 }
 0x2a4   : > { %4294 = vmatpush.msrb.mxu3 %v4293_v58  ;;  %3810 = vmatmul.f32.gmra.mxu0 %v3809_v0  ;;  %v9928_v12 = vpop.f32.mrf.mxu2  ;;  %v4327_v58 = vand.u32 4294901760, %v9911_v11  ;;  %v4311_v5 = vand.u32 4294901760, %v4310_v22  ;;  %v12156_v22 = vand.u32 4294901760, %v9574_v10  ;;  %v12158_v10 = vrot.slane %v9641_v50, 7 }
 0x2a5   : > { %12150 = vst [vmem:[#allocation97_spill] sm:$0xff] %v9928_v12  ;;  %4069 = vmatpush.msrb.mxu0 %v12151_v24  ;;  %4135 = vmatpush.msrb.mxu1 %v9564_v28  ;;  %v9935_v16 = vpop.f32.mrf.mxu0  ;;  %v9944_v28 = vand.u32 4294901760, %v4160_v25  ;;  %v4317_v24 = vand.u32 4294901760, %v4316_v53  ;;  %v4215_v53 = vand.u32 4294901760, %v4214_v1  ;;  %v12163_v1 = vld [vmem:[#allocation86_spill] sm:$0xff] }
 0x2a6   : > { %12152 = vst [vmem:[#allocation98_spill] sm:$0xff] %v9935_v16  ;;  %4202 = vmatpush.msrb.mxu2 %v9812_v31  ;;  %4300 = vmatpush.msrb.mxu3 %v4299_v15  ;;  %v3072_v0 = vpop.f32.mrf.mxu1  ;;  %v12155_v15 = vand.u32 4294901760, %v9562_v56  ;;  %v4323_v56 = vand.u32 4294901760, %v4322_v42  ;;  %v12160_v42 = vand.u32 4294901760, %v9598_v21  ;;  %v12162_v21 = vand.u32 4294901760, %v9610_v8 }
 0x2a7   : > { %4073 = vmatpush.msrb.mxu0 %v12153_v33  ;;  %4137 = vmatpush.msrb.mxu1 %v9576_v14  ;;  %v9946_v54 = vpop.f32.mrf.mxu3  ;;  %v4328_v14 = vsub.f32 %v9911_v11, %v4327_v58 }
 0x2a8   : > { %12154 = vst [vmem:[#allocation99_spill] sm:$0xff] %v9946_v54  ;;  %4204 = vmatpush.msrb.mxu2 %v9829_v36  ;;  %4306 = vmatpush.msrb.mxu3 %v4305_v30  ;;  %v9963_v30 = vsub.f32 %v4160_v25, %v9944_v28 }
 0x2a9   : > { %4077 = vmatpush.msrb.mxu0 %v12155_v15  ;;  %4139 = vmatpush.msrb.mxu1 %v9588_v40  ;;  %v12157_v40 = vand.u32 4294901760, %v9586_v34  ;;  %v4329_v0 = vand.u32 4294901760, %v4328_v14  ;;  %v12159_v34 = vand.u32 4294901760, %v9673_v39  ;;  %v12164_v14 = vand.u32 4294901760, %v12163_v1 }
 0x2aa   : > { %4206 = vmatpush.msrb.mxu2 %v9842_v49  ;;  %4312 = vmatpush.msrb.mxu3 %v4311_v5  ;;  %v4221_v5 = vand.u32 4294901760, %v9963_v30 }
 0x2ab   : > { %4081 = vmatpush.msrb.mxu0 %v12156_v22  ;;  %4141 = vmatpush.msrb.mxu1 %v9600_v43  ;;  %v4159_v43 = vsel %vm1204_vm4, %v4157_v38, %v12158_v10  ;;  %v12161_v38 = vand.u32 4294901760, %v9685_v61 }
 0x2ac   : > { %4208 = vmatpush.msrb.mxu2 %v9864_v2  ;;  %4318 = vmatpush.msrb.mxu3 %v4317_v24  ;;  %v9981_v24 = vand.u32 4294901760, %v4159_v43  ;;  %v4222_v15 = vsub.f32 %v9963_v30, %v4221_v5 }
 0x2ad   : > { %4143 = vmatmul.f32.vlgmr.msrb.gmra.mxu1 %v9680_v46  ;;  %4085 = vmatpush.msrb.mxu0 %v12157_v40 }
 0x2ae   : > { %4407 = vmatpush.msra.mxu1 %v9650_v63  ;;  %4210 = vmatpush.msrb.mxu2 %v9879_v32  ;;  %v3135_v25 = vpop.f32.mrf.mxu2  ;;  %v9998_v22 = vsub.f32 %v4159_v43, %v9981_v24  ;;  %v4223_v8 = vand.u32 4294901760, %v4222_v15 }
 0x2af   : > { %4324 = vmatpush.msrb.mxu3 %v4323_v56  ;;  %4216 = vmatmul.f32.vlgmr.msrb.gmra.mxu2 %v4215_v53  ;;  %v2964_v33 = vpop.f32.mrf.mxu0  ;;  %v12165_v56 = vld [vmem:[#allocation79_spill] sm:$0xff]  ;;  %v4594_v25 = vld [vmem:[#allocation4 + $0x578] sm:$0xff] }
 0x2b0   : > { %4409 = vmatpush.msra.mxu1 %v9658_v27  ;;  %4459 = vmatpush.msra.mxu2 %v12159_v34  ;;  %v12166_v40 = vand.u32 4294901760, %v12165_v56  ;;  %v12168_v53 = vld [vmem:[#allocation87_spill] sm:$0xff]  ;;  %v10032_v34 = vand.u32 4294901760, %v4594_v25 }
 0x2b1   : > { %4089 = vmatpush.msrb.mxu0 %v12160_v42  ;;  %4330 = vmatpush.msrb.mxu3 %v4329_v0  ;;  %v3185_v50 = vpop.f32.mrf.mxu3  ;;  %v12169_v0 = vand.u32 4294901760, %v12168_v53  ;;  %v4593_v33 = vld [vmem:[#allocation4 + $0x570] sm:$0xff] }
 0x2b2   : > { %4332 = vmatmul.f32.vlgmr.msrb.gmra.mxu3 %v9881_v37  ;;  %4411 = vmatpush.msra.mxu1 %v9682_v57  ;;  %v12176_v50 = vld [vmem:[#allocation91_spill] sm:$0xff]  ;;  %v10039_v15 = vand.u32 4294901760, %v4593_v33 }
 0x2b3   : > { %4463 = vmatpush.msra.mxu2 %v12161_v38  ;;  %4533 = vmatpush.msra.mxu3 %v9650_v63  ;;  %v12167_v63 = vld [vmem:[#allocation88_spill] sm:$0xff]  ;;  %v12177_v38 = vand.u32 4294901760, %v12176_v50 }
 0x2b4   : > { %4093 = vmatpush.msrb.mxu0 %v12162_v21  ;;  %4413 = vmatpush.msra.mxu1 %v9694_v6 }
 0x2b5   : > { %4467 = vmatpush.msra.mxu2 %v12164_v14  ;;  %4535 = vmatpush.msra.mxu3 %v9658_v27  ;;  %v4229_v27 = vand.u32 4294901760, %v9998_v22  ;;  %v10049_v14 = vsub.f32 %v4594_v25, %v10032_v34  ;;  %v12185_v25 = vand.u32 4294901760, %v9840_v62 }
 0x2b6   : > { %4097 = vmatpush.msrb.mxu0 %v12166_v40  ;;  %4147 = vmatmul.f32.gmra.mxu1 %v12167_v63  ;;  %v12180_v40 = vand.u32 4294901760, %v9799_v35 }
 0x2b7   : > { %4099 = vmatmul.f32.vlgmr.msrb.gmra.mxu0 %v9680_v46  ;;  %4415 = vmatpush.msra.mxu1 %v9708_v20  ;;  %v12171_v46 = vld [vmem:[#allocation89_spill] sm:$0xff] }
 0x2b8   : > { %4345 = vmatpush.msra.mxu0 %v9673_v39  ;;  %4471 = vmatpush.msra.mxu2 %v12169_v0  ;;  %v10008_v10 = vpop.f32.mrf.mxu1  ;;  %v12172_v43 = vand.u32 4294901760, %v12171_v46  ;;  %v12173_v39 = vld [vmem:[#allocation90_spill] sm:$0xff] }
 0x2b9   : > { %12170 = vst [vmem:[#allocation86_spill] sm:$0xff] %v10008_v10  ;;  %4537 = vmatpush.msra.mxu3 %v9682_v57  ;;  %4224 = vmatmul.f32.gmra.mxu2 %v4223_v8  ;;  %v12174_v57 = vand.u32 4294901760, %v12173_v39  ;;  %v4590_v8 = vld [vmem:[#allocation4 + $0x558] sm:$0xff] }
 0x2ba   : > { %4348 = vmatpush.msra.mxu0 %v9685_v61  ;;  %4417 = vmatpush.msra.mxu1 %v9725_v4  ;;  %v4230_v61 = vsub.f32 %v9998_v22, %v4229_v27  ;;  %v5012_v10 = vld [vmem:[#allocation4 + $0x5d8] sm:$0xff] }
 0x2bb   : > { %4475 = vmatpush.msra.mxu2 %v12172_v43  ;;  %4539 = vmatpush.msra.mxu3 %v9694_v6  ;;  %v12175_v6 = vand.u32 4294901760, %v9764_v45  ;;  %v4589_v43 = vld [vmem:[#allocation4 + $0x550] sm:$0xff] }
 0x2bc   : > { %4336 = vmatmul.f32.gmra.mxu3 %v9944_v28  ;;  %4351 = vmatpush.msra.mxu0 %v12163_v1  ;;  %v4231_v42 = vand.u32 4294901760, %v4230_v61  ;;  %v4591_v1 = vld [vmem:[#allocation4 + $0x560] sm:$0xff] }
 0x2bd   : > { %4419 = vmatpush.msra.mxu1 %v9742_v9  ;;  %4479 = vmatpush.msra.mxu2 %v12174_v57 }
 0x2be   : > { %4541 = vmatpush.msra.mxu3 %v9708_v20  ;;  %4354 = vmatpush.msra.mxu0 %v12168_v53  ;;  %v4592_v20 = vld [vmem:[#allocation4 + $0x568] sm:$0xff]  ;;  %v12181_v53 = vand.u32 4294901760, %v9810_v26 }
 0x2bf   : > { %4421 = vmatpush.msra.mxu1 %v9754_v60  ;;  %4483 = vmatpush.msra.mxu2 %v12175_v6  ;;  %v10051_v56 = vand.u32 4294901760, %v4592_v20  ;;  %v10096_v6 = vand.u32 4294901760, %v4589_v43 }
 0x2c0   : > { %4543 = vmatpush.msra.mxu3 %v9725_v4  ;;  %4103 = vmatmul.f32.gmra.mxu0 %v12167_v63  ;;  %v10061_v63 = vand.u32 4294901760, %v4591_v1 }
 0x2c1   : > { %4151 = vmatmul.f32.gmra.mxu1 %v9789_v18  ;;  %4357 = vmatpush.msra.mxu0 %v12171_v46  ;;  %v10043_v4 = vpop.f32.mrf.mxu1  ;;  %v10070_v0 = vsub.f32 %v4592_v20, %v10051_v56  ;;  %v10075_v46 = vand.u32 4294901760, %v4590_v8  ;;  %v12186_v20 = vand.u32 4294901760, %v9857_v59 }
 0x2c2   : > { %4423 = vmatpush.msra.mxu1 %v9775_v29  ;;  %4487 = vmatpush.msra.mxu2 %v12177_v38  ;;  %v10041_v21 = vpop.f32.mrf.mxu0  ;;  %12179 = vst [vmem:[#allocation88_spill] sm:$0xff] %v10043_v4  ;;  %v10085_v57 = vpop.f32.mrf.mxu2 }
 0x2c3   : > { %12178 = vst [vmem:[#allocation79_spill] sm:$0xff] %v10041_v21  ;;  %4545 = vmatpush.msra.mxu3 %v9742_v9  ;;  %4232 = vmatmul.f32.gmra.mxu2 %v4231_v42  ;;  %v10059_v9 = vsub.f32 %v4593_v33, %v10039_v15  ;;  %v10101_v42 = vsub.f32 %v4590_v8, %v10075_v46  ;;  %v10110_v38 = vpop.f32.mrf.mxu3 }
 0x2c4   : > { %4360 = vmatpush.msra.mxu0 %v12173_v39  ;;  %4425 = vmatpush.msra.mxu1 %v9786_v51  ;;  %v10081_v39 = vsub.f32 %v4591_v1, %v10061_v63  ;;  %12183 = vst [vmem:[#allocation87_spill] sm:$0xff] %v10085_v57  ;;  %v4587_v1 = vld [vmem:[#allocation4 + $0x540] sm:$0xff]  ;;  %v10123_v8 = vsub.f32 %v4589_v43, %v10096_v6  ;;  %v4585_v43 = vld [vmem:[#allocation4 + $0x530] sm:$0xff] }
 0x2c5   : > { %4491 = vmatpush.msra.mxu2 %v12180_v40  ;;  %4547 = vmatpush.msra.mxu3 %v9754_v60  ;;  %v11784_v60 = vand.u32 4294901760, %v10049_v14  ;;  %12187 = vst [vmem:[#allocation90_spill] sm:$0xff] %v10110_v38 }
 0x2c6   : > { %4340 = vmatmul.f32.gmra.mxu3 %v9981_v24  ;;  %4363 = vmatpush.msra.mxu0 %v9764_v45  ;;  %v12182_v45 = vand.u32 4294901760, %v9827_v44 }
 0x2c7   : > { %4427 = vmatpush.msra.mxu1 %v9801_v55  ;;  %4495 = vmatpush.msra.mxu2 %v12181_v53  ;;  %v10128_v53 = vand.u32 4294901760, %v4587_v1 }
 0x2c8   : > { %4549 = vmatpush.msra.mxu3 %v9775_v29  ;;  %4366 = vmatpush.msra.mxu0 %v12176_v50  ;;  %v11781_v29 = vand.u32 4294901760, %v10059_v9  ;;  %v11777_v50 = vand.u32 4294901760, %v10081_v39 }
 0x2c9   : > { %4429 = vmatpush.msra.mxu1 %v9812_v31  ;;  %4499 = vmatpush.msra.mxu2 %v12182_v45  ;;  %v4586_v45 = vld [vmem:[#allocation4 + $0x538] sm:$0xff] }
 0x2ca   : > { %4551 = vmatpush.msra.mxu3 %v9786_v51  ;;  %4107 = vmatmul.f32.gmra.mxu0 %v9789_v18  ;;  %v4654_v51 = vsub.f32 %v10049_v14, %v11784_v60  ;;  %v11778_v18 = vand.u32 4294901760, %v10070_v0 }
 0x2cb   : > { %4369 = vmatpush.msra.mxu0 %v9799_v35  ;;  %4431 = vmatpush.msra.mxu1 %v9829_v36  ;;  %v10087_v61 = vpop.f32.mrf.mxu0  ;;  %v4588_v35 = vld [vmem:[#allocation4 + $0x548] sm:$0xff] }
 0x2cc   : > { %12184 = vst [vmem:[#allocation89_spill] sm:$0xff] %v10087_v61  ;;  %4503 = vmatpush.msra.mxu2 %v12185_v25  ;;  %4553 = vmatpush.msra.mxu3 %v9801_v55  ;;  %v3305_v33 = vpop.f32.mrf.mxu1  ;;  %v4660_v55 = vsub.f32 %v10059_v9, %v11781_v29  ;;  %v4666_v40 = vsub.f32 %v10070_v0, %v11778_v18  ;;  %v10145_v25 = vand.u32 4294901760, %v4586_v45 }
 0x2cd   : > { %4372 = vmatpush.msra.mxu0 %v9810_v26  ;;  %4433 = vmatpush.msra.mxu1 %v9842_v49  ;;  %v10114_v26 = vand.u32 4294901760, %v4588_v35  ;;  %v10158_v33 = vand.u32 4294901760, %v4585_v43 }
 0x2ce   : > { %4507 = vmatpush.msra.mxu2 %v12186_v20  ;;  %4555 = vmatpush.msra.mxu3 %v9812_v31  ;;  %v4655_v31 = vand.u32 4294901760, %v4654_v51  ;;  %v4584_v20 = vld [vmem:[#allocation4 + $0x528] sm:$0xff] }
 0x2cf   : > { %4375 = vmatpush.msra.mxu0 %v9827_v44  ;;  %4435 = vmatpush.msra.mxu1 %v9864_v2  ;;  %v11776_v44 = vand.u32 4294901760, %v10101_v42 }
 0x2d0   : > { %4511 = vmatpush.msra.mxu2 %v4315_v41  ;;  %4557 = vmatpush.msra.mxu3 %v9829_v36  ;;  %v4661_v36 = vand.u32 4294901760, %v4660_v55  ;;  %v4672_v41 = vsub.f32 %v10081_v39, %v11777_v50 }
 0x2d1   : > { %4378 = vmatpush.msra.mxu0 %v9840_v62  ;;  %4437 = vmatpush.msra.mxu1 %v9879_v32  ;;  %v10140_v62 = vsub.f32 %v4588_v35, %v10114_v26  ;;  %v10155_v35 = vpop.f32.mrf.mxu2 }
 0x2d2   : > { %4515 = vmatpush.msra.mxu2 %v4321_v48  ;;  %4559 = vmatpush.msra.mxu3 %v9842_v49  ;;  %v4667_v48 = vand.u32 4294901760, %v4666_v40  ;;  %v11774_v49 = vand.u32 4294901760, %v10123_v8  ;;  %12188 = vst [vmem:[#allocation91_spill] sm:$0xff] %v10155_v35  ;;  %v4583_v40 = vld [vmem:[#allocation4 + $0x520] sm:$0xff] }
 0x2d3   : > { %4441 = vmatmul.f32.vlgmr.msra.gmra.mxu1 %v4213_v13  ;;  %4381 = vmatpush.msra.mxu0 %v9857_v59  ;;  %v4678_v59 = vsub.f32 %v10101_v42, %v11776_v44  ;;  %v10153_v13 = vsub.f32 %v4587_v1, %v10128_v53  ;;  %v10168_v1 = vsub.f32 %v4586_v45, %v10145_v25  ;;  %v4582_v45 = vld [vmem:[#allocation4 + $0x518] sm:$0xff]  ;;  %v5009_v35 = vld [vmem:[#allocation4 + $0x5c0] sm:$0xff] }
 0x2d4   : > { %4656 = vmatpush.msrb.mxu1 %v4655_v31  ;;  %4519 = vmatpush.msra.mxu2 %v4327_v58  ;;  %v3261_v51 = vpop.f32.mrf.mxu0  ;;  %v4673_v58 = vand.u32 4294901760, %v4672_v41  ;;  %v4684_v55 = vsub.f32 %v10123_v8, %v11774_v49  ;;  %v10170_v31 = vpop.f32.mrf.mxu3 }
 0x2d5   : > { %4561 = vmatpush.msra.mxu3 %v9864_v2  ;;  %4521 = vmatmul.f32.vlgmr.msra.gmra.mxu2 %v9881_v37  ;;  %v11773_v2 = vand.u32 4294901760, %v10140_v62  ;;  %12189 = vst [vmem:[#allocation100_spill] sm:$0xff] %v10170_v31  ;;  %v4581_v51 = vld [vmem:[#allocation4 + $0x510] sm:$0xff] }
 0x2d6   : > { %4662 = vmatpush.msrb.mxu1 %v4661_v36  ;;  %4761 = vmatpush.msrb.mxu2 %v10049_v14  ;;  %v10175_v36 = vand.u32 4294901760, %v4584_v20 }
 0x2d7   : > { %4384 = vmatpush.msra.mxu0 %v9873_v3  ;;  %4563 = vmatpush.msra.mxu3 %v9879_v32  ;;  %v4679_v3 = vand.u32 4294901760, %v4678_v59  ;;  %v11775_v32 = vand.u32 4294901760, %v10153_v13  ;;  %v4690_v41 = vsub.f32 %v10140_v62, %v11773_v2  ;;  %v10199_v2 = vand.u32 4294901760, %v4582_v45 }
 0x2d8   : > { %4565 = vmatmul.f32.vlgmr.msra.gmra.mxu3 %v9881_v37  ;;  %4668 = vmatpush.msrb.mxu1 %v4667_v48  ;;  %v10179_v37 = vsub.f32 %v4585_v43, %v10158_v33  ;;  %v10186_v48 = vand.u32 4294901760, %v4583_v40  ;;  %v11780_v43 = vand.u32 4294901760, %v10168_v1 }
 0x2d9   : > { %4764 = vmatpush.msrb.mxu2 %v10059_v9  ;;  %4823 = vmatpush.msrb.mxu3 %v10032_v34  ;;  %v4696_v59 = vsub.f32 %v10153_v13, %v11775_v32  ;;  %v4579_v32 = vld [vmem:[#allocation4 + $0x500] sm:$0xff] }
 0x2da   : > { %4387 = vmatpush.msra.mxu0 %v9894_v19  ;;  %4674 = vmatpush.msrb.mxu1 %v4673_v58  ;;  %v4685_v19 = vand.u32 4294901760, %v4684_v55  ;;  %v10197_v58 = vsub.f32 %v4584_v20, %v10175_v36  ;;  %v4580_v55 = vld [vmem:[#allocation4 + $0x508] sm:$0xff]  ;;  %v10209_v20 = vsub.f32 %v4583_v40, %v10186_v48  ;;  %v10221_v40 = vsub.f32 %v4582_v45, %v10199_v2 }
 0x2db   : > { %4767 = vmatpush.msrb.mxu2 %v10070_v0  ;;  %4825 = vmatpush.msrb.mxu3 %v10039_v15  ;;  %v4697_v50 = vand.u32 4294901760, %v4696_v59  ;;  %v10223_v18 = vand.u32 4294901760, %v4580_v55  ;;  %v10235_v45 = vand.u32 4294901760, %v4579_v32 }
 0x2dc   : > { %4390 = vmatpush.msra.mxu0 %v9911_v11  ;;  %4447 = vmatmul.f32.gmra.mxu1 %v4221_v5  ;;  %v11779_v5 = vand.u32 4294901760, %v10179_v37 }
 0x2dd   : > { %4393 = vmatmul.f32.vlgmr.msra.gmra.mxu0 %v9908_v52  ;;  %4680 = vmatpush.msrb.mxu1 %v4679_v3  ;;  %v3389_v11 = vpop.f32.mrf.mxu2  ;;  %v4691_v52 = vand.u32 4294901760, %v4690_v41  ;;  %v10211_v3 = vand.u32 4294901760, %v4581_v51  ;;  %v11782_v41 = vand.u32 4294901760, %v10197_v58 }
 0x2de   : > { %4596 = vmatpush.msrb.mxu0 %v10032_v34  ;;  %4770 = vmatpush.msrb.mxu2 %v10081_v39  ;;  %v10204_v49 = vpop.f32.mrf.mxu1  ;;  %v4702_v11 = vsub.f32 %v10168_v1, %v11780_v43  ;;  %v10245_v43 = vsub.f32 %v4580_v55, %v10223_v18  ;;  %v10259_v55 = vsub.f32 %v4579_v32, %v10235_v45 }
 0x2df   : > { %12190 = vst [vmem:[#allocation101_spill] sm:$0xff] %v10204_v49  ;;  %4827 = vmatpush.msrb.mxu3 %v10051_v56  ;;  %4525 = vmatmul.f32.gmra.mxu2 %v9944_v28  ;;  %v10233_v59 = vsub.f32 %v4581_v51, %v10211_v3 }
 0x2e0   : > { %4598 = vmatpush.msrb.mxu0 %v10039_v15  ;;  %4686 = vmatpush.msrb.mxu1 %v4685_v19  ;;  %v3497_v44 = vpop.f32.mrf.mxu3  ;;  %v11783_v19 = vand.u32 4294901760, %v10209_v20  ;;  %12191 = vst [vmem:[#allocation102_spill] sm:$0xff] %v10245_v43  ;;  %v11786_v32 = vand.u32 4294901760, %v10245_v43  ;;  %v11787_v61 = vand.u32 4294901760, %v10259_v55 }
 0x2e1   : > { %4773 = vmatpush.msrb.mxu2 %v10101_v42  ;;  %4829 = vmatpush.msrb.mxu3 %v10061_v63  ;;  %v4708_v44 = vsub.f32 %v10179_v37, %v11779_v5  ;;  %v11785_v5 = vand.u32 4294901760, %v10221_v40  ;;  %12193 = vst [vmem:[#allocation104_spill] sm:$0xff] %v10259_v55  ;;  %v12197_v4 = vand.u32 4294901760, %v10233_v59 }
 0x2e2   : > { %4569 = vmatmul.f32.gmra.mxu3 %v9944_v28  ;;  %4600 = vmatpush.msrb.mxu0 %v10051_v56  ;;  %v4703_v28 = vand.u32 4294901760, %v4702_v11 }
 0x2e3   : > { %4692 = vmatpush.msrb.mxu1 %v4691_v52  ;;  %4776 = vmatpush.msrb.mxu2 %v10123_v8  ;;  %v4714_v52 = vsub.f32 %v10197_v58, %v11782_v41  ;;  %v4709_v51 = vand.u32 4294901760, %v4708_v44 }
 0x2e4   : > { %4831 = vmatpush.msrb.mxu3 %v10075_v46  ;;  %4602 = vmatpush.msrb.mxu0 %v10061_v63 }
 0x2e5   : > { %4698 = vmatpush.msrb.mxu1 %v4697_v50  ;;  %4779 = vmatpush.msrb.mxu2 %v10140_v62  ;;  %v4720_v50 = vsub.f32 %v10209_v20, %v11783_v19  ;;  %v4726_v19 = vsub.f32 %v10221_v40, %v11785_v5 }
 0x2e6   : > { %4833 = vmatpush.msrb.mxu3 %v10096_v6  ;;  %4398 = vmatmul.f32.gmra.mxu0 %v9963_v30  ;;  %v10249_v29 = vpop.f32.mrf.mxu2  ;;  %v5016_v30 = vld [vmem:[#allocation4 + $0x5f8] sm:$0xff] }
 0x2e7   : > { %12192 = vst [vmem:[#allocation103_spill] sm:$0xff] %v10249_v29  ;;  %4453 = vmatmul.f32.gmra.mxu1 %v4229_v27  ;;  %4604 = vmatpush.msrb.mxu0 %v10075_v46  ;;  %v10264_v41 = vpop.f32.mrf.mxu1  ;;  %v4715_v27 = vand.u32 4294901760, %v4714_v52  ;;  %v4721_v11 = vand.u32 4294901760, %v4720_v50  ;;  %v4732_v52 = vsub.f32 %v10233_v59, %v12197_v4  ;;  %v10281_v5 = vand.u32 4294901760, %v5016_v30  ;;  %v5014_v4 = vld [vmem:[#allocation4 + $0x5e8] sm:$0xff] }
 0x2e8   : > { %4704 = vmatpush.msrb.mxu1 %v4703_v28  ;;  %4782 = vmatpush.msrb.mxu2 %v10153_v13  ;;  %v10262_v44 = vpop.f32.mrf.mxu0  ;;  %12195 = vst [vmem:[#allocation106_spill] sm:$0xff] %v10264_v41  ;;  %v5015_v28 = vld [vmem:[#allocation4 + $0x5f0] sm:$0xff]  ;;  %v4738_v50 = vsub.f32 %v10245_v43, %v11786_v32  ;;  %v5013_v32 = vld [vmem:[#allocation4 + $0x5e0] sm:$0xff] }
 0x2e9   : > { %12194 = vst [vmem:[#allocation105_spill] sm:$0xff] %v10262_v44  ;;  %4835 = vmatpush.msrb.mxu3 %v10114_v26  ;;  %4529 = vmatmul.f32.gmra.mxu2 %v9981_v24  ;;  %v10272_v60 = vpop.f32.mrf.mxu3  ;;  %v10289_v41 = vand.u32 4294901760, %v5015_v28  ;;  %v5008_v44 = vld [vmem:[#allocation4 + $0x5b8] sm:$0xff] }
 0x2ea   : > { %12196 = vst [vmem:[#allocation107_spill] sm:$0xff] %v10272_v60  ;;  %4606 = vmatpush.msrb.mxu0 %v10096_v6  ;;  %4710 = vmatpush.msrb.mxu1 %v4709_v51  ;;  %v4727_v51 = vand.u32 4294901760, %v4726_v19  ;;  %v10298_v19 = vsub.f32 %v5016_v30, %v10281_v5  ;;  %v10308_v60 = vand.u32 4294901760, %v5014_v4 }
 0x2eb   : > { %4785 = vmatpush.msrb.mxu2 %v10168_v1  ;;  %4837 = vmatpush.msrb.mxu3 %v10128_v53 }
 0x2ec   : > { %4573 = vmatmul.f32.gmra.mxu3 %v9981_v24  ;;  %4608 = vmatpush.msrb.mxu0 %v10114_v26  ;;  %v4733_v24 = vand.u32 4294901760, %v4732_v52  ;;  %v10306_v52 = vand.u32 4294901760, %v9819_v7 }
 0x2ed   : > { %4716 = vmatpush.msrb.mxu1 %v4715_v27  ;;  %4788 = vmatpush.msrb.mxu2 %v10179_v37  ;;  %v4744_v27 = vsub.f32 %v10259_v55, %v11787_v61  ;;  %v10311_v61 = vsub.f32 %v5015_v28, %v10289_v41 }
 0x2ee   : > { %4839 = vmatpush.msrb.mxu3 %v10145_v25  ;;  %4610 = vmatpush.msrb.mxu0 %v10128_v53  ;;  %v4628_v28 = vsub.f32 %v9819_v7, %v10306_v52 }
 0x2ef   : > { %4722 = vmatpush.msrb.mxu1 %v4721_v11  ;;  %4791 = vmatpush.msrb.mxu2 %v10197_v58  ;;  %v4739_v11 = vand.u32 4294901760, %v4738_v50  ;;  %v10334_v50 = vand.u32 4294901760, %v5012_v10 }
 0x2f0   : > { %4841 = vmatpush.msrb.mxu3 %v10158_v33  ;;  %4403 = vmatmul.f32.gmra.mxu0 %v9998_v22  ;;  %v10302_v54 = vpop.f32.mrf.mxu2  ;;  %v4629_v29 = vand.u32 4294901760, %v4628_v28 }
 0x2f1   : > { %12198 = vst [vmem:[#allocation108_spill] sm:$0xff] %v10302_v54  ;;  %4612 = vmatpush.msrb.mxu0 %v10145_v25  ;;  %4728 = vmatpush.msrb.mxu1 %v4727_v51  ;;  %v10313_v30 = vpop.f32.mrf.mxu0  ;;  %v4745_v51 = vand.u32 4294901760, %v4744_v27  ;;  %v10319_v54 = vand.u32 4294901760, %v5013_v32  ;;  %v10330_v27 = vsub.f32 %v5014_v4, %v10308_v60  ;;  %v10359_v21 = vsub.f32 %v5012_v10, %v10334_v50 }
 0x2f2   : > { %12199 = vst [vmem:[#allocation109_spill] sm:$0xff] %v10313_v30  ;;  %4794 = vmatpush.msrb.mxu2 %v10209_v20  ;;  %4843 = vmatpush.msrb.mxu3 %v10175_v36  ;;  %v3610_v22 = vpop.f32.mrf.mxu1  ;;  %v10370_v10 = vand.u32 4294901760, %v5009_v35 }
 0x2f3   : > { %4614 = vmatpush.msrb.mxu0 %v10158_v33  ;;  %4734 = vmatpush.msrb.mxu1 %v4733_v24  ;;  %v10321_v12 = vpop.f32.mrf.mxu3  ;;  %v5011_v22 = vld [vmem:[#allocation4 + $0x5d0] sm:$0xff]  ;;  %v10341_v30 = vsub.f32 %v5013_v32, %v10319_v54  ;;  %v5010_v24 = vld [vmem:[#allocation4 + $0x5c8] sm:$0xff]  ;;  %12205 = vst [vmem:[#allocation113_spill] sm:$0xff] %v10359_v21  ;;  %v4630_v32 = vsub.f32 %v4628_v28, %v4629_v29 }
 0x2f4   : > { %12200 = vst [vmem:[#allocation110_spill] sm:$0xff] %v10321_v12  ;;  %4797 = vmatpush.msrb.mxu2 %v10221_v40  ;;  %4845 = vmatpush.msrb.mxu3 %v10186_v48  ;;  %v10345_v4 = vand.u32 4294901760, %v5011_v22  ;;  %v10361_v49 = vand.u32 4294901760, %v5010_v24 }
 0x2f5   : > { %4616 = vmatpush.msrb.mxu0 %v10175_v36  ;;  %4740 = vmatpush.msrb.mxu1 %v4739_v11  ;;  %v12201_v11 = vand.u32 4294901760, %v10298_v19  ;;  %12202 = vst [vmem:[#allocation111_spill] sm:$0xff] %v10341_v30 }
 0x2f6   : > { %4800 = vmatpush.msrb.mxu2 %v10233_v59  ;;  %4847 = vmatpush.msrb.mxu3 %v10199_v2 }
 0x2f7   : > { %4618 = vmatpush.msrb.mxu0 %v10186_v48  ;;  %4746 = vmatpush.msrb.mxu1 %v4745_v51  ;;  %v5076_v12 = vsub.f32 %v10298_v19, %v12201_v11  ;;  %v12203_v51 = vand.u32 4294901760, %v10311_v61  ;;  %v10353_v11 = vand.u32 4294901760, %v9902_v23 }
 0x2f8   : > { %4803 = vmatpush.msrb.mxu2 %v10245_v43  ;;  %4849 = vmatpush.msrb.mxu3 %v10211_v3  ;;  %v10384_v43 = vand.u32 4294901760, %v5008_v44 }
 0x2f9   : > { %4748 = vmatmul.f32.vlgmr.msrb.gmra.mxu1 %v10306_v52  ;;  %4620 = vmatpush.msrb.mxu0 %v10199_v2  ;;  %v5082_v31 = vsub.f32 %v10311_v61, %v12203_v51  ;;  %12204 = vst [vmem:[#allocation112_spill] sm:$0xff] %v10353_v11  ;;  %v5077_v51 = vand.u32 4294901760, %v5076_v12  ;;  %v12207_v12 = vand.u32 4294901760, %v10330_v27 }
 0x2fa   : > { %4949 = vmatpush.msra.mxu1 %v10032_v34  ;;  %4806 = vmatpush.msrb.mxu2 %v10259_v55  ;;  %v3686_v16 = vpop.f32.mrf.mxu2  ;;  %v10368_v34 = vsub.f32 %v5011_v22, %v10345_v4  ;;  %v10382_v55 = vsub.f32 %v5010_v24, %v10361_v49  ;;  %v5006_v24 = vld [vmem:[#allocation4 + $0x5a8] sm:$0xff] }
 0x2fb   : > { %4851 = vmatpush.msrb.mxu3 %v10223_v18  ;;  %4809 = vmatmul.f32.vlgmr.msrb.gmra.mxu2 %v4628_v28  ;;  %v3560_v38 = vpop.f32.mrf.mxu0  ;;  %v5083_v16 = vand.u32 4294901760, %v5082_v31  ;;  %v5088_v47 = vsub.f32 %v10330_v27, %v12207_v12  ;;  %v12208_v31 = vand.u32 4294901760, %v10341_v30 }
 0x2fc   : > { %4951 = vmatpush.msra.mxu1 %v10039_v15  ;;  %5018 = vmatpush.msra.mxu2 %v10281_v5  ;;  %12206 = vst [vmem:[#allocation114_spill] sm:$0xff] %v10368_v34  ;;  %v4636_v15 = vsub.f32 %v9902_v23, %v10353_v11  ;;  %v5007_v38 = vld [vmem:[#allocation4 + $0x5b0] sm:$0xff] }
 0x2fd   : > { %4622 = vmatpush.msrb.mxu0 %v10211_v3  ;;  %4853 = vmatpush.msrb.mxu3 %v10235_v45  ;;  %v3730_v57 = vpop.f32.mrf.mxu3  ;;  %v5094_v28 = vsub.f32 %v10341_v30, %v12208_v31  ;;  %v5089_v12 = vand.u32 4294901760, %v5088_v47  ;;  %v5005_v30 = vld [vmem:[#allocation4 + $0x5a0] sm:$0xff]  ;;  %v10409_v47 = vand.u32 4294901760, %v5006_v24 }
 0x2fe   : > { %4857 = vmatmul.f32.vlgmr.msrb.gmra.mxu3 %v4629_v29  ;;  %4953 = vmatpush.msra.mxu1 %v10051_v56  ;;  %v10394_v29 = vsub.f32 %v5009_v35, %v10370_v10  ;;  %v10396_v57 = vand.u32 4294901760, %v5007_v38  ;;  %v4637_v22 = vand.u32 4294901760, %v4636_v15  ;;  %v10406_v56 = vsub.f32 %v5008_v44, %v10384_v43 }
 0x2ff   : > { %5020 = vmatpush.msra.mxu2 %v10289_v41  ;;  %5078 = vmatpush.msra.mxu3 %v5077_v51  ;;  %v4631_v51 = vand.u32 4294901760, %v4630_v32  ;;  %v5095_v32 = vand.u32 4294901760, %v5094_v28  ;;  %v10423_v28 = vand.u32 4294901760, %v5005_v30 }
 0x300   : > { %4624 = vmatpush.msrb.mxu0 %v10223_v18  ;;  %4955 = vmatpush.msra.mxu1 %v10061_v63  ;;  %12209 = vst [vmem:[#allocation115_spill] sm:$0xff] %v10394_v29  ;;  %v12210_v63 = vand.u32 4294901760, %v10359_v21  ;;  %v10419_v44 = vsub.f32 %v5007_v38, %v10396_v57 }
 0x301   : > { %5022 = vmatpush.msra.mxu2 %v10308_v60  ;;  %5084 = vmatpush.msra.mxu3 %v5083_v16  ;;  %12211 = vst [vmem:[#allocation116_spill] sm:$0xff] %v10406_v56  ;;  %v12212_v16 = vand.u32 4294901760, %v10049_v14  ;;  %v5004_v14 = vld [vmem:[#allocation4 + $0x598] sm:$0xff] }
 0x302   : > { %4626 = vmatpush.msrb.mxu0 %v10235_v45  ;;  %4752 = vmatmul.f32.gmra.mxu1 %v10353_v11  ;;  %v5100_v31 = vsub.f32 %v10359_v21, %v12210_v63  ;;  %v12213_v11 = vand.u32 4294901760, %v10368_v34  ;;  %12214 = vst [vmem:[#allocation117_spill] sm:$0xff] %v10419_v44  ;;  %v11802_v38 = vand.u32 4294901760, %v10419_v44 }
 0x303   : > { %4632 = vmatmul.f32.vlgmr.msrb.gmra.mxu0 %v4631_v51  ;;  %4957 = vmatpush.msra.mxu1 %v10075_v46  ;;  %v4638_v46 = vsub.f32 %v4636_v15, %v4637_v22 }
 0x304   : > { %4875 = vmatpush.msra.mxu0 %v12212_v16  ;;  %5024 = vmatpush.msra.mxu2 %v10319_v54  ;;  %v5106_v63 = vsub.f32 %v10368_v34, %v12213_v11  ;;  %v10421_v51 = vpop.f32.mrf.mxu1  ;;  %v12215_v16 = vand.u32 4294901760, %v10059_v9  ;;  %v5101_v21 = vand.u32 4294901760, %v5100_v31  ;;  %v12216_v11 = vand.u32 4294901760, %v10382_v55 }
 0x305   : > { %5090 = vmatpush.msra.mxu3 %v5089_v12  ;;  %4814 = vmatmul.f32.gmra.mxu2 %v4636_v15  ;;  %v10434_v15 = vsub.f32 %v5006_v24, %v10409_v47  ;;  %v5003_v12 = vld [vmem:[#allocation4 + $0x590] sm:$0xff]  ;;  %v4639_v24 = vand.u32 4294901760, %v4638_v46  ;;  %v10449_v34 = vsub.f32 %v5005_v30, %v10423_v28  ;;  %v5002_v46 = vld [vmem:[#allocation4 + $0x588] sm:$0xff]  ;;  %v5130_v30 = vsub.f32 %v10419_v44, %v11802_v38 }
 0x306   : > { %4879 = vmatpush.msra.mxu0 %v12215_v16  ;;  %4959 = vmatpush.msra.mxu1 %v10096_v6  ;;  %v5112_v35 = vsub.f32 %v10382_v55, %v12216_v11  ;;  %v12218_v6 = vand.u32 4294901760, %v10070_v0  ;;  %v5107_v31 = vand.u32 4294901760, %v5106_v63  ;;  %v12219_v16 = vand.u32 4294901760, %v10394_v29 }
 0x307   : > { %5026 = vmatpush.msra.mxu2 %v10334_v50  ;;  %5096 = vmatpush.msra.mxu3 %v5095_v32  ;;  %12217 = vst [vmem:[#allocation118_spill] sm:$0xff] %v10434_v15  ;;  %v10444_v32 = vand.u32 4294901760, %v5004_v14  ;;  %v12220_v0 = vand.u32 4294901760, %v10081_v39  ;;  %v12221_v63 = vand.u32 4294901760, %v10406_v56 }
 0x308   : > { %4863 = vmatmul.f32.gmra.mxu3 %v4637_v22  ;;  %4883 = vmatpush.msra.mxu0 %v12218_v6  ;;  %v5118_v11 = vsub.f32 %v10394_v29, %v12219_v16  ;;  %v5113_v22 = vand.u32 4294901760, %v5112_v35  ;;  %v10456_v16 = vld [vmem:[#allocation2 + $0x10] sm:$0xff] }
 0x309   : > { %4961 = vmatpush.msra.mxu1 %v10114_v26  ;;  %5028 = vmatpush.msra.mxu2 %v10345_v4  ;;  %v5124_v6 = vsub.f32 %v10406_v56, %v12221_v63  ;;  %v10459_v9 = vand.u32 4294901760, %v10456_v16  ;;  %v10461_v26 = vand.u32 4294901760, %v5003_v12  ;;  %v10470_v35 = vsub.f32 %v5004_v14, %v10444_v32 }
 0x30a   : > { %5102 = vmatpush.msra.mxu3 %v5101_v21  ;;  %4887 = vmatpush.msra.mxu0 %v12220_v0  ;;  %v11805_v21 = vand.u32 4294901760, %v10434_v15  ;;  %v5119_v39 = vand.u32 4294901760, %v5118_v11  ;;  %v5001_v0 = vld [vmem:[#allocation4 + $0x580] sm:$0xff]  ;;  %v12222_v63 = vrot.slane %v9902_v23, 1  ;;  %v12223_v56 = vrot.slane %v9819_v7, 1 }
 0x30b   : > { %4963 = vmatpush.msra.mxu1 %v10128_v53  ;;  %5030 = vmatpush.msra.mxu2 %v10361_v49  ;;  %v5125_v14 = vand.u32 4294901760, %v5124_v6  ;;  %v4644_v38 = vsub.f32 %v10456_v16, %v10459_v9  ;;  %v10502_v6 = vand.u32 4294901760, %v5001_v0  ;;  %v11809_v44 = vand.u32 4294901760, %v10470_v35 }
 0x30c   : > { %5108 = vmatpush.msra.mxu3 %v5107_v31  ;;  %4640 = vmatmul.f32.gmra.mxu0 %v4639_v24  ;;  %v4998_v53 = vsel %vm2043_vm5, %v12223_v56, %v12222_v63  ;;  %v10478_v29 = vpop.f32.mrf.mxu2  ;;  %v12224_v31 = vand.u32 4294901760, %v10101_v42  ;;  %v10484_v24 = vand.u32 4294901760, %v5002_v46  ;;  %v10490_v56 = vsub.f32 %v5003_v12, %v10461_v26 }
 0x30d   : > { %4965 = vmatpush.msra.mxu1 %v10145_v25  ;;  %5032 = vmatpush.msra.mxu2 %v10370_v10  ;;  %v10494_v42 = vpop.f32.mrf.mxu1  ;;  %v12225_v25 = vand.u32 4294901760, %v10123_v8  ;;  %v5131_v12 = vand.u32 4294901760, %v5130_v30  ;;  %v12226_v8 = vand.u32 4294901760, %v10140_v62  ;;  %v12228_v30 = vand.u32 4294901760, %v10153_v13 }
 0x30e   : > { %4891 = vmatpush.msra.mxu0 %v12224_v31  ;;  %5114 = vmatpush.msra.mxu3 %v5113_v22  ;;  %v10492_v63 = vpop.f32.mrf.mxu0  ;;  %v5136_v22 = vsub.f32 %v10434_v15, %v11805_v21  ;;  %v10504_v31 = vand.u32 4294901760, %v4998_v53  ;;  %v10517_v21 = vsub.f32 %v5002_v46, %v10484_v24  ;;  %v4645_v15 = vand.u32 4294901760, %v4644_v38 }
 0x30f   : > { %4967 = vmatpush.msra.mxu1 %v10158_v33  ;;  %v10506_v11 = vpop.f32.mrf.mxu3  ;;  %5034 = vmatpush.msra.mxu2 %v10384_v43  ;;  %v12227_v33 = vand.u32 4294901760, %v10449_v34  ;;  %v5148_v46 = vsub.f32 %v10470_v35, %v11809_v44  ;;  %v12229_v13 = vand.u32 4294901760, %v10168_v1  ;;  %v12232_v44 = vand.u32 4294901760, %v10197_v58 }
 0x310   : > { %4895 = vmatpush.msra.mxu0 %v12225_v25  ;;  %5120 = vmatpush.msra.mxu3 %v5119_v39  ;;  %v11808_v39 = vand.u32 4294901760, %v10490_v56  ;;  %v5137_v62 = vand.u32 4294901760, %v5136_v22  ;;  %v4646_v22 = vsub.f32 %v4644_v38, %v4645_v15  ;;  %v12235_v58 = vand.u32 4294901760, %v10209_v20 }
 0x311   : > { %4969 = vmatpush.msra.mxu1 %v10175_v36  ;;  %v5142_v25 = vsub.f32 %v10449_v34, %v12227_v33  ;;  %5036 = vmatpush.msra.mxu2 %v10396_v57  ;;  %v10525_v36 = vsub.f32 %v4998_v53, %v10504_v31  ;;  %v5159_v53 = vand.u32 4294901760, %v10517_v21 }
 0x312   : > { %4899 = vmatpush.msra.mxu0 %v12226_v8  ;;  %5126 = vmatpush.msra.mxu3 %v5125_v14  ;;  %v10528_v8 = vsub.f32 %v5001_v0, %v10502_v6  ;;  %v4996_v14 = vrot.slane %v10456_v16, 1  ;;  %v5154_v0 = vsub.f32 %v10490_v56, %v11808_v39  ;;  %v5149_v39 = vand.u32 4294901760, %v5148_v46 }
 0x313   : > { %4971 = vmatpush.msra.mxu1 %v10186_v48  ;;  %5038 = vmatpush.msra.mxu2 %v10409_v47  ;;  %v5143_v48 = vand.u32 4294901760, %v5142_v25  ;;  %v11810_v1 = vand.u32 4294901760, %v10525_v36 }
 0x314   : > { %4903 = vmatpush.msra.mxu0 %v12228_v30  ;;  %5132 = vmatpush.msra.mxu3 %v5131_v12  ;;  %v12230_v12 = vrot.slane %v9902_v23, 1 }
 0x315   : > { %4756 = vmatmul.f32.gmra.mxu1 %v10459_v9  ;;  %5040 = vmatpush.msra.mxu2 %v10423_v28 }
 0x316   : > { %4907 = vmatpush.msra.mxu0 %v12229_v13  ;;  %4973 = vmatpush.msra.mxu1 %v10199_v2  ;;  %v4997_v33 = vsel %vm2043_vm5, %v12230_v12, %v4996_v14  ;;  %v10548_v30 = vpop.f32.mrf.mxu2  ;;  %v5165_v2 = vand.u32 4294901760, %v10528_v8  ;;  %v12231_v13 = vand.u32 4294901760, %v10179_v37  ;;  %v5155_v37 = vand.u32 4294901760, %v5154_v0  ;;  %v12237_v0 = vld [vmem:[#allocation16_spill] sm:$0xff] }
 0x317   : > { %5138 = vmatpush.msra.mxu3 %v5137_v62  ;;  %4819 = vmatmul.f32.gmra.mxu2 %v4644_v38  ;;  %v10552_v25 = vpop.f32.mrf.mxu0  ;;  %v5160_v38 = vsub.f32 %v10517_v21, %v5159_v53  ;;  %v10561_v62 = vand.u32 4294901760, %v4997_v33 }
 0x318   : > { %4911 = vmatpush.msra.mxu0 %v12231_v13  ;;  %4975 = vmatpush.msra.mxu1 %v10211_v3  ;;  %v3919_v23 = vpop.f32.mrf.mxu1  ;;  %v4647_v13 = vand.u32 4294901760, %v4646_v22  ;;  %v5052_v3 = vsub.f32 %v10525_v36, %v11810_v1  ;;  %v5166_v46 = vsub.f32 %v10528_v8, %v5165_v2 }
 0x319   : > { %5042 = vmatpush.msra.mxu2 %v10444_v32  ;;  %5144 = vmatpush.msra.mxu3 %v5143_v48  ;;  %v10563_v12 = vpop.f32.mrf.mxu3  ;;  %v12233_v48 = vld [vmem:[#allocation18_spill] sm:$0xff]  ;;  %v12234_v23 = vld [vmem:[#allocation17_spill] sm:$0xff]  ;;  %v5161_v22 = vand.u32 4294901760, %v5160_v38  ;;  %v10584_v1 = vsub.f32 %v4997_v33, %v10561_v62 }
 0x31a   : > { %4869 = vmatmul.f32.gmra.mxu3 %v4645_v15  ;;  %4915 = vmatpush.msra.mxu0 %v12232_v44  ;;  %v562_v15 = vadd.f32 %v12234_v23, %v12233_v48  ;;  %v12236_v44 = vld [vmem:[#allocation21_spill] sm:$0xff]  ;;  %v5053_v20 = vand.u32 4294901760, %v5052_v3  ;;  %v5167_v48 = vand.u32 4294901760, %v5166_v46  ;;  %v12239_v23 = vld [vmem:[#allocation19_spill] sm:$0xff]  ;;  %v12242_v46 = vand.u32 4294901760, %v10298_v19 }
 0x31b   : > { %4977 = vmatpush.msra.mxu1 %v10223_v18  ;;  %5044 = vmatpush.msra.mxu2 %v10461_v26  ;;  %v566_v18 = vadd.f32 %v12237_v0, %v12236_v44  ;;  %v12244_v44 = vld [vmem:[#allocation20_spill] sm:$0xff] }
 0x31c   : > { %5150 = vmatpush.msra.mxu3 %v5149_v39  ;;  %4919 = vmatpush.msra.mxu0 %v12235_v58  ;;  %v12238_v39 = vand.u32 4294901760, %v10221_v40  ;;  %v623_v58 = vadd.f32 %v12239_v23, %v562_v15  ;;  %v5059_v40 = vand.u32 4294901760, %v10584_v1  ;;  %v12243_v15 = vand.u32 4294901760, %v10233_v59  ;;  %v12248_v23 = vld [vmem:[#allocation102_spill] sm:$0xff] }
 0x31d   : > { %4979 = vmatpush.msra.mxu1 %v10235_v45  ;;  %5046 = vmatpush.msra.mxu2 %v10484_v24  ;;  %v12240_v45 = vrot.slane %v9819_v7, 1 }
 0x31e   : > { %5156 = vmatpush.msra.mxu3 %v5155_v37  ;;  %4648 = vmatmul.f32.gmra.mxu0 %v4647_v13  ;;  %v12241_v37 = vld [vmem:[#allocation22_spill] sm:$0xff]  ;;  %v671_v0 = vadd.f32 %v12244_v44, %v623_v58  ;;  %v5060_v59 = vsub.f32 %v10584_v1, %v5059_v40  ;;  %v12250_v58 = vld [vmem:[#allocation31_spill] sm:$0xff] }
 0x31f   : > { %4981 = vmatmul.f32.vlgmr.msra.gmra.mxu1 %v10306_v52  ;;  %4923 = vmatpush.msra.mxu0 %v12238_v39  ;;  %v4999_v33 = vsel %vm2043_vm5, %v4996_v14, %v12240_v45  ;;  %v628_v13 = vadd.f32 %v12241_v37, %v566_v18  ;;  %v12245_v18 = vld [vmem:[#allocation23_spill] sm:$0xff]  ;;  %v12246_v39 = vand.u32 4294901760, %v10311_v61  ;;  %v12249_v45 = vand.u32 4294901760, %v12248_v23  ;;  %v12262_v23 = vld [vmem:[#allocation46_spill] sm:$0xff] }
 0x320   : > { %5245 = vmatpush.msrb.mxu1 %v10281_v5  ;;  %5048 = vmatpush.msra.mxu2 %v10502_v6  ;;  %v3982_v38 = vpop.f32.mrf.mxu2  ;;  %v10603_v7 = vand.u32 4294901760, %v4999_v33  ;;  %v12251_v37 = vand.u32 4294901760, %v10330_v27 }
 0x321   : > { %5162 = vmatpush.msra.mxu3 %v5161_v22  ;;  %5054 = vmatmul.f32.vlgmr.msra.gmra.mxu2 %v5053_v20  ;;  %v3811_v3 = vpop.f32.mrf.mxu0  ;;  %v677_v22 = vadd.f32 %v12245_v18, %v628_v13  ;;  %v12247_v20 = vld [vmem:[#allocation27_spill] sm:$0xff]  ;;  %v12252_v13 = vld [vmem:[#allocation104_spill] sm:$0xff] }
 0x322   : > { %5247 = vmatpush.msrb.mxu1 %v10289_v41  ;;  %5297 = vmatpush.msrb.mxu2 %v12242_v46  ;;  %v12253_v3 = vand.u32 4294901760, %v12252_v13  ;;  %v12254_v46 = vld [vmem:[#allocation112_spill] sm:$0xff]  ;;  %v12268_v13 = vld [vmem:[#allocation30_spill] sm:$0xff] }
 0x323   : > { %4927 = vmatpush.msra.mxu0 %v12243_v15  ;;  %5168 = vmatpush.msra.mxu3 %v5167_v48  ;;  %v4032_v14 = vpop.f32.mrf.mxu3  ;;  %v751_v48 = vadd.f32 %v12247_v20, %v671_v0  ;;  %v755_v38 = vadd.f32 %v12250_v58, %v677_v22  ;;  %v5061_v15 = vand.u32 4294901760, %v5060_v59  ;;  %v12256_v0 = vld [vmem:[#allocation111_spill] sm:$0xff]  ;;  %v12259_v59 = vld [vmem:[#allocation113_spill] sm:$0xff]  ;;  %v12265_v58 = vld [vmem:[#allocation114_spill] sm:$0xff] }
 0x324   : > { %5170 = vmatmul.f32.vlgmr.msra.gmra.mxu3 %v10504_v31  ;;  %5249 = vmatpush.msrb.mxu1 %v10308_v60  ;;  %v12255_v14 = vld [vmem:[#allocation24_spill] sm:$0xff]  ;;  %v12257_v18 = vand.u32 4294901760, %v12256_v0  ;;  %v12261_v20 = vld [vmem:[#allocation29_spill] sm:$0xff] }
 0x325   : > { %5301 = vmatpush.msrb.mxu2 %v12246_v39  ;;  %5371 = vmatpush.msrb.mxu3 %v10281_v5  ;;  %v10624_v5 = vsub.f32 %v4999_v33, %v10603_v7  ;;  %v795_v44 = vadd.f32 %v12255_v14, %v751_v48  ;;  %v12258_v33 = vld [vmem:[#allocation28_spill] sm:$0xff]  ;;  %v3912_v39 = vadd.f32 %v10421_v51, %v10492_v63 }
 0x326   : > { %4931 = vmatpush.msra.mxu0 %v12249_v45  ;;  %5251 = vmatpush.msrb.mxu1 %v10319_v54  ;;  %v799_v22 = vadd.f32 %v12258_v33, %v755_v38  ;;  %v12263_v45 = vld [vmem:[#allocation14_spill] sm:$0xff]  ;;  %v12264_v51 = vld [vmem:[#allocation32_spill] sm:$0xff]  ;;  %v12266_v38 = vand.u32 4294901760, %v12265_v58 }
 0x327   : > { %5305 = vmatpush.msrb.mxu2 %v12251_v37  ;;  %5373 = vmatpush.msrb.mxu3 %v10289_v41  ;;  %v843_v48 = vadd.f32 %v12261_v20, %v795_v44  ;;  %v5438_v37 = vld [vmem:[#allocation4 + $0x678] sm:$0xff] }
 0x328   : > { %4935 = vmatpush.msra.mxu0 %v12253_v3  ;;  %4985 = vmatmul.f32.gmra.mxu1 %v12254_v46  ;;  %v851_v63 = vadd.f32 %v12264_v51, %v799_v22  ;;  %v10667_v44 = vand.u32 4294901760, %v5438_v37  ;;  %v12272_v22 = vld [vmem:[#allocation47_spill] sm:$0xff] }
 0x329   : > { %4937 = vmatmul.f32.vlgmr.msra.gmra.mxu0 %v10306_v52  ;;  %5253 = vmatpush.msrb.mxu1 %v10334_v50  ;;  %v11820_v52 = vand.u32 4294901760, %v10624_v5  ;;  %v959_v3 = vadd.f32 %v12268_v13, %v843_v48  ;;  %v5436_v48 = vld [vmem:[#allocation4 + $0x668] sm:$0xff]  ;;  %v5435_v13 = vld [vmem:[#allocation4 + $0x660] sm:$0xff] }
 0x32a   : > { %5183 = vmatpush.msrb.mxu0 %v10298_v19  ;;  %5309 = vmatpush.msrb.mxu2 %v12257_v18  ;;  %v4144_v41 = vpop.f32.mrf.mxu1  ;;  %v12260_v19 = vand.u32 4294901760, %v12259_v59 }
 0x32b   : > { %5375 = vmatpush.msrb.mxu3 %v10308_v60  ;;  %5062 = vmatmul.f32.gmra.mxu2 %v5061_v15  ;;  %v1380_v60 = vadd.f32 %v12263_v45, %v12262_v23  ;;  %v12269_v15 = vld [vmem:[#allocation48_spill] sm:$0xff]  ;;  %v12273_v23 = vld [vmem:[#allocation39_spill] sm:$0xff] }
 0x32c   : > { %5186 = vmatpush.msrb.mxu0 %v10311_v61  ;;  %5255 = vmatpush.msrb.mxu1 %v10345_v4  ;;  %v3973_v61 = vadd.f32 %v10478_v29, %v3912_v39  ;;  %v5437_v29 = vld [vmem:[#allocation4 + $0x670] sm:$0xff] }
 0x32d   : > { %5313 = vmatpush.msrb.mxu2 %v12260_v19  ;;  %5377 = vmatpush.msrb.mxu3 %v10319_v54  ;;  %v5068_v54 = vsub.f32 %v10624_v5, %v11820_v52  ;;  %v1441_v14 = vadd.f32 %v12269_v15, %v1380_v60  ;;  %v12274_v45 = vld [vmem:[#allocation115_spill] sm:$0xff]  ;;  %v3916_v60 = vadd.f32 %v10494_v42, %v10552_v25  ;;  %v10681_v51 = vand.u32 4294901760, %v5437_v29  ;;  %v12280_v42 = vld [vmem:[#allocation116_spill] sm:$0xff] }
 0x32e   : > { %5174 = vmatmul.f32.gmra.mxu3 %v10561_v62  ;;  %5189 = vmatpush.msrb.mxu0 %v10330_v27  ;;  %v12267_v27 = vand.u32 4294901760, %v10382_v55  ;;  %v4021_v19 = vadd.f32 %v10506_v11, %v3973_v61  ;;  %v12281_v25 = vand.u32 4294901760, %v12280_v42 }
 0x32f   : > { %5257 = vmatpush.msrb.mxu1 %v10361_v49  ;;  %5317 = vmatpush.msrb.mxu2 %v12266_v38  ;;  %v5069_v20 = vand.u32 4294901760, %v5068_v54  ;;  %v12277_v38 = vld [vmem:[#allocation38_spill] sm:$0xff] }
 0x330   : > { %5379 = vmatpush.msrb.mxu3 %v10334_v50  ;;  %5192 = vmatpush.msrb.mxu0 %v12256_v0  ;;  %v12270_v50 = vld [vmem:[#allocation13_spill] sm:$0xff]  ;;  %v12278_v54 = vld [vmem:[#allocation50_spill] sm:$0xff] }
 0x331   : > { %5259 = vmatpush.msrb.mxu1 %v10370_v10  ;;  %5321 = vmatpush.msrb.mxu2 %v12267_v27  ;;  %v963_v33 = vadd.f32 %v12270_v50, %v851_v63  ;;  %v12271_v0 = vld [vmem:[#allocation25_spill] sm:$0xff]  ;;  %v1796_v27 = vadd.f32 %v12278_v54, %v12277_v38  ;;  %v12287_v38 = vld [vmem:[#allocation40_spill] sm:$0xff]  ;;  %v12288_v54 = vld [vmem:[#allocation34_spill] sm:$0xff] }
 0x332   : > { %5381 = vmatpush.msrb.mxu3 %v10345_v4  ;;  %4941 = vmatmul.f32.gmra.mxu0 %v12254_v46  ;;  %v4217_v18 = vpop.f32.mrf.mxu2  ;;  %v1384_v39 = vadd.f32 %v12272_v22, %v12271_v0  ;;  %v1020_v4 = vadd.f32 %v12273_v23, %v959_v3  ;;  %v12275_v46 = vand.u32 4294901760, %v12274_v45  ;;  %v10694_v0 = vsub.f32 %v5438_v37, %v10667_v44 }
 0x333   : > { %5195 = vmatpush.msrb.mxu0 %v12259_v59  ;;  %5261 = vmatpush.msrb.mxu1 %v10384_v43  ;;  %v10683_v11 = vpop.f32.mrf.mxu1  ;;  %v12276_v59 = vld [vmem:[#allocation43_spill] sm:$0xff]  ;;  %v10711_v37 = vsub.f32 %v5437_v29, %v10681_v51 }
 0x334   : > { %5325 = vmatpush.msrb.mxu2 %v12275_v46  ;;  %5383 = vmatpush.msrb.mxu3 %v10361_v49  ;;  %v4100_v63 = vpop.f32.mrf.mxu0  ;;  %v1025_v61 = vadd.f32 %v12276_v59, %v963_v33  ;;  %v12279_v49 = vld [vmem:[#allocation49_spill] sm:$0xff]  ;;  %12282 = vst [vmem:[#allocation18_spill] sm:$0xff] %v10694_v0  ;;  %v10696_v33 = vand.u32 4294901760, %v5436_v48  ;;  %v3978_v59 = vadd.f32 %v10548_v30, %v3916_v60  ;;  %v11818_v30 = vand.u32 4294901760, %v10694_v0  ;;  %v12294_v60 = vld [vmem:[#allocation26_spill] sm:$0xff] }
 0x335   : > { %5070 = vmatmul.f32.gmra.mxu2 %v5069_v20  ;;  %5198 = vmatpush.msrb.mxu0 %v12265_v58  ;;  %v4101_v3 = vadd.f32 %v4100_v63, %v4021_v19  ;;  %v4333_v15 = vpop.f32.mrf.mxu3  ;;  %v1489_v50 = vadd.f32 %v12279_v49, %v1441_v14  ;;  %v12283_v20 = vld [vmem:[#allocation33_spill] sm:$0xff]  ;;  %v12284_v58 = vld [vmem:[#allocation59_spill] sm:$0xff]  ;;  %12286 = vst [vmem:[#allocation17_spill] sm:$0xff] %v10711_v37 }
 0x336   : > { %5263 = vmatpush.msrb.mxu1 %v10396_v57  ;;  %5329 = vmatpush.msrb.mxu2 %v12281_v25  ;;  %v10698_v22 = vadd.f32 %v4333_v15, %v4217_v18  ;;  %v1446_v23 = vadd.f32 %v12283_v20, %v1384_v39  ;;  %v1857_v46 = vadd.f32 %v12284_v58, %v1796_v27  ;;  %v12285_v19 = vld [vmem:[#allocation35_spill] sm:$0xff]  ;;  %v10713_v18 = vand.u32 4294901760, %v5435_v13  ;;  %v5434_v39 = vld [vmem:[#allocation4 + $0x658] sm:$0xff]  ;;  %v12290_v27 = vld [vmem:[#allocation53_spill] sm:$0xff] }
 0x337   : > { %5385 = vmatpush.msrb.mxu3 %v10370_v10  ;;  %5201 = vmatpush.msrb.mxu0 %v10382_v55  ;;  %v10704_v14 = vadd.f32 %v4144_v41, %v4101_v3  ;;  %v1068_v63 = vadd.f32 %v12285_v19, %v1020_v4  ;;  %v1074_v10 = vadd.f32 %v12287_v38, %v1025_v61  ;;  %v12289_v41 = vld [vmem:[#allocation52_spill] sm:$0xff]  ;;  %v12291_v4 = vld [vmem:[#allocation117_spill] sm:$0xff]  ;;  %v12295_v49 = vld [vmem:[#allocation55_spill] sm:$0xff] }
 0x338   : > { %5178 = vmatmul.f32.gmra.mxu3 %v10603_v7  ;;  %5265 = vmatpush.msrb.mxu1 %v10409_v47  ;;  %v1569_v55 = vadd.f32 %v12288_v54, %v1489_v50  ;;  %v1800_v3 = vadd.f32 %v12290_v27, %v12289_v41  ;;  %v12292_v15 = vand.u32 4294901760, %v12291_v4  ;;  %v10726_v29 = vsub.f32 %v5436_v48, %v10696_v33  ;;  %v12296_v25 = vld [vmem:[#allocation66_spill] sm:$0xff]  ;;  %v12299_v38 = vld [vmem:[#allocation41_spill] sm:$0xff]  ;;  %v12301_v27 = vld [vmem:[#allocation44_spill] sm:$0xff] }
 0x339   : > { %5387 = vmatpush.msrb.mxu3 %v10384_v43  ;;  %5204 = vmatpush.msrb.mxu0 %v12274_v45  ;;  %v1495_v61 = vadd.f32 %v12294_v60, %v1446_v23  ;;  %v1905_v50 = vadd.f32 %v12295_v49, %v1857_v46  ;;  %v12297_v58 = vld [vmem:[#allocation118_spill] sm:$0xff]  ;;  %v10734_v43 = vand.u32 4294901760, %v5434_v39  ;;  %v5433_v45 = vld [vmem:[#allocation4 + $0x650] sm:$0xff]  ;;  %v1148_v54 = vadd.f32 %v12299_v38, %v1068_v63 }
 0x33a   : > { %5333 = vmatpush.msrb.mxu2 %v12292_v15  ;;  %5267 = vmatpush.msrb.mxu1 %v10423_v28  ;;  %12293 = vst [vmem:[#allocation21_spill] sm:$0xff] %v10726_v29  ;;  %v1862_v20 = vadd.f32 %v12296_v25, %v1800_v3  ;;  %v12298_v19 = vand.u32 4294901760, %v12297_v58  ;;  %v4027_v41 = vadd.f32 %v10563_v12, %v3978_v59  ;;  %v11811_v48 = vand.u32 4294901760, %v10711_v37  ;;  %v12303_v60 = vld [vmem:[#allocation51_spill] sm:$0xff]  ;;  %v12305_v25 = vld [vmem:[#allocation57_spill] sm:$0xff]  ;;  %v12306_v38 = vld [vmem:[#allocation58_spill] sm:$0xff] }
 0x33b   : > { %5389 = vmatpush.msrb.mxu3 %v10396_v57  ;;  %4989 = vmatmul.f32.gmra.mxu1 %v10459_v9  ;;  %v10742_v23 = vsub.f32 %v5435_v13, %v10713_v18  ;;  %v1152_v3 = vadd.f32 %v12301_v27, %v1074_v10  ;;  %v12302_v57 = vld [vmem:[#allocation37_spill] sm:$0xff]  ;;  %v1573_v49 = vadd.f32 %v12303_v60, %v1495_v61  ;;  %v12304_v12 = vand.u32 4294901760, %v10449_v34  ;;  %v5432_v10 = vld [vmem:[#allocation4 + $0x648] sm:$0xff] }
 0x33c   : > { %5337 = vmatpush.msrb.mxu2 %v12298_v19  ;;  %5207 = vmatpush.msrb.mxu0 %v12280_v42  ;;  %v4225_v46 = vpop.f32.mrf.mxu2  ;;  %v1613_v15 = vadd.f32 %v12302_v57, %v1569_v55  ;;  %v5498_v13 = vsub.f32 %v10694_v0, %v11818_v30  ;;  %v11812_v42 = vand.u32 4294901760, %v10726_v29  ;;  %v10756_v59 = vand.u32 4294901760, %v5433_v45  ;;  %v12347_v30 = vld [vmem:[#allocation101_spill] sm:$0xff] }
 0x33d   : > { %12300 = vst [vmem:[#allocation16_spill] sm:$0xff] %v10742_v23  ;;  %5269 = vmatpush.msrb.mxu1 %v10444_v32  ;;  %v4104_v63 = vpop.f32.mrf.mxu0  ;;  %5391 = vmatpush.msrb.mxu3 %v10409_v47  ;;  %v1985_v19 = vadd.f32 %v12305_v25, %v1905_v50  ;;  %v1911_v27 = vadd.f32 %v12306_v38, %v1862_v20  ;;  %v12307_v47 = vand.u32 4294901760, %v10470_v35  ;;  %v11814_v50 = vand.u32 4294901760, %v10742_v23  ;;  %v5431_v20 = vld [vmem:[#allocation4 + $0x640] sm:$0xff]  ;;  %v12311_v25 = vld [vmem:[#allocation68_spill] sm:$0xff] }
 0x33e   : > { %5341 = vmatpush.msrb.mxu2 %v12304_v12  ;;  %5210 = vmatpush.msrb.mxu0 %v12291_v4  ;;  %v4105_v55 = vadd.f32 %v4104_v63, %v4027_v41  ;;  %v4152_v61 = vpop.f32.mrf.mxu1  ;;  %v10764_v4 = vsub.f32 %v5434_v39, %v10734_v43  ;;  %v5504_v41 = vsub.f32 %v10711_v37, %v11811_v48  ;;  %v12309_v63 = vld [vmem:[#allocation42_spill] sm:$0xff] }
 0x33f   : > { %5271 = vmatpush.msrb.mxu1 %v10461_v26  ;;  %v4337_v57 = vpop.f32.mrf.mxu3  ;;  %5393 = vmatpush.msrb.mxu3 %v10423_v28  ;;  %v1192_v39 = vadd.f32 %v12309_v63, %v1148_v54  ;;  %v12310_v61 = vld [vmem:[#allocation70_spill] sm:$0xff]  ;;  %v12312_v28 = vand.u32 4294901760, %v10490_v56  ;;  %v5510_v54 = vsub.f32 %v10726_v29, %v11812_v42  ;;  %v12321_v42 = vand.u32 4294901760, %v10525_v36 }
 0x340   : > { %5345 = vmatpush.msrb.mxu2 %v12307_v47  ;;  %12308 = vst [vmem:[#allocation19_spill] sm:$0xff] %v10764_v4  ;;  %5213 = vmatpush.msrb.mxu0 %v12297_v58  ;;  %v10773_v60 = vadd.f32 %v10683_v11, %v4105_v55  ;;  %v10775_v12 = vadd.f32 %v4337_v57, %v4225_v46  ;;  %v10783_v58 = vand.u32 4294901760, %v5432_v10  ;;  %v12313_v47 = vld [vmem:[#allocation45_spill] sm:$0xff]  ;;  %v5499_v11 = vand.u32 4294901760, %v5498_v13  ;;  %v12315_v55 = vld [vmem:[#allocation36_spill] sm:$0xff] }
 0x341   : > { %v2219_v38 = vadd.f32 %v12311_v25, %v12310_v61  ;;  %5273 = vmatpush.msrb.mxu1 %v10484_v24  ;;  %v1196_v48 = vadd.f32 %v12313_v47, %v1152_v3  ;;  %5395 = vmatpush.msrb.mxu3 %v10444_v32  ;;  %v10792_v46 = vsub.f32 %v5433_v45, %v10756_v59  ;;  %v11813_v32 = vand.u32 4294901760, %v10764_v4  ;;  %v12316_v13 = vld [vmem:[#allocation60_spill] sm:$0xff]  ;;  %v12317_v25 = vld [vmem:[#allocation63_spill] sm:$0xff] }
 0x342   : > { %5349 = vmatpush.msrb.mxu2 %v12312_v28  ;;  %5216 = vmatpush.msrb.mxu0 %v10449_v34  ;;  %v1617_v57 = vadd.f32 %v12315_v55, %v1573_v49  ;;  %v1622_v63 = vadd.f32 %v1613_v15, %v1192_v39  ;;  %v10799_v3 = vand.u32 4294901760, %v5431_v20  ;;  %v5430_v34 = vld [vmem:[#allocation4 + $0x638] sm:$0xff]  ;;  %v2029_v61 = vadd.f32 %v12316_v13, %v1985_v19  ;;  %v12318_v49 = vld [vmem:[#allocation69_spill] sm:$0xff]  ;;  %v12319_v39 = vld [vmem:[#allocation74_spill] sm:$0xff] }
 0x343   : > { %12314 = vst [vmem:[#allocation22_spill] sm:$0xff] %v10792_v46  ;;  %5275 = vmatpush.msrb.mxu1 %v10502_v6  ;;  %v1989_v28 = vadd.f32 %v12317_v25, %v1911_v27  ;;  %5397 = vmatpush.msrb.mxu3 %v10461_v26  ;;  %v5505_v45 = vand.u32 4294901760, %v5504_v41  ;;  %v5516_v15 = vsub.f32 %v10742_v23, %v11814_v50  ;;  %v12320_v47 = vld [vmem:[#allocation71_spill] sm:$0xff]  ;;  %v12324_v27 = vld [vmem:[#allocation64_spill] sm:$0xff]  ;;  %v11817_v13 = vand.u32 4294901760, %v10792_v46 }
 0x344   : > { %5353 = vmatpush.msrb.mxu2 %v5159_v53  ;;  %4945 = vmatmul.f32.gmra.mxu0 %v10459_v9  ;;  %v2280_v53 = vadd.f32 %v12318_v49, %v2219_v38  ;;  %v2223_v55 = vadd.f32 %v12320_v47, %v12319_v39  ;;  %v10815_v19 = vsub.f32 %v5432_v10, %v10783_v58  ;;  %v5429_v26 = vld [vmem:[#allocation4 + $0x630] sm:$0xff]  ;;  %v12323_v9 = vld [vmem:[#allocation54_spill] sm:$0xff]  ;;  %v5511_v38 = vand.u32 4294901760, %v5510_v54  ;;  %v12326_v54 = vld [vmem:[#allocation80_spill] sm:$0xff] }
 0x345   : > { %5279 = vmatmul.f32.vlgmr.msrb.gmra.mxu1 %v12321_v42  ;;  %5219 = vmatpush.msrb.mxu0 %v10470_v35  ;;  %v2642_v41 = vadd.f32 %v12324_v27, %v12323_v9  ;;  %v10822_v25 = vand.u32 4294901760, %v5430_v34  ;;  %v1623_v42 = vadd.f32 %v1617_v57, %v1196_v48  ;;  %v5522_v35 = vsub.f32 %v10764_v4, %v11813_v32  ;;  %v12327_v47 = vld [vmem:[#allocation67_spill] sm:$0xff]  ;;  %v12328_v27 = vld [vmem:[#allocation72_spill] sm:$0xff]  ;;  %v12329_v32 = vld [vmem:[#allocation94_spill] sm:$0xff] }
 0x346   : > { %12322 = vst [vmem:[#allocation20_spill] sm:$0xff] %v10815_v19  ;;  %5500 = vmatpush.msra.mxu1 %v5499_v11  ;;  %5357 = vmatpush.msrb.mxu2 %v5165_v2  ;;  %v4233_v49 = vpop.f32.mrf.mxu2  ;;  %v10830_v10 = vsub.f32 %v5431_v20, %v10799_v3  ;;  %v10832_v2 = vadd.f32 %v2029_v61, %v1622_v63  ;;  %v5517_v48 = vand.u32 4294901760, %v5516_v15  ;;  %v10836_v57 = vand.u32 4294901760, %v5429_v26  ;;  %v12330_v50 = vld [vmem:[#allocation92_spill] sm:$0xff]  ;;  %v5427_v61 = vld [vmem:[#allocation4 + $0x620] sm:$0xff] }
 0x347   : > { %5399 = vmatpush.msrb.mxu3 %v10484_v24  ;;  %5359 = vmatmul.f32.vlgmr.msrb.gmra.mxu2 %v10504_v31  ;;  %v4108_v11 = vpop.f32.mrf.mxu0  ;;  %v2703_v39 = vadd.f32 %v12326_v54, %v2642_v41  ;;  %v5428_v24 = vld [vmem:[#allocation4 + $0x628] sm:$0xff]  ;;  %v2033_v9 = vadd.f32 %v12327_v47, %v1989_v28  ;;  %v2328_v49 = vadd.f32 %v12328_v27, %v2280_v53  ;;  %v11816_v63 = vand.u32 4294901760, %v10815_v19  ;;  %v12331_v41 = vld [vmem:[#allocation73_spill] sm:$0xff] }
 0x348   : > { %12325 = vst [vmem:[#allocation23_spill] sm:$0xff] %v10830_v10  ;;  %5506 = vmatpush.msra.mxu1 %v5505_v45  ;;  %5605 = vmatpush.msra.mxu2 %v10694_v0  ;;  %v3065_v20 = vadd.f32 %v12330_v50, %v12329_v32  ;;  %v2285_v15 = vadd.f32 %v12331_v41, %v2223_v55  ;;  %v12332_v50 = vld [vmem:[#allocation61_spill] sm:$0xff]  ;;  %v11815_v32 = vand.u32 4294901760, %v10830_v10  ;;  %v10857_v55 = vand.u32 4294901760, %v5428_v24  ;;  %v12334_v11 = vld [vmem:[#allocation87_spill] sm:$0xff]  ;;  %v12335_v54 = vld [vmem:[#allocation90_spill] sm:$0xff] }
 0x349   : > { %5222 = vmatpush.msrb.mxu0 %v10490_v56  ;;  %5401 = vmatpush.msrb.mxu3 %v10502_v6  ;;  %v4341_v45 = vpop.f32.mrf.mxu3  ;;  %v5528_v28 = vsub.f32 %v10792_v46, %v11817_v13  ;;  %v10851_v53 = vsub.f32 %v5430_v34, %v10822_v25  ;;  %v2408_v56 = vadd.f32 %v12332_v50, %v2328_v49  ;;  %v5523_v6 = vand.u32 4294901760, %v5522_v35  ;;  %v5426_v49 = vld [vmem:[#allocation4 + $0x618] sm:$0xff]  ;;  %v12336_v35 = vld [vmem:[#allocation93_spill] sm:$0xff] }
 0x34a   : > { %5403 = vmatmul.f32.vlgmr.msrb.gmra.mxu3 %v10504_v31  ;;  %5512 = vmatpush.msra.mxu1 %v5511_v38  ;;  %v12333_v31 = vld [vmem:[#allocation77_spill] sm:$0xff]  ;;  %v3490_v47 = vadd.f32 %v12335_v54, %v12334_v11  ;;  %v10864_v34 = vsub.f32 %v5429_v26, %v10836_v57  ;;  %v10866_v27 = vand.u32 4294901760, %v5427_v61  ;;  %v10868_v45 = vadd.f32 %v2033_v9, %v1623_v42  ;;  %v12340_v11 = vld [vmem:[#allocation76_spill] sm:$0xff] }
 0x34b   : > { %5608 = vmatpush.msra.mxu2 %v10711_v37  ;;  %5667 = vmatpush.msra.mxu3 %v10667_v44  ;;  %v2751_v38 = vadd.f32 %v12333_v31, %v2703_v39  ;;  %v3126_v41 = vadd.f32 %v12336_v35, %v3065_v20  ;;  %v5534_v39 = vsub.f32 %v10815_v19, %v11816_v63  ;;  %v12338_v26 = vld [vmem:[#allocation105_spill] sm:$0xff]  ;;  %v5529_v42 = vand.u32 4294901760, %v5528_v28  ;;  %v5425_v20 = vld [vmem:[#allocation4 + $0x610] sm:$0xff]  ;;  %v12339_v31 = vld [vmem:[#allocation62_spill] sm:$0xff] }
 0x34c   : > { %5225 = vmatpush.msrb.mxu0 %v10517_v21  ;;  %5518 = vmatpush.msra.mxu1 %v5517_v48  ;;  %v12337_v21 = vld [vmem:[#allocation75_spill] sm:$0xff]  ;;  %v3551_v50 = vadd.f32 %v12338_v26, %v3490_v47  ;;  %v11819_v9 = vand.u32 4294901760, %v10851_v53  ;;  %v2646_v54 = vadd.f32 %v12340_v11, %v12339_v31  ;;  %v10891_v47 = vsub.f32 %v5428_v24, %v10857_v55  ;;  %v12342_v35 = vld [vmem:[#allocation78_spill] sm:$0xff]  ;;  %v12343_v24 = vld [vmem:[#allocation84_spill] sm:$0xff] }
 0x34d   : > { %5611 = vmatpush.msra.mxu2 %v10726_v29  ;;  %5669 = vmatpush.msra.mxu3 %v10681_v51  ;;  %v10877_v48 = vadd.f32 %v12337_v21, %v2285_v15  ;;  %v5540_v15 = vsub.f32 %v10830_v10, %v11815_v32  ;;  %v2831_v21 = vadd.f32 %v12342_v35, %v2751_v38  ;;  %v5424_v26 = vld [vmem:[#allocation4 + $0x608] sm:$0xff]  ;;  %v12344_v32 = vld [vmem:[#allocation96_spill] sm:$0xff]  ;;  %v10909_v38 = vand.u32 4294901760, %v5425_v20  ;;  %v12346_v35 = vld [vmem:[#allocation95_spill] sm:$0xff] }
 0x34e   : > { %5228 = vmatpush.msrb.mxu0 %v10528_v8  ;;  %5285 = vmatmul.f32.gmra.mxu1 %v5059_v40  ;;  %v10893_v8 = vand.u32 4294901760, %v5426_v49  ;;  %v12341_v40 = vld [vmem:[#allocation15_spill] sm:$0xff]  ;;  %v2708_v11 = vadd.f32 %v12343_v24, %v2646_v54  ;;  %v3174_v63 = vadd.f32 %v12344_v32, %v3126_v41  ;;  %v5546_v54 = vsub.f32 %v10851_v53, %v11819_v9  ;;  %v5423_v32 = vld [vmem:[#allocation4 + $0x600] sm:$0xff]  ;;  %v12352_v24 = vld [vmem:[#allocation100_spill] sm:$0xff] }
 0x34f   : > { %5231 = vmatmul.f32.vlgmr.msrb.gmra.mxu0 %v10525_v36  ;;  %5524 = vmatpush.msra.mxu1 %v5523_v6  ;;  %v2452_v28 = vadd.f32 %v12341_v40, %v2408_v56  ;;  %v11822_v36 = vand.u32 4294901760, %v10864_v34  ;;  %v10901_v6 = vsub.f32 %v5427_v61, %v10866_v27  ;;  %v5535_v56 = vand.u32 4294901760, %v5534_v39  ;;  %v12345_v40 = vld [vmem:[#allocation98_spill] sm:$0xff]  ;;  %v12353_v37 = vld [vmem:[#allocation103_spill] sm:$0xff] }
 0x350   : > { %5440 = vmatpush.msra.mxu0 %v10667_v44  ;;  %5614 = vmatpush.msra.mxu2 %v10742_v23  ;;  %v10903_v31 = vpop.f32.mrf.mxu1  ;;  %v3069_v13 = vadd.f32 %v12346_v35, %v12345_v40  ;;  %v3599_v61 = vadd.f32 %v12347_v30, %v3551_v50  ;;  %v10918_v41 = vld [vmem:[#allocation2 + $0x18] sm:$0xff]  ;;  %v5541_v39 = vand.u32 4294901760, %v5540_v15  ;;  %v10925_v30 = vsub.f32 %v5426_v49, %v10893_v8  ;;  %v10936_v15 = vld [vmem:[#allocation2 + $0x20] sm:$0xff] }
 0x351   : > { %5671 = vmatpush.msra.mxu3 %v10696_v33  ;;  %5363 = vmatmul.f32.gmra.mxu2 %v10561_v62  ;;  %v10927_v50 = vand.u32 4294901760, %v5424_v26  ;;  %v5552_v9 = vsub.f32 %v10864_v34, %v11822_v36  ;;  %v11827_v52 = vrot.slane %v10936_v15, 2  ;;  %v2461_v49 = vadd.f32 %v2452_v28, %v10832_v2  ;;  %v12349_v40 = vld [vmem:[#allocation82_spill] sm:$0xff]  ;;  %v12351_v23 = vld [vmem:[#allocation91_spill] sm:$0xff]  ;;  %v12354_v28 = vld [vmem:[#allocation97_spill] sm:$0xff] }
 0x352   : > { %5442 = vmatpush.msra.mxu0 %v10681_v51  ;;  %5530 = vmatpush.msra.mxu1 %v5529_v42  ;;  %v12348_v42 = vld [vmem:[#allocation79_spill] sm:$0xff]  ;;  %v3494_v29 = vadd.f32 %v12352_v24, %v12351_v23  ;;  %v3679_v0 = vadd.f32 %v12353_v37, %v3599_v61  ;;  %v5547_v2 = vand.u32 4294901760, %v5546_v54  ;;  %v12356_v37 = vld [vmem:[#allocation86_spill] sm:$0xff]  ;;  %v12357_v24 = vld [vmem:[#allocation109_spill] sm:$0xff]  ;;  %v12358_v54 = vand.u32 4294901760, %v10901_v6 }
 0x353   : > { %5617 = vmatpush.msra.mxu2 %v10764_v4  ;;  %5673 = vmatpush.msra.mxu3 %v10713_v18  ;;  %v3254_v35 = vadd.f32 %v12348_v42, %v3174_v63  ;;  %v2875_v4 = vadd.f32 %v12349_v40, %v2831_v21  ;;  %v10945_v63 = vand.u32 4294901760, %v5423_v32  ;;  %v12350_v42 = vld [vmem:[#allocation81_spill] sm:$0xff]  ;;  %v3131_v21 = vadd.f32 %v12354_v28, %v3069_v13 }
 0x354   : > { %5407 = vmatmul.f32.gmra.mxu3 %v10561_v62  ;;  %5444 = vmatpush.msra.mxu0 %v10696_v33  ;;  %v10943_v62 = vsub.f32 %v5425_v20, %v10909_v38  ;;  %v2757_v36 = vadd.f32 %v12350_v42, %v2708_v11  ;;  %v12355_v20 = vand.u32 4294901760, %v10891_v47  ;;  %v10960_v23 = vsub.f32 %v5424_v26, %v10927_v50  ;;  %v12359_v28 = vld [vmem:[#allocation65_spill] sm:$0xff] }
 0x355   : > { %5536 = vmatpush.msra.mxu1 %v5535_v56  ;;  %5620 = vmatpush.msra.mxu2 %v10792_v46  ;;  %v3298_v61 = vadd.f32 %v12356_v37, %v3254_v35  ;;  %v3556_v40 = vadd.f32 %v12357_v24, %v3494_v29  ;;  %v5553_v13 = vand.u32 4294901760, %v5552_v9  ;;  %v12360_v26 = vand.u32 4294901760, %v10624_v5  ;;  %v5859_v46 = vld [vmem:[#allocation4 + $0x6f0] sm:$0xff] }
 0x356   : > { %5675 = vmatpush.msra.mxu3 %v10734_v43  ;;  %5446 = vmatpush.msra.mxu0 %v10713_v18  ;;  %v5558_v56 = vsub.f32 %v10891_v47, %v12355_v20  ;;  %v2412_v20 = vadd.f32 %v12359_v28, %v10877_v48  ;;  %v10976_v35 = vsub.f32 %v5423_v32, %v10945_v63  ;;  %v12362_v48 = vld [vmem:[#allocation83_spill] sm:$0xff] }
 0x357   : > { %5542 = vmatpush.msra.mxu1 %v5541_v39  ;;  %5623 = vmatpush.msra.mxu2 %v10815_v19  ;;  %v5564_v39 = vsub.f32 %v10901_v6, %v12358_v54  ;;  %v2884_v37 = vadd.f32 %v2875_v4, %v2461_v49  ;;  %v2835_v24 = vadd.f32 %v12362_v48, %v2757_v36  ;;  %v12363_v54 = vld [vmem:[#allocation107_spill] sm:$0xff]  ;;  %v11834_v36 = vand.u32 4294901760, %v10960_v23 }
 0x358   : > { %5677 = vmatpush.msra.mxu3 %v10756_v59  ;;  %5236 = vmatmul.f32.gmra.mxu0 %v10584_v1  ;;  %v4522_v42 = vpop.f32.mrf.mxu2  ;;  %v12361_v1 = vrot.slane %v10918_v41, 2  ;;  %v3723_v28 = vadd.f32 %v12363_v54, %v3679_v0  ;;  %v5559_v11 = vand.u32 4294901760, %v5558_v56  ;;  %v12367_v56 = vand.u32 4294901760, %v10943_v62 }
 0x359   : > { %5291 = vmatmul.f32.gmra.mxu1 %v12360_v26  ;;  %5448 = vmatpush.msra.mxu0 %v10734_v43  ;;  %v5860_v26 = vld [vmem:[#allocation4 + $0x6f8] sm:$0xff]  ;;  %v10989_v32 = vpop.f32.mrf.mxu1  ;;  %v3307_v54 = vadd.f32 %v3298_v61, %v2884_v37  ;;  %v5565_v19 = vand.u32 4294901760, %v5564_v39 }
 0x35a   : > { %v10984_v9 = vsel %vm2466_vm6, %v12361_v1, %v11827_v52  ;;  %5548 = vmatpush.msra.mxu1 %v5547_v2  ;;  %5626 = vmatpush.msra.mxu2 %v10830_v10  ;;  %v4394_v29 = vpop.f32.mrf.mxu0  ;;  %v12364_v1 = vand.u32 4294901760, %v10925_v30  ;;  %v12365_v2 = vld [vmem:[#allocation99_spill] sm:$0xff]  ;;  %v12366_v52 = vld [vmem:[#allocation106_spill] sm:$0xff] }
 0x35b   : > { %5679 = vmatpush.msra.mxu3 %v10783_v58  ;;  %5367 = vmatmul.f32.gmra.mxu2 %v10603_v7  ;;  %v4395_v0 = vadd.f32 %v4394_v29, %v10698_v22  ;;  %v4566_v49 = vpop.f32.mrf.mxu3  ;;  %v3180_v48 = vadd.f32 %v12365_v2, %v3131_v21  ;;  %v3605_v10 = vadd.f32 %v12366_v52, %v3556_v40  ;;  %v11831_v22 = vand.u32 4294901760, %v10976_v35  ;;  %v12368_v52 = vld [vmem:[#allocation56_spill] sm:$0xff]  ;;  %v12369_v40 = vld [vmem:[#allocation89_spill] sm:$0xff] }
 0x35c   : > { %v5570_v4 = vsub.f32 %v10925_v30, %v12364_v1  ;;  %5450 = vmatpush.msra.mxu0 %v10756_v59  ;;  %5554 = vmatpush.msra.mxu1 %v5553_v13  ;;  %v5576_v1 = vsub.f32 %v10943_v62, %v12367_v56  ;;  %v11007_v29 = vand.u32 4294901760, %v5860_v26  ;;  %v2456_v61 = vadd.f32 %v12368_v52, %v2412_v20  ;;  %v12371_v52 = vld [vmem:[#allocation108_spill] sm:$0xff] }
 0x35d   : > { %5629 = vmatpush.msra.mxu2 %v10851_v53  ;;  %5681 = vmatpush.msra.mxu3 %v10799_v3  ;;  %v4443_v21 = vadd.f32 %v10903_v31, %v4395_v0  ;;  %v3258_v13 = vadd.f32 %v12369_v40, %v3180_v48  ;;  %v3732_v39 = vadd.f32 %v3723_v28, %v3307_v54  ;;  %v11018_v56 = vand.u32 4294901760, %v5859_v46  ;;  %v12370_v0 = vld [vmem:[#allocation85_spill] sm:$0xff]  ;;  %v12372_v54 = vld [vmem:[#allocation88_spill] sm:$0xff] }
 0x35e   : > { %5411 = vmatmul.f32.gmra.mxu3 %v10603_v7  ;;  %5452 = vmatpush.msra.mxu0 %v10783_v58  ;;  %v5571_v37 = vand.u32 4294901760, %v5570_v4  ;;  %v5582_v2 = vsub.f32 %v10960_v23, %v11834_v36  ;;  %v2879_v20 = vadd.f32 %v12370_v0, %v2835_v24  ;;  %v3683_v48 = vadd.f32 %v12371_v52, %v3605_v10  ;;  %v5858_v7 = vld [vmem:[#allocation4 + $0x6e8] sm:$0xff]  ;;  %v5856_v52 = vld [vmem:[#allocation4 + $0x6d8] sm:$0xff] }
 0x35f   : > { %5560 = vmatpush.msra.mxu1 %v5559_v11  ;;  %5632 = vmatpush.msra.mxu2 %v10864_v34  ;;  %v4523_v31 = vadd.f32 %v4522_v42, %v4443_v21  ;;  %v4154_v11 = vadd.f32 %v10704_v14, %v3732_v39  ;;  %v5577_v28 = vand.u32 4294901760, %v5576_v1  ;;  %v5588_v4 = vsub.f32 %v10976_v35, %v11831_v22  ;;  %v12374_v39 = vld [vmem:[#allocation110_spill] sm:$0xff]  ;;  %v5851_v22 = vld [vmem:[#allocation4 + $0x6b0] sm:$0xff] }
 0x360   : > { %5683 = vmatpush.msra.mxu3 %v10822_v25  ;;  %5454 = vmatpush.msra.mxu0 %v10799_v3  ;;  %v11030_v42 = vsub.f32 %v5860_v26, %v11007_v29  ;;  %v2462_v10 = vadd.f32 %v2456_v61, %v10868_v45  ;;  %v3302_v21 = vadd.f32 %v12372_v54, %v3258_v13  ;;  %v11037_v14 = vand.u32 4294901760, %v10984_v9  ;;  %v12384_v36 = vld [vmem:[#allocation18_spill] sm:$0xff] }
 0x361   : > { %5566 = vmatpush.msra.mxu1 %v5565_v19  ;;  %5635 = vmatpush.msra.mxu2 %v10891_v47  ;;  %v4567_v24 = vadd.f32 %v4566_v49, %v4523_v31  ;;  %v5857_v19 = vld [vmem:[#allocation4 + $0x6e0] sm:$0xff]  ;;  %v5583_v40 = vand.u32 4294901760, %v5582_v2  ;;  %v11040_v26 = vand.u32 4294901760, %v5858_v7  ;;  %v11043_v49 = vsub.f32 %v5859_v46, %v11018_v56 }
 0x362   : > { %5685 = vmatpush.msra.mxu3 %v10836_v57  ;;  %5241 = vmatmul.f32.gmra.mxu0 %v10624_v5  ;;  %v4526_v1 = vpop.f32.mrf.mxu2  ;;  %v2885_v13 = vadd.f32 %v2879_v20, %v2462_v10  ;;  %v3727_v5 = vadd.f32 %v12374_v39, %v3683_v48  ;;  %v11837_v46 = vand.u32 4294901760, %v11030_v42  ;;  %v11053_v2 = vand.u32 4294901760, %v5857_v19  ;;  %v5855_v10 = vld [vmem:[#allocation4 + $0x6d0] sm:$0xff] }
 0x363   : > { %5456 = vmatpush.msra.mxu0 %v10822_v25  ;;  %5572 = vmatpush.msra.mxu1 %v5571_v37  ;;  %v11045_v45 = vadd.f32 %v4567_v24, %v4154_v11  ;;  %v4399_v61 = vpop.f32.mrf.mxu0  ;;  %v5589_v37 = vand.u32 4294901760, %v5588_v4  ;;  %v5418_v4 = vrot.slane %v10456_v16, 2  ;;  %v11064_v24 = vsub.f32 %v5858_v7, %v11040_v26 }
 0x364   : > { %5638 = vmatpush.msra.mxu2 %v10901_v6  ;;  %5687 = vmatpush.msra.mxu3 %v10857_v55  ;;  %v4400_v31 = vadd.f32 %v4399_v61, %v10775_v12  ;;  %v4454_v0 = vpop.f32.mrf.mxu1  ;;  %v3308_v20 = vadd.f32 %v3302_v21, %v2885_v13  ;;  %v5472_v12 = vsub.f32 %v10984_v9, %v11037_v14  ;;  %v12375_v16 = vrot.slane %v10936_v15, 2  ;;  %v5854_v61 = vld [vmem:[#allocation4 + $0x6c8] sm:$0xff] }
 0x365   : > { %12373 = vst [vmem:[#allocation27_spill] sm:$0xff] %v11045_v45  ;;  %5458 = vmatpush.msra.mxu0 %v10836_v57  ;;  %5578 = vmatpush.msra.mxu1 %v5577_v28  ;;  %v4570_v11 = vpop.f32.mrf.mxu3  ;;  %v11835_v28 = vand.u32 4294901760, %v11043_v49  ;;  %v5920_v9 = vsub.f32 %v11030_v42, %v11837_v46  ;;  %v12419_v17 = vand.u32 4294901760, %v11043_v49 }
 0x366   : > { %5641 = vmatpush.msra.mxu2 %v10925_v30  ;;  %5689 = vmatpush.msra.mxu3 %v10866_v27  ;;  %v4449_v48 = vadd.f32 %v10989_v32, %v4400_v31  ;;  %v3733_v54 = vadd.f32 %v3727_v5, %v3308_v20  ;;  %v11068_v32 = vand.u32 4294901760, %v5856_v52  ;;  %v5419_v7 = vsel %vm2466_vm6, %v12375_v16, %v5418_v4 }
 0x367   : > { %5460 = vmatpush.msra.mxu0 %v10857_v55  ;;  %5584 = vmatpush.msra.mxu1 %v5583_v40  ;;  %v11079_v40 = vsub.f32 %v5857_v19, %v11053_v2  ;;  %v5473_v5 = vand.u32 4294901760, %v5472_v12  ;;  %v5926_v19 = vsub.f32 %v11043_v49, %v11835_v28  ;;  %v11833_v31 = vand.u32 4294901760, %v11064_v24 }
 0x368   : > { %5644 = vmatpush.msra.mxu2 %v10943_v62  ;;  %5691 = vmatpush.msra.mxu3 %v10893_v8  ;;  %v4527_v21 = vadd.f32 %v4526_v1, %v4449_v48  ;;  %v11083_v1 = vand.u32 4294901760, %v5855_v10  ;;  %v4155_v13 = vadd.f32 %v10773_v60, %v3733_v54  ;;  %v11094_v0 = vand.u32 4294901760, %v5419_v7 }
 0x369   : > { %5462 = vmatpush.msra.mxu0 %v10866_v27  ;;  %5590 = vmatpush.msra.mxu1 %v5589_v37  ;;  %v11097_v60 = vsub.f32 %v5856_v52, %v11068_v32  ;;  %v5853_v37 = vld [vmem:[#allocation4 + $0x6c0] sm:$0xff]  ;;  %v5921_v48 = vand.u32 4294901760, %v5920_v9  ;;  %v11832_v54 = vand.u32 4294901760, %v11079_v40  ;;  %v5927_v16 = vand.u32 4294901760, %v5926_v19 }
 0x36a   : > { %5647 = vmatpush.msra.mxu2 %v10960_v23  ;;  %5693 = vmatpush.msra.mxu3 %v10909_v38  ;;  %v4571_v39 = vadd.f32 %v4570_v11, %v4527_v21  ;;  %v11103_v21 = vand.u32 4294901760, %v5854_v61  ;;  %v11108_v52 = vsub.f32 %v5855_v10, %v11083_v1  ;;  %v5932_v9 = vsub.f32 %v11064_v24, %v11833_v31  ;;  %v5850_v31 = vld [vmem:[#allocation4 + $0x6a8] sm:$0xff] }
 0x36b   : > { %5592 = vmatmul.f32.vlgmr.msra.gmra.mxu1 %v11037_v14  ;;  %5464 = vmatpush.msra.mxu0 %v10893_v8  ;;  %12376 = vst [vmem:[#allocation102_spill] sm:$0xff] %v11097_v60  ;;  %v11836_v10 = vand.u32 4294901760, %v11097_v60  ;;  %v12385_v28 = vand.u32 4294901760, %v12384_v36 }
 0x36c   : > { %5793 = vmatpush.msrb.mxu1 %v10667_v44  ;;  %5650 = vmatpush.msra.mxu2 %v10976_v35  ;;  %v11099_v11 = vadd.f32 %v4571_v39, %v4155_v13  ;;  %v4530_v20 = vpop.f32.mrf.mxu2  ;;  %12378 = vst [vmem:[#allocation104_spill] sm:$0xff] %v11108_v52  ;;  %v5474_v13 = vsub.f32 %v5472_v12, %v5473_v5  ;;  %v11115_v39 = vand.u32 4294901760, %v5853_v37 }
 0x36d   : > { %5695 = vmatpush.msra.mxu3 %v10927_v50  ;;  %5653 = vmatmul.f32.vlgmr.msra.gmra.mxu2 %v5472_v12  ;;  %v4404_v44 = vpop.f32.mrf.mxu0  ;;  %v5852_v20 = vld [vmem:[#allocation4 + $0x6b8] sm:$0xff]  ;;  %v5938_v12 = vsub.f32 %v11079_v40, %v11832_v54  ;;  %v11125_v19 = vsub.f32 %v5854_v61, %v11103_v21  ;;  %v5933_v61 = vand.u32 4294901760, %v5932_v9  ;;  %v5849_v9 = vld [vmem:[#allocation4 + $0x6a0] sm:$0xff] }
 0x36e   : > { %12377 = vst [vmem:[#allocation31_spill] sm:$0xff] %v11099_v11  ;;  %5795 = vmatpush.msrb.mxu1 %v10681_v51  ;;  %5862 = vmatpush.msrb.mxu2 %v11007_v29  ;;  %v5480_v51 = vsub.f32 %v5419_v7, %v11094_v0  ;;  %v12381_v7 = vrot.slane %v10918_v41, 2  ;;  %v11138_v54 = vsub.f32 %v5853_v37, %v11115_v39  ;;  %v12387_v37 = vld [vmem:[#allocation17_spill] sm:$0xff] }
 0x36f   : > { %5466 = vmatpush.msra.mxu0 %v10909_v38  ;;  %5697 = vmatpush.msra.mxu3 %v10945_v63  ;;  %12379 = vst [vmem:[#allocation112_spill] sm:$0xff] %v11115_v39  ;;  %v4574_v44 = vpop.f32.mrf.mxu3  ;;  %v12388_v11 = vand.u32 4294901760, %v12387_v37  ;;  %v5847_v37 = vld [vmem:[#allocation4 + $0x690] sm:$0xff] }
 0x370   : > { %5701 = vmatmul.f32.vlgmr.msra.gmra.mxu3 %v5473_v5  ;;  %5797 = vmatpush.msrb.mxu1 %v10696_v33  ;;  %12380 = vst [vmem:[#allocation24_spill] sm:$0xff] %v11125_v19  ;;  %v11838_v33 = vand.u32 4294901760, %v11108_v52  ;;  %v5421_v5 = vsel %vm2466_vm6, %v5418_v4, %v12381_v7  ;;  %v5475_v44 = vand.u32 4294901760, %v5474_v13  ;;  %v5944_v4 = vsub.f32 %v11097_v60, %v11836_v10 }
 0x371   : > { %5864 = vmatpush.msrb.mxu2 %v11018_v56  ;;  %5922 = vmatpush.msrb.mxu3 %v5921_v48  ;;  %v11134_v48 = vand.u32 4294901760, %v5852_v20  ;;  %12382 = vst [vmem:[#allocation111_spill] sm:$0xff] %v11138_v54  ;;  %v11145_v7 = vand.u32 4294901760, %v5851_v22  ;;  %v11148_v13 = vand.u32 4294901760, %v5421_v5 }
 0x372   : > { %5468 = vmatpush.msra.mxu0 %v10927_v50  ;;  %5799 = vmatpush.msrb.mxu1 %v10713_v18  ;;  %v5481_v18 = vand.u32 4294901760, %v5480_v51  ;;  %v5950_v10 = vsub.f32 %v11108_v52, %v11838_v33  ;;  %v5945_v36 = vand.u32 4294901760, %v5944_v4  ;;  %v11169_v33 = vand.u32 4294901760, %v5849_v9 }
 0x373   : > { %5866 = vmatpush.msrb.mxu2 %v11040_v26  ;;  %5928 = vmatpush.msrb.mxu3 %v5927_v16  ;;  %v5939_v16 = vand.u32 4294901760, %v5938_v12  ;;  %12383 = vst [vmem:[#allocation28_spill] sm:$0xff] %v11148_v13  ;;  %v11158_v46 = vsub.f32 %v5852_v20, %v11134_v48  ;;  %v5848_v12 = vld [vmem:[#allocation4 + $0x698] sm:$0xff]  ;;  %v11167_v45 = vsub.f32 %v5851_v22, %v11145_v7  ;;  %v12390_v20 = vand.u32 4294901760, %v11125_v19 }
 0x374   : > { %5470 = vmatpush.msra.mxu0 %v10945_v63  ;;  %5596 = vmatmul.f32.gmra.mxu1 %v11094_v0  ;;  %v5951_v4 = vand.u32 4294901760, %v5950_v10  ;;  %v11184_v60 = vand.u32 4294901760, %v5848_v12 }
 0x375   : > { %5476 = vmatmul.f32.vlgmr.msra.gmra.mxu0 %v5475_v44  ;;  %5801 = vmatpush.msrb.mxu1 %v10734_v43  ;;  %12386 = vst [vmem:[#allocation113_spill] sm:$0xff] %v11158_v46  ;;  %v11160_v44 = vand.u32 4294901760, %v5850_v31  ;;  %v5488_v43 = vsub.f32 %v5421_v5, %v11148_v13  ;;  %v12393_v5 = vand.u32 4294901760, %v11138_v54 }
 0x376   : > { %5719 = vmatpush.msrb.mxu0 %v12385_v28  ;;  %5868 = vmatpush.msrb.mxu2 %v11053_v2  ;;  %v5482_v28 = vsub.f32 %v5480_v51, %v5481_v18  ;;  %12389 = vst [vmem:[#allocation29_spill] sm:$0xff] %v11167_v45 }
 0x377   : > { %5934 = vmatpush.msrb.mxu3 %v5933_v61  ;;  %5658 = vmatmul.f32.gmra.mxu2 %v5480_v51  ;;  %v5956_v61 = vsub.f32 %v11125_v19, %v12390_v20  ;;  %v12391_v51 = vld [vmem:[#allocation21_spill] sm:$0xff]  ;;  %v5962_v20 = vsub.f32 %v11138_v54, %v12393_v5  ;;  %v5489_v52 = vand.u32 4294901760, %v5488_v43  ;;  %v4749_v5 = vpop.f32.mrf.mxu1 }
 0x378   : > { %5723 = vmatpush.msrb.mxu0 %v12388_v11  ;;  %5803 = vmatpush.msrb.mxu1 %v10756_v59  ;;  %v12392_v22 = vand.u32 4294901760, %v12391_v51  ;;  %v5483_v10 = vand.u32 4294901760, %v5482_v28  ;;  %v11197_v11 = vand.u32 4294901760, %v5847_v37  ;;  %v5846_v59 = vld [vmem:[#allocation4 + $0x688] sm:$0xff] }
 0x379   : > { %5870 = vmatpush.msrb.mxu2 %v11068_v32  ;;  %5940 = vmatpush.msrb.mxu3 %v5939_v16  ;;  %v11182_v16 = vsub.f32 %v5850_v31, %v11160_v44  ;;  %v11195_v31 = vsub.f32 %v5849_v9, %v11169_v33  ;;  %v11206_v9 = vsub.f32 %v5848_v12, %v11184_v60  ;;  %v12401_v12 = vand.u32 4294901760, %v11167_v45 }
 0x37a   : > { %5707 = vmatmul.f32.gmra.mxu3 %v5481_v18  ;;  %5727 = vmatpush.msrb.mxu0 %v12392_v22  ;;  %v12394_v18 = vld [vmem:[#allocation16_spill] sm:$0xff]  ;;  %v5963_v22 = vand.u32 4294901760, %v5962_v20 }
 0x37b   : > { %5805 = vmatpush.msrb.mxu1 %v10783_v58  ;;  %5872 = vmatpush.msrb.mxu2 %v11083_v1  ;;  %v12395_v51 = vand.u32 4294901760, %v12394_v18  ;;  %v5957_v58 = vand.u32 4294901760, %v5956_v61  ;;  %v5845_v18 = vld [vmem:[#allocation4 + $0x680] sm:$0xff]  ;;  %v12404_v54 = vand.u32 4294901760, %v11182_v16 }
 0x37c   : > { %5946 = vmatpush.msrb.mxu3 %v5945_v36  ;;  %v12396_v36 = vand.u32 4294901760, %v11158_v46  ;;  %5600 = vmatmul.f32.gmra.mxu1 %v11148_v13  ;;  %v11228_v20 = vand.u32 4294901760, %v5845_v18  ;;  %v12402_v13 = vld [vmem:[#allocation22_spill] sm:$0xff] }
 0x37d   : > { %5731 = vmatpush.msrb.mxu0 %v12395_v51  ;;  %5807 = vmatpush.msrb.mxu1 %v10799_v3  ;;  %v12397_v51 = vrot.slane %v10936_v15, 3  ;;  %v12398_v3 = vrot.slane %v10918_v41, 3  ;;  %v12403_v19 = vand.u32 4294901760, %v12402_v13 }
 0x37e   : > { %5874 = vmatpush.msrb.mxu2 %v11103_v21  ;;  %5952 = vmatpush.msrb.mxu3 %v5951_v4  ;;  %v5968_v28 = vsub.f32 %v11158_v46, %v12396_v36  ;;  %v12399_v4 = vld [vmem:[#allocation19_spill] sm:$0xff]  ;;  %v11217_v36 = vand.u32 4294901760, %v5846_v59  ;;  %v5974_v46 = vsub.f32 %v11167_v45, %v12401_v12  ;;  %v5490_v45 = vsub.f32 %v5488_v43, %v5489_v52 }
 0x37f   : > { %5484 = vmatmul.f32.gmra.mxu0 %v5483_v10  ;;  %v5842_v61 = vsel %vm2889_vm7, %v12398_v3, %v12397_v51  ;;  %v12400_v10 = vand.u32 4294901760, %v12399_v4  ;;  %5809 = vmatpush.msrb.mxu1 %v10822_v25  ;;  %v11226_v51 = vsub.f32 %v5847_v37, %v11197_v11  ;;  %v4810_v25 = vpop.f32.mrf.mxu2  ;;  %v5980_v37 = vsub.f32 %v11182_v16, %v12404_v54 }
 0x380   : > { %5876 = vmatpush.msrb.mxu2 %v11115_v39  ;;  %v4633_v3 = vpop.f32.mrf.mxu0  ;;  %5958 = vmatpush.msrb.mxu3 %v5957_v58  ;;  %v11230_v4 = vand.u32 4294901760, %v5842_v61  ;;  %v5969_v12 = vand.u32 4294901760, %v5968_v28  ;;  %v5991_v58 = vand.u32 4294901760, %v11206_v9  ;;  %v11241_v39 = vsub.f32 %v5846_v59, %v11217_v36 }
 0x381   : > { %5735 = vmatpush.msrb.mxu0 %v12400_v10  ;;  %5663 = vmatmul.f32.gmra.mxu2 %v5488_v43  ;;  %v4750_v10 = vadd.f32 %v4749_v5, %v4633_v3  ;;  %v4858_v3 = vpop.f32.mrf.mxu3  ;;  %v12407_v43 = vand.u32 4294901760, %v11195_v31  ;;  %v5997_v54 = vand.u32 4294901760, %v11226_v51 }
 0x382   : > { %5811 = vmatpush.msrb.mxu1 %v10836_v57  ;;  %5878 = vmatpush.msrb.mxu2 %v11134_v48  ;;  %v5975_v57 = vand.u32 4294901760, %v5974_v46  ;;  %v11252_v59 = vsub.f32 %v5842_v61, %v11230_v4  ;;  %v12408_v46 = vld [vmem:[#allocation23_spill] sm:$0xff] }
 0x383   : > { %5739 = vmatpush.msrb.mxu0 %v12403_v19  ;;  %5964 = vmatpush.msrb.mxu3 %v5963_v22  ;;  %v4811_v5 = vadd.f32 %v4810_v25, %v4750_v10  ;;  %v12405_v19 = vld [vmem:[#allocation20_spill] sm:$0xff]  ;;  %v5986_v28 = vsub.f32 %v11195_v31, %v12407_v43  ;;  %v11255_v22 = vsub.f32 %v5845_v18, %v11228_v20  ;;  %v12409_v10 = vand.u32 4294901760, %v12408_v46 }
 0x384   : > { %5713 = vmatmul.f32.gmra.mxu3 %v5489_v52  ;;  %v12406_v13 = vand.u32 4294901760, %v12405_v19  ;;  %5813 = vmatpush.msrb.mxu1 %v10857_v55  ;;  %v5491_v25 = vand.u32 4294901760, %v5490_v45  ;;  %v5981_v19 = vand.u32 4294901760, %v5980_v37  ;;  %v5992_v55 = vsub.f32 %v11206_v9, %v5991_v58 }
 0x385   : > { %5880 = vmatpush.msrb.mxu2 %v11145_v7  ;;  %v11257_v52 = vadd.f32 %v4858_v3, %v4811_v5  ;;  %5970 = vmatpush.msrb.mxu3 %v5969_v12  ;;  %v6003_v18 = vand.u32 4294901760, %v11241_v39  ;;  %v5987_v61 = vand.u32 4294901760, %v5986_v28  ;;  %v5998_v45 = vsub.f32 %v11226_v51, %v5997_v54 }
 0x386   : > { %5743 = vmatpush.msrb.mxu0 %v12406_v13  ;;  %v6639_v13 = vld [vmem:[#allocation2 + $0x10] sm:$0xff]  ;;  %5815 = vmatpush.msrb.mxu1 %v10866_v27  ;;  %v12410_v12 = vrot.slane %v10936_v15, 3  ;;  %v12411_v5 = vand.u32 4294901760, %v10851_v53  ;;  %v5895_v27 = vand.u32 4294901760, %v11252_v59  ;;  %v6009_v3 = vand.u32 4294901760, %v11255_v22 }
 0x387   : > { %v5840_v43 = vrot.slane %v6639_v13, 3  ;;  %5882 = vmatpush.msrb.mxu2 %v11160_v44  ;;  %5976 = vmatpush.msrb.mxu3 %v5975_v57  ;;  %v4753_v57 = vpop.f32.mrf.mxu1  ;;  %v5993_v46 = vand.u32 4294901760, %v5992_v55  ;;  %v12412_v15 = vand.u32 4294901760, %v10864_v34  ;;  %v6004_v53 = vsub.f32 %v11241_v39, %v6003_v18 }
 0x388   : > { %5747 = vmatpush.msrb.mxu0 %v12409_v10  ;;  %5817 = vmatpush.msrb.mxu1 %v10893_v8  ;;  %v5999_v13 = vand.u32 4294901760, %v5998_v45  ;;  %v5896_v34 = vsub.f32 %v11252_v59, %v5895_v27  ;;  %v12414_v45 = vand.u32 4294901760, %v10901_v6  ;;  %v12416_v6 = vrot.slane %v10918_v41, 3 }
 0x389   : > { %5492 = vmatmul.f32.gmra.mxu0 %v5491_v25  ;;  %v5841_v37 = vsel %vm2889_vm7, %v12410_v12, %v5840_v43  ;;  %v4641_v28 = vpop.f32.mrf.mxu0  ;;  %5884 = vmatpush.msrb.mxu2 %v11169_v33  ;;  %v4815_v25 = vpop.f32.mrf.mxu2 }
 0x38a   : > { %5751 = vmatpush.msrb.mxu0 %v12411_v5  ;;  %5982 = vmatpush.msrb.mxu3 %v5981_v19  ;;  %v4754_v10 = vadd.f32 %v4753_v57, %v4641_v28  ;;  %v11286_v8 = vand.u32 4294901760, %v5841_v37  ;;  %v12413_v19 = vand.u32 4294901760, %v10891_v47  ;;  %v6005_v47 = vand.u32 4294901760, %v6004_v53 }
 0x38b   : > { %5819 = vmatpush.msrb.mxu1 %v10909_v38  ;;  %5886 = vmatpush.msrb.mxu2 %v11184_v60  ;;  %v6010_v38 = vsub.f32 %v11255_v22, %v6009_v3  ;;  %v4864_v55 = vpop.f32.mrf.mxu3  ;;  %v12415_v5 = vand.u32 4294901760, %v10925_v30  ;;  %v5897_v57 = vand.u32 4294901760, %v5896_v34  ;;  %v12417_v30 = vand.u32 4294901760, %v11030_v42  ;;  %v12428_v34 = vld [vmem:[#allocation112_spill] sm:$0xff] }
 0x38c   : > { %5755 = vmatpush.msrb.mxu0 %v12412_v15  ;;  %5988 = vmatpush.msrb.mxu3 %v5987_v61  ;;  %v4816_v12 = vadd.f32 %v4815_v25, %v4754_v10  ;;  %v12418_v10 = vand.u32 4294901760, %v10943_v62  ;;  %v12421_v62 = vand.u32 4294901760, %v11064_v24  ;;  %v12422_v25 = vand.u32 4294901760, %v10976_v35 }
 0x38d   : > { %5821 = vmatpush.msrb.mxu1 %v10927_v50  ;;  %5888 = vmatpush.msrb.mxu2 %v11197_v11  ;;  %v11305_v50 = vsub.f32 %v5841_v37, %v11286_v8  ;;  %v6011_v28 = vand.u32 4294901760, %v6010_v38 }
 0x38e   : > { %5759 = vmatpush.msrb.mxu0 %v12413_v19  ;;  %5994 = vmatpush.msrb.mxu3 %v5993_v46  ;;  %v11299_v61 = vadd.f32 %v4864_v55, %v4816_v12  ;;  %v12423_v12 = vand.u32 4294901760, %v11079_v40  ;;  %v12431_v55 = vld [vmem:[#allocation28_spill] sm:$0xff] }
 0x38f   : > { %5823 = vmatpush.msrb.mxu1 %v10945_v63  ;;  %5890 = vmatpush.msrb.mxu2 %v11217_v36  ;;  %v5843_v63 = vsel %vm2889_vm7, %v5840_v43, %v12416_v6  ;;  %v5903_v46 = vand.u32 4294901760, %v11305_v50  ;;  %v12420_v43 = vand.u32 4294901760, %v10960_v23 }
 0x390   : > { %5763 = vmatpush.msrb.mxu0 %v12414_v45  ;;  %6000 = vmatpush.msrb.mxu3 %v5999_v13  ;;  %v11323_v15 = vand.u32 4294901760, %v5843_v63 }
 0x391   : > { %5825 = vmatmul.f32.vlgmr.msrb.gmra.mxu1 %v11037_v14  ;;  %5892 = vmatpush.msrb.mxu2 %v11228_v20  ;;  %v5904_v41 = vsub.f32 %v11305_v50, %v5903_v46 }
 0x392   : > { %5767 = vmatpush.msrb.mxu0 %v12415_v5  ;;  %6089 = vmatpush.msra.mxu1 %v11007_v29  ;;  %v4757_v37 = vpop.f32.mrf.mxu1  ;;  %v11340_v53 = vsub.f32 %v5843_v63, %v11323_v15 }
 0x393   : > { %6006 = vmatpush.msrb.mxu3 %v6005_v47  ;;  %5898 = vmatmul.f32.vlgmr.msrb.gmra.mxu2 %v5897_v57  ;;  %v5905_v23 = vand.u32 4294901760, %v5904_v41  ;;  %v12438_v37 = vld [vmem:[#allocation27_spill] sm:$0xff] }
 0x394   : > { %6091 = vmatpush.msra.mxu1 %v11018_v56  ;;  %6141 = vmatpush.msra.mxu2 %v12417_v30  ;;  %v5911_v35 = vand.u32 4294901760, %v11340_v53 }
 0x395   : > { %5771 = vmatpush.msrb.mxu0 %v12418_v10  ;;  %6012 = vmatpush.msrb.mxu3 %v6011_v28  ;;  %v12434_v28 = vld [vmem:[#allocation113_spill] sm:$0xff]  ;;  %v12439_v10 = vand.u32 4294901760, %v11182_v16 }
 0x396   : > { %6014 = vmatmul.f32.vlgmr.msrb.gmra.mxu3 %v11230_v4  ;;  %6093 = vmatpush.msra.mxu1 %v11040_v26  ;;  %v12435_v6 = vand.u32 4294901760, %v12434_v28 }
 0x397   : > { %6145 = vmatpush.msra.mxu2 %v12419_v17  ;;  %6215 = vmatpush.msra.mxu3 %v11007_v29 }
 0x398   : > { %5775 = vmatpush.msrb.mxu0 %v12420_v43  ;;  %6095 = vmatpush.msra.mxu1 %v11053_v2  ;;  %v12440_v43 = vand.u32 4294901760, %v11195_v31 }
 0x399   : > { %6149 = vmatpush.msra.mxu2 %v12421_v62  ;;  %6217 = vmatpush.msra.mxu3 %v11018_v56 }
 0x39a   : > { %5779 = vmatpush.msrb.mxu0 %v12422_v25  ;;  %5829 = vmatmul.f32.gmra.mxu1 %v11094_v0  ;;  %v4820_v29 = vpop.f32.mrf.mxu2 }
 0x39b   : > { %5781 = vmatmul.f32.vlgmr.msrb.gmra.mxu0 %v11037_v14  ;;  %6097 = vmatpush.msra.mxu1 %v11068_v32  ;;  %v4649_v13 = vpop.f32.mrf.mxu0  ;;  %v12424_v14 = vld [vmem:[#allocation102_spill] sm:$0xff] }
 0x39c   : > { %6027 = vmatpush.msra.mxu0 %v11030_v42  ;;  %6153 = vmatpush.msra.mxu2 %v12423_v12  ;;  %v12425_v19 = vand.u32 4294901760, %v12424_v14  ;;  %v12426_v42 = vld [vmem:[#allocation104_spill] sm:$0xff]  ;;  %v4982_v5 = vpop.f32.mrf.mxu1 }
 0x39d   : > { %6219 = vmatpush.msra.mxu3 %v11040_v26  ;;  %5906 = vmatmul.f32.gmra.mxu2 %v5905_v23  ;;  %v4870_v56 = vpop.f32.mrf.mxu3  ;;  %v12427_v26 = vand.u32 4294901760, %v12426_v42 }
 0x39e   : > { %6030 = vmatpush.msra.mxu0 %v11043_v49  ;;  %6099 = vmatpush.msra.mxu1 %v11083_v1  ;;  %v5912_v49 = vsub.f32 %v11340_v53, %v5911_v35 }
 0x39f   : > { %6157 = vmatpush.msra.mxu2 %v12425_v19  ;;  %6221 = vmatpush.msra.mxu3 %v11053_v2  ;;  %v12429_v2 = vld [vmem:[#allocation24_spill] sm:$0xff] }
 0x3a0   : > { %6018 = vmatmul.f32.gmra.mxu3 %v11286_v8  ;;  %6033 = vmatpush.msra.mxu0 %v11064_v24  ;;  %v12430_v38 = vand.u32 4294901760, %v12429_v2  ;;  %v5913_v45 = vand.u32 4294901760, %v5912_v49 }
 0x3a1   : > { %6101 = vmatpush.msra.mxu1 %v11103_v21  ;;  %6161 = vmatpush.msra.mxu2 %v12427_v26 }
 0x3a2   : > { %6223 = vmatpush.msra.mxu3 %v11068_v32  ;;  %6036 = vmatpush.msra.mxu0 %v11079_v40  ;;  %v12432_v32 = vld [vmem:[#allocation111_spill] sm:$0xff] }
 0x3a3   : > { %6103 = vmatpush.msra.mxu1 %v12428_v34  ;;  %6165 = vmatpush.msra.mxu2 %v12430_v38  ;;  %v12433_v47 = vand.u32 4294901760, %v12432_v32 }
 0x3a4   : > { %6225 = vmatpush.msra.mxu3 %v11083_v1  ;;  %5785 = vmatmul.f32.gmra.mxu0 %v11094_v0  ;;  %v5055_v24 = vpop.f32.mrf.mxu2 }
 0x3a5   : > { %5833 = vmatmul.f32.gmra.mxu1 %v12431_v55  ;;  %6039 = vmatpush.msra.mxu0 %v12424_v14 }
 0x3a6   : > { %6105 = vmatpush.msra.mxu1 %v11134_v48  ;;  %6169 = vmatpush.msra.mxu2 %v12433_v47  ;;  %v4938_v40 = vpop.f32.mrf.mxu0 }
 0x3a7   : > { %6227 = vmatpush.msra.mxu3 %v11103_v21  ;;  %5914 = vmatmul.f32.gmra.mxu2 %v5913_v45  ;;  %v4939_v1 = vadd.f32 %v4938_v40, %v11257_v52  ;;  %v5171_v57 = vpop.f32.mrf.mxu3  ;;  %v12436_v21 = vld [vmem:[#allocation29_spill] sm:$0xff] }
 0x3a8   : > { %6042 = vmatpush.msra.mxu0 %v12426_v42  ;;  %6107 = vmatpush.msra.mxu1 %v11145_v7  ;;  %v11381_v0 = vadd.f32 %v5171_v57, %v5055_v24  ;;  %v12437_v52 = vand.u32 4294901760, %v12436_v21 }
 0x3a9   : > { %6173 = vmatpush.msra.mxu2 %v12435_v6  ;;  %6229 = vmatpush.msra.mxu3 %v12428_v34  ;;  %v4983_v63 = vadd.f32 %v4982_v5, %v4939_v1 }
 0x3aa   : > { %6022 = vmatmul.f32.gmra.mxu3 %v11323_v15  ;;  %6045 = vmatpush.msra.mxu0 %v12429_v2 }
 0x3ab   : > { %6109 = vmatpush.msra.mxu1 %v11160_v44  ;;  %6177 = vmatpush.msra.mxu2 %v12437_v52  ;;  %v11392_v30 = vadd.f32 %v4983_v63, %v12438_v37 }
 0x3ac   : > { %6231 = vmatpush.msra.mxu3 %v11134_v48  ;;  %6048 = vmatpush.msra.mxu0 %v12432_v32 }
 0x3ad   : > { %6111 = vmatpush.msra.mxu1 %v11169_v33  ;;  %6181 = vmatpush.msra.mxu2 %v12439_v10 }
 0x3ae   : > { %6233 = vmatpush.msra.mxu3 %v11145_v7  ;;  %5789 = vmatmul.f32.gmra.mxu0 %v12431_v55  ;;  %v5063_v17 = vpop.f32.mrf.mxu2  ;;  %v4986_v7 = vpop.f32.mrf.mxu1 }
 0x3af   : > { %6051 = vmatpush.msra.mxu0 %v12434_v28  ;;  %6113 = vmatpush.msra.mxu1 %v11184_v60  ;;  %v4942_v41 = vpop.f32.mrf.mxu0 }
 0x3b0   : > { %6185 = vmatpush.msra.mxu2 %v12440_v43  ;;  %6235 = vmatpush.msra.mxu3 %v11160_v44  ;;  %v4943_v48 = vadd.f32 %v4942_v41, %v11299_v61  ;;  %v12441_v44 = vld [vmem:[#allocation31_spill] sm:$0xff] }
 0x3b1   : > { %6054 = vmatpush.msra.mxu0 %v12436_v21  ;;  %6115 = vmatpush.msra.mxu1 %v11197_v11  ;;  %v5175_v62 = vpop.f32.mrf.mxu3 }
 0x3b2   : > { %6189 = vmatpush.msra.mxu2 %v5991_v58  ;;  %6237 = vmatpush.msra.mxu3 %v11169_v33  ;;  %v4987_v25 = vadd.f32 %v4986_v7, %v4943_v48  ;;  %v5176_v29 = vadd.f32 %v5175_v62, %v5063_v17 }
 0x3b3   : > { %6057 = vmatpush.msra.mxu0 %v11182_v16  ;;  %6117 = vmatpush.msra.mxu1 %v11217_v36 }
 0x3b4   : > { %6193 = vmatpush.msra.mxu2 %v5997_v54  ;;  %6239 = vmatpush.msra.mxu3 %v11184_v60  ;;  %v4993_v61 = vadd.f32 %v4987_v25, %v12441_v44 }
 0x3b5   : > { %6060 = vmatpush.msra.mxu0 %v11195_v31  ;;  %6119 = vmatpush.msra.mxu1 %v11228_v20 }
 0x3b6   : > { %6197 = vmatpush.msra.mxu2 %v6003_v18  ;;  %6241 = vmatpush.msra.mxu3 %v11197_v11 }
 0x3b7   : > { %6123 = vmatmul.f32.vlgmr.msra.gmra.mxu1 %v5895_v27  ;;  %6063 = vmatpush.msra.mxu0 %v11206_v9 }
 0x3b8   : > { %6201 = vmatpush.msra.mxu2 %v6009_v3  ;;  %6243 = vmatpush.msra.mxu3 %v11217_v36  ;;  %v5071_v60 = vpop.f32.mrf.mxu2  ;;  %v4990_v33 = vpop.f32.mrf.mxu1 }
 0x3b9   : > { %6203 = vmatmul.f32.vlgmr.msra.gmra.mxu2 %v11230_v4  ;;  %6066 = vmatpush.msra.mxu0 %v11226_v51 }
 0x3ba   : > { %6245 = vmatpush.msra.mxu3 %v11228_v20 }
 0x3bb   : > { %6247 = vmatmul.f32.vlgmr.msra.gmra.mxu3 %v11230_v4  ;;  %6069 = vmatpush.msra.mxu0 %v11241_v39  ;;  %v5179_v11 = vpop.f32.mrf.mxu3 }
 0x3bd   : > { %6072 = vmatpush.msra.mxu0 %v11255_v22 }
 0x3be   : > { %6075 = vmatmul.f32.vlgmr.msra.gmra.mxu0 %v11252_v59 }
 0x3bf   : > { %6129 = vmatmul.f32.gmra.mxu1 %v5903_v46 }
 0x3c1   : > { %6207 = vmatmul.f32.gmra.mxu2 %v11286_v8  ;;  %v4946_v16 = vpop.f32.mrf.mxu0 }
 0x3c2   : > { %v5280_v31 = vpop.f32.mrf.mxu1 }
 0x3c3   : > { %6251 = vmatmul.f32.gmra.mxu3 %v11286_v8 }
 0x3c6   : > { %6080 = vmatmul.f32.gmra.mxu0 %v11305_v50 }
 0x3c7   : > { %6135 = vmatmul.f32.gmra.mxu1 %v5911_v35 }
 0x3c9   : > { %6211 = vmatmul.f32.gmra.mxu2 %v11323_v15 }
 0x3ca   : > { %v5360_v39 = vpop.f32.mrf.mxu2 }
 0x3cb   : > { %6255 = vmatmul.f32.gmra.mxu3 %v11323_v15  ;;  %v5286_v36 = vpop.f32.mrf.mxu1 }
 0x3cc   : > { %v5232_v9 = vpop.f32.mrf.mxu0 }
 0x3cd   : > { %v5233_v51 = vadd.f32 %v5232_v9, %v11381_v0  ;;  %v5404_v20 = vpop.f32.mrf.mxu3 }
 0x3ce   : > { %6085 = vmatmul.f32.gmra.mxu0 %v11340_v53 }
 0x3cf   : > { %v5281_v4 = vadd.f32 %v5280_v31, %v5233_v51 }
 0x3d1   : > { %v5361_v58 = vadd.f32 %v5360_v39, %v5281_v4 }
 0x3d3   : > { %v5405_v54 = vadd.f32 %v5404_v20, %v5361_v58 }
 0x3d4   : > { %v5364_v59 = vpop.f32.mrf.mxu2 }
 0x3d5   : > { %v5414_v22 = vadd.f32 %v5405_v54, %v11392_v30  ;;  %v5237_v18 = vpop.f32.mrf.mxu0 }
 0x3d6   : > { %v5238_v27 = vadd.f32 %v5237_v18, %v5176_v29  ;;  %v5292_v3 = vpop.f32.mrf.mxu1 }
 0x3d7   : > { %v5408_v8 = vpop.f32.mrf.mxu3 }
 0x3d8   : > { %v5287_v50 = vadd.f32 %v5286_v36, %v5238_v27 }
 0x3da   : > { %v5365_v46 = vadd.f32 %v5364_v59, %v5287_v50 }
 0x3dc   : > { %v5409_v15 = vadd.f32 %v5408_v8, %v5365_v46 }
 0x3de   : > { %v5415_v23 = vadd.f32 %v5409_v15, %v4993_v61  ;;  %v5368_v13 = vpop.f32.mrf.mxu2 }
 0x3df   : > { %v5242_v12 = vpop.f32.mrf.mxu0 }
 0x3e1   : > { %v5412_v35 = vpop.f32.mrf.mxu3 }
 0x3e8   : > { %v5593_v56 = vpop.f32.mrf.mxu1 }
 0x3f0   : > { %v5654_v14 = vpop.f32.mrf.mxu2 }
 0x3f1   : > { %v5597_v19 = vpop.f32.mrf.mxu1 }
 0x3f2   : > { %v5477_v53 = vpop.f32.mrf.mxu0 }
 0x3f3   : > { %v5594_v42 = vadd.f32 %v5593_v56, %v5477_v53  ;;  %v5702_v26 = vpop.f32.mrf.mxu3 }
 0x3f5   : > { %v5655_v49 = vadd.f32 %v5654_v14, %v5594_v42 }
 0x3f7   : > { %v5703_v34 = vadd.f32 %v5702_v26, %v5655_v49 }
 0x3f9   : > { %v5601_v55 = vpop.f32.mrf.mxu1 }
 0x3fa   : > { %v5659_v2 = vpop.f32.mrf.mxu2 }
 0x3fc   : > { %v5485_v38 = vpop.f32.mrf.mxu0 }
 0x3fd   : > { %v5598_v24 = vadd.f32 %v5597_v19, %v5485_v38  ;;  %v5708_v45 = vpop.f32.mrf.mxu3 }
 0x3ff   : > { %v5660_v32 = vadd.f32 %v5659_v2, %v5598_v24 }
 0x401   : > { %v5709_v47 = vadd.f32 %v5708_v45, %v5660_v32  ;;  %v12442_v32 = vlaneseq }
 0x403   : > { %vm11449_vm12 = vcmp.lt.s32.totalorder %v12442_v32, 16  ;;  %vm11472_vm2 = vcmp.ge.s32.totalorder %v12442_v32, 16  ;;  %vm11477_vm3 = vcmp.lt.s32.totalorder %v12442_v32, 32  ;;  %vm11491_vm5 = vcmp.ge.s32.totalorder %v12442_v32, 32 }
 0x404   : > { %v5664_v40 = vpop.f32.mrf.mxu2  ;;  %vm6312_vm4 = vmand %vm11472_vm2, %vm11477_vm3  ;;  %vm11496_vm6 = vcmp.lt.s32.totalorder %v12442_v32, 48  ;;  %vm11501_vm7 = vcmp.ge.s32.totalorder %v12442_v32, 48  ;;  %vm11563_vm0 = vcmp.lt.s32.totalorder %v12442_v32, 112 }
 0x406   : > { %v5493_v5 = vpop.f32.mrf.mxu0 }
 0x407   : > { %v5714_v1 = vpop.f32.mrf.mxu3 }
 0x40e   : > { %v5826_v57 = vpop.f32.mrf.mxu1 }
 0x416   : > { %v5899_v0 = vpop.f32.mrf.mxu2 }
 0x417   : > { %v5830_v6 = vpop.f32.mrf.mxu1 }
 0x418   : > { %v5782_v28 = vpop.f32.mrf.mxu0 }
 0x419   : > { %v5783_v63 = vadd.f32 %v5782_v28, %v5703_v34  ;;  %v6015_v21 = vpop.f32.mrf.mxu3 }
 0x41a   : > { %v6016_v61 = vadd.f32 %v6015_v21, %v5899_v0 }
 0x41b   : > { %v5827_v52 = vadd.f32 %v5826_v57, %v5783_v63 }
 0x41d   : > { %v5836_v37 = vadd.f32 %v5827_v52, %v5414_v22 }
 0x420   : > { %v5907_v30 = vpop.f32.mrf.mxu2 }
 0x421   : > { %v5786_v10 = vpop.f32.mrf.mxu0 }
 0x422   : > { %v5787_v17 = vadd.f32 %v5786_v10, %v5709_v47  ;;  %v5834_v41 = vpop.f32.mrf.mxu1 }
 0x423   : > { %v6019_v43 = vpop.f32.mrf.mxu3 }
 0x424   : > { %v5831_v48 = vadd.f32 %v5830_v6, %v5787_v17  ;;  %v6020_v36 = vadd.f32 %v6019_v43, %v5907_v30 }
 0x426   : > { %v5837_v7 = vadd.f32 %v5831_v48, %v5415_v23 }
 0x42a   : > { %v5915_v62 = vpop.f32.mrf.mxu2 }
 0x42b   : > { %v5790_v25 = vpop.f32.mrf.mxu0 }
 0x42d   : > { %v6023_v29 = vpop.f32.mrf.mxu3 }
 0x434   : > { %v6124_v44 = vpop.f32.mrf.mxu1 }
 0x43b   : > { %v6076_v60 = vpop.f32.mrf.mxu0 }
 0x43c   : > { %v6077_v33 = vadd.f32 %v6076_v60, %v6016_v61  ;;  %v6130_v11 = vpop.f32.mrf.mxu1  ;;  %v6204_v16 = vpop.f32.mrf.mxu2 }
 0x43e   : > { %v6125_v31 = vadd.f32 %v6124_v44, %v6077_v33  ;;  %v6248_v39 = vpop.f32.mrf.mxu3 }
 0x440   : > { %v6205_v9 = vadd.f32 %v6204_v16, %v6125_v31 }
 0x442   : > { %v6249_v51 = vadd.f32 %v6248_v39, %v6205_v9 }
 0x443   : > { %v6081_v20 = vpop.f32.mrf.mxu0 }
 0x444   : > { %v6258_v4 = vadd.f32 %v6249_v51, %v5836_v37  ;;  %v6082_v58 = vadd.f32 %v6081_v20, %v6020_v36  ;;  %v6136_v54 = vpop.f32.mrf.mxu1  ;;  %v6208_v59 = vpop.f32.mrf.mxu2 }
 0x446   : > { %v6547_v22 = vmul.f32 -1.442695, %v6258_v4  ;;  %v6131_v18 = vadd.f32 %v6130_v11, %v6082_v58  ;;  %v6252_v27 = vpop.f32.mrf.mxu3 }
 0x448   : > { %6623 = vpow2.f32 %v6547_v22  ;;  %v6209_v3 = vadd.f32 %v6208_v59, %v6131_v18 }
 0x44a   : > { %v6253_v8 = vadd.f32 %v6252_v27, %v6209_v3 }
 0x44b   : > { %v6086_v50 = vpop.f32.mrf.mxu0 }
 0x44c   : > { %v6259_v46 = vadd.f32 %v6253_v8, %v5837_v7  ;;  %v6212_v15 = vpop.f32.mrf.mxu2 }
 0x44e   : > { %v6624_v23 = vpop.eup %6623  ;;  %v6548_v13 = vmul.f32 -1.442695, %v6259_v46  ;;  %v6256_v12 = vpop.f32.mrf.mxu3 }
 0x44f   : > { %v6266_v35 = vadd.f32 1.0, %v6624_v23 }
 0x450   : > { %6625 = vpow2.f32 %v6548_v13 }
 0x451   : > { %6627 = vrcp.f32 %v6266_v35  ;;  %v6279_v26 = vand.u32 2147483648, %v6266_v35  ;;  %v6277_v34 = vand.u32 2147483647, %v6266_v35  ;;  %vm6273_vm9 = vweird.f32 %v6266_v35 }
 0x453   : > { %v6280_v24 = vor.u32 1.1754944e-38, %v6279_v26  ;;  %vm6278_vm11 = vcmp.eq.f32.partialorder %v6277_v34, 8.507059e+37 }
 0x456   : > { %v6626_v56 = vpop.eup %6625 }
 0x457   : > { %v6628_v14 = vpop.eup %6627  ;;  %v6267_v53 = vadd.f32 1.0, %v6626_v56 }
 0x458   : > { %v6269_v19 = vmul.f32 %v6628_v14, %v6266_v35  ;;  %vm6274_vm8 = vweird.f32 %v6628_v14 }
 0x459   : > { %6629 = vrcp.f32 %v6267_v53  ;;  %vm6275_vm10 = vmor %vm6273_vm9, %vm6274_vm8  ;;  %v6294_v1 = vand.u32 2147483648, %v6267_v53  ;;  %v6292_v0 = vand.u32 2147483647, %v6267_v53  ;;  %vm6288_vm14 = vweird.f32 %v6267_v53 }
 0x45a   : > { %v6270_v42 = vsub.f32 1.0, %v6269_v19  ;;  %vm11506_vm8 = vcmp.lt.s32.totalorder %v12442_v32, 64  ;;  %vm6322_vm9 = vmand %vm11491_vm5, %vm11496_vm6  ;;  %vm6371_vm5 = vcmp.lt.s32.totalorder %v12442_v32, 128  ;;  %v6429_v19 = vld [vmem:[%s6899_s6] sm:$0xff] }
 0x45b   : > { %v6295_v6 = vor.u32 1.1754944e-38, %v6294_v1  ;;  %vm6293_vm1 = vcmp.eq.f32.partialorder %v6292_v0, 8.507059e+37  ;;  %vm12469_vm2 = vmand %vm11501_vm7, %vm11506_vm8 }
 0x45c   : > { %v6271_v49 = vmul.f32 %v6628_v14, %v6270_v42 }
 0x45e   : > { %v6272_v2 = vadd.f32 %v6628_v14, %v6271_v49 }
 0x45f   : > { %v6630_v38 = vpop.eup %6629 }
 0x460   : > { %v6276_v55 = vsel %vm6275_vm10, %v6628_v14, %v6272_v2  ;;  %v6284_v45 = vmul.f32 %v6630_v38, %v6267_v53  ;;  %vm6289_vm13 = vweird.f32 %v6630_v38  ;;  %vm11857_vm10 = vmand %vm11501_vm7, %vm11506_vm8  ;;  %vm12471_vm7 = vcmask 1043456  }
 0x461   : > { %v6281_v40 = vsel %vm6278_vm11, %v6280_v24, %v6276_v55  ;;  %vm6290_vm15 = vmor %vm6288_vm14, %vm6289_vm13  ;;  %vm11529_vm11 = vcmp.ge.s32.totalorder %v12442_v32, 64  ;;  %vm11548_vm14 = vcmp.ge.s32.totalorder %v12442_v32, 80 }
 0x462   : > { %6304 = vst [vmem:[#allocation1] sm:$0xff] %v6281_v40  ;;  %v6285_v5 = vsub.f32 1.0, %v6284_v45 }
 0x463   : > { %6302 = vst.msk [vmem:[#allocation3] sm:$0x1] %vm11449_vm12, %v6281_v40 }
 0x464   : > { %v6286_v57 = vmul.f32 %v6630_v38, %v6285_v5 }
 0x466   : > { %v6287_v28 = vadd.f32 %v6630_v38, %v6286_v57 }
 0x468   : > { %v6291_v63 = vsel %vm6290_vm15, %v6630_v38, %v6287_v28  ;;  %vm11553_vm15 = vcmp.lt.s32.totalorder %v12442_v32, 96 }
 0x469   : > { %v6306_v21 = vld [vmem:[#allocation1 + $0x1] ss:$9 sm:$0xff]  ;;  %v6296_v52 = vsel %vm6293_vm1, %v6295_v6, %v6291_v63  ;;  %vm11558_vm1 = vcmp.ge.s32.totalorder %v12442_v32, 96 }
 0x46a   : > { %6314 = vst [vmem:[#allocation1] sm:$0xff] %v6281_v40  ;;  %6307 = vrot.lane.b32.xlu1 %v6306_v21, %s6781_s15 }
 0x46b   : > { %6374 = vst.msk [vmem:[#allocation3 + $0x1] sm:$0x1] %vm11449_vm12, %v6296_v52  ;;  %vm11534_vm12 = vcmp.lt.s32.totalorder %v12442_v32, 80 }
 0x46c   : > { %vm11856_vm13 = vmand %vm11529_vm11, %vm11534_vm12 }
 0x46d   : > { %vm12470_vm3 = vmand %vm11529_vm11, %vm11534_vm12 }
 0x471   : > { %v6316_v37 = vld [vmem:[#allocation1 + $0x2] ss:$9 sm:$0xff] }
 0x472   : > { %6324 = vst [vmem:[#allocation1] sm:$0xff] %v6281_v40  ;;  %6317 = vrot.lane.b32.xlu0 %v6316_v37, %s6780_s14 }
 0x479   : > { %v6326_v30 = vld [vmem:[#allocation1 + $0x3] ss:$9 sm:$0xff] }
 0x47a   : > { %6327 = vrot.lane.b32.xlu2 %v6326_v30, %s6777_s7  ;;  %6334 = vst [vmem:[#allocation1] sm:$0xff] %v6281_v40 }
 0x481   : > { %v6336_v10 = vld [vmem:[#allocation1 + $0x4] ss:$9 sm:$0xff] }
 0x482   : > { %6337 = vrot.lane.b32.xlu1 %v6336_v10, %s6778_s8  ;;  %6344 = vst [vmem:[#allocation1] sm:$0xff] %v6281_v40 }
 0x489   : > { %v6346_v17 = vld [vmem:[#allocation1 + $0x5] ss:$9 sm:$0xff] }
 0x48a   : > { %6347 = vrot.lane.b32.xlu0 %v6346_v17, %s6775_s17  ;;  %6354 = vst [vmem:[#allocation1] sm:$0xff] %v6281_v40 }
 0x491   : > { %v6356_v41 = vld [vmem:[#allocation1 + $0x6] ss:$9 sm:$0xff] }
 0x492   : > { %6357 = vrot.lane.b32.xlu2 %v6356_v41, %s6779_s13  ;;  %6364 = vst [vmem:[#allocation1] sm:$0xff] %v6281_v40 }
 0x499   : > { %v6366_v43 = vld [vmem:[#allocation1 + $0x7] ss:$9 sm:$0xff] }
 0x49a   : > { %6376 = vst [vmem:[#allocation1] sm:$0xff] %v6296_v52 }
 0x4a1   : > { %v6378_v48 = vld [vmem:[#allocation1 + $0x1] ss:$9 sm:$0xff] }
 0x4a2   : > { %6379 = vrot.lane.b32.xlu2 %v6378_v48, %s6781_s15  ;;  %6383 = vst [vmem:[#allocation1] sm:$0xff] %v6296_v52 }
 0x4a9   : > { %v6385_v7 = vld [vmem:[#allocation1 + $0x2] ss:$9 sm:$0xff] }
 0x4aa   : > { %6386 = vrot.lane.b32.xlu1 %v6385_v7, %s6780_s14  ;;  %6390 = vst [vmem:[#allocation1] sm:$0xff] %v6296_v52 }
 0x4b1   : > { %v6392_v62 = vld [vmem:[#allocation1 + $0x3] ss:$9 sm:$0xff] }
 0x4b2   : > { %6393 = vrot.lane.b32.xlu0 %v6392_v62, %s6777_s7  ;;  %6397 = vst [vmem:[#allocation1] sm:$0xff] %v6296_v52 }
 0x4b9   : > { %v6399_v25 = vld [vmem:[#allocation1 + $0x4] ss:$9 sm:$0xff] }
 0x4ba   : > { %6400 = vrot.lane.b32.xlu2 %v6399_v25, %s6778_s8  ;;  %6404 = vst [vmem:[#allocation1] sm:$0xff] %v6296_v52 }
 0x4c1   : > { %v6406_v29 = vld [vmem:[#allocation1 + $0x5] ss:$9 sm:$0xff] }
 0x4c2   : > { %6407 = vrot.lane.b32.xlu1 %v6406_v29, %s6775_s17  ;;  %6411 = vst [vmem:[#allocation1] sm:$0xff] %v6296_v52 }
 0x4c9   : > { %v6413_v44 = vld [vmem:[#allocation1 + $0x6] ss:$9 sm:$0xff] }
 0x4ca   : > { %6367 = vrot.lane.b32.xlu1 %v6366_v43, %s6776_s27  ;;  %6414 = vrot.lane.b32.xlu0 %v6413_v44, %s6779_s13  ;;  %6418 = vst [vmem:[#allocation1] sm:$0xff] %v6296_v52 }
 0x4d1   : > { %v6420_v61 = vld [vmem:[#allocation1 + $0x7] ss:$9 sm:$0xff] }
 0x4d2   : > { %6421 = vrot.lane.b32.xlu2 %v6420_v61, %s6776_s27 }
 0x4d4   : > { %v6328_v51 = vpop.permute.xlu2 %6327 }
 0x4dc   : > { %v6308_v11 = vpop.permute.xlu1 %6307 }
 0x4dd   : > { %6313 = vst.msk [vmem:[#allocation3] sm:$0x1] %vm6312_vm4, %v6308_v11 }
 0x4e4   : > { %v6318_v36 = vpop.permute.xlu0 %6317 }
 0x4e5   : > { %6323 = vst.msk [vmem:[#allocation3] sm:$0x1] %vm6322_vm9, %v6318_v36 }
 0x4e6   : > { %6333 = vst.msk [vmem:[#allocation3] sm:$0x1] %vm11857_vm10, %v6328_v51  ;;  %vm6362_vm10 = vmand %vm11558_vm1, %vm11563_vm0 }
 0x4ec   : > { %v6358_v58 = vpop.permute.xlu2 %6357 }
 0x4f4   : > { %v6338_v54 = vpop.permute.xlu1 %6337 }
 0x4f5   : > { %6343 = vst.msk [vmem:[#allocation3] sm:$0x1] %vm11856_vm13, %v6338_v54  ;;  %vm6352_vm13 = vmand %vm11548_vm14, %vm11553_vm15 }
 0x4fc   : > { %v6348_v3 = vpop.permute.xlu0 %6347  ;;  %v6380_v8 = vpop.permute.xlu2 %6379 }
 0x4fd   : > { %6353 = vst.msk [vmem:[#allocation3] sm:$0x1] %vm6352_vm13, %v6348_v3 }
 0x4fe   : > { %6382 = vst.msk [vmem:[#allocation3 + $0x1] sm:$0x1] %vm6312_vm4, %v6380_v8  ;;  %vm6370_vm4 = vcmp.ge.s32.totalorder %v12442_v32, 112 }
 0x4ff   : > { %6363 = vst.msk [vmem:[#allocation3] sm:$0x1] %vm6362_vm10, %v6358_v58  ;;  %vm6372_vm6 = vmand %vm6370_vm4, %vm6371_vm5 }
 0x514   : > { %v6401_v15 = vpop.permute.xlu2 %6400 }
 0x51c   : > { %v6387_v50 = vpop.permute.xlu1 %6386 }
 0x51d   : > { %6389 = vst.msk [vmem:[#allocation3 + $0x1] sm:$0x1] %vm6322_vm9, %v6387_v50 }
 0x524   : > { %v6394_v46 = vpop.permute.xlu0 %6393 }
 0x525   : > { %6396 = vst.msk [vmem:[#allocation3 + $0x1] sm:$0x1] %vm12469_vm2, %v6394_v46 }
 0x526   : > { %6403 = vst.msk [vmem:[#allocation3 + $0x1] sm:$0x1] %vm12470_vm3, %v6401_v15 }
 0x52c   : > { %v6422_v35 = vpop.permute.xlu2 %6421 }
 0x534   : > { %v6408_v23 = vpop.permute.xlu1 %6407 }
 0x535   : > { %6410 = vst.msk [vmem:[#allocation3 + $0x1] sm:$0x1] %vm6352_vm13, %v6408_v23 }
 0x53c   : > { %v6368_v13 = vpop.permute.xlu1 %6367  ;;  %v6415_v12 = vpop.permute.xlu0 %6414 }
 0x53d   : > { %6373 = vst.msk [vmem:[#allocation3] sm:$0x1] %vm6372_vm6, %v6368_v13 }
 0x53e   : > { %6417 = vst.msk [vmem:[#allocation3 + $0x1] sm:$0x1] %vm6362_vm10, %v6415_v12 }
 0x53f   : > { %6424 = vst.msk [vmem:[#allocation3 + $0x1] sm:$0x1] %vm6372_vm6, %v6422_v35 }
 0x546   : > { %v6425_v56 = vld [vmem:[#allocation3] sm:$0x3] }
 0x547   : > { %v6428_v14 = vperm.slane %v6425_v56, 1  ;;  %v6427_v53 = vperm.slane %v6425_v56, 0 }
 0x549   : > { %v6430_v42 = vrot.slane %v6428_v14, 4 }
 0x54b   : > { %v6431_v26 = vsel %vm12471_vm7, %v6427_v53, %v6430_v42 }
 0x54c   : > { %v6433_v49 = vmul.f32 %v6431_v26, %v6429_v19 }
 0x54e   : > { %6436 = vst [vmem:[%s178_s22] sm:$0xff] %v6433_v49 }
 0x54f   : > { %6727 = shalt.err (!%p6724_p9)
}
 0x550   : > { %6562 = dma.vmem_to_hbm [thread:$0]  (%p6858_p13), %s6452_s24, 128, %s6454_s25, %s6438_s16  }
 0x551 PF: > { %s6465_s29 = sand.u32 1, %s6758_s9   ;;  %p12472_p10 = scmp.ge.s32.totalorder %s6770_s12, 2 }
 0x552   : > { %s6466_s8 = scalar_lea.sflag [#allocation6], %s6465_s29 }
 0x553   : > { %p6573_p11 = pnand %p12472_p10, %p6863_p4 }
 0x555   : > { %p6574_p0 = pneg %p6573_p11 }
 0x557   : > { %6753 = dma.done.wait (%p6574_p0), %s6466_s8, 128  }
 0x558   : > { %6755 = vsyncadd (%p6574_p0), %s6466_s8, 4294967168  ;;  %p16_p2 = scmp.ge.s32.totalorder %s6838_s23, 4   ;;  %s12473_s9 = smov %s6762_s10 }
 0x559   : > { %s12474_s10 = smov %s6766_s11  ;;  %s12475_s11 = smov %s6850_s26 }
 0x55a   : > { %s12476_s12 = smov %s6838_s23  ;;  %18 = sbr.rel (!%p16_p2) target bundleno = 6 (0x6), region = 108 }
 0x55f   :  { %6472 = vsyncpa [#allocation5], 1 }
 0x560   :  { %6474 = vsyncpa [#allocation5 + $0x1], 1 }
 0x561   :  { %6475 = vsyncpa [#allocation8], 1 }
 0x562   :  { %6477 = vsyncpa [#allocation8 + $0x1], 1 }
 0x563   :  { %6478 = vsyncpa [#allocation6], 1 }
 0x564   :  { %6480 = vsyncpa [#allocation6 + $0x1], 1 }

</bundles_post_ra>
